<compile_context>
chip_gen: v7x
topology: tpu7x:2x2x1
jax: 0.10.0
libtpu: 0.0.40
codegen_flags: <defaults>
</compile_context>

<pallas_src>
import functools
import math

import jax
import jax.numpy as jnp
from jax.experimental import pallas as pl
from jax.experimental.pallas import tpu as pltpu

VMEM_LIMIT = 32 * 1024 * 1024   # safe on v5e/v6e/v7x; blocks here are tiny


def _round_up(x, m):
    return (x + m - 1) // m * m


def _pick_rows(m, bytes_per_row, max_rows=1024, budget=1 << 20):
    """Largest row tile that divides m, is a multiple of 8 (or the full dim),
    and keeps one block within ~budget bytes."""
    cap = max(8, budget // max(bytes_per_row, 1))
    cap = min(cap, max_rows)
    if m <= cap:
        return m
    for t in range(min(cap, m), 7, -1):
        if t % 8 == 0 and m % t == 0:
            return t
    return m


def _pick_block(extent, bytes_per_slice, sublane_constrained, budget=1 << 21):
    """Tile size along the gridded (non-convolved) spatial axis."""
    cap = max(1, budget // max(bytes_per_slice, 1))
    if extent <= cap:
        return extent
    for t in range(min(cap, extent), 0, -1):
        if extent % t == 0 and ((not sublane_constrained) or t % 8 == 0):
            return t
    return extent


# --------------------------------------------------------------------------
# Pallas kernels
# --------------------------------------------------------------------------

def _axisconv_kernel(x_ref, w_ref, sh_ref, *rest, axis, dil, relu, has_res):
    """3-tap stride-1 conv along spatial `axis` (1=H, 2=W) of an NHWC block.

    x_ref : (1, Lp, TB, Cin)  [axis==1]  or  (1, TB, Lp, Cin)  [axis==2], bf16
    w_ref : (taps, Cin, Cout) bf16 (BN scale already folded in)
    sh_ref: (1, Cout) f32 (bias + BN shift)
    rest  : [residual_ref,] out_ref with block (1, dA, dB, Cout)
    """
    if has_res:
        r_ref, o_ref = rest
    else:
        (o_ref,) = rest
    taps = w_ref.shape[0]
    lo = o_ref.shape[axis]
    cout = o_ref.shape[-1]
    x = x_ref[0]
    acc = None
    d0 = d1 = 0
    for k in range(taps):                      # implicit im2col: shifted slices
        off = k * dil                          # static offsets (loop unrolled)
        if axis == 1:
            xt = x[off:off + lo, :, :]
        else:
            xt = x[:, off:off + lo, :]
        d0, d1, cin = xt.shape
        part = jnp.dot(xt.reshape(d0 * d1, cin), w_ref[k],
                       preferred_element_type=jnp.float32)
        acc = part if acc is None else acc + part
    y = acc + sh_ref[...]
    if has_res:
        y = y + r_ref[0].reshape(d0 * d1, cout).astype(jnp.float32)
    if relu:
        y = jnp.maximum(y, 0.0)
    o_ref[0] = y.reshape(d0, d1, cout).astype(o_ref.dtype)


def _matmul_kernel(a_ref, w_ref, sh_ref, o_ref, *, relu):
    y = jnp.dot(a_ref[...], w_ref[...],
                preferred_element_type=jnp.float32) + sh_ref[...]
    if relu:
        y = jnp.maximum(y, 0.0)
    o_ref[...] = y.astype(o_ref.dtype)


def _pool_bn_relu_kernel(a_ref, b_ref, c_ref, d_ref, s_ref, t_ref, o_ref):
    m = jnp.maximum(jnp.maximum(a_ref[...], b_ref[...]),
                    jnp.maximum(c_ref[...], d_ref[...])).astype(jnp.float32)
    o_ref[...] = jnp.maximum(m * s_ref[...] + t_ref[...], 0.0).astype(o_ref.dtype)


# --------------------------------------------------------------------------
# Pallas wrappers
# --------------------------------------------------------------------------

def conv1d_spatial(x, w, shift, *, axis, dil, relu, residual=None):
    """k-tap stride-1 conv along spatial `axis` of NHWC x (implicit im2col).
    Padding = dil*(taps-1)//2 on both sides (ERFNet 'same' padding)."""
    taps = w.shape[0]
    n, h, wdt, cin = x.shape
    cout = w.shape[-1]
    pad = dil * (taps - 1) // 2
    if axis == 1:
        xp = jnp.pad(x, ((0, 0), (pad, pad), (0, 0), (0, 0)))
        lp = h + 2 * pad
        extent = wdt
        tb = _pick_block(extent, lp * cin * 2, sublane_constrained=True)
        x_block = (1, lp, tb, cin)
        o_block = (1, h, tb, cout)

        def imap(i, b):
            return (i, 0, b, 0)
    else:
        xp = jnp.pad(x, ((0, 0), (0, 0), (pad, pad), (0, 0)))
        lp = wdt + 2 * pad
        extent = h
        tb = _pick_block(extent, lp * cin * 2, sublane_constrained=False)
        x_block = (1, tb, lp, cin)
        o_block = (1, tb, wdt, cout)

        def imap(i, b):
            return (i, b, 0, 0)

    in_specs = [
        pl.BlockSpec(x_block, imap),
        pl.BlockSpec(w.shape, lambda i, b: (0, 0, 0)),
        pl.BlockSpec((1, cout), lambda i, b: (0, 0)),
    ]
    args = [xp, w, shift]
    if residual is not None:
        in_specs.append(pl.BlockSpec(o_block, imap))
        args.append(residual)

    kernel = functools.partial(_axisconv_kernel, axis=axis, dil=dil,
                               relu=relu, has_res=residual is not None)
    return pl.pallas_call(
        kernel,
        out_shape=jax.ShapeDtypeStruct((n, h, wdt, cout), jnp.bfloat16),
        grid_spec=pltpu.PrefetchScalarGridSpec(
            num_scalar_prefetch=0,
            grid=(n, extent // tb),
            in_specs=in_specs,
            out_specs=pl.BlockSpec(o_block, imap),
        ),
        compiler_params=pltpu.CompilerParams(
            dimension_semantics=("parallel", "parallel"),
            vmem_limit_bytes=VMEM_LIMIT),
    )(*args)


def fused_matmul(a, wm, shift, *, relu, out_dtype):
    """out = maybe_relu(a @ wm + shift); bf16 operands, f32 accumulate,
    no K tiling (K <= 576 in ERFNet), grid over M only."""
    m, k = a.shape
    ncol = wm.shape[-1]
    mp = _round_up(m, 8)
    if mp != m:
        a = jnp.pad(a, ((0, mp - m), (0, 0)))
    tm = _pick_rows(mp, k * 2)
    out = pl.pallas_call(
        functools.partial(_matmul_kernel, relu=relu),
        out_shape=jax.ShapeDtypeStruct((mp, ncol), out_dtype),
        grid_spec=pltpu.PrefetchScalarGridSpec(
            num_scalar_prefetch=0,
            grid=(mp // tm,),
            in_specs=[
                pl.BlockSpec((tm, k), lambda i: (i, 0)),
                pl.BlockSpec((k, ncol), lambda i: (0, 0)),
                pl.BlockSpec((1, ncol), lambda i: (0, 0)),
            ],
            out_specs=pl.BlockSpec((tm, ncol), lambda i: (i, 0)),
        ),
        compiler_params=pltpu.CompilerParams(
            dimension_semantics=("parallel",),
            vmem_limit_bytes=VMEM_LIMIT),
    )(a, wm, shift)
    return out[:m] if mp != m else out


def maxpool2x2_bn_relu(x, scale, shift):
    """MaxPool2d(2,2) -> folded BN affine -> ReLU on NHWC bf16.
    Lane-dense (W*C) last dim, gridded over rows."""
    n, h, w, c = x.shape
    ho, wo = h // 2, w // 2
    lane = wo * c

    def flat(v):
        return v.reshape(n * ho, lane)

    a = flat(x[:, 0::2, 0::2, :])
    b = flat(x[:, 0::2, 1::2, :])
    cq = flat(x[:, 1::2, 0::2, :])
    d = flat(x[:, 1::2, 1::2, :])
    s = jnp.tile(scale, wo).reshape(1, lane).astype(jnp.float32)
    t = jnp.tile(shift, wo).reshape(1, lane).astype(jnp.float32)

    m = n * ho
    tm = _pick_rows(m, lane * 2)
    row_spec = pl.BlockSpec((tm, lane), lambda i: (i, 0))
    vec_spec = pl.BlockSpec((1, lane), lambda i: (0, 0))
    out = pl.pallas_call(
        _pool_bn_relu_kernel,
        out_shape=jax.ShapeDtypeStruct((m, lane), jnp.bfloat16),
        grid_spec=pltpu.PrefetchScalarGridSpec(
            num_scalar_prefetch=0,
            grid=(m // tm,),
            in_specs=[row_spec, row_spec, row_spec, row_spec, vec_spec, vec_spec],
            out_specs=row_spec,
        ),
        compiler_params=pltpu.CompilerParams(
            dimension_semantics=("parallel",),
            vmem_limit_bytes=VMEM_LIMIT),
    )(a, b, cq, d, s, t)
    return out.reshape(n, ho, wo, c)


# --------------------------------------------------------------------------
# Glue for the few non-separable convs
# --------------------------------------------------------------------------

def _im2col(x, kh, kw, stride, padding):
    """Materialised im2col; only used for the 3 stride-2 3x3 downsampler convs
    and the small 2x2 sub-pixel deconv patches (all other convs are implicit)."""
    sh, sw = stride
    (pt, pb), (pw0, pw1) = padding
    n, h, w, c = x.shape
    xp = jnp.pad(x, ((0, 0), (pt, pb), (pw0, pw1), (0, 0)))
    hp, wp = h + pt + pb, w + pw0 + pw1
    ho = (hp - kh) // sh + 1
    wo = (wp - kw) // sw + 1
    cols = []
    for ki in range(kh):
        for kj in range(kw):
            cols.append(xp[:, ki: ki + sh * (ho - 1) + 1: sh,
                            kj: kj + sw * (wo - 1) + 1: sw, :])
    patches = jnp.concatenate(cols, axis=-1)
    return patches.reshape(n * ho * wo, kh * kw * c), (n, ho, wo)


def _interleave_2x2(yp, n, h, w, cout):
    y = yp.reshape(n, h, w, 2, 2, cout)
    y = jnp.transpose(y, (0, 1, 3, 2, 4, 5))
    return y.reshape(n, 2 * h, 2 * w, cout)


# --------------------------------------------------------------------------
# Block forwards
# --------------------------------------------------------------------------

def downsampler_fwd(x, q):
    # conv branch: 3x3 stride-2 conv, BN folded (scale into W), ReLU fused.
    # TODO(synk): this branch still materialises a 9*Cin im2col (only 3 such
    # layers; the 68 separable convs use the implicit-im2col kernel).
    patches, (n, ho, wo) = _im2col(x, 3, 3, (2, 2), ((1, 1), (1, 1)))
    cc = q['Wm'].shape[-1]
    conv = fused_matmul(patches, q['Wm'], q['shift'], relu=True,
                        out_dtype=jnp.bfloat16).reshape(n, ho, wo, cc)
    pool = maxpool2x2_bn_relu(x, q['s_pool'], q['t_pool'])
    return jnp.concatenate([conv, pool], axis=-1)


def non_bottleneck_1d_fwd(x, q, dil):
    out = conv1d_spatial(x, q['w1'], q['b1'], axis=1, dil=1, relu=True)
    out = conv1d_spatial(out, q['w2'], q['b2'], axis=2, dil=1, relu=True)
    out = conv1d_spatial(out, q['w3'], q['b3'], axis=1, dil=dil, relu=True)
    # TODO(synk): Dropout2d is the identity here (inference/eval semantics).
    out = conv1d_spatial(out, q['w4'], q['b4'], axis=2, dil=dil, relu=True,
                         residual=x)
    return out


def upsampler_fwd(x, q):
    # ConvTranspose2d(3, s=2, p=1, op=1) via sub-pixel decomposition:
    # a 2x2 stride-1 conv with packed (4*Cin, 4*Cout) weight + interleave.
    n, h, w, _ = x.shape
    cout = q['Wm'].shape[-1] // 4
    patches, _ = _im2col(x, 2, 2, (1, 1), ((0, 1), (0, 1)))
    yp = fused_matmul(patches, q['Wm'], q['shift'], relu=True,
                      out_dtype=jnp.bfloat16)
    return _interleave_2x2(yp, n, h, w, cout)


def output_conv_fwd(x, q):
    # ConvTranspose2d(2, s=2, p=0) == per-pixel matmul into 4 output phases.
    n, h, w, cin = x.shape
    nc = q['Wm'].shape[-1] // 4
    yp = fused_matmul(x.reshape(n * h * w, cin), q['Wm'], q['shift'],
                      relu=False, out_dtype=jnp.float32)
    return _interleave_2x2(yp, n, h, w, nc)


def erfnet_forward(x_nchw, pp):
    x = jnp.transpose(x_nchw, (0, 2, 3, 1)).astype(jnp.bfloat16)  # NCHW -> NHWC
    # ----- Encoder -----
    x = downsampler_fwd(x, pp['enc_init'])
    x = downsampler_fwd(x, pp['enc_down1'])
    for q in pp['enc_nb64']:
        x = non_bottleneck_1d_fwd(x, q, 1)
    x = downsampler_fwd(x, pp['enc_down2'])
    for q, dil in zip(pp['enc_nb128'], (2, 4, 8, 16, 2, 4, 8, 16)):
        x = non_bottleneck_1d_fwd(x, q, dil)
    # ----- Decoder -----
    x = upsampler_fwd(x, pp['dec_up1'])
    for q in pp['dec_nb64']:
        x = non_bottleneck_1d_fwd(x, q, 1)
    x = upsampler_fwd(x, pp['dec_up2'])
    for q in pp['dec_nb16']:
        x = non_bottleneck_1d_fwd(x, q, 1)
    x = output_conv_fwd(x, pp['out'])
    return jnp.transpose(x, (0, 3, 1, 2)).astype(jnp.float32)  # back to NCHW


# --------------------------------------------------------------------------
# Parameter construction (deterministic, in-script) and one-time prep
# --------------------------------------------------------------------------

class KeyGen:
    def __init__(self, seed):
        self.key = jax.random.PRNGKey(seed)

    def __call__(self):
        self.key, sub = jax.random.split(self.key)
        return sub


def init_conv(kg, kh, kw, cin, cout):
    fan = kh * kw * cin
    w = jax.random.normal(kg(), (kh, kw, cin, cout), jnp.float32) * (0.3 / math.sqrt(fan))
    b = jax.random.normal(kg(), (cout,), jnp.float32) * 0.01
    return w, b


def init_bn(kg, c):
    return dict(
        gamma=1.0 + 0.1 * jax.random.normal(kg(), (c,), jnp.float32),
        beta=0.1 * jax.random.normal(kg(), (c,), jnp.float32),
        mean=0.1 * jax.random.normal(kg(), (c,), jnp.float32),
        var=1.0 + 0.1 * jnp.abs(jax.random.normal(kg(), (c,), jnp.float32)),
    )


def init_downsampler(kg, cin, cout):
    w, b = init_conv(kg, 3, 3, cin, cout - cin)
    return dict(W=w, b=b, bn=init_bn(kg, cout))


def init_non_bt(kg, ch):
    w1, b1 = init_conv(kg, 3, 1, ch, ch)
    w2, b2 = init_conv(kg, 1, 3, ch, ch)
    bn1 = init_bn(kg, ch)
    w3, b3 = init_conv(kg, 3, 1, ch, ch)
    w4, b4 = init_conv(kg, 1, 3, ch, ch)
    bn2 = init_bn(kg, ch)
    return dict(W1=w1, b1=b1, W2=w2, b2=b2, bn1=bn1,
                W3=w3, b3=b3, W4=w4, b4=b4, bn2=bn2)


def init_upsampler(kg, cin, cout):
    w, b = init_conv(kg, 3, 3, cin, cout)
    return dict(W=w, b=b, bn=init_bn(kg, cout))


def init_erfnet(seed, num_classes):
    kg = KeyGen(seed)
    p = {}
    p['enc_init'] = init_downsampler(kg, 3, 16)
    p['enc_down1'] = init_downsampler(kg, 16, 64)
    p['enc_nb64'] = [init_non_bt(kg, 64) for _ in range(5)]
    p['enc_down2'] = init_downsampler(kg, 64, 128)
    p['enc_nb128'] = [init_non_bt(kg, 128) for _ in range(8)]
    # encoder.output_conv exists in the PyTorch module but is unused (predict=False).
    p['dec_up1'] = init_upsampler(kg, 128, 64)
    p['dec_nb64'] = [init_non_bt(kg, 64) for _ in range(2)]
    p['dec_up2'] = init_upsampler(kg, 64, 16)
    p['dec_nb16'] = [init_non_bt(kg, 16) for _ in range(2)]
    wo, bo = init_conv(kg, 2, 2, 16, num_classes)
    p['out_W'], p['out_b'] = wo, bo
    return p


def prepare_params(params):
    """Fold BatchNorm / biases, pack sub-pixel deconv weights and cast all MXU
    operands to bf16 — once, outside the per-forward hot path."""
    f32, bf16 = jnp.float32, jnp.bfloat16

    def fold(bn, eps=1e-3):
        s = bn['gamma'] * jax.lax.rsqrt(bn['var'] + eps)
        t = bn['beta'] - bn['mean'] * s
        return s, t

    def prep_down(p):
        kh, kw, cin, cc = p['W'].shape
        s, t = fold(p['bn'])
        wm = (p['W'] * s[:cc]).reshape(kh * kw * cin, cc).astype(bf16)
        shift = (p['b'] * s[:cc] + t[:cc]).reshape(1, cc).astype(f32)
        return dict(Wm=wm, shift=shift,
                    s_pool=s[cc:].astype(f32), t_pool=t[cc:].astype(f32))

    def prep_nb(p):
        ch = p['W1'].shape[2]
        s1, t1 = fold(p['bn1'])
        s2, t2 = fold(p['bn2'])
        return dict(
            w1=p['W1'][:, 0].astype(bf16),
            b1=p['b1'].reshape(1, ch).astype(f32),
            w2=(p['W2'][0] * s1).astype(bf16),
            b2=(p['b2'] * s1 + t1).reshape(1, ch).astype(f32),
            w3=p['W3'][:, 0].astype(bf16),
            b3=p['b3'].reshape(1, ch).astype(f32),
            w4=(p['W4'][0] * s2).astype(bf16),
            b4=(p['b4'] * s2 + t2).reshape(1, ch).astype(f32),
        )

    def prep_up(p):
        _, _, cin, cout = p['W'].shape
        s, t = fold(p['bn'])
        wf = p['W'] * s                      # fold BN scale into the weight
        wp = jnp.zeros((2, 2, cin, 2, 2, cout), f32)
        # packed[dy, dx, :, py, px, :]: output phase (py,px) <- 2x2 patch tap (dy,dx)
        wp = wp.at[0, 0, :, 0, 0, :].set(wf[1, 1])
        wp = wp.at[0, 0, :, 0, 1, :].set(wf[1, 2])
        wp = wp.at[0, 1, :, 0, 1, :].set(wf[1, 0])
        wp = wp.at[0, 0, :, 1, 0, :].set(wf[2, 1])
        wp = wp.at[1, 0, :, 1, 0, :].set(wf[0, 1])
        wp = wp.at[0, 0, :, 1, 1, :].set(wf[2, 2])
        wp = wp.at[0, 1, :, 1, 1, :].set(wf[2, 0])
        wp = wp.at[1, 0, :, 1, 1, :].set(wf[0, 2])
        wp = wp.at[1, 1, :, 1, 1, :].set(wf[0, 0])
        wm = wp.reshape(4 * cin, 4 * cout).astype(bf16)
        shift = jnp.tile(p['b'] * s + t, 4).reshape(1, 4 * cout).astype(f32)
        return dict(Wm=wm, shift=shift)

    def prep_out(w, b):
        _, _, cin, nc = w.shape
        wm = jnp.transpose(w, (2, 0, 1, 3)).reshape(cin, 4 * nc).astype(bf16)
        shift = jnp.tile(b, 4).reshape(1, 4 * nc).astype(f32)
        return dict(Wm=wm, shift=shift)

    return {
        'enc_init': prep_down(params['enc_init']),
        'enc_down1': prep_down(params['enc_down1']),
        'enc_nb64': [prep_nb(q) for q in params['enc_nb64']],
        'enc_down2': prep_down(params['enc_down2']),
        'enc_nb128': [prep_nb(q) for q in params['enc_nb128']],
        'dec_up1': prep_up(params['dec_up1']),
        'dec_nb64': [prep_nb(q) for q in params['dec_nb64']],
        'dec_up2': prep_up(params['dec_up2']),
        'dec_nb16': [prep_nb(q) for q in params['dec_nb16']],
        'out': prep_out(params['out_W'], params['out_b']),
    }


# --------------------------------------------------------------------------

if __name__ == "__main__":
    NUM_CLASSES = 4
    B, C, H, W = 2, 3, 16, 16   # ERFNet needs 3-channel input, even spatial dims

    params = init_erfnet(seed=1234, num_classes=NUM_CLASSES)
    pp = prepare_params(params)
    x = jax.random.normal(jax.random.PRNGKey(0), (B, C, H, W), jnp.float32)

    fwd = jax.jit(erfnet_forward)
    out = jax.block_until_ready(fwd(x, pp))

    assert out.shape == (B, NUM_CLASSES, H, W), out.shape
    assert bool(jnp.all(jnp.isfinite(out)))
    print("KERNEL_OK")
</pallas_src>

<mosaic_0001>
module attributes {stable_mosaic.version = 11 : i64} {
  func.func @_pool_bn_relu_kernel(%arg0: i32, %arg1: memref<16x24xbf16, #tpu.memory_space<vmem>>, %arg2: memref<16x24xbf16, #tpu.memory_space<vmem>>, %arg3: memref<16x24xbf16, #tpu.memory_space<vmem>>, %arg4: memref<16x24xbf16, #tpu.memory_space<vmem>>, %arg5: memref<1x24xf32, #tpu.memory_space<vmem>>, %arg6: memref<1x24xf32, #tpu.memory_space<vmem>>, %arg7: memref<16x24xbf16, #tpu.memory_space<vmem>>) attributes {dimension_semantics = [#tpu.dimension_semantics<parallel>], iteration_bounds = array<i64: 1>, scalar_prefetch = 0 : i64, scratch_operands = 0 : i64, tpu.core_type = #tpu.core_type<tc>, window_params = [{transform_indices = @transform_0, window_bounds = array<i64: 16, 24>}, {transform_indices = @transform_1, window_bounds = array<i64: 16, 24>}, {transform_indices = @transform_2, window_bounds = array<i64: 16, 24>}, {transform_indices = @transform_3, window_bounds = array<i64: 16, 24>}, {pipeline_mode = #tpu.pipeline_mode<synchronous>, transform_indices = @transform_4, window_bounds = array<i64: 1, 24>}, {pipeline_mode = #tpu.pipeline_mode<synchronous>, transform_indices = @transform_5, window_bounds = array<i64: 1, 24>}, {transform_indices = @transform_6, window_bounds = array<i64: 16, 24>}]} {
    %c0 = arith.constant 0 : index
    %c0_0 = arith.constant 0 : index
    %0 = vector.load %arg1[%c0, %c0_0] : memref<16x24xbf16, #tpu.memory_space<vmem>>, vector<16x24xbf16>
    %c0_1 = arith.constant 0 : index
    %c0_2 = arith.constant 0 : index
    %1 = vector.load %arg2[%c0_1, %c0_2] : memref<16x24xbf16, #tpu.memory_space<vmem>>, vector<16x24xbf16>
    %2 = arith.maximumf %0, %1 : vector<16x24xbf16>
    %c0_3 = arith.constant 0 : index
    %c0_4 = arith.constant 0 : index
    %3 = vector.load %arg3[%c0_3, %c0_4] : memref<16x24xbf16, #tpu.memory_space<vmem>>, vector<16x24xbf16>
    %c0_5 = arith.constant 0 : index
    %c0_6 = arith.constant 0 : index
    %4 = vector.load %arg4[%c0_5, %c0_6] : memref<16x24xbf16, #tpu.memory_space<vmem>>, vector<16x24xbf16>
    %5 = arith.maximumf %3, %4 : vector<16x24xbf16>
    %6 = arith.maximumf %2, %5 : vector<16x24xbf16>
    %7 = arith.extf %6 : vector<16x24xbf16> to vector<16x24xf32>
    %c0_7 = arith.constant 0 : index
    %c0_8 = arith.constant 0 : index
    %8 = vector.load %arg5[%c0_7, %c0_8] : memref<1x24xf32, #tpu.memory_space<vmem>>, vector<1x24xf32>
    %9 = vector.broadcast %8 : vector<1x24xf32> to vector<16x24xf32>
    %10 = arith.mulf %7, %9 : vector<16x24xf32>
    %c0_9 = arith.constant 0 : index
    %c0_10 = arith.constant 0 : index
    %11 = vector.load %arg6[%c0_9, %c0_10] : memref<1x24xf32, #tpu.memory_space<vmem>>, vector<1x24xf32>
    %12 = vector.broadcast %11 : vector<1x24xf32> to vector<16x24xf32>
    %13 = arith.addf %10, %12 : vector<16x24xf32>
    %cst = arith.constant 0.000000e+00 : f32
    %14 = vector.broadcast %cst : f32 to vector<16x24xf32>
    %15 = arith.maximumf %13, %14 : vector<16x24xf32>
    %16 = arith.truncf %15 : vector<16x24xf32> to vector<16x24xbf16>
    %c0_11 = arith.constant 0 : index
    %c0_12 = arith.constant 0 : index
    %17 = vector.load %arg7[%c0_11, %c0_12] : memref<16x24xbf16, #tpu.memory_space<vmem>>, vector<16x24xbf16>
    tpu.vector_store %arg7[%c0_11, %c0_12], %16 {strides = array<i32>} : memref<16x24xbf16, #tpu.memory_space<vmem>>, vector<16x24xbf16>,
    return
  }
  func.func @transform_0(%arg0: i32) -> (i32, i32) {
    %c0_i32 = arith.constant 0 : i32
    %c0_i32_0 = arith.constant 0 : i32
    return %arg0, %c0_i32 : i32, i32
  }
  func.func @transform_1(%arg0: i32) -> (i32, i32) {
    %c0_i32 = arith.constant 0 : i32
    %c0_i32_0 = arith.constant 0 : i32
    return %arg0, %c0_i32 : i32, i32
  }
  func.func @transform_2(%arg0: i32) -> (i32, i32) {
    %c0_i32 = arith.constant 0 : i32
    %c0_i32_0 = arith.constant 0 : i32
    return %arg0, %c0_i32 : i32, i32
  }
  func.func @transform_3(%arg0: i32) -> (i32, i32) {
    %c0_i32 = arith.constant 0 : i32
    %c0_i32_0 = arith.constant 0 : i32
    return %arg0, %c0_i32 : i32, i32
  }
  func.func @transform_4(%arg0: i32) -> (i32, i32) {
    %c0_i32 = arith.constant 0 : i32
    %c0_i32_0 = arith.constant 0 : i32
    %c0_i32_1 = arith.constant 0 : i32
    return %c0_i32, %c0_i32_0 : i32, i32
  }
  func.func @transform_5(%arg0: i32) -> (i32, i32) {
    %c0_i32 = arith.constant 0 : i32
    %c0_i32_0 = arith.constant 0 : i32
    %c0_i32_1 = arith.constant 0 : i32
    return %c0_i32, %c0_i32_0 : i32, i32
  }
  func.func @transform_6(%arg0: i32) -> (i32, i32) {
    %c0_i32 = arith.constant 0 : i32
    %c0_i32_0 = arith.constant 0 : i32
    return %arg0, %c0_i32 : i32, i32
  }
}

module attributes {stable_mosaic.version = 11 : i64} {
  func.func @_matmul_kernel(%arg0: i32, %arg1: memref<128x27xbf16, #tpu.memory_space<vmem>>, %arg2: memref<27x13xbf16, #tpu.memory_space<vmem>>, %arg3: memref<1x13xf32, #tpu.memory_space<vmem>>, %arg4: memref<128x13xbf16, #tpu.memory_space<vmem>>) attributes {dimension_semantics = [#tpu.dimension_semantics<parallel>], iteration_bounds = array<i64: 1>, scalar_prefetch = 0 : i64, scratch_operands = 0 : i64, tpu.core_type = #tpu.core_type<tc>, window_params = [{transform_indices = @transform_0, window_bounds = array<i64: 128, 27>}, {pipeline_mode = #tpu.pipeline_mode<synchronous>, transform_indices = @transform_1, window_bounds = array<i64: 27, 13>}, {pipeline_mode = #tpu.pipeline_mode<synchronous>, transform_indices = @transform_2, window_bounds = array<i64: 1, 13>}, {transform_indices = @transform_3, window_bounds = array<i64: 128, 13>}]} {
    %c0 = arith.constant 0 : index
    %c0_0 = arith.constant 0 : index
    %0 = vector.load %arg1[%c0, %c0_0] : memref<128x27xbf16, #tpu.memory_space<vmem>>, vector<128x27xbf16>
    %c0_1 = arith.constant 0 : index
    %c0_2 = arith.constant 0 : index
    %1 = vector.load %arg2[%c0_1, %c0_2] : memref<27x13xbf16, #tpu.memory_space<vmem>>, vector<27x13xbf16>
    %cst = arith.constant dense<0.000000e+00> : vector<128x13xf32>
    %2 = tpu.matmul %0, %1, %cst {dimension_numbers = #tpu.dot_dimension_numbers<[1], [0], [0], [1], [0, 0, 1, 1], [], []>} : vector<128x27xbf16>, vector<27x13xbf16>, vector<128x13xf32> -> vector<128x13xf32>
    %c0_3 = arith.constant 0 : index
    %c0_4 = arith.constant 0 : index
    %3 = vector.load %arg3[%c0_3, %c0_4] : memref<1x13xf32, #tpu.memory_space<vmem>>, vector<1x13xf32>
    %4 = vector.broadcast %3 : vector<1x13xf32> to vector<128x13xf32>
    %5 = arith.addf %2, %4 : vector<128x13xf32>
    %cst_5 = arith.constant 0.000000e+00 : f32
    %6 = vector.broadcast %cst_5 : f32 to vector<128x13xf32>
    %7 = arith.maximumf %5, %6 : vector<128x13xf32>
    %8 = arith.truncf %7 : vector<128x13xf32> to vector<128x13xbf16>
    %c0_6 = arith.constant 0 : index
    %c0_7 = arith.constant 0 : index
    %9 = vector.load %arg4[%c0_6, %c0_7] : memref<128x13xbf16, #tpu.memory_space<vmem>>, vector<128x13xbf16>
    tpu.vector_store %arg4[%c0_6, %c0_7], %8 {strides = array<i32>} : memref<128x13xbf16, #tpu.memory_space<vmem>>, vector<128x13xbf16>,
    return
  }
  func.func @transform_0(%arg0: i32) -> (i32, i32) {
    %c0_i32 = arith.constant 0 : i32
    %c0_i32_0 = arith.constant 0 : i32
    return %arg0, %c0_i32 : i32, i32
  }
  func.func @transform_1(%arg0: i32) -> (i32, i32) {
    %c0_i32 = arith.constant 0 : i32
    %c0_i32_0 = arith.constant 0 : i32
    %c0_i32_1 = arith.constant 0 : i32
    return %c0_i32, %c0_i32_0 : i32, i32
  }
  func.func @transform_2(%arg0: i32) -> (i32, i32) {
    %c0_i32 = arith.constant 0 : i32
    %c0_i32_0 = arith.constant 0 : i32
    %c0_i32_1 = arith.constant 0 : i32
    return %c0_i32, %c0_i32_0 : i32, i32
  }
  func.func @transform_3(%arg0: i32) -> (i32, i32) {
    %c0_i32 = arith.constant 0 : i32
    %c0_i32_0 = arith.constant 0 : i32
    return %arg0, %c0_i32 : i32, i32
  }
}

module attributes {stable_mosaic.version = 11 : i64} {
  func.func @_pool_bn_relu_kernel(%arg0: i32, %arg1: memref<8x64xbf16, #tpu.memory_space<vmem>>, %arg2: memref<8x64xbf16, #tpu.memory_space<vmem>>, %arg3: memref<8x64xbf16, #tpu.memory_space<vmem>>, %arg4: memref<8x64xbf16, #tpu.memory_space<vmem>>, %arg5: memref<1x64xf32, #tpu.memory_space<vmem>>, %arg6: memref<1x64xf32, #tpu.memory_space<vmem>>, %arg7: memref<8x64xbf16, #tpu.memory_space<vmem>>) attributes {dimension_semantics = [#tpu.dimension_semantics<parallel>], iteration_bounds = array<i64: 1>, scalar_prefetch = 0 : i64, scratch_operands = 0 : i64, tpu.core_type = #tpu.core_type<tc>, window_params = [{transform_indices = @transform_0, window_bounds = array<i64: 8, 64>}, {transform_indices = @transform_1, window_bounds = array<i64: 8, 64>}, {transform_indices = @transform_2, window_bounds = array<i64: 8, 64>}, {transform_indices = @transform_3, window_bounds = array<i64: 8, 64>}, {pipeline_mode = #tpu.pipeline_mode<synchronous>, transform_indices = @transform_4, window_bounds = array<i64: 1, 64>}, {pipeline_mode = #tpu.pipeline_mode<synchronous>, transform_indices = @transform_5, window_bounds = array<i64: 1, 64>}, {transform_indices = @transform_6, window_bounds = array<i64: 8, 64>}]} {
    %c0 = arith.constant 0 : index
    %c0_0 = arith.constant 0 : index
    %0 = vector.load %arg1[%c0, %c0_0] : memref<8x64xbf16, #tpu.memory_space<vmem>>, vector<8x64xbf16>
    %c0_1 = arith.constant 0 : index
    %c0_2 = arith.constant 0 : index
    %1 = vector.load %arg2[%c0_1, %c0_2] : memref<8x64xbf16, #tpu.memory_space<vmem>>, vector<8x64xbf16>
    %2 = arith.maximumf %0, %1 : vector<8x64xbf16>
    %c0_3 = arith.constant 0 : index
    %c0_4 = arith.constant 0 : index
    %3 = vector.load %arg3[%c0_3, %c0_4] : memref<8x64xbf16, #tpu.memory_space<vmem>>, vector<8x64xbf16>
    %c0_5 = arith.constant 0 : index
    %c0_6 = arith.constant 0 : index
    %4 = vector.load %arg4[%c0_5, %c0_6] : memref<8x64xbf16, #tpu.memory_space<vmem>>, vector<8x64xbf16>
    %5 = arith.maximumf %3, %4 : vector<8x64xbf16>
    %6 = arith.maximumf %2, %5 : vector<8x64xbf16>
    %7 = arith.extf %6 : vector<8x64xbf16> to vector<8x64xf32>
    %c0_7 = arith.constant 0 : index
    %c0_8 = arith.constant 0 : index
    %8 = vector.load %arg5[%c0_7, %c0_8] : memref<1x64xf32, #tpu.memory_space<vmem>>, vector<1x64xf32>
    %9 = vector.broadcast %8 : vector<1x64xf32> to vector<8x64xf32>
    %10 = arith.mulf %7, %9 : vector<8x64xf32>
    %c0_9 = arith.constant 0 : index
    %c0_10 = arith.constant 0 : index
    %11 = vector.load %arg6[%c0_9, %c0_10] : memref<1x64xf32, #tpu.memory_space<vmem>>, vector<1x64xf32>
    %12 = vector.broadcast %11 : vector<1x64xf32> to vector<8x64xf32>
    %13 = arith.addf %10, %12 : vector<8x64xf32>
    %cst = arith.constant 0.000000e+00 : f32
    %14 = vector.broadcast %cst : f32 to vector<8x64xf32>
    %15 = arith.maximumf %13, %14 : vector<8x64xf32>
    %16 = arith.truncf %15 : vector<8x64xf32> to vector<8x64xbf16>
    %c0_11 = arith.constant 0 : index
    %c0_12 = arith.constant 0 : index
    %17 = vector.load %arg7[%c0_11, %c0_12] : memref<8x64xbf16, #tpu.memory_space<vmem>>, vector<8x64xbf16>
    tpu.vector_store %arg7[%c0_11, %c0_12], %16 {strides = array<i32>} : memref<8x64xbf16, #tpu.memory_space<vmem>>, vector<8x64xbf16>,
    return
  }
  func.func @transform_0(%arg0: i32) -> (i32, i32) {
    %c0_i32 = arith.constant 0 : i32
    %c0_i32_0 = arith.constant 0 : i32
    return %arg0, %c0_i32 : i32, i32
  }
  func.func @transform_1(%arg0: i32) -> (i32, i32) {
    %c0_i32 = arith.constant 0 : i32
    %c0_i32_0 = arith.constant 0 : i32
    return %arg0, %c0_i32 : i32, i32
  }
  func.func @transform_2(%arg0: i32) -> (i32, i32) {
    %c0_i32 = arith.constant 0 : i32
    %c0_i32_0 = arith.constant 0 : i32
    return %arg0, %c0_i32 : i32, i32
  }
  func.func @transform_3(%arg0: i32) -> (i32, i32) {
    %c0_i32 = arith.constant 0 : i32
    %c0_i32_0 = arith.constant 0 : i32
    return %arg0, %c0_i32 : i32, i32
  }
  func.func @transform_4(%arg0: i32) -> (i32, i32) {
    %c0_i32 = arith.constant 0 : i32
    %c0_i32_0 = arith.constant 0 : i32
    %c0_i32_1 = arith.constant 0 : i32
    return %c0_i32, %c0_i32_0 : i32, i32
  }
  func.func @transform_5(%arg0: i32) -> (i32, i32) {
    %c0_i32 = arith.constant 0 : i32
    %c0_i32_0 = arith.constant 0 : i32
    %c0_i32_1 = arith.constant 0 : i32
    return %c0_i32, %c0_i32_0 : i32, i32
  }
  func.func @transform_6(%arg0: i32) -> (i32, i32) {
    %c0_i32 = arith.constant 0 : i32
    %c0_i32_0 = arith.constant 0 : i32
    return %arg0, %c0_i32 : i32, i32
  }
}

module attributes {stable_mosaic.version = 11 : i64} {
  func.func @_matmul_kernel(%arg0: i32, %arg1: memref<32x144xbf16, #tpu.memory_space<vmem>>, %arg2: memref<144x48xbf16, #tpu.memory_space<vmem>>, %arg3: memref<1x48xf32, #tpu.memory_space<vmem>>, %arg4: memref<32x48xbf16, #tpu.memory_space<vmem>>) attributes {dimension_semantics = [#tpu.dimension_semantics<parallel>], iteration_bounds = array<i64: 1>, scalar_prefetch = 0 : i64, scratch_operands = 0 : i64, tpu.core_type = #tpu.core_type<tc>, window_params = [{transform_indices = @transform_0, window_bounds = array<i64: 32, 144>}, {pipeline_mode = #tpu.pipeline_mode<synchronous>, transform_indices = @transform_1, window_bounds = array<i64: 144, 48>}, {pipeline_mode = #tpu.pipeline_mode<synchronous>, transform_indices = @transform_2, window_bounds = array<i64: 1, 48>}, {transform_indices = @transform_3, window_bounds = array<i64: 32, 48>}]} {
    %c0 = arith.constant 0 : index
    %c0_0 = arith.constant 0 : index
    %0 = vector.load %arg1[%c0, %c0_0] : memref<32x144xbf16, #tpu.memory_space<vmem>>, vector<32x144xbf16>
    %c0_1 = arith.constant 0 : index
    %c0_2 = arith.constant 0 : index
    %1 = vector.load %arg2[%c0_1, %c0_2] : memref<144x48xbf16, #tpu.memory_space<vmem>>, vector<144x48xbf16>
    %cst = arith.constant dense<0.000000e+00> : vector<32x48xf32>
    %2 = tpu.matmul %0, %1, %cst {dimension_numbers = #tpu.dot_dimension_numbers<[1], [0], [0], [1], [0, 0, 1, 1], [], []>} : vector<32x144xbf16>, vector<144x48xbf16>, vector<32x48xf32> -> vector<32x48xf32>
    %c0_3 = arith.constant 0 : index
    %c0_4 = arith.constant 0 : index
    %3 = vector.load %arg3[%c0_3, %c0_4] : memref<1x48xf32, #tpu.memory_space<vmem>>, vector<1x48xf32>
    %4 = vector.broadcast %3 : vector<1x48xf32> to vector<32x48xf32>
    %5 = arith.addf %2, %4 : vector<32x48xf32>
    %cst_5 = arith.constant 0.000000e+00 : f32
    %6 = vector.broadcast %cst_5 : f32 to vector<32x48xf32>
    %7 = arith.maximumf %5, %6 : vector<32x48xf32>
    %8 = arith.truncf %7 : vector<32x48xf32> to vector<32x48xbf16>
    %c0_6 = arith.constant 0 : index
    %c0_7 = arith.constant 0 : index
    %9 = vector.load %arg4[%c0_6, %c0_7] : memref<32x48xbf16, #tpu.memory_space<vmem>>, vector<32x48xbf16>
    tpu.vector_store %arg4[%c0_6, %c0_7], %8 {strides = array<i32>} : memref<32x48xbf16, #tpu.memory_space<vmem>>, vector<32x48xbf16>,
    return
  }
  func.func @transform_0(%arg0: i32) -> (i32, i32) {
    %c0_i32 = arith.constant 0 : i32
    %c0_i32_0 = arith.constant 0 : i32
    return %arg0, %c0_i32 : i32, i32
  }
  func.func @transform_1(%arg0: i32) -> (i32, i32) {
    %c0_i32 = arith.constant 0 : i32
    %c0_i32_0 = arith.constant 0 : i32
    %c0_i32_1 = arith.constant 0 : i32
    return %c0_i32, %c0_i32_0 : i32, i32
  }
  func.func @transform_2(%arg0: i32) -> (i32, i32) {
    %c0_i32 = arith.constant 0 : i32
    %c0_i32_0 = arith.constant 0 : i32
    %c0_i32_1 = arith.constant 0 : i32
    return %c0_i32, %c0_i32_0 : i32, i32
  }
  func.func @transform_3(%arg0: i32) -> (i32, i32) {
    %c0_i32 = arith.constant 0 : i32
    %c0_i32_0 = arith.constant 0 : i32
    return %arg0, %c0_i32 : i32, i32
  }
}

module attributes {stable_mosaic.version = 11 : i64} {
  func.func @_axisconv_kernel(%arg0: i32, %arg1: i32, %arg2: memref<1x4x6x64xbf16, #tpu.memory_space<vmem>>, %arg3: memref<3x64x64xbf16, #tpu.memory_space<vmem>>, %arg4: memref<1x64xf32, #tpu.memory_space<vmem>>, %arg5: memref<1x4x4x64xbf16, #tpu.memory_space<vmem>>) attributes {dimension_semantics = [#tpu.dimension_semantics<parallel>, #tpu.dimension_semantics<parallel>], iteration_bounds = array<i64: 2, 1>, scalar_prefetch = 0 : i64, scratch_operands = 0 : i64, tpu.core_type = #tpu.core_type<tc>, window_params = [{transform_indices = @transform_0, window_bounds = array<i64: 1, 4, 6, 64>}, {pipeline_mode = #tpu.pipeline_mode<synchronous>, transform_indices = @transform_1, window_bounds = array<i64: 3, 64, 64>}, {pipeline_mode = #tpu.pipeline_mode<synchronous>, transform_indices = @transform_2, window_bounds = array<i64: 1, 64>}, {transform_indices = @transform_3, window_bounds = array<i64: 1, 4, 4, 64>}]} {
    %c0 = arith.constant 0 : index
    %c0_0 = arith.constant 0 : index
    %c0_1 = arith.constant 0 : index
    %c0_2 = arith.constant 0 : index
    %0 = vector.load %arg2[%c0, %c0_0, %c0_1, %c0_2] : memref<1x4x6x64xbf16, #tpu.memory_space<vmem>>, vector<1x4x6x64xbf16>
    %1 = vector.shape_cast %0 : vector<1x4x6x64xbf16> to vector<4x6x64xbf16>
    %2 = vector.extract_strided_slice %1 {offsets = [0, 0, 0], sizes = [4, 4, 64], strides = [1, 1, 1]} : vector<4x6x64xbf16> to vector<4x4x64xbf16>
    %3 = vector.shape_cast %2 : vector<4x4x64xbf16> to vector<16x64xbf16>
    %c0_3 = arith.constant 0 : index
    %c0_4 = arith.constant 0 : index
    %c0_5 = arith.constant 0 : index
    %4 = vector.load %arg3[%c0_3, %c0_4, %c0_5] : memref<3x64x64xbf16, #tpu.memory_space<vmem>>, vector<1x64x64xbf16>
    %5 = vector.shape_cast %4 : vector<1x64x64xbf16> to vector<64x64xbf16>
    %cst = arith.constant dense<0.000000e+00> : vector<16x64xf32>
    %6 = tpu.matmul %3, %5, %cst {dimension_numbers = #tpu.dot_dimension_numbers<[1], [0], [0], [1], [0, 0, 1, 1], [], []>} : vector<16x64xbf16>, vector<64x64xbf16>, vector<16x64xf32> -> vector<16x64xf32>
    %7 = vector.extract_strided_slice %1 {offsets = [0, 1, 0], sizes = [4, 4, 64], strides = [1, 1, 1]} : vector<4x6x64xbf16> to vector<4x4x64xbf16>
    %8 = vector.shape_cast %7 : vector<4x4x64xbf16> to vector<16x64xbf16>
    %c1 = arith.constant 1 : index
    %c0_6 = arith.constant 0 : index
    %c0_7 = arith.constant 0 : index
    %9 = vector.load %arg3[%c1, %c0_6, %c0_7] : memref<3x64x64xbf16, #tpu.memory_space<vmem>>, vector<1x64x64xbf16>
    %10 = vector.shape_cast %9 : vector<1x64x64xbf16> to vector<64x64xbf16>
    %cst_8 = arith.constant dense<0.000000e+00> : vector<16x64xf32>
    %11 = tpu.matmul %8, %10, %cst_8 {dimension_numbers = #tpu.dot_dimension_numbers<[1], [0], [0], [1], [0, 0, 1, 1], [], []>} : vector<16x64xbf16>, vector<64x64xbf16>, vector<16x64xf32> -> vector<16x64xf32>
    %12 = arith.addf %6, %11 : vector<16x64xf32>
    %13 = vector.extract_strided_slice %1 {offsets = [0, 2, 0], sizes = [4, 4, 64], strides = [1, 1, 1]} : vector<4x6x64xbf16> to vector<4x4x64xbf16>
    %14 = vector.shape_cast %13 : vector<4x4x64xbf16> to vector<16x64xbf16>
    %c2 = arith.constant 2 : index
    %c0_9 = arith.constant 0 : index
    %c0_10 = arith.constant 0 : index
    %15 = vector.load %arg3[%c2, %c0_9, %c0_10] : memref<3x64x64xbf16, #tpu.memory_space<vmem>>, vector<1x64x64xbf16>
    %16 = vector.shape_cast %15 : vector<1x64x64xbf16> to vector<64x64xbf16>
    %cst_11 = arith.constant dense<0.000000e+00> : vector<16x64xf32>
    %17 = tpu.matmul %14, %16, %cst_11 {dimension_numbers = #tpu.dot_dimension_numbers<[1], [0], [0], [1], [0, 0, 1, 1], [], []>} : vector<16x64xbf16>, vector<64x64xbf16>, vector<16x64xf32> -> vector<16x64xf32>
    %18 = arith.addf %12, %17 : vector<16x64xf32>
    %c0_12 = arith.constant 0 : index
    %c0_13 = arith.constant 0 : index
    %19 = vector.load %arg4[%c0_12, %c0_13] : memref<1x64xf32, #tpu.memory_space<vmem>>, vector<1x64xf32>
    %20 = vector.broadcast %19 : vector<1x64xf32> to vector<16x64xf32>
    %21 = arith.addf %18, %20 : vector<16x64xf32>
    %cst_14 = arith.constant 0.000000e+00 : f32
    %22 = vector.broadcast %cst_14 : f32 to vector<16x64xf32>
    %23 = arith.maximumf %21, %22 : vector<16x64xf32>
    %24 = vector.shape_cast %23 : vector<16x64xf32> to vector<4x4x64xf32>
    %25 = arith.truncf %24 : vector<4x4x64xf32> to vector<4x4x64xbf16>
    %c0_15 = arith.constant 0 : index
    %c0_16 = arith.constant 0 : index
    %c0_17 = arith.constant 0 : index
    %c0_18 = arith.constant 0 : index
    %26 = vector.load %arg5[%c0_15, %c0_16, %c0_17, %c0_18] : memref<1x4x4x64xbf16, #tpu.memory_space<vmem>>, vector<1x4x4x64xbf16>
    %27 = vector.shape_cast %26 : vector<1x4x4x64xbf16> to vector<4x4x64xbf16>
    %28 = vector.shape_cast %25 : vector<4x4x64xbf16> to vector<1x4x4x64xbf16>
    tpu.vector_store %arg5[%c0_15, %c0_16, %c0_17, %c0_18], %28 {strides = array<i32>} : memref<1x4x4x64xbf16, #tpu.memory_space<vmem>>, vector<1x4x4x64xbf16>,
    return
  }
  func.func @transform_0(%arg0: i32, %arg1: i32) -> (i32, i32, i32, i32) {
    %c0_i32 = arith.constant 0 : i32
    %c0_i32_0 = arith.constant 0 : i32
    %c0_i32_1 = arith.constant 0 : i32
    return %arg0, %arg1, %c0_i32, %c0_i32_0 : i32, i32, i32, i32
  }
  func.func @transform_1(%arg0: i32, %arg1: i32) -> (i32, i32, i32) {
    %c0_i32 = arith.constant 0 : i32
    %c0_i32_0 = arith.constant 0 : i32
    %c0_i32_1 = arith.constant 0 : i32
    %c0_i32_2 = arith.constant 0 : i32
    return %c0_i32, %c0_i32_0, %c0_i32_1 : i32, i32, i32
  }
  func.func @transform_2(%arg0: i32, %arg1: i32) -> (i32, i32) {
    %c0_i32 = arith.constant 0 : i32
    %c0_i32_0 = arith.constant 0 : i32
    %c0_i32_1 = arith.constant 0 : i32
    return %c0_i32, %c0_i32_0 : i32, i32
  }
  func.func @transform_3(%arg0: i32, %arg1: i32) -> (i32, i32, i32, i32) {
    %c0_i32 = arith.constant 0 : i32
    %c0_i32_0 = arith.constant 0 : i32
    %c0_i32_1 = arith.constant 0 : i32
    return %arg0, %arg1, %c0_i32, %c0_i32_0 : i32, i32, i32, i32
  }
}

module attributes {stable_mosaic.version = 11 : i64} {
  func.func @_axisconv_kernel(%arg0: i32, %arg1: i32, %arg2: memref<1x6x4x64xbf16, #tpu.memory_space<vmem>>, %arg3: memref<3x64x64xbf16, #tpu.memory_space<vmem>>, %arg4: memref<1x64xf32, #tpu.memory_space<vmem>>, %arg5: memref<1x4x4x64xbf16, #tpu.memory_space<vmem>>) attributes {dimension_semantics = [#tpu.dimension_semantics<parallel>, #tpu.dimension_semantics<parallel>], iteration_bounds = array<i64: 2, 1>, scalar_prefetch = 0 : i64, scratch_operands = 0 : i64, tpu.core_type = #tpu.core_type<tc>, window_params = [{transform_indices = @transform_0, window_bounds = array<i64: 1, 6, 4, 64>}, {pipeline_mode = #tpu.pipeline_mode<synchronous>, transform_indices = @transform_1, window_bounds = array<i64: 3, 64, 64>}, {pipeline_mode = #tpu.pipeline_mode<synchronous>, transform_indices = @transform_2, window_bounds = array<i64: 1, 64>}, {transform_indices = @transform_3, window_bounds = array<i64: 1, 4, 4, 64>}]} {
    %c0 = arith.constant 0 : index
    %c0_0 = arith.constant 0 : index
    %c0_1 = arith.constant 0 : index
    %c0_2 = arith.constant 0 : index
    %0 = vector.load %arg2[%c0, %c0_0, %c0_1, %c0_2] : memref<1x6x4x64xbf16, #tpu.memory_space<vmem>>, vector<1x6x4x64xbf16>
    %1 = vector.shape_cast %0 : vector<1x6x4x64xbf16> to vector<6x4x64xbf16>
    %2 = vector.extract_strided_slice %1 {offsets = [0, 0, 0], sizes = [4, 4, 64], strides = [1, 1, 1]} : vector<6x4x64xbf16> to vector<4x4x64xbf16>
    %3 = vector.shape_cast %2 : vector<4x4x64xbf16> to vector<16x64xbf16>
    %c0_3 = arith.constant 0 : index
    %c0_4 = arith.constant 0 : index
    %c0_5 = arith.constant 0 : index
    %4 = vector.load %arg3[%c0_3, %c0_4, %c0_5] : memref<3x64x64xbf16, #tpu.memory_space<vmem>>, vector<1x64x64xbf16>
    %5 = vector.shape_cast %4 : vector<1x64x64xbf16> to vector<64x64xbf16>
    %cst = arith.constant dense<0.000000e+00> : vector<16x64xf32>
    %6 = tpu.matmul %3, %5, %cst {dimension_numbers = #tpu.dot_dimension_numbers<[1], [0], [0], [1], [0, 0, 1, 1], [], []>} : vector<16x64xbf16>, vector<64x64xbf16>, vector<16x64xf32> -> vector<16x64xf32>
    %7 = vector.extract_strided_slice %1 {offsets = [1, 0, 0], sizes = [4, 4, 64], strides = [1, 1, 1]} : vector<6x4x64xbf16> to vector<4x4x64xbf16>
    %8 = vector.shape_cast %7 : vector<4x4x64xbf16> to vector<16x64xbf16>
    %c1 = arith.constant 1 : index
    %c0_6 = arith.constant 0 : index
    %c0_7 = arith.constant 0 : index
    %9 = vector.load %arg3[%c1, %c0_6, %c0_7] : memref<3x64x64xbf16, #tpu.memory_space<vmem>>, vector<1x64x64xbf16>
    %10 = vector.shape_cast %9 : vector<1x64x64xbf16> to vector<64x64xbf16>
    %cst_8 = arith.constant dense<0.000000e+00> : vector<16x64xf32>
    %11 = tpu.matmul %8, %10, %cst_8 {dimension_numbers = #tpu.dot_dimension_numbers<[1], [0], [0], [1], [0, 0, 1, 1], [], []>} : vector<16x64xbf16>, vector<64x64xbf16>, vector<16x64xf32> -> vector<16x64xf32>
    %12 = arith.addf %6, %11 : vector<16x64xf32>
    %13 = vector.extract_strided_slice %1 {offsets = [2, 0, 0], sizes = [4, 4, 64], strides = [1, 1, 1]} : vector<6x4x64xbf16> to vector<4x4x64xbf16>
    %14 = vector.shape_cast %13 : vector<4x4x64xbf16> to vector<16x64xbf16>
    %c2 = arith.constant 2 : index
    %c0_9 = arith.constant 0 : index
    %c0_10 = arith.constant 0 : index
    %15 = vector.load %arg3[%c2, %c0_9, %c0_10] : memref<3x64x64xbf16, #tpu.memory_space<vmem>>, vector<1x64x64xbf16>
    %16 = vector.shape_cast %15 : vector<1x64x64xbf16> to vector<64x64xbf16>
    %cst_11 = arith.constant dense<0.000000e+00> : vector<16x64xf32>
    %17 = tpu.matmul %14, %16, %cst_11 {dimension_numbers = #tpu.dot_dimension_numbers<[1], [0], [0], [1], [0, 0, 1, 1], [], []>} : vector<16x64xbf16>, vector<64x64xbf16>, vector<16x64xf32> -> vector<16x64xf32>
    %18 = arith.addf %12, %17 : vector<16x64xf32>
    %c0_12 = arith.constant 0 : index
    %c0_13 = arith.constant 0 : index
    %19 = vector.load %arg4[%c0_12, %c0_13] : memref<1x64xf32, #tpu.memory_space<vmem>>, vector<1x64xf32>
    %20 = vector.broadcast %19 : vector<1x64xf32> to vector<16x64xf32>
    %21 = arith.addf %18, %20 : vector<16x64xf32>
    %cst_14 = arith.constant 0.000000e+00 : f32
    %22 = vector.broadcast %cst_14 : f32 to vector<16x64xf32>
    %23 = arith.maximumf %21, %22 : vector<16x64xf32>
    %24 = vector.shape_cast %23 : vector<16x64xf32> to vector<4x4x64xf32>
    %25 = arith.truncf %24 : vector<4x4x64xf32> to vector<4x4x64xbf16>
    %c0_15 = arith.constant 0 : index
    %c0_16 = arith.constant 0 : index
    %c0_17 = arith.constant 0 : index
    %c0_18 = arith.constant 0 : index
    %26 = vector.load %arg5[%c0_15, %c0_16, %c0_17, %c0_18] : memref<1x4x4x64xbf16, #tpu.memory_space<vmem>>, vector<1x4x4x64xbf16>
    %27 = vector.shape_cast %26 : vector<1x4x4x64xbf16> to vector<4x4x64xbf16>
    %28 = vector.shape_cast %25 : vector<4x4x64xbf16> to vector<1x4x4x64xbf16>
    tpu.vector_store %arg5[%c0_15, %c0_16, %c0_17, %c0_18], %28 {strides = array<i32>} : memref<1x4x4x64xbf16, #tpu.memory_space<vmem>>, vector<1x4x4x64xbf16>,
    return
  }
  func.func @transform_0(%arg0: i32, %arg1: i32) -> (i32, i32, i32, i32) {
    %c0_i32 = arith.constant 0 : i32
    %c0_i32_0 = arith.constant 0 : i32
    %c0_i32_1 = arith.constant 0 : i32
    return %arg0, %c0_i32, %arg1, %c0_i32_0 : i32, i32, i32, i32
  }
  func.func @transform_1(%arg0: i32, %arg1: i32) -> (i32, i32, i32) {
    %c0_i32 = arith.constant 0 : i32
    %c0_i32_0 = arith.constant 0 : i32
    %c0_i32_1 = arith.constant 0 : i32
    %c0_i32_2 = arith.constant 0 : i32
    return %c0_i32, %c0_i32_0, %c0_i32_1 : i32, i32, i32
  }
  func.func @transform_2(%arg0: i32, %arg1: i32) -> (i32, i32) {
    %c0_i32 = arith.constant 0 : i32
    %c0_i32_0 = arith.constant 0 : i32
    %c0_i32_1 = arith.constant 0 : i32
    return %c0_i32, %c0_i32_0 : i32, i32
  }
  func.func @transform_3(%arg0: i32, %arg1: i32) -> (i32, i32, i32, i32) {
    %c0_i32 = arith.constant 0 : i32
    %c0_i32_0 = arith.constant 0 : i32
    %c0_i32_1 = arith.constant 0 : i32
    return %arg0, %c0_i32, %arg1, %c0_i32_0 : i32, i32, i32, i32
  }
}

module attributes {stable_mosaic.version = 11 : i64} {
  func.func @_axisconv_kernel(%arg0: i32, %arg1: i32, %arg2: memref<1x4x6x64xbf16, #tpu.memory_space<vmem>>, %arg3: memref<3x64x64xbf16, #tpu.memory_space<vmem>>, %arg4: memref<1x64xf32, #tpu.memory_space<vmem>>, %arg5: memref<1x4x4x64xbf16, #tpu.memory_space<vmem>>, %arg6: memref<1x4x4x64xbf16, #tpu.memory_space<vmem>>) attributes {dimension_semantics = [#tpu.dimension_semantics<parallel>, #tpu.dimension_semantics<parallel>], iteration_bounds = array<i64: 2, 1>, scalar_prefetch = 0 : i64, scratch_operands = 0 : i64, tpu.core_type = #tpu.core_type<tc>, window_params = [{transform_indices = @transform_0, window_bounds = array<i64: 1, 4, 6, 64>}, {pipeline_mode = #tpu.pipeline_mode<synchronous>, transform_indices = @transform_1, window_bounds = array<i64: 3, 64, 64>}, {pipeline_mode = #tpu.pipeline_mode<synchronous>, transform_indices = @transform_2, window_bounds = array<i64: 1, 64>}, {transform_indices = @transform_3, window_bounds = array<i64: 1, 4, 4, 64>}, {transform_indices = @transform_4, window_bounds = array<i64: 1, 4, 4, 64>}]} {
    %c0 = arith.constant 0 : index
    %c0_0 = arith.constant 0 : index
    %c0_1 = arith.constant 0 : index
    %c0_2 = arith.constant 0 : index
    %0 = vector.load %arg2[%c0, %c0_0, %c0_1, %c0_2] : memref<1x4x6x64xbf16, #tpu.memory_space<vmem>>, vector<1x4x6x64xbf16>
    %1 = vector.shape_cast %0 : vector<1x4x6x64xbf16> to vector<4x6x64xbf16>
    %2 = vector.extract_strided_slice %1 {offsets = [0, 0, 0], sizes = [4, 4, 64], strides = [1, 1, 1]} : vector<4x6x64xbf16> to vector<4x4x64xbf16>
    %3 = vector.shape_cast %2 : vector<4x4x64xbf16> to vector<16x64xbf16>
    %c0_3 = arith.constant 0 : index
    %c0_4 = arith.constant 0 : index
    %c0_5 = arith.constant 0 : index
    %4 = vector.load %arg3[%c0_3, %c0_4, %c0_5] : memref<3x64x64xbf16, #tpu.memory_space<vmem>>, vector<1x64x64xbf16>
    %5 = vector.shape_cast %4 : vector<1x64x64xbf16> to vector<64x64xbf16>
    %cst = arith.constant dense<0.000000e+00> : vector<16x64xf32>
    %6 = tpu.matmul %3, %5, %cst {dimension_numbers = #tpu.dot_dimension_numbers<[1], [0], [0], [1], [0, 0, 1, 1], [], []>} : vector<16x64xbf16>, vector<64x64xbf16>, vector<16x64xf32> -> vector<16x64xf32>
    %7 = vector.extract_strided_slice %1 {offsets = [0, 1, 0], sizes = [4, 4, 64], strides = [1, 1, 1]} : vector<4x6x64xbf16> to vector<4x4x64xbf16>
    %8 = vector.shape_cast %7 : vector<4x4x64xbf16> to vector<16x64xbf16>
    %c1 = arith.constant 1 : index
    %c0_6 = arith.constant 0 : index
    %c0_7 = arith.constant 0 : index
    %9 = vector.load %arg3[%c1, %c0_6, %c0_7] : memref<3x64x64xbf16, #tpu.memory_space<vmem>>, vector<1x64x64xbf16>
    %10 = vector.shape_cast %9 : vector<1x64x64xbf16> to vector<64x64xbf16>
    %cst_8 = arith.constant dense<0.000000e+00> : vector<16x64xf32>
    %11 = tpu.matmul %8, %10, %cst_8 {dimension_numbers = #tpu.dot_dimension_numbers<[1], [0], [0], [1], [0, 0, 1, 1], [], []>} : vector<16x64xbf16>, vector<64x64xbf16>, vector<16x64xf32> -> vector<16x64xf32>
    %12 = arith.addf %6, %11 : vector<16x64xf32>
    %13 = vector.extract_strided_slice %1 {offsets = [0, 2, 0], sizes = [4, 4, 64], strides = [1, 1, 1]} : vector<4x6x64xbf16> to vector<4x4x64xbf16>
    %14 = vector.shape_cast %13 : vector<4x4x64xbf16> to vector<16x64xbf16>
    %c2 = arith.constant 2 : index
    %c0_9 = arith.constant 0 : index
    %c0_10 = arith.constant 0 : index
    %15 = vector.load %arg3[%c2, %c0_9, %c0_10] : memref<3x64x64xbf16, #tpu.memory_space<vmem>>, vector<1x64x64xbf16>
    %16 = vector.shape_cast %15 : vector<1x64x64xbf16> to vector<64x64xbf16>
    %cst_11 = arith.constant dense<0.000000e+00> : vector<16x64xf32>
    %17 = tpu.matmul %14, %16, %cst_11 {dimension_numbers = #tpu.dot_dimension_numbers<[1], [0], [0], [1], [0, 0, 1, 1], [], []>} : vector<16x64xbf16>, vector<64x64xbf16>, vector<16x64xf32> -> vector<16x64xf32>
    %18 = arith.addf %12, %17 : vector<16x64xf32>
    %c0_12 = arith.constant 0 : index
    %c0_13 = arith.constant 0 : index
    %19 = vector.load %arg4[%c0_12, %c0_13] : memref<1x64xf32, #tpu.memory_space<vmem>>, vector<1x64xf32>
    %20 = vector.broadcast %19 : vector<1x64xf32> to vector<16x64xf32>
    %21 = arith.addf %18, %20 : vector<16x64xf32>
    %c0_14 = arith.constant 0 : index
    %c0_15 = arith.constant 0 : index
    %c0_16 = arith.constant 0 : index
    %c0_17 = arith.constant 0 : index
    %22 = vector.load %arg5[%c0_14, %c0_15, %c0_16, %c0_17] : memref<1x4x4x64xbf16, #tpu.memory_space<vmem>>, vector<1x4x4x64xbf16>
    %23 = vector.shape_cast %22 : vector<1x4x4x64xbf16> to vector<4x4x64xbf16>
    %24 = vector.shape_cast %23 : vector<4x4x64xbf16> to vector<16x64xbf16>
    %25 = arith.extf %24 : vector<16x64xbf16> to vector<16x64xf32>
    %26 = arith.addf %21, %25 : vector<16x64xf32>
    %cst_18 = arith.constant 0.000000e+00 : f32
    %27 = vector.broadcast %cst_18 : f32 to vector<16x64xf32>
    %28 = arith.maximumf %26, %27 : vector<16x64xf32>
    %29 = vector.shape_cast %28 : vector<16x64xf32> to vector<4x4x64xf32>
    %30 = arith.truncf %29 : vector<4x4x64xf32> to vector<4x4x64xbf16>
    %c0_19 = arith.constant 0 : index
    %c0_20 = arith.constant 0 : index
    %c0_21 = arith.constant 0 : index
    %c0_22 = arith.constant 0 : index
    %31 = vector.load %arg6[%c0_19, %c0_20, %c0_21, %c0_22] : memref<1x4x4x64xbf16, #tpu.memory_space<vmem>>, vector<1x4x4x64xbf16>
    %32 = vector.shape_cast %31 : vector<1x4x4x64xbf16> to vector<4x4x64xbf16>
    %33 = vector.shape_cast %30 : vector<4x4x64xbf16> to vector<1x4x4x64xbf16>
    tpu.vector_store %arg6[%c0_19, %c0_20, %c0_21, %c0_22], %33 {strides = array<i32>} : memref<1x4x4x64xbf16, #tpu.memory_space<vmem>>, vector<1x4x4x64xbf16>,
    return
  }
  func.func @transform_0(%arg0: i32, %arg1: i32) -> (i32, i32, i32, i32) {
    %c0_i32 = arith.constant 0 : i32
    %c0_i32_0 = arith.constant 0 : i32
    %c0_i32_1 = arith.constant 0 : i32
    return %arg0, %arg1, %c0_i32, %c0_i32_0 : i32, i32, i32, i32
  }
  func.func @transform_1(%arg0: i32, %arg1: i32) -> (i32, i32, i32) {
    %c0_i32 = arith.constant 0 : i32
    %c0_i32_0 = arith.constant 0 : i32
    %c0_i32_1 = arith.constant 0 : i32
    %c0_i32_2 = arith.constant 0 : i32
    return %c0_i32, %c0_i32_0, %c0_i32_1 : i32, i32, i32
  }
  func.func @transform_2(%arg0: i32, %arg1: i32) -> (i32, i32) {
    %c0_i32 = arith.constant 0 : i32
    %c0_i32_0 = arith.constant 0 : i32
    %c0_i32_1 = arith.constant 0 : i32
    return %c0_i32, %c0_i32_0 : i32, i32
  }
  func.func @transform_3(%arg0: i32, %arg1: i32) -> (i32, i32, i32, i32) {
    %c0_i32 = arith.constant 0 : i32
    %c0_i32_0 = arith.constant 0 : i32
    %c0_i32_1 = arith.constant 0 : i32
    return %arg0, %arg1, %c0_i32, %c0_i32_0 : i32, i32, i32, i32
  }
  func.func @transform_4(%arg0: i32, %arg1: i32) -> (i32, i32, i32, i32) {
    %c0_i32 = arith.constant 0 : i32
    %c0_i32_0 = arith.constant 0 : i32
    %c0_i32_1 = arith.constant 0 : i32
    return %arg0, %arg1, %c0_i32, %c0_i32_0 : i32, i32, i32, i32
  }
}

module attributes {stable_mosaic.version = 11 : i64} {
  func.func @_pool_bn_relu_kernel(%arg0: i32, %arg1: memref<4x128xbf16, #tpu.memory_space<vmem>>, %arg2: memref<4x128xbf16, #tpu.memory_space<vmem>>, %arg3: memref<4x128xbf16, #tpu.memory_space<vmem>>, %arg4: memref<4x128xbf16, #tpu.memory_space<vmem>>, %arg5: memref<1x128xf32, #tpu.memory_space<vmem>>, %arg6: memref<1x128xf32, #tpu.memory_space<vmem>>, %arg7: memref<4x128xbf16, #tpu.memory_space<vmem>>) attributes {dimension_semantics = [#tpu.dimension_semantics<parallel>], iteration_bounds = array<i64: 1>, scalar_prefetch = 0 : i64, scratch_operands = 0 : i64, tpu.core_type = #tpu.core_type<tc>, window_params = [{transform_indices = @transform_0, window_bounds = array<i64: 4, 128>}, {transform_indices = @transform_1, window_bounds = array<i64: 4, 128>}, {transform_indices = @transform_2, window_bounds = array<i64: 4, 128>}, {transform_indices = @transform_3, window_bounds = array<i64: 4, 128>}, {pipeline_mode = #tpu.pipeline_mode<synchronous>, transform_indices = @transform_4, window_bounds = array<i64: 1, 128>}, {pipeline_mode = #tpu.pipeline_mode<synchronous>, transform_indices = @transform_5, window_bounds = array<i64: 1, 128>}, {transform_indices = @transform_6, window_bounds = array<i64: 4, 128>}]} {
    %c0 = arith.constant 0 : index
    %c0_0 = arith.constant 0 : index
    %0 = vector.load %arg1[%c0, %c0_0] : memref<4x128xbf16, #tpu.memory_space<vmem>>, vector<4x128xbf16>
    %c0_1 = arith.constant 0 : index
    %c0_2 = arith.constant 0 : index
    %1 = vector.load %arg2[%c0_1, %c0_2] : memref<4x128xbf16, #tpu.memory_space<vmem>>, vector<4x128xbf16>
    %2 = arith.maximumf %0, %1 : vector<4x128xbf16>
    %c0_3 = arith.constant 0 : index
    %c0_4 = arith.constant 0 : index
    %3 = vector.load %arg3[%c0_3, %c0_4] : memref<4x128xbf16, #tpu.memory_space<vmem>>, vector<4x128xbf16>
    %c0_5 = arith.constant 0 : index
    %c0_6 = arith.constant 0 : index
    %4 = vector.load %arg4[%c0_5, %c0_6] : memref<4x128xbf16, #tpu.memory_space<vmem>>, vector<4x128xbf16>
    %5 = arith.maximumf %3, %4 : vector<4x128xbf16>
    %6 = arith.maximumf %2, %5 : vector<4x128xbf16>
    %7 = arith.extf %6 : vector<4x128xbf16> to vector<4x128xf32>
    %c0_7 = arith.constant 0 : index
    %c0_8 = arith.constant 0 : index
    %8 = vector.load %arg5[%c0_7, %c0_8] : memref<1x128xf32, #tpu.memory_space<vmem>>, vector<1x128xf32>
    %9 = vector.broadcast %8 : vector<1x128xf32> to vector<4x128xf32>
    %10 = arith.mulf %7, %9 : vector<4x128xf32>
    %c0_9 = arith.constant 0 : index
    %c0_10 = arith.constant 0 : index
    %11 = vector.load %arg6[%c0_9, %c0_10] : memref<1x128xf32, #tpu.memory_space<vmem>>, vector<1x128xf32>
    %12 = vector.broadcast %11 : vector<1x128xf32> to vector<4x128xf32>
    %13 = arith.addf %10, %12 : vector<4x128xf32>
    %cst = arith.constant 0.000000e+00 : f32
    %14 = vector.broadcast %cst : f32 to vector<4x128xf32>
    %15 = arith.maximumf %13, %14 : vector<4x128xf32>
    %16 = arith.truncf %15 : vector<4x128xf32> to vector<4x128xbf16>
    %c0_11 = arith.constant 0 : index
    %c0_12 = arith.constant 0 : index
    %17 = vector.load %arg7[%c0_11, %c0_12] : memref<4x128xbf16, #tpu.memory_space<vmem>>, vector<4x128xbf16>
    tpu.vector_store %arg7[%c0_11, %c0_12], %16 {strides = array<i32>} : memref<4x128xbf16, #tpu.memory_space<vmem>>, vector<4x128xbf16>,
    return
  }
  func.func @transform_0(%arg0: i32) -> (i32, i32) {
    %c0_i32 = arith.constant 0 : i32
    %c0_i32_0 = arith.constant 0 : i32
    return %arg0, %c0_i32 : i32, i32
  }
  func.func @transform_1(%arg0: i32) -> (i32, i32) {
    %c0_i32 = arith.constant 0 : i32
    %c0_i32_0 = arith.constant 0 : i32
    return %arg0, %c0_i32 : i32, i32
  }
  func.func @transform_2(%arg0: i32) -> (i32, i32) {
    %c0_i32 = arith.constant 0 : i32
    %c0_i32_0 = arith.constant 0 : i32
    return %arg0, %c0_i32 : i32, i32
  }
  func.func @transform_3(%arg0: i32) -> (i32, i32) {
    %c0_i32 = arith.constant 0 : i32
    %c0_i32_0 = arith.constant 0 : i32
    return %arg0, %c0_i32 : i32, i32
  }
  func.func @transform_4(%arg0: i32) -> (i32, i32) {
    %c0_i32 = arith.constant 0 : i32
    %c0_i32_0 = arith.constant 0 : i32
    %c0_i32_1 = arith.constant 0 : i32
    return %c0_i32, %c0_i32_0 : i32, i32
  }
  func.func @transform_5(%arg0: i32) -> (i32, i32) {
    %c0_i32 = arith.constant 0 : i32
    %c0_i32_0 = arith.constant 0 : i32
    %c0_i32_1 = arith.constant 0 : i32
    return %c0_i32, %c0_i32_0 : i32, i32
  }
  func.func @transform_6(%arg0: i32) -> (i32, i32) {
    %c0_i32 = arith.constant 0 : i32
    %c0_i32_0 = arith.constant 0 : i32
    return %arg0, %c0_i32 : i32, i32
  }
}

module attributes {stable_mosaic.version = 11 : i64} {
  func.func @_matmul_kernel(%arg0: i32, %arg1: memref<8x576xbf16, #tpu.memory_space<vmem>>, %arg2: memref<576x64xbf16, #tpu.memory_space<vmem>>, %arg3: memref<1x64xf32, #tpu.memory_space<vmem>>, %arg4: memref<8x64xbf16, #tpu.memory_space<vmem>>) attributes {dimension_semantics = [#tpu.dimension_semantics<parallel>], iteration_bounds = array<i64: 1>, scalar_prefetch = 0 : i64, scratch_operands = 0 : i64, tpu.core_type = #tpu.core_type<tc>, window_params = [{transform_indices = @transform_0, window_bounds = array<i64: 8, 576>}, {pipeline_mode = #tpu.pipeline_mode<synchronous>, transform_indices = @transform_1, window_bounds = array<i64: 576, 64>}, {pipeline_mode = #tpu.pipeline_mode<synchronous>, transform_indices = @transform_2, window_bounds = array<i64: 1, 64>}, {transform_indices = @transform_3, window_bounds = array<i64: 8, 64>}]} {
    %c0 = arith.constant 0 : index
    %c0_0 = arith.constant 0 : index
    %0 = vector.load %arg1[%c0, %c0_0] : memref<8x576xbf16, #tpu.memory_space<vmem>>, vector<8x576xbf16>
    %c0_1 = arith.constant 0 : index
    %c0_2 = arith.constant 0 : index
    %1 = vector.load %arg2[%c0_1, %c0_2] : memref<576x64xbf16, #tpu.memory_space<vmem>>, vector<576x64xbf16>
    %cst = arith.constant dense<0.000000e+00> : vector<8x64xf32>
    %2 = tpu.matmul %0, %1, %cst {dimension_numbers = #tpu.dot_dimension_numbers<[1], [0], [0], [1], [0, 0, 1, 1], [], []>} : vector<8x576xbf16>, vector<576x64xbf16>, vector<8x64xf32> -> vector<8x64xf32>
    %c0_3 = arith.constant 0 : index
    %c0_4 = arith.constant 0 : index
    %3 = vector.load %arg3[%c0_3, %c0_4] : memref<1x64xf32, #tpu.memory_space<vmem>>, vector<1x64xf32>
    %4 = vector.broadcast %3 : vector<1x64xf32> to vector<8x64xf32>
    %5 = arith.addf %2, %4 : vector<8x64xf32>
    %cst_5 = arith.constant 0.000000e+00 : f32
    %6 = vector.broadcast %cst_5 : f32 to vector<8x64xf32>
    %7 = arith.maximumf %5, %6 : vector<8x64xf32>
    %8 = arith.truncf %7 : vector<8x64xf32> to vector<8x64xbf16>
    %c0_6 = arith.constant 0 : index
    %c0_7 = arith.constant 0 : index
    %9 = vector.load %arg4[%c0_6, %c0_7] : memref<8x64xbf16, #tpu.memory_space<vmem>>, vector<8x64xbf16>
    tpu.vector_store %arg4[%c0_6, %c0_7], %8 {strides = array<i32>} : memref<8x64xbf16, #tpu.memory_space<vmem>>, vector<8x64xbf16>,
    return
  }
  func.func @transform_0(%arg0: i32) -> (i32, i32) {
    %c0_i32 = arith.constant 0 : i32
    %c0_i32_0 = arith.constant 0 : i32
    return %arg0, %c0_i32 : i32, i32
  }
  func.func @transform_1(%arg0: i32) -> (i32, i32) {
    %c0_i32 = arith.constant 0 : i32
    %c0_i32_0 = arith.constant 0 : i32
    %c0_i32_1 = arith.constant 0 : i32
    return %c0_i32, %c0_i32_0 : i32, i32
  }
  func.func @transform_2(%arg0: i32) -> (i32, i32) {
    %c0_i32 = arith.constant 0 : i32
    %c0_i32_0 = arith.constant 0 : i32
    %c0_i32_1 = arith.constant 0 : i32
    return %c0_i32, %c0_i32_0 : i32, i32
  }
  func.func @transform_3(%arg0: i32) -> (i32, i32) {
    %c0_i32 = arith.constant 0 : i32
    %c0_i32_0 = arith.constant 0 : i32
    return %arg0, %c0_i32 : i32, i32
  }
}

module attributes {stable_mosaic.version = 11 : i64} {
  func.func @_axisconv_kernel(%arg0: i32, %arg1: i32, %arg2: memref<1x4x2x128xbf16, #tpu.memory_space<vmem>>, %arg3: memref<3x128x128xbf16, #tpu.memory_space<vmem>>, %arg4: memref<1x128xf32, #tpu.memory_space<vmem>>, %arg5: memref<1x2x2x128xbf16, #tpu.memory_space<vmem>>) attributes {dimension_semantics = [#tpu.dimension_semantics<parallel>, #tpu.dimension_semantics<parallel>], iteration_bounds = array<i64: 2, 1>, scalar_prefetch = 0 : i64, scratch_operands = 0 : i64, tpu.core_type = #tpu.core_type<tc>, window_params = [{transform_indices = @transform_0, window_bounds = array<i64: 1, 4, 2, 128>}, {pipeline_mode = #tpu.pipeline_mode<synchronous>, transform_indices = @transform_1, window_bounds = array<i64: 3, 128, 128>}, {pipeline_mode = #tpu.pipeline_mode<synchronous>, transform_indices = @transform_2, window_bounds = array<i64: 1, 128>}, {transform_indices = @transform_3, window_bounds = array<i64: 1, 2, 2, 128>}]} {
    %c0 = arith.constant 0 : index
    %c0_0 = arith.constant 0 : index
    %c0_1 = arith.constant 0 : index
    %c0_2 = arith.constant 0 : index
    %0 = vector.load %arg2[%c0, %c0_0, %c0_1, %c0_2] : memref<1x4x2x128xbf16, #tpu.memory_space<vmem>>, vector<1x4x2x128xbf16>
    %1 = vector.shape_cast %0 : vector<1x4x2x128xbf16> to vector<4x2x128xbf16>
    %2 = vector.extract_strided_slice %1 {offsets = [0, 0, 0], sizes = [2, 2, 128], strides = [1, 1, 1]} : vector<4x2x128xbf16> to vector<2x2x128xbf16>
    %3 = vector.shape_cast %2 : vector<2x2x128xbf16> to vector<4x128xbf16>
    %c0_3 = arith.constant 0 : index
    %c0_4 = arith.constant 0 : index
    %c0_5 = arith.constant 0 : index
    %4 = vector.load %arg3[%c0_3, %c0_4, %c0_5] : memref<3x128x128xbf16, #tpu.memory_space<vmem>>, vector<1x128x128xbf16>
    %5 = vector.shape_cast %4 : vector<1x128x128xbf16> to vector<128x128xbf16>
    %cst = arith.constant dense<0.000000e+00> : vector<4x128xf32>
    %6 = tpu.matmul %3, %5, %cst {dimension_numbers = #tpu.dot_dimension_numbers<[1], [0], [0], [1], [0, 0, 1, 1], [], []>} : vector<4x128xbf16>, vector<128x128xbf16>, vector<4x128xf32> -> vector<4x128xf32>
    %7 = vector.extract_strided_slice %1 {offsets = [1, 0, 0], sizes = [2, 2, 128], strides = [1, 1, 1]} : vector<4x2x128xbf16> to vector<2x2x128xbf16>
    %8 = vector.shape_cast %7 : vector<2x2x128xbf16> to vector<4x128xbf16>
    %c1 = arith.constant 1 : index
    %c0_6 = arith.constant 0 : index
    %c0_7 = arith.constant 0 : index
    %9 = vector.load %arg3[%c1, %c0_6, %c0_7] : memref<3x128x128xbf16, #tpu.memory_space<vmem>>, vector<1x128x128xbf16>
    %10 = vector.shape_cast %9 : vector<1x128x128xbf16> to vector<128x128xbf16>
    %cst_8 = arith.constant dense<0.000000e+00> : vector<4x128xf32>
    %11 = tpu.matmul %8, %10, %cst_8 {dimension_numbers = #tpu.dot_dimension_numbers<[1], [0], [0], [1], [0, 0, 1, 1], [], []>} : vector<4x128xbf16>, vector<128x128xbf16>, vector<4x128xf32> -> vector<4x128xf32>
    %12 = arith.addf %6, %11 : vector<4x128xf32>
    %13 = vector.extract_strided_slice %1 {offsets = [2, 0, 0], sizes = [2, 2, 128], strides = [1, 1, 1]} : vector<4x2x128xbf16> to vector<2x2x128xbf16>
    %14 = vector.shape_cast %13 : vector<2x2x128xbf16> to vector<4x128xbf16>
    %c2 = arith.constant 2 : index
    %c0_9 = arith.constant 0 : index
    %c0_10 = arith.constant 0 : index
    %15 = vector.load %arg3[%c2, %c0_9, %c0_10] : memref<3x128x128xbf16, #tpu.memory_space<vmem>>, vector<1x128x128xbf16>
    %16 = vector.shape_cast %15 : vector<1x128x128xbf16> to vector<128x128xbf16>
    %cst_11 = arith.constant dense<0.000000e+00> : vector<4x128xf32>
    %17 = tpu.matmul %14, %16, %cst_11 {dimension_numbers = #tpu.dot_dimension_numbers<[1], [0], [0], [1], [0, 0, 1, 1], [], []>} : vector<4x128xbf16>, vector<128x128xbf16>, vector<4x128xf32> -> vector<4x128xf32>
    %18 = arith.addf %12, %17 : vector<4x128xf32>
    %c0_12 = arith.constant 0 : index
    %c0_13 = arith.constant 0 : index
    %19 = vector.load %arg4[%c0_12, %c0_13] : memref<1x128xf32, #tpu.memory_space<vmem>>, vector<1x128xf32>
    %20 = vector.broadcast %19 : vector<1x128xf32> to vector<4x128xf32>
    %21 = arith.addf %18, %20 : vector<4x128xf32>
    %cst_14 = arith.constant 0.000000e+00 : f32
    %22 = vector.broadcast %cst_14 : f32 to vector<4x128xf32>
    %23 = arith.maximumf %21, %22 : vector<4x128xf32>
    %24 = vector.shape_cast %23 : vector<4x128xf32> to vector<2x2x128xf32>
    %25 = arith.truncf %24 : vector<2x2x128xf32> to vector<2x2x128xbf16>
    %c0_15 = arith.constant 0 : index
    %c0_16 = arith.constant 0 : index
    %c0_17 = arith.constant 0 : index
    %c0_18 = arith.constant 0 : index
    %26 = vector.load %arg5[%c0_15, %c0_16, %c0_17, %c0_18] : memref<1x2x2x128xbf16, #tpu.memory_space<vmem>>, vector<1x2x2x128xbf16>
    %27 = vector.shape_cast %26 : vector<1x2x2x128xbf16> to vector<2x2x128xbf16>
    %28 = vector.shape_cast %25 : vector<2x2x128xbf16> to vector<1x2x2x128xbf16>
    tpu.vector_store %arg5[%c0_15, %c0_16, %c0_17, %c0_18], %28 {strides = array<i32>} : memref<1x2x2x128xbf16, #tpu.memory_space<vmem>>, vector<1x2x2x128xbf16>,
    return
  }
  func.func @transform_0(%arg0: i32, %arg1: i32) -> (i32, i32, i32, i32) {
    %c0_i32 = arith.constant 0 : i32
    %c0_i32_0 = arith.constant 0 : i32
    %c0_i32_1 = arith.constant 0 : i32
    return %arg0, %c0_i32, %arg1, %c0_i32_0 : i32, i32, i32, i32
  }
  func.func @transform_1(%arg0: i32, %arg1: i32) -> (i32, i32, i32) {
    %c0_i32 = arith.constant 0 : i32
    %c0_i32_0 = arith.constant 0 : i32
    %c0_i32_1 = arith.constant 0 : i32
    %c0_i32_2 = arith.constant 0 : i32
    return %c0_i32, %c0_i32_0, %c0_i32_1 : i32, i32, i32
  }
  func.func @transform_2(%arg0: i32, %arg1: i32) -> (i32, i32) {
    %c0_i32 = arith.constant 0 : i32
    %c0_i32_0 = arith.constant 0 : i32
    %c0_i32_1 = arith.constant 0 : i32
    return %c0_i32, %c0_i32_0 : i32, i32
  }
  func.func @transform_3(%arg0: i32, %arg1: i32) -> (i32, i32, i32, i32) {
    %c0_i32 = arith.constant 0 : i32
    %c0_i32_0 = arith.constant 0 : i32
    %c0_i32_1 = arith.constant 0 : i32
    return %arg0, %c0_i32, %arg1, %c0_i32_0 : i32, i32, i32, i32
  }
}

module attributes {stable_mosaic.version = 11 : i64} {
  func.func @_axisconv_kernel(%arg0: i32, %arg1: i32, %arg2: memref<1x6x2x128xbf16, #tpu.memory_space<vmem>>, %arg3: memref<3x128x128xbf16, #tpu.memory_space<vmem>>, %arg4: memref<1x128xf32, #tpu.memory_space<vmem>>, %arg5: memref<1x2x2x128xbf16, #tpu.memory_space<vmem>>) attributes {dimension_semantics = [#tpu.dimension_semantics<parallel>, #tpu.dimension_semantics<parallel>], iteration_bounds = array<i64: 2, 1>, scalar_prefetch = 0 : i64, scratch_operands = 0 : i64, tpu.core_type = #tpu.core_type<tc>, window_params = [{transform_indices = @transform_0, window_bounds = array<i64: 1, 6, 2, 128>}, {pipeline_mode = #tpu.pipeline_mode<synchronous>, transform_indices = @transform_1, window_bounds = array<i64: 3, 128, 128>}, {pipeline_mode = #tpu.pipeline_mode<synchronous>, transform_indices = @transform_2, window_bounds = array<i64: 1, 128>}, {transform_indices = @transform_3, window_bounds = array<i64: 1, 2, 2, 128>}]} {
    %c0 = arith.constant 0 : index
    %c0_0 = arith.constant 0 : index
    %c0_1 = arith.constant 0 : index
    %c0_2 = arith.constant 0 : index
    %0 = vector.load %arg2[%c0, %c0_0, %c0_1, %c0_2] : memref<1x6x2x128xbf16, #tpu.memory_space<vmem>>, vector<1x6x2x128xbf16>
    %1 = vector.shape_cast %0 : vector<1x6x2x128xbf16> to vector<6x2x128xbf16>
    %2 = vector.extract_strided_slice %1 {offsets = [0, 0, 0], sizes = [2, 2, 128], strides = [1, 1, 1]} : vector<6x2x128xbf16> to vector<2x2x128xbf16>
    %3 = vector.shape_cast %2 : vector<2x2x128xbf16> to vector<4x128xbf16>
    %c0_3 = arith.constant 0 : index
    %c0_4 = arith.constant 0 : index
    %c0_5 = arith.constant 0 : index
    %4 = vector.load %arg3[%c0_3, %c0_4, %c0_5] : memref<3x128x128xbf16, #tpu.memory_space<vmem>>, vector<1x128x128xbf16>
    %5 = vector.shape_cast %4 : vector<1x128x128xbf16> to vector<128x128xbf16>
    %cst = arith.constant dense<0.000000e+00> : vector<4x128xf32>
    %6 = tpu.matmul %3, %5, %cst {dimension_numbers = #tpu.dot_dimension_numbers<[1], [0], [0], [1], [0, 0, 1, 1], [], []>} : vector<4x128xbf16>, vector<128x128xbf16>, vector<4x128xf32> -> vector<4x128xf32>
    %7 = vector.extract_strided_slice %1 {offsets = [2, 0, 0], sizes = [2, 2, 128], strides = [1, 1, 1]} : vector<6x2x128xbf16> to vector<2x2x128xbf16>
    %8 = vector.shape_cast %7 : vector<2x2x128xbf16> to vector<4x128xbf16>
    %c1 = arith.constant 1 : index
    %c0_6 = arith.constant 0 : index
    %c0_7 = arith.constant 0 : index
    %9 = vector.load %arg3[%c1, %c0_6, %c0_7] : memref<3x128x128xbf16, #tpu.memory_space<vmem>>, vector<1x128x128xbf16>
    %10 = vector.shape_cast %9 : vector<1x128x128xbf16> to vector<128x128xbf16>
    %cst_8 = arith.constant dense<0.000000e+00> : vector<4x128xf32>
    %11 = tpu.matmul %8, %10, %cst_8 {dimension_numbers = #tpu.dot_dimension_numbers<[1], [0], [0], [1], [0, 0, 1, 1], [], []>} : vector<4x128xbf16>, vector<128x128xbf16>, vector<4x128xf32> -> vector<4x128xf32>
    %12 = arith.addf %6, %11 : vector<4x128xf32>
    %13 = vector.extract_strided_slice %1 {offsets = [4, 0, 0], sizes = [2, 2, 128], strides = [1, 1, 1]} : vector<6x2x128xbf16> to vector<2x2x128xbf16>
    %14 = vector.shape_cast %13 : vector<2x2x128xbf16> to vector<4x128xbf16>
    %c2 = arith.constant 2 : index
    %c0_9 = arith.constant 0 : index
    %c0_10 = arith.constant 0 : index
    %15 = vector.load %arg3[%c2, %c0_9, %c0_10] : memref<3x128x128xbf16, #tpu.memory_space<vmem>>, vector<1x128x128xbf16>
    %16 = vector.shape_cast %15 : vector<1x128x128xbf16> to vector<128x128xbf16>
    %cst_11 = arith.constant dense<0.000000e+00> : vector<4x128xf32>
    %17 = tpu.matmul %14, %16, %cst_11 {dimension_numbers = #tpu.dot_dimension_numbers<[1], [0], [0], [1], [0, 0, 1, 1], [], []>} : vector<4x128xbf16>, vector<128x128xbf16>, vector<4x128xf32> -> vector<4x128xf32>
    %18 = arith.addf %12, %17 : vector<4x128xf32>
    %c0_12 = arith.constant 0 : index
    %c0_13 = arith.constant 0 : index
    %19 = vector.load %arg4[%c0_12, %c0_13] : memref<1x128xf32, #tpu.memory_space<vmem>>, vector<1x128xf32>
    %20 = vector.broadcast %19 : vector<1x128xf32> to vector<4x128xf32>
    %21 = arith.addf %18, %20 : vector<4x128xf32>
    %cst_14 = arith.constant 0.000000e+00 : f32
    %22 = vector.broadcast %cst_14 : f32 to vector<4x128xf32>
    %23 = arith.maximumf %21, %22 : vector<4x128xf32>
    %24 = vector.shape_cast %23 : vector<4x128xf32> to vector<2x2x128xf32>
    %25 = arith.truncf %24 : vector<2x2x128xf32> to vector<2x2x128xbf16>
    %c0_15 = arith.constant 0 : index
    %c0_16 = arith.constant 0 : index
    %c0_17 = arith.constant 0 : index
    %c0_18 = arith.constant 0 : index
    %26 = vector.load %arg5[%c0_15, %c0_16, %c0_17, %c0_18] : memref<1x2x2x128xbf16, #tpu.memory_space<vmem>>, vector<1x2x2x128xbf16>
    %27 = vector.shape_cast %26 : vector<1x2x2x128xbf16> to vector<2x2x128xbf16>
    %28 = vector.shape_cast %25 : vector<2x2x128xbf16> to vector<1x2x2x128xbf16>
    tpu.vector_store %arg5[%c0_15, %c0_16, %c0_17, %c0_18], %28 {strides = array<i32>} : memref<1x2x2x128xbf16, #tpu.memory_space<vmem>>, vector<1x2x2x128xbf16>,
    return
  }
  func.func @transform_0(%arg0: i32, %arg1: i32) -> (i32, i32, i32, i32) {
    %c0_i32 = arith.constant 0 : i32
    %c0_i32_0 = arith.constant 0 : i32
    %c0_i32_1 = arith.constant 0 : i32
    return %arg0, %c0_i32, %arg1, %c0_i32_0 : i32, i32, i32, i32
  }
  func.func @transform_1(%arg0: i32, %arg1: i32) -> (i32, i32, i32) {
    %c0_i32 = arith.constant 0 : i32
    %c0_i32_0 = arith.constant 0 : i32
    %c0_i32_1 = arith.constant 0 : i32
    %c0_i32_2 = arith.constant 0 : i32
    return %c0_i32, %c0_i32_0, %c0_i32_1 : i32, i32, i32
  }
  func.func @transform_2(%arg0: i32, %arg1: i32) -> (i32, i32) {
    %c0_i32 = arith.constant 0 : i32
    %c0_i32_0 = arith.constant 0 : i32
    %c0_i32_1 = arith.constant 0 : i32
    return %c0_i32, %c0_i32_0 : i32, i32
  }
  func.func @transform_3(%arg0: i32, %arg1: i32) -> (i32, i32, i32, i32) {
    %c0_i32 = arith.constant 0 : i32
    %c0_i32_0 = arith.constant 0 : i32
    %c0_i32_1 = arith.constant 0 : i32
    return %arg0, %c0_i32, %arg1, %c0_i32_0 : i32, i32, i32, i32
  }
}

module attributes {stable_mosaic.version = 11 : i64} {
  func.func @_axisconv_kernel(%arg0: i32, %arg1: i32, %arg2: memref<1x2x4x128xbf16, #tpu.memory_space<vmem>>, %arg3: memref<3x128x128xbf16, #tpu.memory_space<vmem>>, %arg4: memref<1x128xf32, #tpu.memory_space<vmem>>, %arg5: memref<1x2x2x128xbf16, #tpu.memory_space<vmem>>) attributes {dimension_semantics = [#tpu.dimension_semantics<parallel>, #tpu.dimension_semantics<parallel>], iteration_bounds = array<i64: 2, 1>, scalar_prefetch = 0 : i64, scratch_operands = 0 : i64, tpu.core_type = #tpu.core_type<tc>, window_params = [{transform_indices = @transform_0, window_bounds = array<i64: 1, 2, 4, 128>}, {pipeline_mode = #tpu.pipeline_mode<synchronous>, transform_indices = @transform_1, window_bounds = array<i64: 3, 128, 128>}, {pipeline_mode = #tpu.pipeline_mode<synchronous>, transform_indices = @transform_2, window_bounds = array<i64: 1, 128>}, {transform_indices = @transform_3, window_bounds = array<i64: 1, 2, 2, 128>}]} {
    %c0 = arith.constant 0 : index
    %c0_0 = arith.constant 0 : index
    %c0_1 = arith.constant 0 : index
    %c0_2 = arith.constant 0 : index
    %0 = vector.load %arg2[%c0, %c0_0, %c0_1, %c0_2] : memref<1x2x4x128xbf16, #tpu.memory_space<vmem>>, vector<1x2x4x128xbf16>
    %1 = vector.shape_cast %0 : vector<1x2x4x128xbf16> to vector<2x4x128xbf16>
    %2 = vector.extract_strided_slice %1 {offsets = [0, 0, 0], sizes = [2, 2, 128], strides = [1, 1, 1]} : vector<2x4x128xbf16> to vector<2x2x128xbf16>
    %3 = vector.shape_cast %2 : vector<2x2x128xbf16> to vector<4x128xbf16>
    %c0_3 = arith.constant 0 : index
    %c0_4 = arith.constant 0 : index
    %c0_5 = arith.constant 0 : index
    %4 = vector.load %arg3[%c0_3, %c0_4, %c0_5] : memref<3x128x128xbf16, #tpu.memory_space<vmem>>, vector<1x128x128xbf16>
    %5 = vector.shape_cast %4 : vector<1x128x128xbf16> to vector<128x128xbf16>
    %cst = arith.constant dense<0.000000e+00> : vector<4x128xf32>
    %6 = tpu.matmul %3, %5, %cst {dimension_numbers = #tpu.dot_dimension_numbers<[1], [0], [0], [1], [0, 0, 1, 1], [], []>} : vector<4x128xbf16>, vector<128x128xbf16>, vector<4x128xf32> -> vector<4x128xf32>
    %7 = vector.extract_strided_slice %1 {offsets = [0, 1, 0], sizes = [2, 2, 128], strides = [1, 1, 1]} : vector<2x4x128xbf16> to vector<2x2x128xbf16>
    %8 = vector.shape_cast %7 : vector<2x2x128xbf16> to vector<4x128xbf16>
    %c1 = arith.constant 1 : index
    %c0_6 = arith.constant 0 : index
    %c0_7 = arith.constant 0 : index
    %9 = vector.load %arg3[%c1, %c0_6, %c0_7] : memref<3x128x128xbf16, #tpu.memory_space<vmem>>, vector<1x128x128xbf16>
    %10 = vector.shape_cast %9 : vector<1x128x128xbf16> to vector<128x128xbf16>
    %cst_8 = arith.constant dense<0.000000e+00> : vector<4x128xf32>
    %11 = tpu.matmul %8, %10, %cst_8 {dimension_numbers = #tpu.dot_dimension_numbers<[1], [0], [0], [1], [0, 0, 1, 1], [], []>} : vector<4x128xbf16>, vector<128x128xbf16>, vector<4x128xf32> -> vector<4x128xf32>
    %12 = arith.addf %6, %11 : vector<4x128xf32>
    %13 = vector.extract_strided_slice %1 {offsets = [0, 2, 0], sizes = [2, 2, 128], strides = [1, 1, 1]} : vector<2x4x128xbf16> to vector<2x2x128xbf16>
    %14 = vector.shape_cast %13 : vector<2x2x128xbf16> to vector<4x128xbf16>
    %c2 = arith.constant 2 : index
    %c0_9 = arith.constant 0 : index
    %c0_10 = arith.constant 0 : index
    %15 = vector.load %arg3[%c2, %c0_9, %c0_10] : memref<3x128x128xbf16, #tpu.memory_space<vmem>>, vector<1x128x128xbf16>
    %16 = vector.shape_cast %15 : vector<1x128x128xbf16> to vector<128x128xbf16>
    %cst_11 = arith.constant dense<0.000000e+00> : vector<4x128xf32>
    %17 = tpu.matmul %14, %16, %cst_11 {dimension_numbers = #tpu.dot_dimension_numbers<[1], [0], [0], [1], [0, 0, 1, 1], [], []>} : vector<4x128xbf16>, vector<128x128xbf16>, vector<4x128xf32> -> vector<4x128xf32>
    %18 = arith.addf %12, %17 : vector<4x128xf32>
    %c0_12 = arith.constant 0 : index
    %c0_13 = arith.constant 0 : index
    %19 = vector.load %arg4[%c0_12, %c0_13] : memref<1x128xf32, #tpu.memory_space<vmem>>, vector<1x128xf32>
    %20 = vector.broadcast %19 : vector<1x128xf32> to vector<4x128xf32>
    %21 = arith.addf %18, %20 : vector<4x128xf32>
    %cst_14 = arith.constant 0.000000e+00 : f32
    %22 = vector.broadcast %cst_14 : f32 to vector<4x128xf32>
    %23 = arith.maximumf %21, %22 : vector<4x128xf32>
    %24 = vector.shape_cast %23 : vector<4x128xf32> to vector<2x2x128xf32>
    %25 = arith.truncf %24 : vector<2x2x128xf32> to vector<2x2x128xbf16>
    %c0_15 = arith.constant 0 : index
    %c0_16 = arith.constant 0 : index
    %c0_17 = arith.constant 0 : index
    %c0_18 = arith.constant 0 : index
    %26 = vector.load %arg5[%c0_15, %c0_16, %c0_17, %c0_18] : memref<1x2x2x128xbf16, #tpu.memory_space<vmem>>, vector<1x2x2x128xbf16>
    %27 = vector.shape_cast %26 : vector<1x2x2x128xbf16> to vector<2x2x128xbf16>
    %28 = vector.shape_cast %25 : vector<2x2x128xbf16> to vector<1x2x2x128xbf16>
    tpu.vector_store %arg5[%c0_15, %c0_16, %c0_17, %c0_18], %28 {strides = array<i32>} : memref<1x2x2x128xbf16, #tpu.memory_space<vmem>>, vector<1x2x2x128xbf16>,
    return
  }
  func.func @transform_0(%arg0: i32, %arg1: i32) -> (i32, i32, i32, i32) {
    %c0_i32 = arith.constant 0 : i32
    %c0_i32_0 = arith.constant 0 : i32
    %c0_i32_1 = arith.constant 0 : i32
    return %arg0, %arg1, %c0_i32, %c0_i32_0 : i32, i32, i32, i32
  }
  func.func @transform_1(%arg0: i32, %arg1: i32) -> (i32, i32, i32) {
    %c0_i32 = arith.constant 0 : i32
    %c0_i32_0 = arith.constant 0 : i32
    %c0_i32_1 = arith.constant 0 : i32
    %c0_i32_2 = arith.constant 0 : i32
    return %c0_i32, %c0_i32_0, %c0_i32_1 : i32, i32, i32
  }
  func.func @transform_2(%arg0: i32, %arg1: i32) -> (i32, i32) {
    %c0_i32 = arith.constant 0 : i32
    %c0_i32_0 = arith.constant 0 : i32
    %c0_i32_1 = arith.constant 0 : i32
    return %c0_i32, %c0_i32_0 : i32, i32
  }
  func.func @transform_3(%arg0: i32, %arg1: i32) -> (i32, i32, i32, i32) {
    %c0_i32 = arith.constant 0 : i32
    %c0_i32_0 = arith.constant 0 : i32
    %c0_i32_1 = arith.constant 0 : i32
    return %arg0, %arg1, %c0_i32, %c0_i32_0 : i32, i32, i32, i32
  }
}

module attributes {stable_mosaic.version = 11 : i64} {
  func.func @_axisconv_kernel(%arg0: i32, %arg1: i32, %arg2: memref<1x2x6x128xbf16, #tpu.memory_space<vmem>>, %arg3: memref<3x128x128xbf16, #tpu.memory_space<vmem>>, %arg4: memref<1x128xf32, #tpu.memory_space<vmem>>, %arg5: memref<1x2x2x128xbf16, #tpu.memory_space<vmem>>, %arg6: memref<1x2x2x128xbf16, #tpu.memory_space<vmem>>) attributes {dimension_semantics = [#tpu.dimension_semantics<parallel>, #tpu.dimension_semantics<parallel>], iteration_bounds = array<i64: 2, 1>, scalar_prefetch = 0 : i64, scratch_operands = 0 : i64, tpu.core_type = #tpu.core_type<tc>, window_params = [{transform_indices = @transform_0, window_bounds = array<i64: 1, 2, 6, 128>}, {pipeline_mode = #tpu.pipeline_mode<synchronous>, transform_indices = @transform_1, window_bounds = array<i64: 3, 128, 128>}, {pipeline_mode = #tpu.pipeline_mode<synchronous>, transform_indices = @transform_2, window_bounds = array<i64: 1, 128>}, {transform_indices = @transform_3, window_bounds = array<i64: 1, 2, 2, 128>}, {transform_indices = @transform_4, window_bounds = array<i64: 1, 2, 2, 128>}]} {
    %c0 = arith.constant 0 : index
    %c0_0 = arith.constant 0 : index
    %c0_1 = arith.constant 0 : index
    %c0_2 = arith.constant 0 : index
    %0 = vector.load %arg2[%c0, %c0_0, %c0_1, %c0_2] : memref<1x2x6x128xbf16, #tpu.memory_space<vmem>>, vector<1x2x6x128xbf16>
    %1 = vector.shape_cast %0 : vector<1x2x6x128xbf16> to vector<2x6x128xbf16>
    %2 = vector.extract_strided_slice %1 {offsets = [0, 0, 0], sizes = [2, 2, 128], strides = [1, 1, 1]} : vector<2x6x128xbf16> to vector<2x2x128xbf16>
    %3 = vector.shape_cast %2 : vector<2x2x128xbf16> to vector<4x128xbf16>
    %c0_3 = arith.constant 0 : index
    %c0_4 = arith.constant 0 : index
    %c0_5 = arith.constant 0 : index
    %4 = vector.load %arg3[%c0_3, %c0_4, %c0_5] : memref<3x128x128xbf16, #tpu.memory_space<vmem>>, vector<1x128x128xbf16>
    %5 = vector.shape_cast %4 : vector<1x128x128xbf16> to vector<128x128xbf16>
    %cst = arith.constant dense<0.000000e+00> : vector<4x128xf32>
    %6 = tpu.matmul %3, %5, %cst {dimension_numbers = #tpu.dot_dimension_numbers<[1], [0], [0], [1], [0, 0, 1, 1], [], []>} : vector<4x128xbf16>, vector<128x128xbf16>, vector<4x128xf32> -> vector<4x128xf32>
    %7 = vector.extract_strided_slice %1 {offsets = [0, 2, 0], sizes = [2, 2, 128], strides = [1, 1, 1]} : vector<2x6x128xbf16> to vector<2x2x128xbf16>
    %8 = vector.shape_cast %7 : vector<2x2x128xbf16> to vector<4x128xbf16>
    %c1 = arith.constant 1 : index
    %c0_6 = arith.constant 0 : index
    %c0_7 = arith.constant 0 : index
    %9 = vector.load %arg3[%c1, %c0_6, %c0_7] : memref<3x128x128xbf16, #tpu.memory_space<vmem>>, vector<1x128x128xbf16>
    %10 = vector.shape_cast %9 : vector<1x128x128xbf16> to vector<128x128xbf16>
    %cst_8 = arith.constant dense<0.000000e+00> : vector<4x128xf32>
    %11 = tpu.matmul %8, %10, %cst_8 {dimension_numbers = #tpu.dot_dimension_numbers<[1], [0], [0], [1], [0, 0, 1, 1], [], []>} : vector<4x128xbf16>, vector<128x128xbf16>, vector<4x128xf32> -> vector<4x128xf32>
    %12 = arith.addf %6, %11 : vector<4x128xf32>
    %13 = vector.extract_strided_slice %1 {offsets = [0, 4, 0], sizes = [2, 2, 128], strides = [1, 1, 1]} : vector<2x6x128xbf16> to vector<2x2x128xbf16>
    %14 = vector.shape_cast %13 : vector<2x2x128xbf16> to vector<4x128xbf16>
    %c2 = arith.constant 2 : index
    %c0_9 = arith.constant 0 : index
    %c0_10 = arith.constant 0 : index
    %15 = vector.load %arg3[%c2, %c0_9, %c0_10] : memref<3x128x128xbf16, #tpu.memory_space<vmem>>, vector<1x128x128xbf16>
    %16 = vector.shape_cast %15 : vector<1x128x128xbf16> to vector<128x128xbf16>
    %cst_11 = arith.constant dense<0.000000e+00> : vector<4x128xf32>
    %17 = tpu.matmul %14, %16, %cst_11 {dimension_numbers = #tpu.dot_dimension_numbers<[1], [0], [0], [1], [0, 0, 1, 1], [], []>} : vector<4x128xbf16>, vector<128x128xbf16>, vector<4x128xf32> -> vector<4x128xf32>
    %18 = arith.addf %12, %17 : vector<4x128xf32>
    %c0_12 = arith.constant 0 : index
    %c0_13 = arith.constant 0 : index
    %19 = vector.load %arg4[%c0_12, %c0_13] : memref<1x128xf32, #tpu.memory_space<vmem>>, vector<1x128xf32>
    %20 = vector.broadcast %19 : vector<1x128xf32> to vector<4x128xf32>
    %21 = arith.addf %18, %20 : vector<4x128xf32>
    %c0_14 = arith.constant 0 : index
    %c0_15 = arith.constant 0 : index
    %c0_16 = arith.constant 0 : index
    %c0_17 = arith.constant 0 : index
    %22 = vector.load %arg5[%c0_14, %c0_15, %c0_16, %c0_17] : memref<1x2x2x128xbf16, #tpu.memory_space<vmem>>, vector<1x2x2x128xbf16>
    %23 = vector.shape_cast %22 : vector<1x2x2x128xbf16> to vector<2x2x128xbf16>
    %24 = vector.shape_cast %23 : vector<2x2x128xbf16> to vector<4x128xbf16>
    %25 = arith.extf %24 : vector<4x128xbf16> to vector<4x128xf32>
    %26 = arith.addf %21, %25 : vector<4x128xf32>
    %cst_18 = arith.constant 0.000000e+00 : f32
    %27 = vector.broadcast %cst_18 : f32 to vector<4x128xf32>
    %28 = arith.maximumf %26, %27 : vector<4x128xf32>
    %29 = vector.shape_cast %28 : vector<4x128xf32> to vector<2x2x128xf32>
    %30 = arith.truncf %29 : vector<2x2x128xf32> to vector<2x2x128xbf16>
    %c0_19 = arith.constant 0 : index
    %c0_20 = arith.constant 0 : index
    %c0_21 = arith.constant 0 : index
    %c0_22 = arith.constant 0 : index
    %31 = vector.load %arg6[%c0_19, %c0_20, %c0_21, %c0_22] : memref<1x2x2x128xbf16, #tpu.memory_space<vmem>>, vector<1x2x2x128xbf16>
    %32 = vector.shape_cast %31 : vector<1x2x2x128xbf16> to vector<2x2x128xbf16>
    %33 = vector.shape_cast %30 : vector<2x2x128xbf16> to vector<1x2x2x128xbf16>
    tpu.vector_store %arg6[%c0_19, %c0_20, %c0_21, %c0_22], %33 {strides = array<i32>} : memref<1x2x2x128xbf16, #tpu.memory_space<vmem>>, vector<1x2x2x128xbf16>,
    return
  }
  func.func @transform_0(%arg0: i32, %arg1: i32) -> (i32, i32, i32, i32) {
    %c0_i32 = arith.constant 0 : i32
    %c0_i32_0 = arith.constant 0 : i32
    %c0_i32_1 = arith.constant 0 : i32
    return %arg0, %arg1, %c0_i32, %c0_i32_0 : i32, i32, i32, i32
  }
  func.func @transform_1(%arg0: i32, %arg1: i32) -> (i32, i32, i32) {
    %c0_i32 = arith.constant 0 : i32
    %c0_i32_0 = arith.constant 0 : i32
    %c0_i32_1 = arith.constant 0 : i32
    %c0_i32_2 = arith.constant 0 : i32
    return %c0_i32, %c0_i32_0, %c0_i32_1 : i32, i32, i32
  }
  func.func @transform_2(%arg0: i32, %arg1: i32) -> (i32, i32) {
    %c0_i32 = arith.constant 0 : i32
    %c0_i32_0 = arith.constant 0 : i32
    %c0_i32_1 = arith.constant 0 : i32
    return %c0_i32, %c0_i32_0 : i32, i32
  }
  func.func @transform_3(%arg0: i32, %arg1: i32) -> (i32, i32, i32, i32) {
    %c0_i32 = arith.constant 0 : i32
    %c0_i32_0 = arith.constant 0 : i32
    %c0_i32_1 = arith.constant 0 : i32
    return %arg0, %arg1, %c0_i32, %c0_i32_0 : i32, i32, i32, i32
  }
  func.func @transform_4(%arg0: i32, %arg1: i32) -> (i32, i32, i32, i32) {
    %c0_i32 = arith.constant 0 : i32
    %c0_i32_0 = arith.constant 0 : i32
    %c0_i32_1 = arith.constant 0 : i32
    return %arg0, %arg1, %c0_i32, %c0_i32_0 : i32, i32, i32, i32
  }
}

module attributes {stable_mosaic.version = 11 : i64} {
  func.func @_axisconv_kernel(%arg0: i32, %arg1: i32, %arg2: memref<1x10x2x128xbf16, #tpu.memory_space<vmem>>, %arg3: memref<3x128x128xbf16, #tpu.memory_space<vmem>>, %arg4: memref<1x128xf32, #tpu.memory_space<vmem>>, %arg5: memref<1x2x2x128xbf16, #tpu.memory_space<vmem>>) attributes {dimension_semantics = [#tpu.dimension_semantics<parallel>, #tpu.dimension_semantics<parallel>], iteration_bounds = array<i64: 2, 1>, scalar_prefetch = 0 : i64, scratch_operands = 0 : i64, tpu.core_type = #tpu.core_type<tc>, window_params = [{transform_indices = @transform_0, window_bounds = array<i64: 1, 10, 2, 128>}, {pipeline_mode = #tpu.pipeline_mode<synchronous>, transform_indices = @transform_1, window_bounds = array<i64: 3, 128, 128>}, {pipeline_mode = #tpu.pipeline_mode<synchronous>, transform_indices = @transform_2, window_bounds = array<i64: 1, 128>}, {transform_indices = @transform_3, window_bounds = array<i64: 1, 2, 2, 128>}]} {
    %c0 = arith.constant 0 : index
    %c0_0 = arith.constant 0 : index
    %c0_1 = arith.constant 0 : index
    %c0_2 = arith.constant 0 : index
    %0 = vector.load %arg2[%c0, %c0_0, %c0_1, %c0_2] : memref<1x10x2x128xbf16, #tpu.memory_space<vmem>>, vector<1x10x2x128xbf16>
    %1 = vector.shape_cast %0 : vector<1x10x2x128xbf16> to vector<10x2x128xbf16>
    %2 = vector.extract_strided_slice %1 {offsets = [0, 0, 0], sizes = [2, 2, 128], strides = [1, 1, 1]} : vector<10x2x128xbf16> to vector<2x2x128xbf16>
    %3 = vector.shape_cast %2 : vector<2x2x128xbf16> to vector<4x128xbf16>
    %c0_3 = arith.constant 0 : index
    %c0_4 = arith.constant 0 : index
    %c0_5 = arith.constant 0 : index
    %4 = vector.load %arg3[%c0_3, %c0_4, %c0_5] : memref<3x128x128xbf16, #tpu.memory_space<vmem>>, vector<1x128x128xbf16>
    %5 = vector.shape_cast %4 : vector<1x128x128xbf16> to vector<128x128xbf16>
    %cst = arith.constant dense<0.000000e+00> : vector<4x128xf32>
    %6 = tpu.matmul %3, %5, %cst {dimension_numbers = #tpu.dot_dimension_numbers<[1], [0], [0], [1], [0, 0, 1, 1], [], []>} : vector<4x128xbf16>, vector<128x128xbf16>, vector<4x128xf32> -> vector<4x128xf32>
    %7 = vector.extract_strided_slice %1 {offsets = [4, 0, 0], sizes = [2, 2, 128], strides = [1, 1, 1]} : vector<10x2x128xbf16> to vector<2x2x128xbf16>
    %8 = vector.shape_cast %7 : vector<2x2x128xbf16> to vector<4x128xbf16>
    %c1 = arith.constant 1 : index
    %c0_6 = arith.constant 0 : index
    %c0_7 = arith.constant 0 : index
    %9 = vector.load %arg3[%c1, %c0_6, %c0_7] : memref<3x128x128xbf16, #tpu.memory_space<vmem>>, vector<1x128x128xbf16>
    %10 = vector.shape_cast %9 : vector<1x128x128xbf16> to vector<128x128xbf16>
    %cst_8 = arith.constant dense<0.000000e+00> : vector<4x128xf32>
    %11 = tpu.matmul %8, %10, %cst_8 {dimension_numbers = #tpu.dot_dimension_numbers<[1], [0], [0], [1], [0, 0, 1, 1], [], []>} : vector<4x128xbf16>, vector<128x128xbf16>, vector<4x128xf32> -> vector<4x128xf32>
    %12 = arith.addf %6, %11 : vector<4x128xf32>
    %13 = vector.extract_strided_slice %1 {offsets = [8, 0, 0], sizes = [2, 2, 128], strides = [1, 1, 1]} : vector<10x2x128xbf16> to vector<2x2x128xbf16>
    %14 = vector.shape_cast %13 : vector<2x2x128xbf16> to vector<4x128xbf16>
    %c2 = arith.constant 2 : index
    %c0_9 = arith.constant 0 : index
    %c0_10 = arith.constant 0 : index
    %15 = vector.load %arg3[%c2, %c0_9, %c0_10] : memref<3x128x128xbf16, #tpu.memory_space<vmem>>, vector<1x128x128xbf16>
    %16 = vector.shape_cast %15 : vector<1x128x128xbf16> to vector<128x128xbf16>
    %cst_11 = arith.constant dense<0.000000e+00> : vector<4x128xf32>
    %17 = tpu.matmul %14, %16, %cst_11 {dimension_numbers = #tpu.dot_dimension_numbers<[1], [0], [0], [1], [0, 0, 1, 1], [], []>} : vector<4x128xbf16>, vector<128x128xbf16>, vector<4x128xf32> -> vector<4x128xf32>
    %18 = arith.addf %12, %17 : vector<4x128xf32>
    %c0_12 = arith.constant 0 : index
    %c0_13 = arith.constant 0 : index
    %19 = vector.load %arg4[%c0_12, %c0_13] : memref<1x128xf32, #tpu.memory_space<vmem>>, vector<1x128xf32>
    %20 = vector.broadcast %19 : vector<1x128xf32> to vector<4x128xf32>
    %21 = arith.addf %18, %20 : vector<4x128xf32>
    %cst_14 = arith.constant 0.000000e+00 : f32
    %22 = vector.broadcast %cst_14 : f32 to vector<4x128xf32>
    %23 = arith.maximumf %21, %22 : vector<4x128xf32>
    %24 = vector.shape_cast %23 : vector<4x128xf32> to vector<2x2x128xf32>
    %25 = arith.truncf %24 : vector<2x2x128xf32> to vector<2x2x128xbf16>
    %c0_15 = arith.constant 0 : index
    %c0_16 = arith.constant 0 : index
    %c0_17 = arith.constant 0 : index
    %c0_18 = arith.constant 0 : index
    %26 = vector.load %arg5[%c0_15, %c0_16, %c0_17, %c0_18] : memref<1x2x2x128xbf16, #tpu.memory_space<vmem>>, vector<1x2x2x128xbf16>
    %27 = vector.shape_cast %26 : vector<1x2x2x128xbf16> to vector<2x2x128xbf16>
    %28 = vector.shape_cast %25 : vector<2x2x128xbf16> to vector<1x2x2x128xbf16>
    tpu.vector_store %arg5[%c0_15, %c0_16, %c0_17, %c0_18], %28 {strides = array<i32>} : memref<1x2x2x128xbf16, #tpu.memory_space<vmem>>, vector<1x2x2x128xbf16>,
    return
  }
  func.func @transform_0(%arg0: i32, %arg1: i32) -> (i32, i32, i32, i32) {
    %c0_i32 = arith.constant 0 : i32
    %c0_i32_0 = arith.constant 0 : i32
    %c0_i32_1 = arith.constant 0 : i32
    return %arg0, %c0_i32, %arg1, %c0_i32_0 : i32, i32, i32, i32
  }
  func.func @transform_1(%arg0: i32, %arg1: i32) -> (i32, i32, i32) {
    %c0_i32 = arith.constant 0 : i32
    %c0_i32_0 = arith.constant 0 : i32
    %c0_i32_1 = arith.constant 0 : i32
    %c0_i32_2 = arith.constant 0 : i32
    return %c0_i32, %c0_i32_0, %c0_i32_1 : i32, i32, i32
  }
  func.func @transform_2(%arg0: i32, %arg1: i32) -> (i32, i32) {
    %c0_i32 = arith.constant 0 : i32
    %c0_i32_0 = arith.constant 0 : i32
    %c0_i32_1 = arith.constant 0 : i32
    return %c0_i32, %c0_i32_0 : i32, i32
  }
  func.func @transform_3(%arg0: i32, %arg1: i32) -> (i32, i32, i32, i32) {
    %c0_i32 = arith.constant 0 : i32
    %c0_i32_0 = arith.constant 0 : i32
    %c0_i32_1 = arith.constant 0 : i32
    return %arg0, %c0_i32, %arg1, %c0_i32_0 : i32, i32, i32, i32
  }
}

module attributes {stable_mosaic.version = 11 : i64} {
  func.func @_axisconv_kernel(%arg0: i32, %arg1: i32, %arg2: memref<1x2x10x128xbf16, #tpu.memory_space<vmem>>, %arg3: memref<3x128x128xbf16, #tpu.memory_space<vmem>>, %arg4: memref<1x128xf32, #tpu.memory_space<vmem>>, %arg5: memref<1x2x2x128xbf16, #tpu.memory_space<vmem>>, %arg6: memref<1x2x2x128xbf16, #tpu.memory_space<vmem>>) attributes {dimension_semantics = [#tpu.dimension_semantics<parallel>, #tpu.dimension_semantics<parallel>], iteration_bounds = array<i64: 2, 1>, scalar_prefetch = 0 : i64, scratch_operands = 0 : i64, tpu.core_type = #tpu.core_type<tc>, window_params = [{transform_indices = @transform_0, window_bounds = array<i64: 1, 2, 10, 128>}, {pipeline_mode = #tpu.pipeline_mode<synchronous>, transform_indices = @transform_1, window_bounds = array<i64: 3, 128, 128>}, {pipeline_mode = #tpu.pipeline_mode<synchronous>, transform_indices = @transform_2, window_bounds = array<i64: 1, 128>}, {transform_indices = @transform_3, window_bounds = array<i64: 1, 2, 2, 128>}, {transform_indices = @transform_4, window_bounds = array<i64: 1, 2, 2, 128>}]} {
    %c0 = arith.constant 0 : index
    %c0_0 = arith.constant 0 : index
    %c0_1 = arith.constant 0 : index
    %c0_2 = arith.constant 0 : index
    %0 = vector.load %arg2[%c0, %c0_0, %c0_1, %c0_2] : memref<1x2x10x128xbf16, #tpu.memory_space<vmem>>, vector<1x2x10x128xbf16>
    %1 = vector.shape_cast %0 : vector<1x2x10x128xbf16> to vector<2x10x128xbf16>
    %2 = vector.extract_strided_slice %1 {offsets = [0, 0, 0], sizes = [2, 2, 128], strides = [1, 1, 1]} : vector<2x10x128xbf16> to vector<2x2x128xbf16>
    %3 = vector.shape_cast %2 : vector<2x2x128xbf16> to vector<4x128xbf16>
    %c0_3 = arith.constant 0 : index
    %c0_4 = arith.constant 0 : index
    %c0_5 = arith.constant 0 : index
    %4 = vector.load %arg3[%c0_3, %c0_4, %c0_5] : memref<3x128x128xbf16, #tpu.memory_space<vmem>>, vector<1x128x128xbf16>
    %5 = vector.shape_cast %4 : vector<1x128x128xbf16> to vector<128x128xbf16>
    %cst = arith.constant dense<0.000000e+00> : vector<4x128xf32>
    %6 = tpu.matmul %3, %5, %cst {dimension_numbers = #tpu.dot_dimension_numbers<[1], [0], [0], [1], [0, 0, 1, 1], [], []>} : vector<4x128xbf16>, vector<128x128xbf16>, vector<4x128xf32> -> vector<4x128xf32>
    %7 = vector.extract_strided_slice %1 {offsets = [0, 4, 0], sizes = [2, 2, 128], strides = [1, 1, 1]} : vector<2x10x128xbf16> to vector<2x2x128xbf16>
    %8 = vector.shape_cast %7 : vector<2x2x128xbf16> to vector<4x128xbf16>
    %c1 = arith.constant 1 : index
    %c0_6 = arith.constant 0 : index
    %c0_7 = arith.constant 0 : index
    %9 = vector.load %arg3[%c1, %c0_6, %c0_7] : memref<3x128x128xbf16, #tpu.memory_space<vmem>>, vector<1x128x128xbf16>
    %10 = vector.shape_cast %9 : vector<1x128x128xbf16> to vector<128x128xbf16>
    %cst_8 = arith.constant dense<0.000000e+00> : vector<4x128xf32>
    %11 = tpu.matmul %8, %10, %cst_8 {dimension_numbers = #tpu.dot_dimension_numbers<[1], [0], [0], [1], [0, 0, 1, 1], [], []>} : vector<4x128xbf16>, vector<128x128xbf16>, vector<4x128xf32> -> vector<4x128xf32>
    %12 = arith.addf %6, %11 : vector<4x128xf32>
    %13 = vector.extract_strided_slice %1 {offsets = [0, 8, 0], sizes = [2, 2, 128], strides = [1, 1, 1]} : vector<2x10x128xbf16> to vector<2x2x128xbf16>
    %14 = vector.shape_cast %13 : vector<2x2x128xbf16> to vector<4x128xbf16>
    %c2 = arith.constant 2 : index
    %c0_9 = arith.constant 0 : index
    %c0_10 = arith.constant 0 : index
    %15 = vector.load %arg3[%c2, %c0_9, %c0_10] : memref<3x128x128xbf16, #tpu.memory_space<vmem>>, vector<1x128x128xbf16>
    %16 = vector.shape_cast %15 : vector<1x128x128xbf16> to vector<128x128xbf16>
    %cst_11 = arith.constant dense<0.000000e+00> : vector<4x128xf32>
    %17 = tpu.matmul %14, %16, %cst_11 {dimension_numbers = #tpu.dot_dimension_numbers<[1], [0], [0], [1], [0, 0, 1, 1], [], []>} : vector<4x128xbf16>, vector<128x128xbf16>, vector<4x128xf32> -> vector<4x128xf32>
    %18 = arith.addf %12, %17 : vector<4x128xf32>
    %c0_12 = arith.constant 0 : index
    %c0_13 = arith.constant 0 : index
    %19 = vector.load %arg4[%c0_12, %c0_13] : memref<1x128xf32, #tpu.memory_space<vmem>>, vector<1x128xf32>
    %20 = vector.broadcast %19 : vector<1x128xf32> to vector<4x128xf32>
    %21 = arith.addf %18, %20 : vector<4x128xf32>
    %c0_14 = arith.constant 0 : index
    %c0_15 = arith.constant 0 : index
    %c0_16 = arith.constant 0 : index
    %c0_17 = arith.constant 0 : index
    %22 = vector.load %arg5[%c0_14, %c0_15, %c0_16, %c0_17] : memref<1x2x2x128xbf16, #tpu.memory_space<vmem>>, vector<1x2x2x128xbf16>
    %23 = vector.shape_cast %22 : vector<1x2x2x128xbf16> to vector<2x2x128xbf16>
    %24 = vector.shape_cast %23 : vector<2x2x128xbf16> to vector<4x128xbf16>
    %25 = arith.extf %24 : vector<4x128xbf16> to vector<4x128xf32>
    %26 = arith.addf %21, %25 : vector<4x128xf32>
    %cst_18 = arith.constant 0.000000e+00 : f32
    %27 = vector.broadcast %cst_18 : f32 to vector<4x128xf32>
    %28 = arith.maximumf %26, %27 : vector<4x128xf32>
    %29 = vector.shape_cast %28 : vector<4x128xf32> to vector<2x2x128xf32>
    %30 = arith.truncf %29 : vector<2x2x128xf32> to vector<2x2x128xbf16>
    %c0_19 = arith.constant 0 : index
    %c0_20 = arith.constant 0 : index
    %c0_21 = arith.constant 0 : index
    %c0_22 = arith.constant 0 : index
    %31 = vector.load %arg6[%c0_19, %c0_20, %c0_21, %c0_22] : memref<1x2x2x128xbf16, #tpu.memory_space<vmem>>, vector<1x2x2x128xbf16>
    %32 = vector.shape_cast %31 : vector<1x2x2x128xbf16> to vector<2x2x128xbf16>
    %33 = vector.shape_cast %30 : vector<2x2x128xbf16> to vector<1x2x2x128xbf16>
    tpu.vector_store %arg6[%c0_19, %c0_20, %c0_21, %c0_22], %33 {strides = array<i32>} : memref<1x2x2x128xbf16, #tpu.memory_space<vmem>>, vector<1x2x2x128xbf16>,
    return
  }
  func.func @transform_0(%arg0: i32, %arg1: i32) -> (i32, i32, i32, i32) {
    %c0_i32 = arith.constant 0 : i32
    %c0_i32_0 = arith.constant 0 : i32
    %c0_i32_1 = arith.constant 0 : i32
    return %arg0, %arg1, %c0_i32, %c0_i32_0 : i32, i32, i32, i32
  }
  func.func @transform_1(%arg0: i32, %arg1: i32) -> (i32, i32, i32) {
    %c0_i32 = arith.constant 0 : i32
    %c0_i32_0 = arith.constant 0 : i32
    %c0_i32_1 = arith.constant 0 : i32
    %c0_i32_2 = arith.constant 0 : i32
    return %c0_i32, %c0_i32_0, %c0_i32_1 : i32, i32, i32
  }
  func.func @transform_2(%arg0: i32, %arg1: i32) -> (i32, i32) {
    %c0_i32 = arith.constant 0 : i32
    %c0_i32_0 = arith.constant 0 : i32
    %c0_i32_1 = arith.constant 0 : i32
    return %c0_i32, %c0_i32_0 : i32, i32
  }
  func.func @transform_3(%arg0: i32, %arg1: i32) -> (i32, i32, i32, i32) {
    %c0_i32 = arith.constant 0 : i32
    %c0_i32_0 = arith.constant 0 : i32
    %c0_i32_1 = arith.constant 0 : i32
    return %arg0, %arg1, %c0_i32, %c0_i32_0 : i32, i32, i32, i32
  }
  func.func @transform_4(%arg0: i32, %arg1: i32) -> (i32, i32, i32, i32) {
    %c0_i32 = arith.constant 0 : i32
    %c0_i32_0 = arith.constant 0 : i32
    %c0_i32_1 = arith.constant 0 : i32
    return %arg0, %arg1, %c0_i32, %c0_i32_0 : i32, i32, i32, i32
  }
}

module attributes {stable_mosaic.version = 11 : i64} {
  func.func @_axisconv_kernel(%arg0: i32, %arg1: i32, %arg2: memref<1x18x2x128xbf16, #tpu.memory_space<vmem>>, %arg3: memref<3x128x128xbf16, #tpu.memory_space<vmem>>, %arg4: memref<1x128xf32, #tpu.memory_space<vmem>>, %arg5: memref<1x2x2x128xbf16, #tpu.memory_space<vmem>>) attributes {dimension_semantics = [#tpu.dimension_semantics<parallel>, #tpu.dimension_semantics<parallel>], iteration_bounds = array<i64: 2, 1>, scalar_prefetch = 0 : i64, scratch_operands = 0 : i64, tpu.core_type = #tpu.core_type<tc>, window_params = [{transform_indices = @transform_0, window_bounds = array<i64: 1, 18, 2, 128>}, {pipeline_mode = #tpu.pipeline_mode<synchronous>, transform_indices = @transform_1, window_bounds = array<i64: 3, 128, 128>}, {pipeline_mode = #tpu.pipeline_mode<synchronous>, transform_indices = @transform_2, window_bounds = array<i64: 1, 128>}, {transform_indices = @transform_3, window_bounds = array<i64: 1, 2, 2, 128>}]} {
    %c0 = arith.constant 0 : index
    %c0_0 = arith.constant 0 : index
    %c0_1 = arith.constant 0 : index
    %c0_2 = arith.constant 0 : index
    %0 = vector.load %arg2[%c0, %c0_0, %c0_1, %c0_2] : memref<1x18x2x128xbf16, #tpu.memory_space<vmem>>, vector<1x18x2x128xbf16>
    %1 = vector.shape_cast %0 : vector<1x18x2x128xbf16> to vector<18x2x128xbf16>
    %2 = vector.extract_strided_slice %1 {offsets = [0, 0, 0], sizes = [2, 2, 128], strides = [1, 1, 1]} : vector<18x2x128xbf16> to vector<2x2x128xbf16>
    %3 = vector.shape_cast %2 : vector<2x2x128xbf16> to vector<4x128xbf16>
    %c0_3 = arith.constant 0 : index
    %c0_4 = arith.constant 0 : index
    %c0_5 = arith.constant 0 : index
    %4 = vector.load %arg3[%c0_3, %c0_4, %c0_5] : memref<3x128x128xbf16, #tpu.memory_space<vmem>>, vector<1x128x128xbf16>
    %5 = vector.shape_cast %4 : vector<1x128x128xbf16> to vector<128x128xbf16>
    %cst = arith.constant dense<0.000000e+00> : vector<4x128xf32>
    %6 = tpu.matmul %3, %5, %cst {dimension_numbers = #tpu.dot_dimension_numbers<[1], [0], [0], [1], [0, 0, 1, 1], [], []>} : vector<4x128xbf16>, vector<128x128xbf16>, vector<4x128xf32> -> vector<4x128xf32>
    %7 = vector.extract_strided_slice %1 {offsets = [8, 0, 0], sizes = [2, 2, 128], strides = [1, 1, 1]} : vector<18x2x128xbf16> to vector<2x2x128xbf16>
    %8 = vector.shape_cast %7 : vector<2x2x128xbf16> to vector<4x128xbf16>
    %c1 = arith.constant 1 : index
    %c0_6 = arith.constant 0 : index
    %c0_7 = arith.constant 0 : index
    %9 = vector.load %arg3[%c1, %c0_6, %c0_7] : memref<3x128x128xbf16, #tpu.memory_space<vmem>>, vector<1x128x128xbf16>
    %10 = vector.shape_cast %9 : vector<1x128x128xbf16> to vector<128x128xbf16>
    %cst_8 = arith.constant dense<0.000000e+00> : vector<4x128xf32>
    %11 = tpu.matmul %8, %10, %cst_8 {dimension_numbers = #tpu.dot_dimension_numbers<[1], [0], [0], [1], [0, 0, 1, 1], [], []>} : vector<4x128xbf16>, vector<128x128xbf16>, vector<4x128xf32> -> vector<4x128xf32>
    %12 = arith.addf %6, %11 : vector<4x128xf32>
    %13 = vector.extract_strided_slice %1 {offsets = [16, 0, 0], sizes = [2, 2, 128], strides = [1, 1, 1]} : vector<18x2x128xbf16> to vector<2x2x128xbf16>
    %14 = vector.shape_cast %13 : vector<2x2x128xbf16> to vector<4x128xbf16>
    %c2 = arith.constant 2 : index
    %c0_9 = arith.constant 0 : index
    %c0_10 = arith.constant 0 : index
    %15 = vector.load %arg3[%c2, %c0_9, %c0_10] : memref<3x128x128xbf16, #tpu.memory_space<vmem>>, vector<1x128x128xbf16>
    %16 = vector.shape_cast %15 : vector<1x128x128xbf16> to vector<128x128xbf16>
    %cst_11 = arith.constant dense<0.000000e+00> : vector<4x128xf32>
    %17 = tpu.matmul %14, %16, %cst_11 {dimension_numbers = #tpu.dot_dimension_numbers<[1], [0], [0], [1], [0, 0, 1, 1], [], []>} : vector<4x128xbf16>, vector<128x128xbf16>, vector<4x128xf32> -> vector<4x128xf32>
    %18 = arith.addf %12, %17 : vector<4x128xf32>
    %c0_12 = arith.constant 0 : index
    %c0_13 = arith.constant 0 : index
    %19 = vector.load %arg4[%c0_12, %c0_13] : memref<1x128xf32, #tpu.memory_space<vmem>>, vector<1x128xf32>
    %20 = vector.broadcast %19 : vector<1x128xf32> to vector<4x128xf32>
    %21 = arith.addf %18, %20 : vector<4x128xf32>
    %cst_14 = arith.constant 0.000000e+00 : f32
    %22 = vector.broadcast %cst_14 : f32 to vector<4x128xf32>
    %23 = arith.maximumf %21, %22 : vector<4x128xf32>
    %24 = vector.shape_cast %23 : vector<4x128xf32> to vector<2x2x128xf32>
    %25 = arith.truncf %24 : vector<2x2x128xf32> to vector<2x2x128xbf16>
    %c0_15 = arith.constant 0 : index
    %c0_16 = arith.constant 0 : index
    %c0_17 = arith.constant 0 : index
    %c0_18 = arith.constant 0 : index
    %26 = vector.load %arg5[%c0_15, %c0_16, %c0_17, %c0_18] : memref<1x2x2x128xbf16, #tpu.memory_space<vmem>>, vector<1x2x2x128xbf16>
    %27 = vector.shape_cast %26 : vector<1x2x2x128xbf16> to vector<2x2x128xbf16>
    %28 = vector.shape_cast %25 : vector<2x2x128xbf16> to vector<1x2x2x128xbf16>
    tpu.vector_store %arg5[%c0_15, %c0_16, %c0_17, %c0_18], %28 {strides = array<i32>} : memref<1x2x2x128xbf16, #tpu.memory_space<vmem>>, vector<1x2x2x128xbf16>,
    return
  }
  func.func @transform_0(%arg0: i32, %arg1: i32) -> (i32, i32, i32, i32) {
    %c0_i32 = arith.constant 0 : i32
    %c0_i32_0 = arith.constant 0 : i32
    %c0_i32_1 = arith.constant 0 : i32
    return %arg0, %c0_i32, %arg1, %c0_i32_0 : i32, i32, i32, i32
  }
  func.func @transform_1(%arg0: i32, %arg1: i32) -> (i32, i32, i32) {
    %c0_i32 = arith.constant 0 : i32
    %c0_i32_0 = arith.constant 0 : i32
    %c0_i32_1 = arith.constant 0 : i32
    %c0_i32_2 = arith.constant 0 : i32
    return %c0_i32, %c0_i32_0, %c0_i32_1 : i32, i32, i32
  }
  func.func @transform_2(%arg0: i32, %arg1: i32) -> (i32, i32) {
    %c0_i32 = arith.constant 0 : i32
    %c0_i32_0 = arith.constant 0 : i32
    %c0_i32_1 = arith.constant 0 : i32
    return %c0_i32, %c0_i32_0 : i32, i32
  }
  func.func @transform_3(%arg0: i32, %arg1: i32) -> (i32, i32, i32, i32) {
    %c0_i32 = arith.constant 0 : i32
    %c0_i32_0 = arith.constant 0 : i32
    %c0_i32_1 = arith.constant 0 : i32
    return %arg0, %c0_i32, %arg1, %c0_i32_0 : i32, i32, i32, i32
  }
}

module attributes {stable_mosaic.version = 11 : i64} {
  func.func @_axisconv_kernel(%arg0: i32, %arg1: i32, %arg2: memref<1x2x18x128xbf16, #tpu.memory_space<vmem>>, %arg3: memref<3x128x128xbf16, #tpu.memory_space<vmem>>, %arg4: memref<1x128xf32, #tpu.memory_space<vmem>>, %arg5: memref<1x2x2x128xbf16, #tpu.memory_space<vmem>>, %arg6: memref<1x2x2x128xbf16, #tpu.memory_space<vmem>>) attributes {dimension_semantics = [#tpu.dimension_semantics<parallel>, #tpu.dimension_semantics<parallel>], iteration_bounds = array<i64: 2, 1>, scalar_prefetch = 0 : i64, scratch_operands = 0 : i64, tpu.core_type = #tpu.core_type<tc>, window_params = [{transform_indices = @transform_0, window_bounds = array<i64: 1, 2, 18, 128>}, {pipeline_mode = #tpu.pipeline_mode<synchronous>, transform_indices = @transform_1, window_bounds = array<i64: 3, 128, 128>}, {pipeline_mode = #tpu.pipeline_mode<synchronous>, transform_indices = @transform_2, window_bounds = array<i64: 1, 128>}, {transform_indices = @transform_3, window_bounds = array<i64: 1, 2, 2, 128>}, {transform_indices = @transform_4, window_bounds = array<i64: 1, 2, 2, 128>}]} {
    %c0 = arith.constant 0 : index
    %c0_0 = arith.constant 0 : index
    %c0_1 = arith.constant 0 : index
    %c0_2 = arith.constant 0 : index
    %0 = vector.load %arg2[%c0, %c0_0, %c0_1, %c0_2] : memref<1x2x18x128xbf16, #tpu.memory_space<vmem>>, vector<1x2x18x128xbf16>
    %1 = vector.shape_cast %0 : vector<1x2x18x128xbf16> to vector<2x18x128xbf16>
    %2 = vector.extract_strided_slice %1 {offsets = [0, 0, 0], sizes = [2, 2, 128], strides = [1, 1, 1]} : vector<2x18x128xbf16> to vector<2x2x128xbf16>
    %3 = vector.shape_cast %2 : vector<2x2x128xbf16> to vector<4x128xbf16>
    %c0_3 = arith.constant 0 : index
    %c0_4 = arith.constant 0 : index
    %c0_5 = arith.constant 0 : index
    %4 = vector.load %arg3[%c0_3, %c0_4, %c0_5] : memref<3x128x128xbf16, #tpu.memory_space<vmem>>, vector<1x128x128xbf16>
    %5 = vector.shape_cast %4 : vector<1x128x128xbf16> to vector<128x128xbf16>
    %cst = arith.constant dense<0.000000e+00> : vector<4x128xf32>
    %6 = tpu.matmul %3, %5, %cst {dimension_numbers = #tpu.dot_dimension_numbers<[1], [0], [0], [1], [0, 0, 1, 1], [], []>} : vector<4x128xbf16>, vector<128x128xbf16>, vector<4x128xf32> -> vector<4x128xf32>
    %7 = vector.extract_strided_slice %1 {offsets = [0, 8, 0], sizes = [2, 2, 128], strides = [1, 1, 1]} : vector<2x18x128xbf16> to vector<2x2x128xbf16>
    %8 = vector.shape_cast %7 : vector<2x2x128xbf16> to vector<4x128xbf16>
    %c1 = arith.constant 1 : index
    %c0_6 = arith.constant 0 : index
    %c0_7 = arith.constant 0 : index
    %9 = vector.load %arg3[%c1, %c0_6, %c0_7] : memref<3x128x128xbf16, #tpu.memory_space<vmem>>, vector<1x128x128xbf16>
    %10 = vector.shape_cast %9 : vector<1x128x128xbf16> to vector<128x128xbf16>
    %cst_8 = arith.constant dense<0.000000e+00> : vector<4x128xf32>
    %11 = tpu.matmul %8, %10, %cst_8 {dimension_numbers = #tpu.dot_dimension_numbers<[1], [0], [0], [1], [0, 0, 1, 1], [], []>} : vector<4x128xbf16>, vector<128x128xbf16>, vector<4x128xf32> -> vector<4x128xf32>
    %12 = arith.addf %6, %11 : vector<4x128xf32>
    %13 = vector.extract_strided_slice %1 {offsets = [0, 16, 0], sizes = [2, 2, 128], strides = [1, 1, 1]} : vector<2x18x128xbf16> to vector<2x2x128xbf16>
    %14 = vector.shape_cast %13 : vector<2x2x128xbf16> to vector<4x128xbf16>
    %c2 = arith.constant 2 : index
    %c0_9 = arith.constant 0 : index
    %c0_10 = arith.constant 0 : index
    %15 = vector.load %arg3[%c2, %c0_9, %c0_10] : memref<3x128x128xbf16, #tpu.memory_space<vmem>>, vector<1x128x128xbf16>
    %16 = vector.shape_cast %15 : vector<1x128x128xbf16> to vector<128x128xbf16>
    %cst_11 = arith.constant dense<0.000000e+00> : vector<4x128xf32>
    %17 = tpu.matmul %14, %16, %cst_11 {dimension_numbers = #tpu.dot_dimension_numbers<[1], [0], [0], [1], [0, 0, 1, 1], [], []>} : vector<4x128xbf16>, vector<128x128xbf16>, vector<4x128xf32> -> vector<4x128xf32>
    %18 = arith.addf %12, %17 : vector<4x128xf32>
    %c0_12 = arith.constant 0 : index
    %c0_13 = arith.constant 0 : index
    %19 = vector.load %arg4[%c0_12, %c0_13] : memref<1x128xf32, #tpu.memory_space<vmem>>, vector<1x128xf32>
    %20 = vector.broadcast %19 : vector<1x128xf32> to vector<4x128xf32>
    %21 = arith.addf %18, %20 : vector<4x128xf32>
    %c0_14 = arith.constant 0 : index
    %c0_15 = arith.constant 0 : index
    %c0_16 = arith.constant 0 : index
    %c0_17 = arith.constant 0 : index
    %22 = vector.load %arg5[%c0_14, %c0_15, %c0_16, %c0_17] : memref<1x2x2x128xbf16, #tpu.memory_space<vmem>>, vector<1x2x2x128xbf16>
    %23 = vector.shape_cast %22 : vector<1x2x2x128xbf16> to vector<2x2x128xbf16>
    %24 = vector.shape_cast %23 : vector<2x2x128xbf16> to vector<4x128xbf16>
    %25 = arith.extf %24 : vector<4x128xbf16> to vector<4x128xf32>
    %26 = arith.addf %21, %25 : vector<4x128xf32>
    %cst_18 = arith.constant 0.000000e+00 : f32
    %27 = vector.broadcast %cst_18 : f32 to vector<4x128xf32>
    %28 = arith.maximumf %26, %27 : vector<4x128xf32>
    %29 = vector.shape_cast %28 : vector<4x128xf32> to vector<2x2x128xf32>
    %30 = arith.truncf %29 : vector<2x2x128xf32> to vector<2x2x128xbf16>
    %c0_19 = arith.constant 0 : index
    %c0_20 = arith.constant 0 : index
    %c0_21 = arith.constant 0 : index
    %c0_22 = arith.constant 0 : index
    %31 = vector.load %arg6[%c0_19, %c0_20, %c0_21, %c0_22] : memref<1x2x2x128xbf16, #tpu.memory_space<vmem>>, vector<1x2x2x128xbf16>
    %32 = vector.shape_cast %31 : vector<1x2x2x128xbf16> to vector<2x2x128xbf16>
    %33 = vector.shape_cast %30 : vector<2x2x128xbf16> to vector<1x2x2x128xbf16>
    tpu.vector_store %arg6[%c0_19, %c0_20, %c0_21, %c0_22], %33 {strides = array<i32>} : memref<1x2x2x128xbf16, #tpu.memory_space<vmem>>, vector<1x2x2x128xbf16>,
    return
  }
  func.func @transform_0(%arg0: i32, %arg1: i32) -> (i32, i32, i32, i32) {
    %c0_i32 = arith.constant 0 : i32
    %c0_i32_0 = arith.constant 0 : i32
    %c0_i32_1 = arith.constant 0 : i32
    return %arg0, %arg1, %c0_i32, %c0_i32_0 : i32, i32, i32, i32
  }
  func.func @transform_1(%arg0: i32, %arg1: i32) -> (i32, i32, i32) {
    %c0_i32 = arith.constant 0 : i32
    %c0_i32_0 = arith.constant 0 : i32
    %c0_i32_1 = arith.constant 0 : i32
    %c0_i32_2 = arith.constant 0 : i32
    return %c0_i32, %c0_i32_0, %c0_i32_1 : i32, i32, i32
  }
  func.func @transform_2(%arg0: i32, %arg1: i32) -> (i32, i32) {
    %c0_i32 = arith.constant 0 : i32
    %c0_i32_0 = arith.constant 0 : i32
    %c0_i32_1 = arith.constant 0 : i32
    return %c0_i32, %c0_i32_0 : i32, i32
  }
  func.func @transform_3(%arg0: i32, %arg1: i32) -> (i32, i32, i32, i32) {
    %c0_i32 = arith.constant 0 : i32
    %c0_i32_0 = arith.constant 0 : i32
    %c0_i32_1 = arith.constant 0 : i32
    return %arg0, %arg1, %c0_i32, %c0_i32_0 : i32, i32, i32, i32
  }
  func.func @transform_4(%arg0: i32, %arg1: i32) -> (i32, i32, i32, i32) {
    %c0_i32 = arith.constant 0 : i32
    %c0_i32_0 = arith.constant 0 : i32
    %c0_i32_1 = arith.constant 0 : i32
    return %arg0, %arg1, %c0_i32, %c0_i32_0 : i32, i32, i32, i32
  }
}

module attributes {stable_mosaic.version = 11 : i64} {
  func.func @_axisconv_kernel(%arg0: i32, %arg1: i32, %arg2: memref<1x34x2x128xbf16, #tpu.memory_space<vmem>>, %arg3: memref<3x128x128xbf16, #tpu.memory_space<vmem>>, %arg4: memref<1x128xf32, #tpu.memory_space<vmem>>, %arg5: memref<1x2x2x128xbf16, #tpu.memory_space<vmem>>) attributes {dimension_semantics = [#tpu.dimension_semantics<parallel>, #tpu.dimension_semantics<parallel>], iteration_bounds = array<i64: 2, 1>, scalar_prefetch = 0 : i64, scratch_operands = 0 : i64, tpu.core_type = #tpu.core_type<tc>, window_params = [{transform_indices = @transform_0, window_bounds = array<i64: 1, 34, 2, 128>}, {pipeline_mode = #tpu.pipeline_mode<synchronous>, transform_indices = @transform_1, window_bounds = array<i64: 3, 128, 128>}, {pipeline_mode = #tpu.pipeline_mode<synchronous>, transform_indices = @transform_2, window_bounds = array<i64: 1, 128>}, {transform_indices = @transform_3, window_bounds = array<i64: 1, 2, 2, 128>}]} {
    %c0 = arith.constant 0 : index
    %c0_0 = arith.constant 0 : index
    %c0_1 = arith.constant 0 : index
    %c0_2 = arith.constant 0 : index
    %0 = vector.load %arg2[%c0, %c0_0, %c0_1, %c0_2] : memref<1x34x2x128xbf16, #tpu.memory_space<vmem>>, vector<1x34x2x128xbf16>
    %1 = vector.shape_cast %0 : vector<1x34x2x128xbf16> to vector<34x2x128xbf16>
    %2 = vector.extract_strided_slice %1 {offsets = [0, 0, 0], sizes = [2, 2, 128], strides = [1, 1, 1]} : vector<34x2x128xbf16> to vector<2x2x128xbf16>
    %3 = vector.shape_cast %2 : vector<2x2x128xbf16> to vector<4x128xbf16>
    %c0_3 = arith.constant 0 : index
    %c0_4 = arith.constant 0 : index
    %c0_5 = arith.constant 0 : index
    %4 = vector.load %arg3[%c0_3, %c0_4, %c0_5] : memref<3x128x128xbf16, #tpu.memory_space<vmem>>, vector<1x128x128xbf16>
    %5 = vector.shape_cast %4 : vector<1x128x128xbf16> to vector<128x128xbf16>
    %cst = arith.constant dense<0.000000e+00> : vector<4x128xf32>
    %6 = tpu.matmul %3, %5, %cst {dimension_numbers = #tpu.dot_dimension_numbers<[1], [0], [0], [1], [0, 0, 1, 1], [], []>} : vector<4x128xbf16>, vector<128x128xbf16>, vector<4x128xf32> -> vector<4x128xf32>
    %7 = vector.extract_strided_slice %1 {offsets = [16, 0, 0], sizes = [2, 2, 128], strides = [1, 1, 1]} : vector<34x2x128xbf16> to vector<2x2x128xbf16>
    %8 = vector.shape_cast %7 : vector<2x2x128xbf16> to vector<4x128xbf16>
    %c1 = arith.constant 1 : index
    %c0_6 = arith.constant 0 : index
    %c0_7 = arith.constant 0 : index
    %9 = vector.load %arg3[%c1, %c0_6, %c0_7] : memref<3x128x128xbf16, #tpu.memory_space<vmem>>, vector<1x128x128xbf16>
    %10 = vector.shape_cast %9 : vector<1x128x128xbf16> to vector<128x128xbf16>
    %cst_8 = arith.constant dense<0.000000e+00> : vector<4x128xf32>
    %11 = tpu.matmul %8, %10, %cst_8 {dimension_numbers = #tpu.dot_dimension_numbers<[1], [0], [0], [1], [0, 0, 1, 1], [], []>} : vector<4x128xbf16>, vector<128x128xbf16>, vector<4x128xf32> -> vector<4x128xf32>
    %12 = arith.addf %6, %11 : vector<4x128xf32>
    %13 = vector.extract_strided_slice %1 {offsets = [32, 0, 0], sizes = [2, 2, 128], strides = [1, 1, 1]} : vector<34x2x128xbf16> to vector<2x2x128xbf16>
    %14 = vector.shape_cast %13 : vector<2x2x128xbf16> to vector<4x128xbf16>
    %c2 = arith.constant 2 : index
    %c0_9 = arith.constant 0 : index
    %c0_10 = arith.constant 0 : index
    %15 = vector.load %arg3[%c2, %c0_9, %c0_10] : memref<3x128x128xbf16, #tpu.memory_space<vmem>>, vector<1x128x128xbf16>
    %16 = vector.shape_cast %15 : vector<1x128x128xbf16> to vector<128x128xbf16>
    %cst_11 = arith.constant dense<0.000000e+00> : vector<4x128xf32>
    %17 = tpu.matmul %14, %16, %cst_11 {dimension_numbers = #tpu.dot_dimension_numbers<[1], [0], [0], [1], [0, 0, 1, 1], [], []>} : vector<4x128xbf16>, vector<128x128xbf16>, vector<4x128xf32> -> vector<4x128xf32>
    %18 = arith.addf %12, %17 : vector<4x128xf32>
    %c0_12 = arith.constant 0 : index
    %c0_13 = arith.constant 0 : index
    %19 = vector.load %arg4[%c0_12, %c0_13] : memref<1x128xf32, #tpu.memory_space<vmem>>, vector<1x128xf32>
    %20 = vector.broadcast %19 : vector<1x128xf32> to vector<4x128xf32>
    %21 = arith.addf %18, %20 : vector<4x128xf32>
    %cst_14 = arith.constant 0.000000e+00 : f32
    %22 = vector.broadcast %cst_14 : f32 to vector<4x128xf32>
    %23 = arith.maximumf %21, %22 : vector<4x128xf32>
    %24 = vector.shape_cast %23 : vector<4x128xf32> to vector<2x2x128xf32>
    %25 = arith.truncf %24 : vector<2x2x128xf32> to vector<2x2x128xbf16>
    %c0_15 = arith.constant 0 : index
    %c0_16 = arith.constant 0 : index
    %c0_17 = arith.constant 0 : index
    %c0_18 = arith.constant 0 : index
    %26 = vector.load %arg5[%c0_15, %c0_16, %c0_17, %c0_18] : memref<1x2x2x128xbf16, #tpu.memory_space<vmem>>, vector<1x2x2x128xbf16>
    %27 = vector.shape_cast %26 : vector<1x2x2x128xbf16> to vector<2x2x128xbf16>
    %28 = vector.shape_cast %25 : vector<2x2x128xbf16> to vector<1x2x2x128xbf16>
    tpu.vector_store %arg5[%c0_15, %c0_16, %c0_17, %c0_18], %28 {strides = array<i32>} : memref<1x2x2x128xbf16, #tpu.memory_space<vmem>>, vector<1x2x2x128xbf16>,
    return
  }
  func.func @transform_0(%arg0: i32, %arg1: i32) -> (i32, i32, i32, i32) {
    %c0_i32 = arith.constant 0 : i32
    %c0_i32_0 = arith.constant 0 : i32
    %c0_i32_1 = arith.constant 0 : i32
    return %arg0, %c0_i32, %arg1, %c0_i32_0 : i32, i32, i32, i32
  }
  func.func @transform_1(%arg0: i32, %arg1: i32) -> (i32, i32, i32) {
    %c0_i32 = arith.constant 0 : i32
    %c0_i32_0 = arith.constant 0 : i32
    %c0_i32_1 = arith.constant 0 : i32
    %c0_i32_2 = arith.constant 0 : i32
    return %c0_i32, %c0_i32_0, %c0_i32_1 : i32, i32, i32
  }
  func.func @transform_2(%arg0: i32, %arg1: i32) -> (i32, i32) {
    %c0_i32 = arith.constant 0 : i32
    %c0_i32_0 = arith.constant 0 : i32
    %c0_i32_1 = arith.constant 0 : i32
    return %c0_i32, %c0_i32_0 : i32, i32
  }
  func.func @transform_3(%arg0: i32, %arg1: i32) -> (i32, i32, i32, i32) {
    %c0_i32 = arith.constant 0 : i32
    %c0_i32_0 = arith.constant 0 : i32
    %c0_i32_1 = arith.constant 0 : i32
    return %arg0, %c0_i32, %arg1, %c0_i32_0 : i32, i32, i32, i32
  }
}

module attributes {stable_mosaic.version = 11 : i64} {
  func.func @_axisconv_kernel(%arg0: i32, %arg1: i32, %arg2: memref<1x2x34x128xbf16, #tpu.memory_space<vmem>>, %arg3: memref<3x128x128xbf16, #tpu.memory_space<vmem>>, %arg4: memref<1x128xf32, #tpu.memory_space<vmem>>, %arg5: memref<1x2x2x128xbf16, #tpu.memory_space<vmem>>, %arg6: memref<1x2x2x128xbf16, #tpu.memory_space<vmem>>) attributes {dimension_semantics = [#tpu.dimension_semantics<parallel>, #tpu.dimension_semantics<parallel>], iteration_bounds = array<i64: 2, 1>, scalar_prefetch = 0 : i64, scratch_operands = 0 : i64, tpu.core_type = #tpu.core_type<tc>, window_params = [{transform_indices = @transform_0, window_bounds = array<i64: 1, 2, 34, 128>}, {pipeline_mode = #tpu.pipeline_mode<synchronous>, transform_indices = @transform_1, window_bounds = array<i64: 3, 128, 128>}, {pipeline_mode = #tpu.pipeline_mode<synchronous>, transform_indices = @transform_2, window_bounds = array<i64: 1, 128>}, {transform_indices = @transform_3, window_bounds = array<i64: 1, 2, 2, 128>}, {transform_indices = @transform_4, window_bounds = array<i64: 1, 2, 2, 128>}]} {
    %c0 = arith.constant 0 : index
    %c0_0 = arith.constant 0 : index
    %c0_1 = arith.constant 0 : index
    %c0_2 = arith.constant 0 : index
    %0 = vector.load %arg2[%c0, %c0_0, %c0_1, %c0_2] : memref<1x2x34x128xbf16, #tpu.memory_space<vmem>>, vector<1x2x34x128xbf16>
    %1 = vector.shape_cast %0 : vector<1x2x34x128xbf16> to vector<2x34x128xbf16>
    %2 = vector.extract_strided_slice %1 {offsets = [0, 0, 0], sizes = [2, 2, 128], strides = [1, 1, 1]} : vector<2x34x128xbf16> to vector<2x2x128xbf16>
    %3 = vector.shape_cast %2 : vector<2x2x128xbf16> to vector<4x128xbf16>
    %c0_3 = arith.constant 0 : index
    %c0_4 = arith.constant 0 : index
    %c0_5 = arith.constant 0 : index
    %4 = vector.load %arg3[%c0_3, %c0_4, %c0_5] : memref<3x128x128xbf16, #tpu.memory_space<vmem>>, vector<1x128x128xbf16>
    %5 = vector.shape_cast %4 : vector<1x128x128xbf16> to vector<128x128xbf16>
    %cst = arith.constant dense<0.000000e+00> : vector<4x128xf32>
    %6 = tpu.matmul %3, %5, %cst {dimension_numbers = #tpu.dot_dimension_numbers<[1], [0], [0], [1], [0, 0, 1, 1], [], []>} : vector<4x128xbf16>, vector<128x128xbf16>, vector<4x128xf32> -> vector<4x128xf32>
    %7 = vector.extract_strided_slice %1 {offsets = [0, 16, 0], sizes = [2, 2, 128], strides = [1, 1, 1]} : vector<2x34x128xbf16> to vector<2x2x128xbf16>
    %8 = vector.shape_cast %7 : vector<2x2x128xbf16> to vector<4x128xbf16>
    %c1 = arith.constant 1 : index
    %c0_6 = arith.constant 0 : index
    %c0_7 = arith.constant 0 : index
    %9 = vector.load %arg3[%c1, %c0_6, %c0_7] : memref<3x128x128xbf16, #tpu.memory_space<vmem>>, vector<1x128x128xbf16>
    %10 = vector.shape_cast %9 : vector<1x128x128xbf16> to vector<128x128xbf16>
    %cst_8 = arith.constant dense<0.000000e+00> : vector<4x128xf32>
    %11 = tpu.matmul %8, %10, %cst_8 {dimension_numbers = #tpu.dot_dimension_numbers<[1], [0], [0], [1], [0, 0, 1, 1], [], []>} : vector<4x128xbf16>, vector<128x128xbf16>, vector<4x128xf32> -> vector<4x128xf32>
    %12 = arith.addf %6, %11 : vector<4x128xf32>
    %13 = vector.extract_strided_slice %1 {offsets = [0, 32, 0], sizes = [2, 2, 128], strides = [1, 1, 1]} : vector<2x34x128xbf16> to vector<2x2x128xbf16>
    %14 = vector.shape_cast %13 : vector<2x2x128xbf16> to vector<4x128xbf16>
    %c2 = arith.constant 2 : index
    %c0_9 = arith.constant 0 : index
    %c0_10 = arith.constant 0 : index
    %15 = vector.load %arg3[%c2, %c0_9, %c0_10] : memref<3x128x128xbf16, #tpu.memory_space<vmem>>, vector<1x128x128xbf16>
    %16 = vector.shape_cast %15 : vector<1x128x128xbf16> to vector<128x128xbf16>
    %cst_11 = arith.constant dense<0.000000e+00> : vector<4x128xf32>
    %17 = tpu.matmul %14, %16, %cst_11 {dimension_numbers = #tpu.dot_dimension_numbers<[1], [0], [0], [1], [0, 0, 1, 1], [], []>} : vector<4x128xbf16>, vector<128x128xbf16>, vector<4x128xf32> -> vector<4x128xf32>
    %18 = arith.addf %12, %17 : vector<4x128xf32>
    %c0_12 = arith.constant 0 : index
    %c0_13 = arith.constant 0 : index
    %19 = vector.load %arg4[%c0_12, %c0_13] : memref<1x128xf32, #tpu.memory_space<vmem>>, vector<1x128xf32>
    %20 = vector.broadcast %19 : vector<1x128xf32> to vector<4x128xf32>
    %21 = arith.addf %18, %20 : vector<4x128xf32>
    %c0_14 = arith.constant 0 : index
    %c0_15 = arith.constant 0 : index
    %c0_16 = arith.constant 0 : index
    %c0_17 = arith.constant 0 : index
    %22 = vector.load %arg5[%c0_14, %c0_15, %c0_16, %c0_17] : memref<1x2x2x128xbf16, #tpu.memory_space<vmem>>, vector<1x2x2x128xbf16>
    %23 = vector.shape_cast %22 : vector<1x2x2x128xbf16> to vector<2x2x128xbf16>
    %24 = vector.shape_cast %23 : vector<2x2x128xbf16> to vector<4x128xbf16>
    %25 = arith.extf %24 : vector<4x128xbf16> to vector<4x128xf32>
    %26 = arith.addf %21, %25 : vector<4x128xf32>
    %cst_18 = arith.constant 0.000000e+00 : f32
    %27 = vector.broadcast %cst_18 : f32 to vector<4x128xf32>
    %28 = arith.maximumf %26, %27 : vector<4x128xf32>
    %29 = vector.shape_cast %28 : vector<4x128xf32> to vector<2x2x128xf32>
    %30 = arith.truncf %29 : vector<2x2x128xf32> to vector<2x2x128xbf16>
    %c0_19 = arith.constant 0 : index
    %c0_20 = arith.constant 0 : index
    %c0_21 = arith.constant 0 : index
    %c0_22 = arith.constant 0 : index
    %31 = vector.load %arg6[%c0_19, %c0_20, %c0_21, %c0_22] : memref<1x2x2x128xbf16, #tpu.memory_space<vmem>>, vector<1x2x2x128xbf16>
    %32 = vector.shape_cast %31 : vector<1x2x2x128xbf16> to vector<2x2x128xbf16>
    %33 = vector.shape_cast %30 : vector<2x2x128xbf16> to vector<1x2x2x128xbf16>
    tpu.vector_store %arg6[%c0_19, %c0_20, %c0_21, %c0_22], %33 {strides = array<i32>} : memref<1x2x2x128xbf16, #tpu.memory_space<vmem>>, vector<1x2x2x128xbf16>,
    return
  }
  func.func @transform_0(%arg0: i32, %arg1: i32) -> (i32, i32, i32, i32) {
    %c0_i32 = arith.constant 0 : i32
    %c0_i32_0 = arith.constant 0 : i32
    %c0_i32_1 = arith.constant 0 : i32
    return %arg0, %arg1, %c0_i32, %c0_i32_0 : i32, i32, i32, i32
  }
  func.func @transform_1(%arg0: i32, %arg1: i32) -> (i32, i32, i32) {
    %c0_i32 = arith.constant 0 : i32
    %c0_i32_0 = arith.constant 0 : i32
    %c0_i32_1 = arith.constant 0 : i32
    %c0_i32_2 = arith.constant 0 : i32
    return %c0_i32, %c0_i32_0, %c0_i32_1 : i32, i32, i32
  }
  func.func @transform_2(%arg0: i32, %arg1: i32) -> (i32, i32) {
    %c0_i32 = arith.constant 0 : i32
    %c0_i32_0 = arith.constant 0 : i32
    %c0_i32_1 = arith.constant 0 : i32
    return %c0_i32, %c0_i32_0 : i32, i32
  }
  func.func @transform_3(%arg0: i32, %arg1: i32) -> (i32, i32, i32, i32) {
    %c0_i32 = arith.constant 0 : i32
    %c0_i32_0 = arith.constant 0 : i32
    %c0_i32_1 = arith.constant 0 : i32
    return %arg0, %arg1, %c0_i32, %c0_i32_0 : i32, i32, i32, i32
  }
  func.func @transform_4(%arg0: i32, %arg1: i32) -> (i32, i32, i32, i32) {
    %c0_i32 = arith.constant 0 : i32
    %c0_i32_0 = arith.constant 0 : i32
    %c0_i32_1 = arith.constant 0 : i32
    return %arg0, %arg1, %c0_i32, %c0_i32_0 : i32, i32, i32, i32
  }
}

module attributes {stable_mosaic.version = 11 : i64} {
  func.func @_matmul_kernel(%arg0: i32, %arg1: memref<8x512xbf16, #tpu.memory_space<vmem>>, %arg2: memref<512x256xbf16, #tpu.memory_space<vmem>>, %arg3: memref<1x256xf32, #tpu.memory_space<vmem>>, %arg4: memref<8x256xbf16, #tpu.memory_space<vmem>>) attributes {dimension_semantics = [#tpu.dimension_semantics<parallel>], iteration_bounds = array<i64: 1>, scalar_prefetch = 0 : i64, scratch_operands = 0 : i64, tpu.core_type = #tpu.core_type<tc>, window_params = [{transform_indices = @transform_0, window_bounds = array<i64: 8, 512>}, {pipeline_mode = #tpu.pipeline_mode<synchronous>, transform_indices = @transform_1, window_bounds = array<i64: 512, 256>}, {pipeline_mode = #tpu.pipeline_mode<synchronous>, transform_indices = @transform_2, window_bounds = array<i64: 1, 256>}, {transform_indices = @transform_3, window_bounds = array<i64: 8, 256>}]} {
    %c0 = arith.constant 0 : index
    %c0_0 = arith.constant 0 : index
    %0 = vector.load %arg1[%c0, %c0_0] : memref<8x512xbf16, #tpu.memory_space<vmem>>, vector<8x512xbf16>
    %c0_1 = arith.constant 0 : index
    %c0_2 = arith.constant 0 : index
    %1 = vector.load %arg2[%c0_1, %c0_2] : memref<512x256xbf16, #tpu.memory_space<vmem>>, vector<512x256xbf16>
    %cst = arith.constant dense<0.000000e+00> : vector<8x256xf32>
    %2 = tpu.matmul %0, %1, %cst {dimension_numbers = #tpu.dot_dimension_numbers<[1], [0], [0], [1], [0, 0, 1, 1], [], []>} : vector<8x512xbf16>, vector<512x256xbf16>, vector<8x256xf32> -> vector<8x256xf32>
    %c0_3 = arith.constant 0 : index
    %c0_4 = arith.constant 0 : index
    %3 = vector.load %arg3[%c0_3, %c0_4] : memref<1x256xf32, #tpu.memory_space<vmem>>, vector<1x256xf32>
    %4 = vector.broadcast %3 : vector<1x256xf32> to vector<8x256xf32>
    %5 = arith.addf %2, %4 : vector<8x256xf32>
    %cst_5 = arith.constant 0.000000e+00 : f32
    %6 = vector.broadcast %cst_5 : f32 to vector<8x256xf32>
    %7 = arith.maximumf %5, %6 : vector<8x256xf32>
    %8 = arith.truncf %7 : vector<8x256xf32> to vector<8x256xbf16>
    %c0_6 = arith.constant 0 : index
    %c0_7 = arith.constant 0 : index
    %9 = vector.load %arg4[%c0_6, %c0_7] : memref<8x256xbf16, #tpu.memory_space<vmem>>, vector<8x256xbf16>
    tpu.vector_store %arg4[%c0_6, %c0_7], %8 {strides = array<i32>} : memref<8x256xbf16, #tpu.memory_space<vmem>>, vector<8x256xbf16>,
    return
  }
  func.func @transform_0(%arg0: i32) -> (i32, i32) {
    %c0_i32 = arith.constant 0 : i32
    %c0_i32_0 = arith.constant 0 : i32
    return %arg0, %c0_i32 : i32, i32
  }
  func.func @transform_1(%arg0: i32) -> (i32, i32) {
    %c0_i32 = arith.constant 0 : i32
    %c0_i32_0 = arith.constant 0 : i32
    %c0_i32_1 = arith.constant 0 : i32
    return %c0_i32, %c0_i32_0 : i32, i32
  }
  func.func @transform_2(%arg0: i32) -> (i32, i32) {
    %c0_i32 = arith.constant 0 : i32
    %c0_i32_0 = arith.constant 0 : i32
    %c0_i32_1 = arith.constant 0 : i32
    return %c0_i32, %c0_i32_0 : i32, i32
  }
  func.func @transform_3(%arg0: i32) -> (i32, i32) {
    %c0_i32 = arith.constant 0 : i32
    %c0_i32_0 = arith.constant 0 : i32
    return %arg0, %c0_i32 : i32, i32
  }
}

module attributes {stable_mosaic.version = 11 : i64} {
  func.func @_matmul_kernel(%arg0: i32, %arg1: memref<32x256xbf16, #tpu.memory_space<vmem>>, %arg2: memref<256x64xbf16, #tpu.memory_space<vmem>>, %arg3: memref<1x64xf32, #tpu.memory_space<vmem>>, %arg4: memref<32x64xbf16, #tpu.memory_space<vmem>>) attributes {dimension_semantics = [#tpu.dimension_semantics<parallel>], iteration_bounds = array<i64: 1>, scalar_prefetch = 0 : i64, scratch_operands = 0 : i64, tpu.core_type = #tpu.core_type<tc>, window_params = [{transform_indices = @transform_0, window_bounds = array<i64: 32, 256>}, {pipeline_mode = #tpu.pipeline_mode<synchronous>, transform_indices = @transform_1, window_bounds = array<i64: 256, 64>}, {pipeline_mode = #tpu.pipeline_mode<synchronous>, transform_indices = @transform_2, window_bounds = array<i64: 1, 64>}, {transform_indices = @transform_3, window_bounds = array<i64: 32, 64>}]} {
    %c0 = arith.constant 0 : index
    %c0_0 = arith.constant 0 : index
    %0 = vector.load %arg1[%c0, %c0_0] : memref<32x256xbf16, #tpu.memory_space<vmem>>, vector<32x256xbf16>
    %c0_1 = arith.constant 0 : index
    %c0_2 = arith.constant 0 : index
    %1 = vector.load %arg2[%c0_1, %c0_2] : memref<256x64xbf16, #tpu.memory_space<vmem>>, vector<256x64xbf16>
    %cst = arith.constant dense<0.000000e+00> : vector<32x64xf32>
    %2 = tpu.matmul %0, %1, %cst {dimension_numbers = #tpu.dot_dimension_numbers<[1], [0], [0], [1], [0, 0, 1, 1], [], []>} : vector<32x256xbf16>, vector<256x64xbf16>, vector<32x64xf32> -> vector<32x64xf32>
    %c0_3 = arith.constant 0 : index
    %c0_4 = arith.constant 0 : index
    %3 = vector.load %arg3[%c0_3, %c0_4] : memref<1x64xf32, #tpu.memory_space<vmem>>, vector<1x64xf32>
    %4 = vector.broadcast %3 : vector<1x64xf32> to vector<32x64xf32>
    %5 = arith.addf %2, %4 : vector<32x64xf32>
    %cst_5 = arith.constant 0.000000e+00 : f32
    %6 = vector.broadcast %cst_5 : f32 to vector<32x64xf32>
    %7 = arith.maximumf %5, %6 : vector<32x64xf32>
    %8 = arith.truncf %7 : vector<32x64xf32> to vector<32x64xbf16>
    %c0_6 = arith.constant 0 : index
    %c0_7 = arith.constant 0 : index
    %9 = vector.load %arg4[%c0_6, %c0_7] : memref<32x64xbf16, #tpu.memory_space<vmem>>, vector<32x64xbf16>
    tpu.vector_store %arg4[%c0_6, %c0_7], %8 {strides = array<i32>} : memref<32x64xbf16, #tpu.memory_space<vmem>>, vector<32x64xbf16>,
    return
  }
  func.func @transform_0(%arg0: i32) -> (i32, i32) {
    %c0_i32 = arith.constant 0 : i32
    %c0_i32_0 = arith.constant 0 : i32
    return %arg0, %c0_i32 : i32, i32
  }
  func.func @transform_1(%arg0: i32) -> (i32, i32) {
    %c0_i32 = arith.constant 0 : i32
    %c0_i32_0 = arith.constant 0 : i32
    %c0_i32_1 = arith.constant 0 : i32
    return %c0_i32, %c0_i32_0 : i32, i32
  }
  func.func @transform_2(%arg0: i32) -> (i32, i32) {
    %c0_i32 = arith.constant 0 : i32
    %c0_i32_0 = arith.constant 0 : i32
    %c0_i32_1 = arith.constant 0 : i32
    return %c0_i32, %c0_i32_0 : i32, i32
  }
  func.func @transform_3(%arg0: i32) -> (i32, i32) {
    %c0_i32 = arith.constant 0 : i32
    %c0_i32_0 = arith.constant 0 : i32
    return %arg0, %c0_i32 : i32, i32
  }
}

module attributes {stable_mosaic.version = 11 : i64} {
  func.func @_axisconv_kernel(%arg0: i32, %arg1: i32, %arg2: memref<1x8x10x16xbf16, #tpu.memory_space<vmem>>, %arg3: memref<3x16x16xbf16, #tpu.memory_space<vmem>>, %arg4: memref<1x16xf32, #tpu.memory_space<vmem>>, %arg5: memref<1x8x8x16xbf16, #tpu.memory_space<vmem>>, %arg6: memref<1x8x8x16xbf16, #tpu.memory_space<vmem>>) attributes {dimension_semantics = [#tpu.dimension_semantics<parallel>, #tpu.dimension_semantics<parallel>], iteration_bounds = array<i64: 2, 1>, scalar_prefetch = 0 : i64, scratch_operands = 0 : i64, tpu.core_type = #tpu.core_type<tc>, window_params = [{transform_indices = @transform_0, window_bounds = array<i64: 1, 8, 10, 16>}, {pipeline_mode = #tpu.pipeline_mode<synchronous>, transform_indices = @transform_1, window_bounds = array<i64: 3, 16, 16>}, {pipeline_mode = #tpu.pipeline_mode<synchronous>, transform_indices = @transform_2, window_bounds = array<i64: 1, 16>}, {transform_indices = @transform_3, window_bounds = array<i64: 1, 8, 8, 16>}, {transform_indices = @transform_4, window_bounds = array<i64: 1, 8, 8, 16>}]} {
    %c0 = arith.constant 0 : index
    %c0_0 = arith.constant 0 : index
    %c0_1 = arith.constant 0 : index
    %c0_2 = arith.constant 0 : index
    %0 = vector.load %arg2[%c0, %c0_0, %c0_1, %c0_2] : memref<1x8x10x16xbf16, #tpu.memory_space<vmem>>, vector<1x8x10x16xbf16>
    %1 = vector.shape_cast %0 : vector<1x8x10x16xbf16> to vector<8x10x16xbf16>
    %2 = vector.extract_strided_slice %1 {offsets = [0, 0, 0], sizes = [8, 8, 16], strides = [1, 1, 1]} : vector<8x10x16xbf16> to vector<8x8x16xbf16>
    %3 = vector.shape_cast %2 : vector<8x8x16xbf16> to vector<64x16xbf16>
    %c0_3 = arith.constant 0 : index
    %c0_4 = arith.constant 0 : index
    %c0_5 = arith.constant 0 : index
    %4 = vector.load %arg3[%c0_3, %c0_4, %c0_5] : memref<3x16x16xbf16, #tpu.memory_space<vmem>>, vector<1x16x16xbf16>
    %5 = vector.shape_cast %4 : vector<1x16x16xbf16> to vector<16x16xbf16>
    %cst = arith.constant dense<0.000000e+00> : vector<64x16xf32>
    %6 = tpu.matmul %3, %5, %cst {dimension_numbers = #tpu.dot_dimension_numbers<[1], [0], [0], [1], [0, 0, 1, 1], [], []>} : vector<64x16xbf16>, vector<16x16xbf16>, vector<64x16xf32> -> vector<64x16xf32>
    %7 = vector.extract_strided_slice %1 {offsets = [0, 1, 0], sizes = [8, 8, 16], strides = [1, 1, 1]} : vector<8x10x16xbf16> to vector<8x8x16xbf16>
    %8 = vector.shape_cast %7 : vector<8x8x16xbf16> to vector<64x16xbf16>
    %c1 = arith.constant 1 : index
    %c0_6 = arith.constant 0 : index
    %c0_7 = arith.constant 0 : index
    %9 = vector.load %arg3[%c1, %c0_6, %c0_7] : memref<3x16x16xbf16, #tpu.memory_space<vmem>>, vector<1x16x16xbf16>
    %10 = vector.shape_cast %9 : vector<1x16x16xbf16> to vector<16x16xbf16>
    %cst_8 = arith.constant dense<0.000000e+00> : vector<64x16xf32>
    %11 = tpu.matmul %8, %10, %cst_8 {dimension_numbers = #tpu.dot_dimension_numbers<[1], [0], [0], [1], [0, 0, 1, 1], [], []>} : vector<64x16xbf16>, vector<16x16xbf16>, vector<64x16xf32> -> vector<64x16xf32>
    %12 = arith.addf %6, %11 : vector<64x16xf32>
    %13 = vector.extract_strided_slice %1 {offsets = [0, 2, 0], sizes = [8, 8, 16], strides = [1, 1, 1]} : vector<8x10x16xbf16> to vector<8x8x16xbf16>
    %14 = vector.shape_cast %13 : vector<8x8x16xbf16> to vector<64x16xbf16>
    %c2 = arith.constant 2 : index
    %c0_9 = arith.constant 0 : index
    %c0_10 = arith.constant 0 : index
    %15 = vector.load %arg3[%c2, %c0_9, %c0_10] : memref<3x16x16xbf16, #tpu.memory_space<vmem>>, vector<1x16x16xbf16>
    %16 = vector.shape_cast %15 : vector<1x16x16xbf16> to vector<16x16xbf16>
    %cst_11 = arith.constant dense<0.000000e+00> : vector<64x16xf32>
    %17 = tpu.matmul %14, %16, %cst_11 {dimension_numbers = #tpu.dot_dimension_numbers<[1], [0], [0], [1], [0, 0, 1, 1], [], []>} : vector<64x16xbf16>, vector<16x16xbf16>, vector<64x16xf32> -> vector<64x16xf32>
    %18 = arith.addf %12, %17 : vector<64x16xf32>
    %c0_12 = arith.constant 0 : index
    %c0_13 = arith.constant 0 : index
    %19 = vector.load %arg4[%c0_12, %c0_13] : memref<1x16xf32, #tpu.memory_space<vmem>>, vector<1x16xf32>
    %20 = vector.broadcast %19 : vector<1x16xf32> to vector<64x16xf32>
    %21 = arith.addf %18, %20 : vector<64x16xf32>
    %c0_14 = arith.constant 0 : index
    %c0_15 = arith.constant 0 : index
    %c0_16 = arith.constant 0 : index
    %c0_17 = arith.constant 0 : index
    %22 = vector.load %arg5[%c0_14, %c0_15, %c0_16, %c0_17] : memref<1x8x8x16xbf16, #tpu.memory_space<vmem>>, vector<1x8x8x16xbf16>
    %23 = vector.shape_cast %22 : vector<1x8x8x16xbf16> to vector<8x8x16xbf16>
    %24 = vector.shape_cast %23 : vector<8x8x16xbf16> to vector<64x16xbf16>
    %25 = arith.extf %24 : vector<64x16xbf16> to vector<64x16xf32>
    %26 = arith.addf %21, %25 : vector<64x16xf32>
    %cst_18 = arith.constant 0.000000e+00 : f32
    %27 = vector.broadcast %cst_18 : f32 to vector<64x16xf32>
    %28 = arith.maximumf %26, %27 : vector<64x16xf32>
    %29 = vector.shape_cast %28 : vector<64x16xf32> to vector<8x8x16xf32>
    %30 = arith.truncf %29 : vector<8x8x16xf32> to vector<8x8x16xbf16>
    %c0_19 = arith.constant 0 : index
    %c0_20 = arith.constant 0 : index
    %c0_21 = arith.constant 0 : index
    %c0_22 = arith.constant 0 : index
    %31 = vector.load %arg6[%c0_19, %c0_20, %c0_21, %c0_22] : memref<1x8x8x16xbf16, #tpu.memory_space<vmem>>, vector<1x8x8x16xbf16>
    %32 = vector.shape_cast %31 : vector<1x8x8x16xbf16> to vector<8x8x16xbf16>
    %33 = vector.shape_cast %30 : vector<8x8x16xbf16> to vector<1x8x8x16xbf16>
    tpu.vector_store %arg6[%c0_19, %c0_20, %c0_21, %c0_22], %33 {strides = array<i32>} : memref<1x8x8x16xbf16, #tpu.memory_space<vmem>>, vector<1x8x8x16xbf16>,
    return
  }
  func.func @transform_0(%arg0: i32, %arg1: i32) -> (i32, i32, i32, i32) {
    %c0_i32 = arith.constant 0 : i32
    %c0_i32_0 = arith.constant 0 : i32
    %c0_i32_1 = arith.constant 0 : i32
    return %arg0, %arg1, %c0_i32, %c0_i32_0 : i32, i32, i32, i32
  }
  func.func @transform_1(%arg0: i32, %arg1: i32) -> (i32, i32, i32) {
    %c0_i32 = arith.constant 0 : i32
    %c0_i32_0 = arith.constant 0 : i32
    %c0_i32_1 = arith.constant 0 : i32
    %c0_i32_2 = arith.constant 0 : i32
    return %c0_i32, %c0_i32_0, %c0_i32_1 : i32, i32, i32
  }
  func.func @transform_2(%arg0: i32, %arg1: i32) -> (i32, i32) {
    %c0_i32 = arith.constant 0 : i32
    %c0_i32_0 = arith.constant 0 : i32
    %c0_i32_1 = arith.constant 0 : i32
    return %c0_i32, %c0_i32_0 : i32, i32
  }
  func.func @transform_3(%arg0: i32, %arg1: i32) -> (i32, i32, i32, i32) {
    %c0_i32 = arith.constant 0 : i32
    %c0_i32_0 = arith.constant 0 : i32
    %c0_i32_1 = arith.constant 0 : i32
    return %arg0, %arg1, %c0_i32, %c0_i32_0 : i32, i32, i32, i32
  }
  func.func @transform_4(%arg0: i32, %arg1: i32) -> (i32, i32, i32, i32) {
    %c0_i32 = arith.constant 0 : i32
    %c0_i32_0 = arith.constant 0 : i32
    %c0_i32_1 = arith.constant 0 : i32
    return %arg0, %arg1, %c0_i32, %c0_i32_0 : i32, i32, i32, i32
  }
}

module attributes {stable_mosaic.version = 11 : i64} {
  func.func @_axisconv_kernel(%arg0: i32, %arg1: i32, %arg2: memref<1x10x8x16xbf16, #tpu.memory_space<vmem>>, %arg3: memref<3x16x16xbf16, #tpu.memory_space<vmem>>, %arg4: memref<1x16xf32, #tpu.memory_space<vmem>>, %arg5: memref<1x8x8x16xbf16, #tpu.memory_space<vmem>>) attributes {dimension_semantics = [#tpu.dimension_semantics<parallel>, #tpu.dimension_semantics<parallel>], iteration_bounds = array<i64: 2, 1>, scalar_prefetch = 0 : i64, scratch_operands = 0 : i64, tpu.core_type = #tpu.core_type<tc>, window_params = [{transform_indices = @transform_0, window_bounds = array<i64: 1, 10, 8, 16>}, {pipeline_mode = #tpu.pipeline_mode<synchronous>, transform_indices = @transform_1, window_bounds = array<i64: 3, 16, 16>}, {pipeline_mode = #tpu.pipeline_mode<synchronous>, transform_indices = @transform_2, window_bounds = array<i64: 1, 16>}, {transform_indices = @transform_3, window_bounds = array<i64: 1, 8, 8, 16>}]} {
    %c0 = arith.constant 0 : index
    %c0_0 = arith.constant 0 : index
    %c0_1 = arith.constant 0 : index
    %c0_2 = arith.constant 0 : index
    %0 = vector.load %arg2[%c0, %c0_0, %c0_1, %c0_2] : memref<1x10x8x16xbf16, #tpu.memory_space<vmem>>, vector<1x10x8x16xbf16>
    %1 = vector.shape_cast %0 : vector<1x10x8x16xbf16> to vector<10x8x16xbf16>
    %2 = vector.extract_strided_slice %1 {offsets = [0, 0, 0], sizes = [8, 8, 16], strides = [1, 1, 1]} : vector<10x8x16xbf16> to vector<8x8x16xbf16>
    %3 = vector.shape_cast %2 : vector<8x8x16xbf16> to vector<64x16xbf16>
    %c0_3 = arith.constant 0 : index
    %c0_4 = arith.constant 0 : index
    %c0_5 = arith.constant 0 : index
    %4 = vector.load %arg3[%c0_3, %c0_4, %c0_5] : memref<3x16x16xbf16, #tpu.memory_space<vmem>>, vector<1x16x16xbf16>
    %5 = vector.shape_cast %4 : vector<1x16x16xbf16> to vector<16x16xbf16>
    %cst = arith.constant dense<0.000000e+00> : vector<64x16xf32>
    %6 = tpu.matmul %3, %5, %cst {dimension_numbers = #tpu.dot_dimension_numbers<[1], [0], [0], [1], [0, 0, 1, 1], [], []>} : vector<64x16xbf16>, vector<16x16xbf16>, vector<64x16xf32> -> vector<64x16xf32>
    %7 = vector.extract_strided_slice %1 {offsets = [1, 0, 0], sizes = [8, 8, 16], strides = [1, 1, 1]} : vector<10x8x16xbf16> to vector<8x8x16xbf16>
    %8 = vector.shape_cast %7 : vector<8x8x16xbf16> to vector<64x16xbf16>
    %c1 = arith.constant 1 : index
    %c0_6 = arith.constant 0 : index
    %c0_7 = arith.constant 0 : index
    %9 = vector.load %arg3[%c1, %c0_6, %c0_7] : memref<3x16x16xbf16, #tpu.memory_space<vmem>>, vector<1x16x16xbf16>
    %10 = vector.shape_cast %9 : vector<1x16x16xbf16> to vector<16x16xbf16>
    %cst_8 = arith.constant dense<0.000000e+00> : vector<64x16xf32>
    %11 = tpu.matmul %8, %10, %cst_8 {dimension_numbers = #tpu.dot_dimension_numbers<[1], [0], [0], [1], [0, 0, 1, 1], [], []>} : vector<64x16xbf16>, vector<16x16xbf16>, vector<64x16xf32> -> vector<64x16xf32>
    %12 = arith.addf %6, %11 : vector<64x16xf32>
    %13 = vector.extract_strided_slice %1 {offsets = [2, 0, 0], sizes = [8, 8, 16], strides = [1, 1, 1]} : vector<10x8x16xbf16> to vector<8x8x16xbf16>
    %14 = vector.shape_cast %13 : vector<8x8x16xbf16> to vector<64x16xbf16>
    %c2 = arith.constant 2 : index
    %c0_9 = arith.constant 0 : index
    %c0_10 = arith.constant 0 : index
    %15 = vector.load %arg3[%c2, %c0_9, %c0_10] : memref<3x16x16xbf16, #tpu.memory_space<vmem>>, vector<1x16x16xbf16>
    %16 = vector.shape_cast %15 : vector<1x16x16xbf16> to vector<16x16xbf16>
    %cst_11 = arith.constant dense<0.000000e+00> : vector<64x16xf32>
    %17 = tpu.matmul %14, %16, %cst_11 {dimension_numbers = #tpu.dot_dimension_numbers<[1], [0], [0], [1], [0, 0, 1, 1], [], []>} : vector<64x16xbf16>, vector<16x16xbf16>, vector<64x16xf32> -> vector<64x16xf32>
    %18 = arith.addf %12, %17 : vector<64x16xf32>
    %c0_12 = arith.constant 0 : index
    %c0_13 = arith.constant 0 : index
    %19 = vector.load %arg4[%c0_12, %c0_13] : memref<1x16xf32, #tpu.memory_space<vmem>>, vector<1x16xf32>
    %20 = vector.broadcast %19 : vector<1x16xf32> to vector<64x16xf32>
    %21 = arith.addf %18, %20 : vector<64x16xf32>
    %cst_14 = arith.constant 0.000000e+00 : f32
    %22 = vector.broadcast %cst_14 : f32 to vector<64x16xf32>
    %23 = arith.maximumf %21, %22 : vector<64x16xf32>
    %24 = vector.shape_cast %23 : vector<64x16xf32> to vector<8x8x16xf32>
    %25 = arith.truncf %24 : vector<8x8x16xf32> to vector<8x8x16xbf16>
    %c0_15 = arith.constant 0 : index
    %c0_16 = arith.constant 0 : index
    %c0_17 = arith.constant 0 : index
    %c0_18 = arith.constant 0 : index
    %26 = vector.load %arg5[%c0_15, %c0_16, %c0_17, %c0_18] : memref<1x8x8x16xbf16, #tpu.memory_space<vmem>>, vector<1x8x8x16xbf16>
    %27 = vector.shape_cast %26 : vector<1x8x8x16xbf16> to vector<8x8x16xbf16>
    %28 = vector.shape_cast %25 : vector<8x8x16xbf16> to vector<1x8x8x16xbf16>
    tpu.vector_store %arg5[%c0_15, %c0_16, %c0_17, %c0_18], %28 {strides = array<i32>} : memref<1x8x8x16xbf16, #tpu.memory_space<vmem>>, vector<1x8x8x16xbf16>,
    return
  }
  func.func @transform_0(%arg0: i32, %arg1: i32) -> (i32, i32, i32, i32) {
    %c0_i32 = arith.constant 0 : i32
    %c0_i32_0 = arith.constant 0 : i32
    %c0_i32_1 = arith.constant 0 : i32
    return %arg0, %c0_i32, %arg1, %c0_i32_0 : i32, i32, i32, i32
  }
  func.func @transform_1(%arg0: i32, %arg1: i32) -> (i32, i32, i32) {
    %c0_i32 = arith.constant 0 : i32
    %c0_i32_0 = arith.constant 0 : i32
    %c0_i32_1 = arith.constant 0 : i32
    %c0_i32_2 = arith.constant 0 : i32
    return %c0_i32, %c0_i32_0, %c0_i32_1 : i32, i32, i32
  }
  func.func @transform_2(%arg0: i32, %arg1: i32) -> (i32, i32) {
    %c0_i32 = arith.constant 0 : i32
    %c0_i32_0 = arith.constant 0 : i32
    %c0_i32_1 = arith.constant 0 : i32
    return %c0_i32, %c0_i32_0 : i32, i32
  }
  func.func @transform_3(%arg0: i32, %arg1: i32) -> (i32, i32, i32, i32) {
    %c0_i32 = arith.constant 0 : i32
    %c0_i32_0 = arith.constant 0 : i32
    %c0_i32_1 = arith.constant 0 : i32
    return %arg0, %c0_i32, %arg1, %c0_i32_0 : i32, i32, i32, i32
  }
}

module attributes {stable_mosaic.version = 11 : i64} {
  func.func @_axisconv_kernel(%arg0: i32, %arg1: i32, %arg2: memref<1x8x10x16xbf16, #tpu.memory_space<vmem>>, %arg3: memref<3x16x16xbf16, #tpu.memory_space<vmem>>, %arg4: memref<1x16xf32, #tpu.memory_space<vmem>>, %arg5: memref<1x8x8x16xbf16, #tpu.memory_space<vmem>>) attributes {dimension_semantics = [#tpu.dimension_semantics<parallel>, #tpu.dimension_semantics<parallel>], iteration_bounds = array<i64: 2, 1>, scalar_prefetch = 0 : i64, scratch_operands = 0 : i64, tpu.core_type = #tpu.core_type<tc>, window_params = [{transform_indices = @transform_0, window_bounds = array<i64: 1, 8, 10, 16>}, {pipeline_mode = #tpu.pipeline_mode<synchronous>, transform_indices = @transform_1, window_bounds = array<i64: 3, 16, 16>}, {pipeline_mode = #tpu.pipeline_mode<synchronous>, transform_indices = @transform_2, window_bounds = array<i64: 1, 16>}, {transform_indices = @transform_3, window_bounds = array<i64: 1, 8, 8, 16>}]} {
    %c0 = arith.constant 0 : index
    %c0_0 = arith.constant 0 : index
    %c0_1 = arith.constant 0 : index
    %c0_2 = arith.constant 0 : index
    %0 = vector.load %arg2[%c0, %c0_0, %c0_1, %c0_2] : memref<1x8x10x16xbf16, #tpu.memory_space<vmem>>, vector<1x8x10x16xbf16>
    %1 = vector.shape_cast %0 : vector<1x8x10x16xbf16> to vector<8x10x16xbf16>
    %2 = vector.extract_strided_slice %1 {offsets = [0, 0, 0], sizes = [8, 8, 16], strides = [1, 1, 1]} : vector<8x10x16xbf16> to vector<8x8x16xbf16>
    %3 = vector.shape_cast %2 : vector<8x8x16xbf16> to vector<64x16xbf16>
    %c0_3 = arith.constant 0 : index
    %c0_4 = arith.constant 0 : index
    %c0_5 = arith.constant 0 : index
    %4 = vector.load %arg3[%c0_3, %c0_4, %c0_5] : memref<3x16x16xbf16, #tpu.memory_space<vmem>>, vector<1x16x16xbf16>
    %5 = vector.shape_cast %4 : vector<1x16x16xbf16> to vector<16x16xbf16>
    %cst = arith.constant dense<0.000000e+00> : vector<64x16xf32>
    %6 = tpu.matmul %3, %5, %cst {dimension_numbers = #tpu.dot_dimension_numbers<[1], [0], [0], [1], [0, 0, 1, 1], [], []>} : vector<64x16xbf16>, vector<16x16xbf16>, vector<64x16xf32> -> vector<64x16xf32>
    %7 = vector.extract_strided_slice %1 {offsets = [0, 1, 0], sizes = [8, 8, 16], strides = [1, 1, 1]} : vector<8x10x16xbf16> to vector<8x8x16xbf16>
    %8 = vector.shape_cast %7 : vector<8x8x16xbf16> to vector<64x16xbf16>
    %c1 = arith.constant 1 : index
    %c0_6 = arith.constant 0 : index
    %c0_7 = arith.constant 0 : index
    %9 = vector.load %arg3[%c1, %c0_6, %c0_7] : memref<3x16x16xbf16, #tpu.memory_space<vmem>>, vector<1x16x16xbf16>
    %10 = vector.shape_cast %9 : vector<1x16x16xbf16> to vector<16x16xbf16>
    %cst_8 = arith.constant dense<0.000000e+00> : vector<64x16xf32>
    %11 = tpu.matmul %8, %10, %cst_8 {dimension_numbers = #tpu.dot_dimension_numbers<[1], [0], [0], [1], [0, 0, 1, 1], [], []>} : vector<64x16xbf16>, vector<16x16xbf16>, vector<64x16xf32> -> vector<64x16xf32>
    %12 = arith.addf %6, %11 : vector<64x16xf32>
    %13 = vector.extract_strided_slice %1 {offsets = [0, 2, 0], sizes = [8, 8, 16], strides = [1, 1, 1]} : vector<8x10x16xbf16> to vector<8x8x16xbf16>
    %14 = vector.shape_cast %13 : vector<8x8x16xbf16> to vector<64x16xbf16>
    %c2 = arith.constant 2 : index
    %c0_9 = arith.constant 0 : index
    %c0_10 = arith.constant 0 : index
    %15 = vector.load %arg3[%c2, %c0_9, %c0_10] : memref<3x16x16xbf16, #tpu.memory_space<vmem>>, vector<1x16x16xbf16>
    %16 = vector.shape_cast %15 : vector<1x16x16xbf16> to vector<16x16xbf16>
    %cst_11 = arith.constant dense<0.000000e+00> : vector<64x16xf32>
    %17 = tpu.matmul %14, %16, %cst_11 {dimension_numbers = #tpu.dot_dimension_numbers<[1], [0], [0], [1], [0, 0, 1, 1], [], []>} : vector<64x16xbf16>, vector<16x16xbf16>, vector<64x16xf32> -> vector<64x16xf32>
    %18 = arith.addf %12, %17 : vector<64x16xf32>
    %c0_12 = arith.constant 0 : index
    %c0_13 = arith.constant 0 : index
    %19 = vector.load %arg4[%c0_12, %c0_13] : memref<1x16xf32, #tpu.memory_space<vmem>>, vector<1x16xf32>
    %20 = vector.broadcast %19 : vector<1x16xf32> to vector<64x16xf32>
    %21 = arith.addf %18, %20 : vector<64x16xf32>
    %cst_14 = arith.constant 0.000000e+00 : f32
    %22 = vector.broadcast %cst_14 : f32 to vector<64x16xf32>
    %23 = arith.maximumf %21, %22 : vector<64x16xf32>
    %24 = vector.shape_cast %23 : vector<64x16xf32> to vector<8x8x16xf32>
    %25 = arith.truncf %24 : vector<8x8x16xf32> to vector<8x8x16xbf16>
    %c0_15 = arith.constant 0 : index
    %c0_16 = arith.constant 0 : index
    %c0_17 = arith.constant 0 : index
    %c0_18 = arith.constant 0 : index
    %26 = vector.load %arg5[%c0_15, %c0_16, %c0_17, %c0_18] : memref<1x8x8x16xbf16, #tpu.memory_space<vmem>>, vector<1x8x8x16xbf16>
    %27 = vector.shape_cast %26 : vector<1x8x8x16xbf16> to vector<8x8x16xbf16>
    %28 = vector.shape_cast %25 : vector<8x8x16xbf16> to vector<1x8x8x16xbf16>
    tpu.vector_store %arg5[%c0_15, %c0_16, %c0_17, %c0_18], %28 {strides = array<i32>} : memref<1x8x8x16xbf16, #tpu.memory_space<vmem>>, vector<1x8x8x16xbf16>,
    return
  }
  func.func @transform_0(%arg0: i32, %arg1: i32) -> (i32, i32, i32, i32) {
    %c0_i32 = arith.constant 0 : i32
    %c0_i32_0 = arith.constant 0 : i32
    %c0_i32_1 = arith.constant 0 : i32
    return %arg0, %arg1, %c0_i32, %c0_i32_0 : i32, i32, i32, i32
  }
  func.func @transform_1(%arg0: i32, %arg1: i32) -> (i32, i32, i32) {
    %c0_i32 = arith.constant 0 : i32
    %c0_i32_0 = arith.constant 0 : i32
    %c0_i32_1 = arith.constant 0 : i32
    %c0_i32_2 = arith.constant 0 : i32
    return %c0_i32, %c0_i32_0, %c0_i32_1 : i32, i32, i32
  }
  func.func @transform_2(%arg0: i32, %arg1: i32) -> (i32, i32) {
    %c0_i32 = arith.constant 0 : i32
    %c0_i32_0 = arith.constant 0 : i32
    %c0_i32_1 = arith.constant 0 : i32
    return %c0_i32, %c0_i32_0 : i32, i32
  }
  func.func @transform_3(%arg0: i32, %arg1: i32) -> (i32, i32, i32, i32) {
    %c0_i32 = arith.constant 0 : i32
    %c0_i32_0 = arith.constant 0 : i32
    %c0_i32_1 = arith.constant 0 : i32
    return %arg0, %arg1, %c0_i32, %c0_i32_0 : i32, i32, i32, i32
  }
}

module attributes {stable_mosaic.version = 11 : i64} {
  func.func @_matmul_kernel(%arg0: i32, %arg1: memref<128x16xbf16, #tpu.memory_space<vmem>>, %arg2: memref<16x16xbf16, #tpu.memory_space<vmem>>, %arg3: memref<1x16xf32, #tpu.memory_space<vmem>>, %arg4: memref<128x16xf32, #tpu.memory_space<vmem>>) attributes {dimension_semantics = [#tpu.dimension_semantics<parallel>], iteration_bounds = array<i64: 1>, scalar_prefetch = 0 : i64, scratch_operands = 0 : i64, tpu.core_type = #tpu.core_type<tc>, window_params = [{transform_indices = @transform_0, window_bounds = array<i64: 128, 16>}, {pipeline_mode = #tpu.pipeline_mode<synchronous>, transform_indices = @transform_1, window_bounds = array<i64: 16, 16>}, {pipeline_mode = #tpu.pipeline_mode<synchronous>, transform_indices = @transform_2, window_bounds = array<i64: 1, 16>}, {transform_indices = @transform_3, window_bounds = array<i64: 128, 16>}]} {
    %c0 = arith.constant 0 : index
    %c0_0 = arith.constant 0 : index
    %0 = vector.load %arg1[%c0, %c0_0] : memref<128x16xbf16, #tpu.memory_space<vmem>>, vector<128x16xbf16>
    %c0_1 = arith.constant 0 : index
    %c0_2 = arith.constant 0 : index
    %1 = vector.load %arg2[%c0_1, %c0_2] : memref<16x16xbf16, #tpu.memory_space<vmem>>, vector<16x16xbf16>
    %cst = arith.constant dense<0.000000e+00> : vector<128x16xf32>
    %2 = tpu.matmul %0, %1, %cst {dimension_numbers = #tpu.dot_dimension_numbers<[1], [0], [0], [1], [0, 0, 1, 1], [], []>} : vector<128x16xbf16>, vector<16x16xbf16>, vector<128x16xf32> -> vector<128x16xf32>
    %c0_3 = arith.constant 0 : index
    %c0_4 = arith.constant 0 : index
    %3 = vector.load %arg3[%c0_3, %c0_4] : memref<1x16xf32, #tpu.memory_space<vmem>>, vector<1x16xf32>
    %4 = vector.broadcast %3 : vector<1x16xf32> to vector<128x16xf32>
    %5 = arith.addf %2, %4 : vector<128x16xf32>
    %c0_5 = arith.constant 0 : index
    %c0_6 = arith.constant 0 : index
    %6 = vector.load %arg4[%c0_5, %c0_6] : memref<128x16xf32, #tpu.memory_space<vmem>>, vector<128x16xf32>
    tpu.vector_store %arg4[%c0_5, %c0_6], %5 {strides = array<i32>} : memref<128x16xf32, #tpu.memory_space<vmem>>, vector<128x16xf32>,
    return
  }
  func.func @transform_0(%arg0: i32) -> (i32, i32) {
    %c0_i32 = arith.constant 0 : i32
    %c0_i32_0 = arith.constant 0 : i32
    return %arg0, %c0_i32 : i32, i32
  }
  func.func @transform_1(%arg0: i32) -> (i32, i32) {
    %c0_i32 = arith.constant 0 : i32
    %c0_i32_0 = arith.constant 0 : i32
    %c0_i32_1 = arith.constant 0 : i32
    return %c0_i32, %c0_i32_0 : i32, i32
  }
  func.func @transform_2(%arg0: i32) -> (i32, i32) {
    %c0_i32 = arith.constant 0 : i32
    %c0_i32_0 = arith.constant 0 : i32
    %c0_i32_1 = arith.constant 0 : i32
    return %c0_i32, %c0_i32_0 : i32, i32
  }
  func.func @transform_3(%arg0: i32) -> (i32, i32) {
    %c0_i32 = arith.constant 0 : i32
    %c0_i32_0 = arith.constant 0 : i32
    return %arg0, %c0_i32 : i32, i32
  }
}

</mosaic_0001>

<bundles_post_ra>
// kernel: tile.44
= control target key start
LH: loop header
LB: loop body
LE: loop exit
PB: predicated region body
PF: predicated region fallthrough
CT: control target
= control target key end

     0   :  { %vm7_vm0 = vcmask 130048   ;;  %s37_s8 = smov 16   ;;  %s38_s9 = smov 32   ;;  %vm13_vm1 = vcmask 523648   ;;  %vm19_vm2 = vcmask 392448   ;;  %vm25_vm3 = vcmask 261248   ;;  %s55_s0 = inlined_call_operand.vmem [shape: f32[4,16], index: 0, kind: input, shape index: {}]   ;;  %s56_s1 = inlined_call_operand.vmem [shape: f32[1,64], index: 1, kind: output, shape index: {}]  }
   0x1   :  { %v4_v0 = vld [vmem:[%s55_s0] sm:$0xf]  ;;  %s36_s0 = smov 48  }
   0x2   :  { %5 = vst [vmem:[#allocation1] sm:$0xf] %v4_v0 }
   0x9   :  { %v10_v1 = vld [vmem:[#allocation1 + $0x3] sm:$0x1]   ;;  %v22_v2 = vld [vmem:[#allocation1 + $0x1] sm:$0x1]   ;;  %v6_v3 = vld [vmem:[#allocation1] sm:$0x1]  }
   0xa   :  { %11 = vrot.lane.b32.xlu0 %v10_v1, %s36_s0  ;;  %23 = vrot.lane.b32.xlu1 %v22_v2, %s37_s8  ;;  %v16_v4 = vld [vmem:[#allocation1 + $0x2] sm:$0x1]   ;;  %8 = vst.msk [vmem:[#allocation0] sm:$0x1] %vm7_vm0, %v6_v3  }
   0xe   :  { %17 = vrot.lane.b32.xlu0 %v16_v4, %s38_s9 }
  0x7c   :  { %v12_v5 = vpop.permute.xlu0 %11   ;;  %v24_v6 = vpop.permute.xlu1 %23  }
  0x7d   :  { %14 = vst.msk [vmem:[#allocation0] sm:$0x1] %vm13_vm1, %v12_v5  }
  0x80   :  { %v18_v7 = vpop.permute.xlu0 %17  }
  0x81   :  { %20 = vst.msk [vmem:[#allocation0] sm:$0x1] %vm19_vm2, %v18_v7  }
  0x82   :  { %26 = vst.msk [vmem:[#allocation0] sm:$0x1] %vm25_vm3, %v24_v6  }
  0x89   :  { %v30_v8 = vld [vmem:[#allocation0] sm:$0x1] }
  0x8a   :  { %32 = vst [vmem:[%s56_s1] sm:$0x1] %v30_v8 }

// kernel: tile.54
= control target key start
LH: loop header
LB: loop body
LE: loop exit
PB: predicated region body
PF: predicated region fallthrough
CT: control target
= control target key end

     0   :  { %vm7_vm0 = vcmask 523264   ;;  %vm13_vm1 = vcmask 1048064   ;;  %s39_s0 = inlined_call_operand.vmem [shape: f32[2,64], index: 0, kind: input, shape index: {}]   ;;  %s40_s1 = inlined_call_operand.vmem [shape: f32[1,128], index: 1, kind: output, shape index: {}]  }
   0x1   :  { %v4_v0 = vld [vmem:[%s39_s0] sm:$0x3]  ;;  %s22_s0 = smov 64  }
   0x2   :  { %5 = vst [vmem:[#allocation1] sm:$0x3] %v4_v0 }
   0x9   :  { %v10_v1 = vld [vmem:[#allocation1 + $0x1] sm:$0x1]   ;;  %v6_v2 = vld [vmem:[#allocation1] sm:$0x1]  }
   0xa   :  { %11 = vrot.lane.b32.xlu0 %v10_v1, %s22_s0  ;;  %8 = vst.msk [vmem:[#allocation0] sm:$0x1] %vm7_vm0, %v6_v2  }
  0x7c   :  { %v12_v3 = vpop.permute.xlu0 %11  }
  0x7d   :  { %14 = vst.msk [vmem:[#allocation0] sm:$0x1] %vm13_vm1, %v12_v3  }
  0x84   :  { %v18_v4 = vld [vmem:[#allocation0] sm:$0x1] }
  0x85   :  { %20 = vst [vmem:[%s40_s1] sm:$0x1] %v18_v4 }

// kernel: tile.53
= control target key start
LH: loop header
LB: loop body
LE: loop exit
PB: predicated region body
PF: predicated region fallthrough
CT: control target
= control target key end

     0   :  { %s22_s0 = inlined_call_operand.vmem [shape: f32[64], index: 0, kind: input, shape index: {}]   ;;  %s23_s1 = inlined_call_operand.vmem [shape: f32[2,64], index: 1, kind: output, shape index: {}]  }
   0x1   :  { %v4_v0 = vld [vmem:[%s22_s0] ss:$0 sm:$0xff] }
   0x2   :  { %5 = vst [vmem:[%s23_s1] sm:$0x3] %v4_v0 }

// kernel: tile.43
= control target key start
LH: loop header
LB: loop body
LE: loop exit
PB: predicated region body
PF: predicated region fallthrough
CT: control target
= control target key end

     0   :  { %s22_s0 = inlined_call_operand.vmem [shape: f32[16], index: 0, kind: input, shape index: {}]   ;;  %s23_s1 = inlined_call_operand.vmem [shape: f32[4,16], index: 1, kind: output, shape index: {}]  }
   0x1   :  { %v4_v0 = vld [vmem:[%s22_s0] ss:$0 sm:$0xff] }
   0x2   :  { %5 = vst [vmem:[%s23_s1] sm:$0xf] %v4_v0 }

// kernel: tile.34
= control target key start
LH: loop header
LB: loop body
LE: loop exit
PB: predicated region body
PF: predicated region fallthrough
CT: control target
= control target key end

     0   :  { %s67_s10 = smov 21   ;;  %s68_s11 = smov 15   ;;  %vm3_vm0 = vcmask 23552   ;;  %vm9_vm1 = vcmask 195752   ;;  %vm15_vm2 = vcmask 171152   ;;  %vm21_vm3 = vcmask 146552   ;;  %s111_s0 = inlined_call_operand.vmem [shape: f32[8,3], index: 0, kind: input, shape index: {}]   ;;  %s112_s1 = inlined_call_operand.vmem [shape: f32[1,24], index: 1, kind: output, shape index: {}]  }
   0x1   :  { %v53_v0 = vld [vmem:[%s111_s0 + $0x7] sm:$0x1]   ;;  %v55_v1 = vld [vmem:[%s111_s0 + $0x5] sm:$0x1]   ;;  %v54_v2 = vld [vmem:[%s111_s0 + $0x6] sm:$0x1]  }
   0x2   :  { %7 = vrot.lane.b32.xlu0 %v53_v0, %s67_s10  ;;  %19 = vrot.lane.b32.xlu1 %v55_v1, %s68_s11  ;;  %v56_v3 = vld [vmem:[%s111_s0 + $0x4] sm:$0x1]   ;;  %v2_v4 = vld [vmem:[%s111_s0] sm:$0x1]   ;;  %s69_s18 = smov 18   ;;  %s70_s19 = smov 12  }
   0x3   :  { %4 = vst.msk [vmem:[#allocation0] sm:$0x1] %vm3_vm0, %v2_v4   ;;  %v57_v5 = vld [vmem:[%s111_s0 + $0x3] sm:$0x1]   ;;  %v58_v6 = vld [vmem:[%s111_s0 + $0x2] sm:$0x1]  }
   0x4   :  { %s71_s24 = smov 9   ;;  %s72_s25 = smov 6   ;;  %v59_v7 = vld [vmem:[%s111_s0 + $0x1] sm:$0x1]   ;;  %vm27_vm4 = vcmask 121952   ;;  %vm33_vm5 = vcmask 97352  }
   0x5   :  { %s73_s0 = smov 3   ;;  %vm39_vm6 = vcmask 72752   ;;  %vm45_vm7 = vcmask 48152  }
   0x6   :  { %13 = vrot.lane.b32.xlu0 %v54_v2, %s69_s18  ;;  %25 = vrot.lane.b32.xlu1 %v56_v3, %s70_s19 }
   0xa   :  { %31 = vrot.lane.b32.xlu0 %v57_v5, %s71_s24  ;;  %37 = vrot.lane.b32.xlu1 %v58_v6, %s72_s25 }
   0xe   :  { %43 = vrot.lane.b32.xlu0 %v59_v7, %s73_s0 }
  0x74   :  { %v8_v8 = vpop.permute.xlu0 %7   ;;  %v20_v9 = vpop.permute.xlu1 %19  }
  0x75   :  { %10 = vst.msk [vmem:[#allocation0] sm:$0x1] %vm9_vm1, %v8_v8  }
  0x78   :  { %v14_v10 = vpop.permute.xlu0 %13   ;;  %v26_v11 = vpop.permute.xlu1 %25  }
  0x79   :  { %16 = vst.msk [vmem:[#allocation0] sm:$0x1] %vm15_vm2, %v14_v10  }
  0x7a   :  { %22 = vst.msk [vmem:[#allocation0] sm:$0x1] %vm21_vm3, %v20_v9  }
  0x7b   :  { %28 = vst.msk [vmem:[#allocation0] sm:$0x1] %vm27_vm4, %v26_v11  }
  0x7c   :  { %v32_v12 = vpop.permute.xlu0 %31   ;;  %v38_v13 = vpop.permute.xlu1 %37  }
  0x7d   :  { %34 = vst.msk [vmem:[#allocation0] sm:$0x1] %vm33_vm5, %v32_v12  }
  0x7e   :  { %40 = vst.msk [vmem:[#allocation0] sm:$0x1] %vm39_vm6, %v38_v13  }
  0x80   :  { %v44_v14 = vpop.permute.xlu0 %43  }
  0x81   :  { %46 = vst.msk [vmem:[#allocation0] sm:$0x1] %vm45_vm7, %v44_v14  }
  0x88   :  { %v50_v15 = vld [vmem:[#allocation0] sm:$0x1] }
  0x89   :  { %52 = vst [vmem:[%s112_s1] sm:$0x1] %v50_v15 }

// kernel: tile.33
= control target key start
LH: loop header
LB: loop body
LE: loop exit
PB: predicated region body
PF: predicated region fallthrough
CT: control target
= control target key end

     0   :  { %s22_s0 = inlined_call_operand.vmem [shape: f32[3], index: 0, kind: input, shape index: {}]   ;;  %s23_s1 = inlined_call_operand.vmem [shape: f32[8,3], index: 1, kind: output, shape index: {}]  }
   0x1   :  { %v4_v0 = vld [vmem:[%s22_s0] ss:$0 sm:$0xff] }
   0x2   :  { %5 = vst [vmem:[%s23_s1] sm:$0xff] %v4_v0 }

// kernel: erfnet_forward.78
= control target key start
LH: loop header
LB: loop body
LE: loop exit
PB: predicated region body
PF: predicated region fallthrough
CT: control target
= control target key end

     0   :  { %vm67_vm0 = vcmask 191488   ;;  %s151_s0 = inlined_call_operand.vmem [shape: bf16[16,24], index: 0, kind: input, shape index: {}]   ;;  %s152_s1 = inlined_call_operand.vmem [shape: bf16[16,24], index: 1, kind: input, shape index: {}]   ;;  %s153_s2 = inlined_call_operand.vmem [shape: bf16[16,24], index: 2, kind: input, shape index: {}]   ;;  %s154_s3 = inlined_call_operand.vmem [shape: bf16[16,24], index: 3, kind: input, shape index: {}]   ;;  %s155_s4 = inlined_call_operand.vmem [shape: f32[1,24], index: 4, kind: input, shape index: {}]   ;;  %s156_s5 = inlined_call_operand.vmem [shape: f32[1,24], index: 5, kind: input, shape index: {}]   ;;  %s157_s6 = inlined_call_operand.vmem [shape: bf16[16,24], index: 6, kind: output, shape index: {}]  }
   0x1   :  { %v23_v0 = vld [vmem:[%s151_s0] sm:$0xf]  ;;  %v24_v6 = vld [vmem:[%s151_s0 + $0x4] sm:$0xf] }
   0x2   :  { %v25_v1 = vld [vmem:[%s152_s1] sm:$0xf]  ;;  %v26_v7 = vld [vmem:[%s152_s1 + $0x4] sm:$0xf] }
   0x3   :  { %v29_v2 = vld [vmem:[%s153_s2] sm:$0xf]  ;;  %v27_v3 = vmax.bf16 %v25_v1, %v23_v0  ;;  %v30_v8 = vld [vmem:[%s153_s2 + $0x4] sm:$0xf]  ;;  %v28_v9 = vmax.bf16 %v26_v7, %v24_v6 }
   0x4   :  { %v31_v4 = vld [vmem:[%s154_s3] sm:$0xf]  ;;  %v32_v10 = vld [vmem:[%s154_s3 + $0x4] sm:$0xf] }
   0x5   :  { %v33_v5 = vmax.bf16 %v31_v4, %v29_v2  ;;  %v34_v12 = vmax.bf16 %v32_v10, %v30_v8  ;;  %v74_v13 = vld [vmem:[%s155_s4] ss:$0 sm:$0xff] }
   0x6   :  { %v75_v16 = vld [vmem:[%s156_s5] ss:$0 sm:$0xff] }
   0x7   :  { %v35_v11 = vmax.bf16 %v33_v5, %v27_v3  ;;  %v36_v15 = vmax.bf16 %v34_v12, %v28_v9 }
   0x9   :  { %v37_v14 = vunpack.c.l.bf16 %v35_v11  ;;  %v38_v18 = vunpack.c.l.bf16 %v36_v15 }
   0xb   :  { %v46_v17 = vmul.f32 %v74_v13, %v37_v14  ;;  %v47_v20 = vmul.f32 %v74_v13, %v38_v18 }
   0xd   :  { %v55_v19 = vadd.f32 %v75_v16, %v46_v17  ;;  %v56_v22 = vadd.f32 %v75_v16, %v47_v20 }
   0xf   :  { %v57_v21 = vmax.f32 %v55_v19, 0.0  ;;  %v58_v24 = vmax.f32 %v56_v22, 0.0 }
  0x11   :  { %v78_v23 = vpack.c.bf16 %v57_v21, %v57_v21  ;;  %v79_v25 = vpack.c.bf16 %v58_v24, %v58_v24 }
  0x13   :  { %68 = vst.msk [vmem:[%s157_s6] sm:$0xf] %vm67_vm0, %v78_v23  ;;  %69 = vst.msk [vmem:[%s157_s6 + $0x4] sm:$0xf] %vm67_vm0, %v79_v25 }

// kernel: erfnet_forward.77
= control target key start
LH: loop header
LB: loop body
LE: loop exit
PB: predicated region body
PF: predicated region fallthrough
CT: control target
= control target key end

     0   :  { %vm118_vm0 = vcmask 1044480   ;;  %vm119_vm1 = vcmask 1045504   ;;  %vm93_vm2 = vcmask 220160   ;;  %v419_v1 = vmov 65535   ;;  %s545_s1 = inlined_call_operand.vmem [shape: bf16[27,13], index: 1, kind: input, shape index: {}]   ;;  %s546_s0 = inlined_call_operand.vmem [shape: bf16[128,27], index: 0, kind: input, shape index: {}]   ;;  %s547_s2 = inlined_call_operand.vmem [shape: f32[1,13], index: 2, kind: input, shape index: {}]   ;;  %s548_s3 = inlined_call_operand.vmem [shape: bf16[128,13], index: 3, kind: output, shape index: {}]  }
   0x1   :  { %v409_v0 = vld [vmem:[%s545_s1] sm:$0xff]   ;;  %v120_v2 = vsel %vm118_vm0, 4294967295, %v419_v1  ;;  %v410_v3 = vld [vmem:[%s545_s1 + $0x8] sm:$0x3f]   ;;  %v415_v10 = vld [vmem:[%s546_s0 + $0x10] sm:$0xff]   ;;  %vm302_vm3 = vcmask 101376  }
   0x2   :  { %384 = vmatprep.subr.bf16.mxu0 %v409_v0  ;;  %404 = vmatprep.subr.bf16.mxu1 %v409_v0  ;;  %v121_v4 = vsel %vm119_vm1, %v120_v2, 0  ;;  %v411_v5 = vld [vmem:[%s546_s0] sm:$0xff]   ;;  %v413_v8 = vld [vmem:[%s546_s0 + $0x8] sm:$0xff]   ;;  %v416_v11 = vld [vmem:[%s546_s0 + $0x30] sm:$0xff]  }
   0x3   :  { %385 = vmatpush3.bf16.msra.mxu0 %v409_v0  ;;  %406 = vmatpush3.bf16.msra.mxu1 %v409_v0  ;;  %v123_v6 = vand.u32 %v410_v3, %v121_v4  ;;  %v412_v7 = vld [vmem:[%s546_s0 + $0x20] sm:$0xff]   ;;  %v414_v9 = vld [vmem:[%s546_s0 + $0x28] sm:$0xff]   ;;  %v417_v12 = vld [vmem:[%s546_s0 + $0x18] sm:$0xff]  }
   0x4   :  { %388 = vmatprep.mubr.msk.bf16.mxu0 %vm93_vm2, %v411_v5  ;;  %396 = vmatprep.mubr.msk.bf16.mxu1 %vm93_vm2, %v412_v7  ;;  %v418_v13 = vld [vmem:[%s546_s0 + $0x38] sm:$0xff]   ;;  %v323_v14 = vld [vmem:[%s547_s2] ss:$0 sm:$0xff] }
   0x5   :  { %386 = vmatprep.subr.bf16.mxu0 %v123_v6  ;;  %405 = vmatprep.subr.bf16.mxu1 %v123_v6 }
   0x7   :  { %387 = vmatpush3.bf16.msra.mxu0 %v123_v6  ;;  %407 = vmatpush3.bf16.msra.mxu1 %v123_v6 }
   0xa   :  { %389 = vmatmul.mubr.msk.bf16.vlgmr.msra.gmra.mrb[0].mxu0 %vm93_vm2, %v413_v8  ;;  %397 = vmatmul.mubr.msk.bf16.vlgmr.msra.gmra.mrb[0].mxu1 %vm93_vm2, %v414_v9 }
   0xb   :  { %392 = vmatprep.mubr.msk.bf16.mxu0 %vm93_vm2, %v415_v10  ;;  %400 = vmatprep.mubr.msk.bf16.mxu1 %vm93_vm2, %v416_v11 }
  0x12   :  { %393 = vmatmul.mubr.msk.bf16.gmra.mrb[4].mxu0 %vm93_vm2, %v417_v12  ;;  %401 = vmatmul.mubr.msk.bf16.gmra.mrb[4].mxu1 %vm93_vm2, %v418_v13 }
  0xdd   :  { %v390_v15 = vpop.f32.mrb[0].mxu0  ;;  %v398_v16 = vpop.f32.mrb[0].mxu1 }
  0xde   :  { %v168_v17 = vadd.f32 %v390_v15, %v323_v14  ;;  %v200_v18 = vadd.f32 %v398_v16, %v323_v14  ;;  %v159_v19 = vpop.f32.mrb[1].mxu0  ;;  %v191_v20 = vpop.f32.mrb[1].mxu1 }
  0xdf   :  { %v160_v21 = vadd.f32 %v323_v14, %v159_v19  ;;  %v192_v22 = vadd.f32 %v323_v14, %v191_v20  ;;  %v391_v23 = vpop.f32.mrb[2].mxu0  ;;  %v399_v24 = vpop.f32.mrb[2].mxu1 }
  0xe0   :  { %v224_v25 = vmax.f32 %v168_v17, 0.0  ;;  %v232_v26 = vmax.f32 %v200_v18, 0.0  ;;  %v171_v27 = vadd.f32 %v391_v23, %v323_v14  ;;  %v203_v28 = vadd.f32 %v399_v24, %v323_v14  ;;  %v162_v29 = vpop.f32.mrb[3].mxu0  ;;  %v194_v30 = vpop.f32.mrb[3].mxu1 }
  0xe1   :  { %v222_v31 = vmax.f32 %v160_v21, 0.0  ;;  %v230_v32 = vmax.f32 %v192_v22, 0.0  ;;  %v163_v33 = vadd.f32 %v323_v14, %v162_v29  ;;  %v195_v34 = vadd.f32 %v323_v14, %v194_v30 }
  0xe2   :  { %v360_v35 = vpack.c.bf16 %v224_v25, %v224_v25  ;;  %v368_v36 = vpack.c.bf16 %v232_v26, %v232_v26  ;;  %v225_v37 = vmax.f32 %v171_v27, 0.0  ;;  %v233_v38 = vmax.f32 %v203_v28, 0.0 }
  0xe3   :  { %v358_v39 = vpack.c.bf16 %v222_v31, %v222_v31  ;;  %v366_v40 = vpack.c.bf16 %v230_v32, %v230_v32  ;;  %v223_v41 = vmax.f32 %v163_v33, 0.0  ;;  %v231_v42 = vmax.f32 %v195_v34, 0.0 }
  0xe4   :  { %305 = vst.msk [vmem:[%s548_s3 + $0x8] sm:$0xf] %vm302_vm3, %v360_v35  ;;  %313 = vst.msk [vmem:[%s548_s3 + $0x28] sm:$0xf] %vm302_vm3, %v368_v36  ;;  %v361_v43 = vpack.c.bf16 %v225_v37, %v225_v37  ;;  %v369_v44 = vpack.c.bf16 %v233_v38, %v233_v38 }
  0xe5   :  { %303 = vst.msk [vmem:[%s548_s3] sm:$0xf] %vm302_vm3, %v358_v39  ;;  %311 = vst.msk [vmem:[%s548_s3 + $0x20] sm:$0xf] %vm302_vm3, %v366_v40  ;;  %v359_v45 = vpack.c.bf16 %v223_v41, %v223_v41  ;;  %v367_v46 = vpack.c.bf16 %v231_v42, %v231_v42  ;;  %v394_v47 = vpop.f32.mrb[4].mxu0  ;;  %v402_v48 = vpop.f32.mrb[4].mxu1 }
  0xe6   :  { %306 = vst.msk [vmem:[%s548_s3 + $0xc] sm:$0xf] %vm302_vm3, %v361_v43  ;;  %314 = vst.msk [vmem:[%s548_s3 + $0x2c] sm:$0xf] %vm302_vm3, %v369_v44  ;;  %v184_v49 = vadd.f32 %v394_v47, %v323_v14  ;;  %v216_v50 = vadd.f32 %v402_v48, %v323_v14  ;;  %v175_v51 = vpop.f32.mrb[5].mxu0  ;;  %v207_v52 = vpop.f32.mrb[5].mxu1 }
  0xe7   :  { %304 = vst.msk [vmem:[%s548_s3 + $0x4] sm:$0xf] %vm302_vm3, %v359_v45  ;;  %312 = vst.msk [vmem:[%s548_s3 + $0x24] sm:$0xf] %vm302_vm3, %v367_v46  ;;  %v176_v53 = vadd.f32 %v323_v14, %v175_v51  ;;  %v208_v54 = vadd.f32 %v323_v14, %v207_v52  ;;  %v395_v55 = vpop.f32.mrb[6].mxu0  ;;  %v403_v56 = vpop.f32.mrb[6].mxu1 }
  0xe8   :  { %v228_v57 = vmax.f32 %v184_v49, 0.0  ;;  %v236_v58 = vmax.f32 %v216_v50, 0.0  ;;  %v187_v59 = vadd.f32 %v395_v55, %v323_v14  ;;  %v219_v60 = vadd.f32 %v403_v56, %v323_v14  ;;  %v178_v61 = vpop.f32.mrb[7].mxu0  ;;  %v210_v62 = vpop.f32.mrb[7].mxu1 }
  0xe9   :  { %v226_v63 = vmax.f32 %v176_v53, 0.0  ;;  %v234_v0 = vmax.f32 %v208_v54, 0.0  ;;  %v179_v1 = vadd.f32 %v323_v14, %v178_v61  ;;  %v211_v2 = vadd.f32 %v323_v14, %v210_v62 }
  0xea   :  { %v364_v3 = vpack.c.bf16 %v228_v57, %v228_v57  ;;  %v372_v4 = vpack.c.bf16 %v236_v58, %v236_v58  ;;  %v229_v5 = vmax.f32 %v187_v59, 0.0  ;;  %v237_v6 = vmax.f32 %v219_v60, 0.0 }
  0xeb   :  { %v362_v7 = vpack.c.bf16 %v226_v63, %v226_v63  ;;  %v370_v8 = vpack.c.bf16 %v234_v0, %v234_v0  ;;  %v227_v9 = vmax.f32 %v179_v1, 0.0  ;;  %v235_v10 = vmax.f32 %v211_v2, 0.0 }
  0xec   :  { %309 = vst.msk [vmem:[%s548_s3 + $0x18] sm:$0xf] %vm302_vm3, %v364_v3  ;;  %317 = vst.msk [vmem:[%s548_s3 + $0x38] sm:$0xf] %vm302_vm3, %v372_v4  ;;  %v365_v11 = vpack.c.bf16 %v229_v5, %v229_v5  ;;  %v373_v12 = vpack.c.bf16 %v237_v6, %v237_v6 }
  0xed   :  { %307 = vst.msk [vmem:[%s548_s3 + $0x10] sm:$0xf] %vm302_vm3, %v362_v7  ;;  %315 = vst.msk [vmem:[%s548_s3 + $0x30] sm:$0xf] %vm302_vm3, %v370_v8  ;;  %v363_v13 = vpack.c.bf16 %v227_v9, %v227_v9  ;;  %v371_v14 = vpack.c.bf16 %v235_v10, %v235_v10 }
  0xee   :  { %310 = vst.msk [vmem:[%s548_s3 + $0x1c] sm:$0xf] %vm302_vm3, %v365_v11  ;;  %318 = vst.msk [vmem:[%s548_s3 + $0x3c] sm:$0xf] %vm302_vm3, %v373_v12 }
  0xef   :  { %308 = vst.msk [vmem:[%s548_s3 + $0x14] sm:$0xf] %vm302_vm3, %v363_v13  ;;  %316 = vst.msk [vmem:[%s548_s3 + $0x34] sm:$0xf] %vm302_vm3, %v371_v14 }

// kernel: erfnet_forward.80
= control target key start
LH: loop header
LB: loop body
LE: loop exit
PB: predicated region body
PF: predicated region fallthrough
CT: control target
= control target key end

     0   :  { %vm49_vm0 = vcmask 519168   ;;  %s113_s0 = inlined_call_operand.vmem [shape: bf16[8,64], index: 0, kind: input, shape index: {}]   ;;  %s114_s1 = inlined_call_operand.vmem [shape: bf16[8,64], index: 1, kind: input, shape index: {}]   ;;  %s115_s2 = inlined_call_operand.vmem [shape: bf16[8,64], index: 2, kind: input, shape index: {}]   ;;  %s116_s3 = inlined_call_operand.vmem [shape: bf16[8,64], index: 3, kind: input, shape index: {}]   ;;  %s117_s4 = inlined_call_operand.vmem [shape: f32[1,64], index: 4, kind: input, shape index: {}]   ;;  %s118_s5 = inlined_call_operand.vmem [shape: f32[1,64], index: 5, kind: input, shape index: {}]   ;;  %s119_s6 = inlined_call_operand.vmem [shape: bf16[8,64], index: 6, kind: output, shape index: {}]  }
   0x1   :  { %v23_v0 = vld [vmem:[%s113_s0] sm:$0xf] }
   0x2   :  { %v24_v1 = vld [vmem:[%s114_s1] sm:$0xf] }
   0x3   :  { %v26_v2 = vld [vmem:[%s115_s2] sm:$0xf]  ;;  %v25_v3 = vmax.bf16 %v24_v1, %v23_v0 }
   0x4   :  { %v27_v4 = vld [vmem:[%s116_s3] sm:$0xf] }
   0x5   :  { %v28_v5 = vmax.bf16 %v27_v4, %v26_v2  ;;  %v55_v7 = vld [vmem:[%s117_s4] ss:$0 sm:$0xff] }
   0x6   :  { %v56_v9 = vld [vmem:[%s118_s5] ss:$0 sm:$0xff] }
   0x7   :  { %v29_v6 = vmax.bf16 %v28_v5, %v25_v3 }
   0x9   :  { %v30_v8 = vunpack.c.l.bf16 %v29_v6 }
   0xb   :  { %v38_v10 = vmul.f32 %v55_v7, %v30_v8 }
   0xd   :  { %v46_v11 = vadd.f32 %v56_v9, %v38_v10 }
   0xf   :  { %v47_v12 = vmax.f32 %v46_v11, 0.0 }
  0x11   :  { %v48_v13 = vpack.c.bf16 %v47_v12, %v47_v12 }
  0x13   :  { %50 = vst.msk [vmem:[%s119_s6] sm:$0xf] %vm49_vm0, %v48_v13 }

// kernel: erfnet_forward.79
= control target key start
LH: loop header
LB: loop body
LE: loop exit
PB: predicated region body
PF: predicated region fallthrough
CT: control target
= control target key end

     0   :  { %v259_v0 = vmov 0   ;;  %vm116_vm0 = vcmask 130048   ;;  %vm192_vm1 = vcmask 388096   ;;  %s334_s1 = inlined_call_operand.vmem [shape: bf16[144,48], index: 1, kind: input, shape index: {}]   ;;  %s335_s0 = inlined_call_operand.vmem [shape: bf16[32,144], index: 0, kind: input, shape index: {}]   ;;  %s336_s2 = inlined_call_operand.vmem [shape: f32[1,48], index: 2, kind: input, shape index: {}]   ;;  %s337_s3 = inlined_call_operand.vmem [shape: bf16[32,48], index: 3, kind: output, shape index: {}]  }
   0x1   :  { %123 = vmatprep.subr.bf16.mxu0 %v259_v0  ;;  %225 = vmatprep.subr.bf16.mxu1 %v259_v0  ;;  %v244_v1 = vld [vmem:[%s334_s1] sm:$0xff]   ;;  %v245_v2 = vld [vmem:[%s334_s1 + $0x8] sm:$0xff]   ;;  %v246_v3 = vld [vmem:[%s334_s1 + $0x10] sm:$0xff]  }
   0x2   :  { %124 = vmatpush1.bf16.msra.mxu0 %v244_v1  ;;  %234 = vmatpush1.bf16.msra.mxu1 %v244_v1  ;;  %v247_v4 = vld [vmem:[%s334_s1 + $0x18] sm:$0xff]   ;;  %v255_v5 = vld [vmem:[%s335_s0 + $0x4] ss:$8 sps:$4 sm:$0xff]   ;;  %v250_v9 = vld [vmem:[%s334_s1 + $0x30] sm:$0xff]  }
   0x3   :  { %125 = vmatprep.subr.bf16.mxu0 %v259_v0  ;;  %226 = vmatprep.subr.bf16.mxu1 %v259_v0  ;;  %v258_v6 = vld [vmem:[%s335_s0 + $0x14] ss:$8 sps:$4 sm:$0xff]   ;;  %v248_v7 = vld [vmem:[%s334_s1 + $0x20] sm:$0xff]   ;;  %v249_v8 = vld [vmem:[%s334_s1 + $0x28] sm:$0xff]  }
   0x4   :  { %215 = vmatprep.mubr.msk.bf16.mxu0 %vm116_vm0, %v255_v5  ;;  %216 = vmatprep.mubr.msk.bf16.mxu1 %vm116_vm0, %v258_v6  ;;  %v251_v10 = vld [vmem:[%s334_s1 + $0x38] sm:$0xff]   ;;  %v252_v11 = vld [vmem:[%s334_s1 + $0x40] sm:$0xff]  }
   0x5   :  { %v253_v12 = vld [vmem:[%s335_s0] ss:$8 sps:$4 sm:$0xff]   ;;  %v256_v13 = vld [vmem:[%s335_s0 + $0x10] ss:$8 sps:$4 sm:$0xff]  }
   0x6   :  { %126 = vmatpush1.bf16.msra.mxu0 %v245_v2  ;;  %235 = vmatpush1.bf16.msra.mxu1 %v245_v2  ;;  %v201_v14 = vld [vmem:[%s336_s2] ss:$0 sm:$0xff] }
   0x7   :  { %127 = vmatprep.subr.bf16.mxu0 %v259_v0  ;;  %227 = vmatprep.subr.bf16.mxu1 %v259_v0 }
   0xa   :  { %128 = vmatpush1.bf16.msra.mxu0 %v246_v3  ;;  %236 = vmatpush1.bf16.msra.mxu1 %v246_v3 }
   0xb   :  { %129 = vmatprep.subr.bf16.mxu0 %v259_v0  ;;  %228 = vmatprep.subr.bf16.mxu1 %v259_v0 }
   0xe   :  { %130 = vmatpush1.bf16.msra.mxu0 %v247_v4  ;;  %237 = vmatpush1.bf16.msra.mxu1 %v247_v4 }
   0xf   :  { %131 = vmatprep.subr.bf16.mxu0 %v259_v0  ;;  %229 = vmatprep.subr.bf16.mxu1 %v259_v0 }
  0x12   :  { %132 = vmatpush1.bf16.msra.mxu0 %v248_v7  ;;  %238 = vmatpush1.bf16.msra.mxu1 %v248_v7 }
  0x13   :  { %133 = vmatprep.subr.bf16.mxu0 %v259_v0  ;;  %230 = vmatprep.subr.bf16.mxu1 %v259_v0 }
  0x16   :  { %134 = vmatpush1.bf16.msra.mxu0 %v249_v8  ;;  %239 = vmatpush1.bf16.msra.mxu1 %v249_v8 }
  0x17   :  { %135 = vmatprep.subr.bf16.mxu0 %v259_v0  ;;  %231 = vmatprep.subr.bf16.mxu1 %v259_v0 }
  0x1a   :  { %136 = vmatpush1.bf16.msra.mxu0 %v250_v9  ;;  %240 = vmatpush1.bf16.msra.mxu1 %v250_v9 }
  0x1b   :  { %137 = vmatprep.subr.bf16.mxu0 %v259_v0  ;;  %232 = vmatprep.subr.bf16.mxu1 %v259_v0 }
  0x1e   :  { %138 = vmatpush1.bf16.msra.mxu0 %v251_v10  ;;  %241 = vmatpush1.bf16.msra.mxu1 %v251_v10 }
  0x1f   :  { %139 = vmatprep.subr.bf16.mxu0 %v259_v0  ;;  %233 = vmatprep.subr.bf16.mxu1 %v259_v0 }
  0x22   :  { %140 = vmatpush1.bf16.msra.mxu0 %v252_v11  ;;  %242 = vmatpush1.bf16.msra.mxu1 %v252_v11 }
  0x25   :  { %156 = vmatmul.mubr.bf16.vlgmr.msra.gmra.mrb[0].mxu0 %v253_v12  ;;  %164 = vmatmul.mubr.bf16.vlgmr.msra.gmra.mrb[0].mxu1 %v256_v13 }
  0xf8   :  { %v157_v15 = vpop.f32.mrb[0].mxu0  ;;  %v165_v16 = vpop.f32.mrb[0].mxu1 }
  0xf9   :  { %v158_v17 = vadd.f32 %v201_v14, %v157_v15  ;;  %v166_v18 = vadd.f32 %v201_v14, %v165_v16  ;;  %v159_v19 = vpop.f32.mrb[1].mxu0  ;;  %v167_v20 = vpop.f32.mrb[1].mxu1 }
  0xfa   :  { %v160_v21 = vpop.f32.mrb[2].mxu0  ;;  %v168_v22 = vpop.f32.mrb[2].mxu1 }
  0xfb   :  { %v172_v23 = vmax.f32 %v158_v17, 0.0  ;;  %v174_v24 = vmax.f32 %v166_v18, 0.0  ;;  %v161_v25 = vadd.f32 %v201_v14, %v160_v21  ;;  %v169_v26 = vadd.f32 %v201_v14, %v168_v22  ;;  %v162_v27 = vpop.f32.mrb[3].mxu0  ;;  %v170_v28 = vpop.f32.mrb[3].mxu1 }
  0xfd   :  { %v221_v29 = vpack.c.bf16 %v172_v23, %v172_v23  ;;  %v223_v30 = vpack.c.bf16 %v174_v24, %v174_v24  ;;  %v173_v31 = vmax.f32 %v161_v25, 0.0  ;;  %v175_v32 = vmax.f32 %v169_v26, 0.0 }
  0xff   :  { %193 = vst.msk [vmem:[%s337_s3] sm:$0xf] %vm192_vm1, %v221_v29  ;;  %195 = vst.msk [vmem:[%s337_s3 + $0x8] sm:$0xf] %vm192_vm1, %v223_v30  ;;  %v222_v33 = vpack.c.bf16 %v173_v31, %v173_v31  ;;  %v224_v34 = vpack.c.bf16 %v175_v32, %v175_v32 }
 0x101   :  { %194 = vst.msk [vmem:[%s337_s3 + $0x4] sm:$0xf] %vm192_vm1, %v222_v33  ;;  %196 = vst.msk [vmem:[%s337_s3 + $0xc] sm:$0xf] %vm192_vm1, %v224_v34 }

// kernel: erfnet_forward.81
= control target key start
LH: loop header
LB: loop body
LE: loop exit
PB: predicated region body
PF: predicated region fallthrough
CT: control target
= control target key end

     0   :  { %s781_s12 = smov 0   ;;  %s783_s13 = smov 0   ;;  %s886_s0 = inlined_call_operand.vmem [shape: bf16[2,6,4,64], index: 0, kind: input, shape index: {}]   ;;  %s887_s1 = inlined_call_operand.vmem [shape: bf16[3,64,64], index: 1, kind: input, shape index: {}]   ;;  %s888_s2 = inlined_call_operand.vmem [shape: f32[1,64], index: 2, kind: input, shape index: {}]   ;;  %s889_s3 = inlined_call_operand.vmem [shape: bf16[2,4,4,64], index: 3, kind: output, shape index: {}]  }
   0x1   :  { %s785_s14 = smov 0  }
   0x2 LB: > { %s25_s15 = sadd.s32 1, %s752_s13  ;;  %p604_p0 = scmp.ge.s32.totalorder %s756_s14, 1  ;;  %s756_s14 = sphi %s785_s14, %s13_s14   ;;  %s752_s13 = sphi %s783_s13, %s891_s13   ;;  %s748_s12 = sphi %s781_s12, %s890_s12  }
   0x3   : > { %p27_p1 = scmp.ge.s32.totalorder %s25_s15, 2  ;;  %p156_p2 = scmp.lt.s32.totalorder %s756_s14, 3 }
   0x5   : > { %s893_s15 = smov (%p27_p1, %s25_s15), 0  ;;  %p157_p3 = pnand %p604_p0, %p156_p2 }
   0x6   : > { %v722_v0 = vld [vmem:[%s887_s1 + $0x20] sm:$0xff] (!%p157_p3)   ;;  %v758_v1 = vmov (!%p157_p3), 0.0   ;;  %v724_v3 = vld [vmem:[%s887_s1 + $0x28] sm:$0xff] (!%p157_p3)   ;;  %vm759_vm0 = vmmov (!%p157_p3), 0   ;;  %p186_p4 = scmp.lt.s32.totalorder (!%p157_p3), %s748_s12, 1  ;;  %v235_v5 = vlaneseq (!%p157_p3)  ;;  %v726_v6 = vld [vmem:[%s887_s1 + $0x30] sm:$0xff] (!%p157_p3)  }
   0x7   : > { %160 = sbr.rel (%p157_p3) target bundleno = 267 (0x10b), region = 32  ;;  %658 = vmatprep.subr.bf16.mxu0 (!%p157_p3), %v758_v1  ;;  %670 = vmatprep.subr.bf16.mxu1 (!%p157_p3), %v758_v1  ;;  %v723_v2 = vld [vmem:[%s887_s1] sm:$0xff] (!%p157_p3)   ;;  %v725_v4 = vld [vmem:[%s887_s1 + $0x8] sm:$0xff] (!%p157_p3)   ;;  %v727_v7 = vld [vmem:[%s887_s1 + $0x10] sm:$0xff] (!%p157_p3)   ;;  %v760_v12 = vmov (!%p157_p3), 1983009808  }
   0x8   : > { %659 = vmatpush3.bf16.msra.mxu0 (!%p157_p3), %v722_v0  ;;  %666 = vmatprep.mubr.msk.bf16.mxu0 (!%p157_p3), %vm759_vm0, %v758_v1  ;;  %v236_v8 = vshrl.u32 (!%p157_p3), %v235_v5, 7  ;;  %v233_v13 = vunpack.c.l.s4 (!%p157_p3), %v760_v12  ;;  %v728_v14 = vld [vmem:[%s887_s1 + $0x38] sm:$0xff] (!%p157_p3)   ;;  %vm271_vm1 = vcmask (!%p157_p3), 523264   ;;  %v730_v28 = vld [vmem:[%s887_s1 + $0x40] sm:$0xff] (!%p157_p3)   ;;  %v731_v32 = vld [vmem:[%s887_s1 + $0x48] sm:$0xff] (!%p157_p3)   ;;  %vm512_vm2 = vcmask (!%p157_p3), 517120  }
   0x9   : > { %671 = vmatpush3.bf16.msra.mxu1 (!%p157_p3), %v723_v2  ;;  %660 = vmatprep.subr.bf16.mxu0 (!%p157_p3), %v758_v1  ;;  %v729_v18 = vld [vmem:[%s887_s1 + $0x18] sm:$0xff] (!%p157_p3)   ;;  %v732_v34 = vld [vmem:[%s887_s1 + $0x50] sm:$0xff] (!%p157_p3)   ;;  %v639_v49 = vld [vmem:[%s888_s2] ss:$0 sm:$0xff] (!%p157_p3) }
   0xa   : > { %672 = vmatprep.subr.bf16.mxu1 (!%p157_p3), %v758_v1  ;;  %678 = vmatprep.mubr.msk.bf16.mxu1 (!%p157_p3), %vm759_vm0, %v758_v1  ;;  %v234_v20 = vunpack.c.0.s8 (!%p157_p3), %v233_v13  ;;  %v733_v36 = vld [vmem:[%s887_s1 + $0x58] sm:$0xff] (!%p157_p3)  }
   0xc   : > { %661 = vmatpush3.bf16.msra.mxu0 (!%p157_p3), %v724_v3  ;;  %v237_v23 = vsub.s32 (!%p157_p3), %v234_v20, %v236_v8 }
   0xd   : > { %673 = vmatpush3.bf16.msra.mxu1 (!%p157_p3), %v725_v4  ;;  %662 = vmatprep.subr.bf16.mxu0 (!%p157_p3), %v758_v1 }
   0xe   : > { %s895_s12 = smov (!%p186_p4, %s748_s12), 1  ;;  %674 = vmatprep.subr.bf16.mxu1 %v758_v1 }
   0xf   : > { %s694_s26 = smul.u32 12, %s895_s12  ;;  %s642_s23 = sshll.u32 %s895_s12, 3 }
  0x10   : > { %663 = vmatpush3.bf16.msra.mxu0 %v726_v6 }
  0x11   : > { %s833_s4 = scalar_lea.vmem %s886_s0, %s694_s26  ;;  %675 = vmatpush3.bf16.msra.mxu1 %v727_v7  ;;  %664 = vmatprep.subr.bf16.mxu0 %v758_v1  ;;  %s201_s26 = scalar_lea.vmem %s889_s3, %s642_s23 }
  0x12   : > { %v204_v9 = vld [vmem:[%s833_s4 + $0x2] sm:$0x3]  ;;  %v205_v10 = vld [vmem:[%s833_s4 + $0x4] sm:$0x3]  ;;  %v206_v11 = vld [vmem:[%s833_s4 + $0x6] sm:$0x3]  ;;  %676 = vmatprep.subr.bf16.mxu1 %v758_v1 }
  0x13   : > { %v207_v15 = vld [vmem:[%s833_s4 + $0x8] sm:$0x3]  ;;  %v230_v16 = vcombine.low %v204_v9, %v205_v10  ;;  %v203_v17 = vld [vmem:[%s833_s4] sm:$0x3]  ;;  %v318_v22 = vcombine.low %v205_v10, %v206_v11  ;;  %v208_v31 = vld [vmem:[%s833_s4 + $0xa] sm:$0x3] }
  0x14   : > { %v231_v19 = vcombine.low %v206_v11, %v207_v15  ;;  %v317_v21 = vcombine.low %v203_v17, %v204_v9  ;;  %665 = vmatpush3.bf16.msra.mxu0 %v728_v14  ;;  %v412_v33 = vcombine.low %v207_v15, %v208_v31 }
  0x15   : > { %677 = vmatpush3.bf16.msra.mxu1 %v729_v18  ;;  %v238_v24 = vrot.slane %v230_v16, %v237_v23  ;;  %v332_v27 = vrot.slane %v318_v22, %v237_v23  ;;  %682 = vmatprep.subr.bf16.mxu0 %v758_v1 }
  0x16   : > { %v245_v25 = vrot.slane %v231_v19, %v237_v23  ;;  %v325_v26 = vrot.slane %v317_v21, %v237_v23  ;;  %v419_v35 = vrot.slane %v412_v33, %v237_v23 }
  0x18   : > { %v246_v29 = vcombine.low %v238_v24, %v245_v25  ;;  %v333_v30 = vcombine.low %v325_v26, %v332_v27  ;;  %v420_v37 = vcombine.low %v332_v27, %v419_v35 }
  0x1a   : > { %667 = vmatmul.mubr.msk.bf16.vlgmr.msra.gmra.mrb[0].mxu0 %vm271_vm1, %v246_v29  ;;  %679 = vmatmul.mubr.msk.bf16.vlgmr.msra.gmra.mrb[0].mxu1 %vm271_vm1, %v333_v30 }
  0x1b   : > { %683 = vmatpush3.bf16.msra.mxu0 %v730_v28  ;;  %690 = vmatprep.mubr.msk.bf16.mxu0 %vm759_vm0, %v758_v1 }
  0x1c   : > { %684 = vmatprep.subr.bf16.mxu0 %v758_v1 }
  0x1f   : > { %685 = vmatpush3.bf16.msra.mxu0 %v731_v32 }
  0x20   : > { %686 = vmatprep.subr.bf16.mxu0 %v758_v1 }
  0x23   : > { %687 = vmatpush3.bf16.msra.mxu0 %v732_v34 }
  0x24   : > { %688 = vmatprep.subr.bf16.mxu0 %v758_v1 }
  0x27   : > { %689 = vmatpush3.bf16.msra.mxu0 %v733_v36 }
  0x2a   : > { %691 = vmatmul.mubr.msk.bf16.vlgmr.msra.gmra.mrb[4].mxu0 %vm271_vm1, %v420_v37 }
  0xed   : > { %v309_v38 = vpop.f32.mrb[0].mxu0  ;;  %v395_v39 = vpop.f32.mrb[0].mxu1 }
  0xee   : > { %v396_v40 = vadd.f32 %v395_v39, %v309_v38  ;;  %v668_v41 = vpop.f32.mrb[1].mxu0  ;;  %v680_v42 = vpop.f32.mrb[1].mxu1 }
  0xef   : > { %v312_v43 = vpop.f32.mrb[2].mxu0  ;;  %v398_v44 = vpop.f32.mrb[2].mxu1 }
  0xf0   : > { %v399_v45 = vadd.f32 %v398_v44, %v312_v43  ;;  %v669_v46 = vpop.f32.mrb[3].mxu0  ;;  %v681_v47 = vpop.f32.mrb[3].mxu1 }
  0xfd   : > { %v482_v48 = vpop.f32.mrb[4].mxu0 }
  0xfe   : > { %v489_v50 = vadd.f32 %v482_v48, %v396_v40  ;;  %v692_v51 = vpop.f32.mrb[5].mxu0 }
  0xff   : > { %v485_v52 = vpop.f32.mrb[6].mxu0 }
 0x100   : > { %v498_v53 = vadd.f32 %v639_v49, %v489_v50  ;;  %v490_v54 = vadd.f32 %v485_v52, %v399_v45  ;;  %v693_v55 = vpop.f32.mrb[7].mxu0 }
 0x102   : > { %v500_v56 = vmax.f32 %v498_v53, 0.0  ;;  %v499_v57 = vadd.f32 %v639_v49, %v490_v54 }
 0x104   : > { %v504_v58 = vcombine.high %v500_v56, %v500_v56  ;;  %v508_v59 = vpack.c.bf16 %v500_v56, %v500_v56  ;;  %v501_v60 = vmax.f32 %v499_v57, 0.0 }
 0x106   : > { %v509_v61 = vpack.c.bf16 %v504_v58, %v504_v58  ;;  %513 = vst.msk [vmem:[%s201_s26] sm:$0x3] %vm512_vm2, %v508_v59  ;;  %v505_v62 = vcombine.high %v501_v60, %v501_v60  ;;  %v510_v63 = vpack.c.bf16 %v501_v60, %v501_v60 }
 0x108   : > { %514 = vst.msk [vmem:[%s201_s26 + $0x2] sm:$0x3] %vm512_vm2, %v509_v61  ;;  %v511_v0 = vpack.c.bf16 %v505_v62, %v505_v62  ;;  %515 = vst.msk [vmem:[%s201_s26 + $0x4] sm:$0x3] %vm512_vm2, %v510_v63 }
 0x10a   : > { %516 = vst.msk [vmem:[%s201_s26 + $0x6] sm:$0x3] %vm512_vm2, %v511_v0 }
 0x10b PF: > { %s13_s14 = sadd.s32 1, %s756_s14   ;;  %s890_s12 = smov %s752_s13 }
 0x10c   : > { %p10_p5 = scmp.ge.s32.totalorder %s13_s14, 4   ;;  %s891_s13 = smov %s893_s15 }
 0x10e   :  { %12 = sbr.rel (!%p10_p5) target bundleno = 2 (0x2), region = 64 }

// kernel: erfnet_forward.82
= control target key start
LH: loop header
LB: loop body
LE: loop exit
PB: predicated region body
PF: predicated region fallthrough
CT: control target
= control target key end

     0   :  { %s922_s12 = smov 0   ;;  %s924_s13 = smov 0   ;;  %s1090_s0 = inlined_call_operand.vmem [shape: bf16[2,4,6,64], index: 0, kind: input, shape index: {}]   ;;  %s1091_s1 = inlined_call_operand.vmem [shape: bf16[3,64,64], index: 1, kind: input, shape index: {}]   ;;  %s1092_s2 = inlined_call_operand.vmem [shape: f32[1,64], index: 2, kind: input, shape index: {}]   ;;  %s1093_s3 = inlined_call_operand.vmem [shape: bf16[2,4,4,64], index: 3, kind: output, shape index: {}]  }
   0x1   :  { %s926_s14 = smov 0  }
   0x2 LB: > { %s25_s15 = sadd.s32 1, %s893_s13  ;;  %p738_p0 = scmp.ge.s32.totalorder %s897_s14, 1  ;;  %s897_s14 = sphi %s926_s14, %s13_s14   ;;  %s893_s13 = sphi %s924_s13, %s1097_s13   ;;  %s889_s12 = sphi %s922_s12, %s1096_s12  }
   0x3   : > { %p27_p1 = scmp.ge.s32.totalorder %s25_s15, 2  ;;  %p158_p2 = scmp.lt.s32.totalorder %s897_s14, 3 }
   0x5   : > { %s1099_s15 = smov (%p27_p1, %s25_s15), 0  ;;  %p159_p3 = pnand %p738_p0, %p158_p2 }
   0x6   : > { %v861_v0 = vld [vmem:[%s1091_s1 + $0x20] sm:$0xff] (!%p159_p3)   ;;  %v899_v1 = vmov (!%p159_p3), 0.0   ;;  %v863_v3 = vld [vmem:[%s1091_s1 + $0x28] sm:$0xff] (!%p159_p3)   ;;  %vm900_vm0 = vmmov (!%p159_p3), 0   ;;  %p191_p4 = scmp.lt.s32.totalorder (!%p159_p3), %s889_s12, 1  ;;  %v865_v5 = vld [vmem:[%s1091_s1 + $0x30] sm:$0xff] (!%p159_p3)   ;;  %v230_v6 = vlaneseq (!%p159_p3) }
   0x7   : > { %162 = sbr.rel (%p159_p3) target bundleno = 282 (0x11a), region = 32  ;;  %798 = vmatprep.subr.bf16.mxu0 (!%p159_p3), %v899_v1  ;;  %810 = vmatprep.subr.bf16.mxu1 (!%p159_p3), %v899_v1  ;;  %v862_v2 = vld [vmem:[%s1091_s1] sm:$0xff] (!%p159_p3)   ;;  %v864_v4 = vld [vmem:[%s1091_s1 + $0x8] sm:$0xff] (!%p159_p3)   ;;  %v866_v7 = vld [vmem:[%s1091_s1 + $0x10] sm:$0xff] (!%p159_p3)   ;;  %v901_v11 = vmov (!%p159_p3), 1983009808  }
   0x8   : > { %799 = vmatpush3.bf16.msra.mxu0 (!%p159_p3), %v861_v0  ;;  %806 = vmatprep.mubr.msk.bf16.mxu0 (!%p159_p3), %vm900_vm0, %v899_v1  ;;  %v867_v8 = vld [vmem:[%s1091_s1 + $0x38] sm:$0xff] (!%p159_p3)   ;;  %v228_v12 = vunpack.c.l.s4 (!%p159_p3), %v901_v11  ;;  %v231_v13 = vshrl.u32 (!%p159_p3), %v230_v6, 7  ;;  %vm259_vm1 = vsmask.f32 (!%p159_p3), 1280  ;;  %vm260_vm2 = vsmask.f32 (!%p159_p3), 3336 }
   0x9   : > { %811 = vmatpush3.bf16.msra.mxu1 (!%p159_p3), %v862_v2  ;;  %800 = vmatprep.subr.bf16.mxu0 (!%p159_p3), %v899_v1  ;;  %v868_v9 = vld [vmem:[%s1091_s1 + $0x18] sm:$0xff] (!%p159_p3)   ;;  %vm372_vm3 = vcmask (!%p159_p3), 523264   ;;  %vm262_vm4 = vsmask.f32 (!%p159_p3), 5392  ;;  %vm264_vm5 = vsmask.f32 (!%p159_p3), 7448  ;;  %vm261_vm6 = vmor (!%p159_p3), %vm259_vm1, %vm260_vm2 }
   0xa   : > { %812 = vmatprep.subr.bf16.mxu1 (!%p159_p3), %v899_v1  ;;  %818 = vmatprep.mubr.msk.bf16.mxu1 (!%p159_p3), %vm900_vm0, %v899_v1  ;;  %v229_v17 = vunpack.c.0.s8 (!%p159_p3), %v228_v12  ;;  %vm263_vm7 = vmor (!%p159_p3), %vm261_vm6, %vm262_vm4  ;;  %vm502_vm9 = vcmask (!%p159_p3), 1040384   ;;  %vm503_vm10 = vcmask (!%p159_p3), 1042434   ;;  %vm505_vm12 = vcmask (!%p159_p3), 1044484  }
   0xb   : > { %vm1028_vm8 = vmor (!%p159_p3), %vm263_vm7, %vm264_vm5  ;;  %vm507_vm14 = vcmask (!%p159_p3), 1046534  }
   0xc   : > { %801 = vmatpush3.bf16.msra.mxu0 (!%p159_p3), %v863_v3  ;;  %v982_v20 = vsub.s32 (!%p159_p3), %v229_v17, %v231_v13  ;;  %vm504_vm11 = vmor (!%p159_p3), %vm502_vm9, %vm503_vm10 }
   0xd   : > { %813 = vmatpush3.bf16.msra.mxu1 (!%p159_p3), %v864_v4  ;;  %802 = vmatprep.subr.bf16.mxu0 (!%p159_p3), %v899_v1  ;;  %vm506_vm13 = vmor (!%p159_p3), %vm504_vm11, %vm505_vm12 }
   0xe   : > { %s1101_s12 = smov (!%p191_p4, %s889_s12), 1  ;;  %814 = vmatprep.subr.bf16.mxu1 %v899_v1  ;;  %vm508_vm15 = vmor %vm506_vm13, %vm507_vm14 }
   0xf   : > { %s781_s26 = sshll.u32 %s1101_s12, 4  ;;  %s782_s23 = sshll.u32 %s1101_s12, 3 }
  0x10   : > { %s198_s4 = scalar_lea.vmem %s1090_s0, %s781_s26  ;;  %803 = vmatpush3.bf16.msra.mxu0 %v865_v5  ;;  %s208_s26 = scalar_lea.vmem %s1093_s3, %s782_s23 }
  0x11   : > { %v211_v10 = vld [vmem:[%s198_s4] sm:$0x7]  ;;  %815 = vmatpush3.bf16.msra.mxu1 %v866_v7  ;;  %804 = vmatprep.subr.bf16.mxu0 %v899_v1  ;;  %v212_v14 = vld [vmem:[%s198_s4 + $0x4] sm:$0x7]  ;;  %v213_v15 = vld [vmem:[%s198_s4 + $0x8] sm:$0x7] }
  0x12   : > { %816 = vmatprep.subr.bf16.mxu1 %v899_v1  ;;  %v214_v16 = vld [vmem:[%s198_s4 + $0xc] sm:$0x7]  ;;  %v417_v18 = vcombine.low %v211_v10, %v212_v14  ;;  %v986_v21 = vrot.slane %v211_v10, %v982_v20  ;;  %v989_v22 = vrot.slane %v212_v14, %v982_v20  ;;  %v992_v23 = vrot.slane %v213_v15, %v982_v20  ;;  %v871_v14 = vld [vmem:[%s1091_s1 + $0x40] sm:$0xff]  }
  0x13   : > { %v418_v19 = vcombine.low %v213_v15, %v214_v16  ;;  %v995_v24 = vrot.slane %v214_v16, %v982_v20 }
  0x14   : > { %805 = vmatpush3.bf16.msra.mxu0 %v867_v8  ;;  %v425_v25 = vrot.slane %v417_v18, %v982_v20  ;;  %v1001_v27 = vcombine.high %v986_v21, %v986_v21  ;;  %v1005_v28 = vcombine.high %v989_v22, %v989_v22  ;;  %v1009_v29 = vcombine.high %v992_v23, %v992_v23 }
  0x15   : > { %817 = vmatpush3.bf16.msra.mxu1 %v868_v9  ;;  %822 = vmatprep.subr.bf16.mxu0 %v899_v1  ;;  %v432_v26 = vrot.slane %v418_v19, %v982_v20  ;;  %v1013_v30 = vcombine.high %v995_v24, %v995_v24  ;;  %v267_v31 = vshrl.u32 %v986_v21, 16  ;;  %v270_v32 = vshll.u32 %v986_v21, 16 }
  0x16   : > { %v281_v33 = vshrl.u32 %v989_v22, 16  ;;  %v284_v34 = vshll.u32 %v989_v22, 16  ;;  %v276_v35 = vshll.u32 %v1001_v27, 16  ;;  %v290_v36 = vshll.u32 %v1005_v28, 16 }
  0x17   : > { %v295_v37 = vshrl.u32 %v992_v23, 16  ;;  %v298_v38 = vshll.u32 %v992_v23, 16  ;;  %v269_v39 = vrot.slane %v267_v31, 6  ;;  %v272_v40 = vrot.slane %v270_v32, 7  ;;  %v874_v31 = vld [vmem:[%s1091_s1 + $0x58] sm:$0xff]  }
  0x18   : > { %v283_v41 = vrot.slane %v281_v33, 6  ;;  %v286_v42 = vrot.slane %v284_v34, 7  ;;  %v278_v43 = vrot.slane %v276_v35, 7  ;;  %v292_v44 = vrot.slane %v290_v36, 7 }
  0x19   : > { %v297_v45 = vrot.slane %v295_v37, 6  ;;  %v300_v46 = vrot.slane %v298_v38, 7  ;;  %v273_v47 = vor.u32 %v272_v40, %v269_v39  ;;  %v304_v49 = vshll.u32 %v1009_v29, 16 }
  0x1a   : > { %v287_v48 = vor.u32 %v286_v42, %v283_v41  ;;  %v309_v50 = vshrl.u32 %v995_v24, 16  ;;  %v312_v53 = vshll.u32 %v995_v24, 16  ;;  %v318_v54 = vshll.u32 %v1013_v30, 16 }
  0x1b   : > { %v301_v52 = vor.u32 %v300_v46, %v297_v45  ;;  %v433_v55 = vcombine.low %v425_v25, %v432_v26  ;;  %v274_v56 = vrot.slane %v273_v47, 2  ;;  %v306_v60 = vrot.slane %v304_v49, 7 }
  0x1c   : > { %v288_v57 = vrot.slane %v287_v48, 2  ;;  %v311_v58 = vrot.slane %v309_v50, 6  ;;  %v314_v61 = vrot.slane %v312_v53, 7  ;;  %v320_v2 = vrot.slane %v318_v54, 7 }
  0x1d   : > { %v302_v59 = vrot.slane %v301_v52, 2  ;;  %819 = vmatmul.mubr.msk.bf16.vlgmr.msra.gmra.mrb[0].mxu1 %vm372_vm3, %v433_v55  ;;  %v279_v62 = vsel %vm1028_vm8, %v274_v56, %v278_v43  ;;  %v761_v9 = vrot.slane %v986_v21, 9  ;;  %v511_v11 = vrot.slane %v1001_v27, 7 }
  0x1e   : > { %v293_v63 = vsel %vm1028_vm8, %v288_v57, %v292_v44  ;;  %v315_v0 = vor.u32 %v314_v61, %v311_v58  ;;  %v762_v12 = vrot.slane %v989_v22, 9  ;;  %v515_v13 = vrot.slane %v1005_v28, 7  ;;  %v872_v22 = vld [vmem:[%s1091_s1 + $0x48] sm:$0xff]   ;;  %v873_v28 = vld [vmem:[%s1091_s1 + $0x50] sm:$0xff]  }
  0x1f   : > { %v331_v3 = vcombine.low %v279_v62, %v293_v63  ;;  %v307_v4 = vsel %vm1028_vm8, %v302_v59, %v306_v60  ;;  %v763_v15 = vrot.slane %v992_v23, 9  ;;  %v519_v16 = vrot.slane %v1009_v29, 7 }
  0x20   : > { %v316_v5 = vrot.slane %v315_v0, 2  ;;  %v764_v17 = vrot.slane %v995_v24, 9  ;;  %v523_v18 = vrot.slane %v1013_v30, 7  ;;  %v512_v21 = vsel %vm508_vm15, %v761_v9, %v511_v11 }
  0x21   : > { %v339_v8 = vrot.slane %v331_v3, %v982_v20  ;;  %v516_v25 = vsel %vm508_vm15, %v762_v12, %v515_v13  ;;  %v520_v23 = vsel %vm508_vm15, %v763_v15, %v519_v16 }
  0x22   : > { %v321_v6 = vsel %vm1028_vm8, %v316_v5, %v320_v2  ;;  %v524_v26 = vsel %vm508_vm15, %v764_v17, %v523_v18  ;;  %v534_v24 = vcombine.low %v512_v21, %v516_v25 }
  0x23   : > { %v332_v7 = vcombine.low %v307_v4, %v321_v6  ;;  %v535_v27 = vcombine.low %v520_v23, %v524_v26 }
  0x24   : > { %v542_v29 = vrot.slane %v534_v24, %v982_v20 }
  0x25   : > { %v346_v10 = vrot.slane %v332_v7, %v982_v20  ;;  %v549_v30 = vrot.slane %v535_v27, %v982_v20 }
  0x27   : > { %v347_v19 = vcombine.low %v339_v8, %v346_v10  ;;  %v550_v32 = vcombine.low %v542_v29, %v549_v30 }
  0x29   : > { %807 = vmatmul.mubr.msk.bf16.vlgmr.msra.gmra.mrb[0].mxu0 %vm372_vm3, %v347_v19 }
  0x2a   : > { %823 = vmatpush3.bf16.msra.mxu0 %v871_v14  ;;  %830 = vmatprep.mubr.msk.bf16.mxu0 %vm900_vm0, %v899_v1  ;;  %vm642_vm0 = vcmask 517120  }
  0x2b   : > { %824 = vmatprep.subr.bf16.mxu0 %v899_v1 }
  0x2e   : > { %825 = vmatpush3.bf16.msra.mxu0 %v872_v22 }
  0x2f   : > { %826 = vmatprep.subr.bf16.mxu0 %v899_v1 }
  0x32   : > { %827 = vmatpush3.bf16.msra.mxu0 %v873_v28 }
  0x33   : > { %828 = vmatprep.subr.bf16.mxu0 %v899_v1  ;;  %v778_v1 = vld [vmem:[%s1092_s2] ss:$0 sm:$0xff] }
  0x36   : > { %829 = vmatpush3.bf16.msra.mxu0 %v874_v31 }
  0x39   : > { %831 = vmatmul.mubr.msk.bf16.vlgmr.msra.gmra.mrb[4].mxu0 %vm372_vm3, %v550_v32 }
  0xf0   : > { %v495_v33 = vpop.f32.mrb[0].mxu1 }
  0xf1   : > { %v820_v34 = vpop.f32.mrb[1].mxu1 }
  0xf2   : > { %v498_v35 = vpop.f32.mrb[2].mxu1 }
  0xf3   : > { %v821_v36 = vpop.f32.mrb[3].mxu1 }
  0xfc   : > { %v410_v37 = vpop.f32.mrb[0].mxu0 }
  0xfd   : > { %v496_v38 = vadd.f32 %v495_v33, %v410_v37  ;;  %v808_v39 = vpop.f32.mrb[1].mxu0 }
  0xfe   : > { %v413_v20 = vpop.f32.mrb[2].mxu0 }
  0xff   : > { %v499_v40 = vadd.f32 %v498_v35, %v413_v20  ;;  %v809_v41 = vpop.f32.mrb[3].mxu0 }
 0x10c   : > { %v612_v42 = vpop.f32.mrb[4].mxu0 }
 0x10d   : > { %v619_v43 = vadd.f32 %v612_v42, %v496_v38  ;;  %v832_v44 = vpop.f32.mrb[5].mxu0 }
 0x10e   : > { %v615_v45 = vpop.f32.mrb[6].mxu0 }
 0x10f   : > { %v628_v46 = vadd.f32 %v778_v1, %v619_v43  ;;  %v620_v47 = vadd.f32 %v615_v45, %v499_v40  ;;  %v833_v48 = vpop.f32.mrb[7].mxu0 }
 0x111   : > { %v630_v49 = vmax.f32 %v628_v46, 0.0  ;;  %v629_v50 = vadd.f32 %v778_v1, %v620_v47 }
 0x113   : > { %v634_v51 = vcombine.high %v630_v49, %v630_v49  ;;  %v638_v52 = vpack.c.bf16 %v630_v49, %v630_v49  ;;  %v631_v53 = vmax.f32 %v629_v50, 0.0 }
 0x115   : > { %v639_v54 = vpack.c.bf16 %v634_v51, %v634_v51  ;;  %643 = vst.msk [vmem:[%s208_s26] sm:$0x3] %vm642_vm0, %v638_v52  ;;  %v635_v55 = vcombine.high %v631_v53, %v631_v53  ;;  %v640_v56 = vpack.c.bf16 %v631_v53, %v631_v53 }
 0x117   : > { %644 = vst.msk [vmem:[%s208_s26 + $0x2] sm:$0x3] %vm642_vm0, %v639_v54  ;;  %v641_v57 = vpack.c.bf16 %v635_v55, %v635_v55  ;;  %645 = vst.msk [vmem:[%s208_s26 + $0x4] sm:$0x3] %vm642_vm0, %v640_v56 }
 0x119   : > { %646 = vst.msk [vmem:[%s208_s26 + $0x6] sm:$0x3] %vm642_vm0, %v641_v57 }
 0x11a PF: > { %s13_s14 = sadd.s32 1, %s897_s14   ;;  %s1096_s12 = smov %s893_s13 }
 0x11b   : > { %p10_p5 = scmp.ge.s32.totalorder %s13_s14, 4   ;;  %s1097_s13 = smov %s1099_s15 }
 0x11d   :  { %12 = sbr.rel (!%p10_p5) target bundleno = 2 (0x2), region = 64 }

// kernel: erfnet_forward.84
= control target key start
LH: loop header
LB: loop body
LE: loop exit
PB: predicated region body
PF: predicated region fallthrough
CT: control target
= control target key end

     0   :  { %s1029_s15 = smov 0   ;;  %s1031_s16 = smov 0   ;;  %s1200_s0 = inlined_call_operand.vmem [shape: bf16[2,4,6,64], index: 0, kind: input, shape index: {}]   ;;  %s1201_s1 = inlined_call_operand.vmem [shape: bf16[3,64,64], index: 1, kind: input, shape index: {}]   ;;  %s1202_s2 = inlined_call_operand.vmem [shape: f32[1,64], index: 2, kind: input, shape index: {}]   ;;  %s1203_s3 = inlined_call_operand.vmem [shape: bf16[2,4,4,64], index: 3, kind: input, shape index: {}]   ;;  %s1204_s4 = inlined_call_operand.vmem [shape: bf16[2,4,4,64], index: 4, kind: output, shape index: {}]  }
   0x1   :  { %s1033_s17 = smov 0  }
   0x2 LB: > { %s26_s18 = sadd.s32 1, %s995_s16  ;;  %p837_p0 = scmp.ge.s32.totalorder %s999_s17, 1  ;;  %s999_s17 = sphi %s1033_s17, %s14_s17   ;;  %s995_s16 = sphi %s1031_s16, %s1208_s16   ;;  %s991_s15 = sphi %s1029_s15, %s1207_s15  }
   0x3   : > { %p28_p1 = scmp.ge.s32.totalorder %s26_s18, 2  ;;  %p200_p2 = scmp.lt.s32.totalorder %s999_s17, 3 }
   0x5   : > { %s1210_s18 = smov (%p28_p1, %s26_s18), 0  ;;  %p201_p3 = pnand %p837_p0, %p200_p2 }
   0x6   : > { %v963_v0 = vld [vmem:[%s1201_s1 + $0x20] sm:$0xff] (!%p201_p3)   ;;  %v1001_v1 = vmov (!%p201_p3), 0.0   ;;  %v965_v3 = vld [vmem:[%s1201_s1 + $0x28] sm:$0xff] (!%p201_p3)   ;;  %vm1002_vm0 = vmmov (!%p201_p3), 0   ;;  %p244_p4 = scmp.lt.s32.totalorder (!%p201_p3), %s991_s15, 1  ;;  %v967_v5 = vld [vmem:[%s1201_s1 + $0x30] sm:$0xff] (!%p201_p3)   ;;  %v293_v6 = vlaneseq (!%p201_p3) }
   0x7   : > { %204 = sbr.rel (%p201_p3) target bundleno = 284 (0x11c), region = 36  ;;  %900 = vmatprep.subr.bf16.mxu0 (!%p201_p3), %v1001_v1  ;;  %912 = vmatprep.subr.bf16.mxu1 (!%p201_p3), %v1001_v1  ;;  %v964_v2 = vld [vmem:[%s1201_s1] sm:$0xff] (!%p201_p3)   ;;  %v966_v4 = vld [vmem:[%s1201_s1 + $0x8] sm:$0xff] (!%p201_p3)   ;;  %v968_v7 = vld [vmem:[%s1201_s1 + $0x10] sm:$0xff] (!%p201_p3)   ;;  %v1003_v11 = vmov (!%p201_p3), 1983009808  }
   0x8   : > { %901 = vmatpush3.bf16.msra.mxu0 (!%p201_p3), %v963_v0  ;;  %908 = vmatprep.mubr.msk.bf16.mxu0 (!%p201_p3), %vm1002_vm0, %v1001_v1  ;;  %v969_v8 = vld [vmem:[%s1201_s1 + $0x38] sm:$0xff] (!%p201_p3)   ;;  %v291_v12 = vunpack.c.l.s4 (!%p201_p3), %v1003_v11  ;;  %v294_v13 = vshrl.u32 (!%p201_p3), %v293_v6, 7  ;;  %vm322_vm1 = vsmask.f32 (!%p201_p3), 1280  ;;  %vm323_vm2 = vsmask.f32 (!%p201_p3), 3336 }
   0x9   : > { %913 = vmatpush3.bf16.msra.mxu1 (!%p201_p3), %v964_v2  ;;  %902 = vmatprep.subr.bf16.mxu0 (!%p201_p3), %v1001_v1  ;;  %v970_v9 = vld [vmem:[%s1201_s1 + $0x18] sm:$0xff] (!%p201_p3)   ;;  %vm435_vm3 = vcmask (!%p201_p3), 523264   ;;  %vm325_vm4 = vsmask.f32 (!%p201_p3), 5392  ;;  %vm327_vm5 = vsmask.f32 (!%p201_p3), 7448  ;;  %vm324_vm6 = vmor (!%p201_p3), %vm322_vm1, %vm323_vm2 }
   0xa   : > { %914 = vmatprep.subr.bf16.mxu1 (!%p201_p3), %v1001_v1  ;;  %920 = vmatprep.mubr.msk.bf16.mxu1 (!%p201_p3), %vm1002_vm0, %v1001_v1  ;;  %v292_v17 = vunpack.c.0.s8 (!%p201_p3), %v291_v12  ;;  %vm326_vm7 = vmor (!%p201_p3), %vm324_vm6, %vm325_vm4  ;;  %vm565_vm9 = vcmask (!%p201_p3), 1040384   ;;  %vm566_vm10 = vcmask (!%p201_p3), 1042434   ;;  %vm568_vm12 = vcmask (!%p201_p3), 1044484  }
   0xb   : > { %vm1135_vm8 = vmor (!%p201_p3), %vm326_vm7, %vm327_vm5  ;;  %vm570_vm14 = vcmask (!%p201_p3), 1046534  }
   0xc   : > { %903 = vmatpush3.bf16.msra.mxu0 (!%p201_p3), %v965_v3  ;;  %v1089_v20 = vsub.s32 (!%p201_p3), %v292_v17, %v294_v13  ;;  %vm567_vm11 = vmor (!%p201_p3), %vm565_vm9, %vm566_vm10 }
   0xd   : > { %915 = vmatpush3.bf16.msra.mxu1 (!%p201_p3), %v966_v4  ;;  %904 = vmatprep.subr.bf16.mxu0 (!%p201_p3), %v1001_v1  ;;  %vm569_vm13 = vmor (!%p201_p3), %vm567_vm11, %vm568_vm12 }
   0xe   : > { %s1212_s15 = smov (!%p244_p4, %s991_s15), 1  ;;  %916 = vmatprep.subr.bf16.mxu1 %v1001_v1  ;;  %vm571_vm15 = vmor %vm569_vm13, %vm570_vm14 }
   0xf   : > { %s882_s29 = sshll.u32 %s1212_s15, 4  ;;  %s883_s25 = sshll.u32 %s1212_s15, 3 }
  0x10   : > { %s251_s8 = scalar_lea.vmem %s1200_s0, %s882_s29  ;;  %905 = vmatpush3.bf16.msra.mxu0 %v967_v5  ;;  %s261_s28 = scalar_lea.vmem %s1203_s3, %s883_s25 }
  0x11   : > { %v274_v10 = vld [vmem:[%s251_s8] sm:$0x7]  ;;  %917 = vmatpush3.bf16.msra.mxu1 %v968_v7  ;;  %906 = vmatprep.subr.bf16.mxu0 %v1001_v1  ;;  %v275_v14 = vld [vmem:[%s251_s8 + $0x4] sm:$0x7]  ;;  %v276_v15 = vld [vmem:[%s251_s8 + $0x8] sm:$0x7]  ;;  %s271_s6 = scalar_lea.vmem %s1204_s4, %s883_s25 }
  0x12   : > { %918 = vmatprep.subr.bf16.mxu1 %v1001_v1  ;;  %v277_v16 = vld [vmem:[%s251_s8 + $0xc] sm:$0x7]  ;;  %v480_v18 = vcombine.low %v274_v10, %v275_v14  ;;  %v1093_v21 = vrot.slane %v274_v10, %v1089_v20  ;;  %v1096_v22 = vrot.slane %v275_v14, %v1089_v20  ;;  %v1099_v23 = vrot.slane %v276_v15, %v1089_v20  ;;  %v973_v14 = vld [vmem:[%s1201_s1 + $0x40] sm:$0xff]  }
  0x13   : > { %v481_v19 = vcombine.low %v276_v15, %v277_v16  ;;  %v1102_v24 = vrot.slane %v277_v16, %v1089_v20 }
  0x14   : > { %907 = vmatpush3.bf16.msra.mxu0 %v969_v8  ;;  %v488_v25 = vrot.slane %v480_v18, %v1089_v20  ;;  %v1108_v27 = vcombine.high %v1093_v21, %v1093_v21  ;;  %v1112_v28 = vcombine.high %v1096_v22, %v1096_v22  ;;  %v1116_v29 = vcombine.high %v1099_v23, %v1099_v23 }
  0x15   : > { %919 = vmatpush3.bf16.msra.mxu1 %v970_v9  ;;  %924 = vmatprep.subr.bf16.mxu0 %v1001_v1  ;;  %v495_v26 = vrot.slane %v481_v19, %v1089_v20  ;;  %v1120_v30 = vcombine.high %v1102_v24, %v1102_v24  ;;  %v330_v31 = vshrl.u32 %v1093_v21, 16  ;;  %v333_v32 = vshll.u32 %v1093_v21, 16 }
  0x16   : > { %v344_v33 = vshrl.u32 %v1096_v22, 16  ;;  %v347_v34 = vshll.u32 %v1096_v22, 16  ;;  %v339_v35 = vshll.u32 %v1108_v27, 16  ;;  %v353_v36 = vshll.u32 %v1112_v28, 16 }
  0x17   : > { %v358_v37 = vshrl.u32 %v1099_v23, 16  ;;  %v361_v38 = vshll.u32 %v1099_v23, 16  ;;  %v332_v39 = vrot.slane %v330_v31, 6  ;;  %v335_v40 = vrot.slane %v333_v32, 7  ;;  %v976_v31 = vld [vmem:[%s1201_s1 + $0x58] sm:$0xff]  }
  0x18   : > { %v346_v41 = vrot.slane %v344_v33, 6  ;;  %v349_v42 = vrot.slane %v347_v34, 7  ;;  %v341_v43 = vrot.slane %v339_v35, 7  ;;  %v355_v44 = vrot.slane %v353_v36, 7 }
  0x19   : > { %v360_v45 = vrot.slane %v358_v37, 6  ;;  %v363_v46 = vrot.slane %v361_v38, 7  ;;  %v336_v47 = vor.u32 %v335_v40, %v332_v39  ;;  %v367_v49 = vshll.u32 %v1116_v29, 16 }
  0x1a   : > { %v350_v48 = vor.u32 %v349_v42, %v346_v41  ;;  %v372_v50 = vshrl.u32 %v1102_v24, 16  ;;  %v375_v53 = vshll.u32 %v1102_v24, 16  ;;  %v381_v54 = vshll.u32 %v1120_v30, 16  ;;  %v694_v42 = vld [vmem:[%s261_s28 + $0x2] sm:$0x3] }
  0x1b   : > { %v364_v52 = vor.u32 %v363_v46, %v360_v45  ;;  %v496_v55 = vcombine.low %v488_v25, %v495_v26  ;;  %v337_v56 = vrot.slane %v336_v47, 2  ;;  %v369_v60 = vrot.slane %v367_v49, 7 }
  0x1c   : > { %v351_v57 = vrot.slane %v350_v48, 2  ;;  %v374_v58 = vrot.slane %v372_v50, 6  ;;  %v377_v61 = vrot.slane %v375_v53, 7  ;;  %v383_v2 = vrot.slane %v381_v54, 7  ;;  %v879_v50 = vld [vmem:[%s1202_s2] ss:$0 sm:$0xff] }
  0x1d   : > { %v365_v59 = vrot.slane %v364_v52, 2  ;;  %921 = vmatmul.mubr.msk.bf16.vlgmr.msra.gmra.mrb[0].mxu1 %vm435_vm3, %v496_v55  ;;  %v342_v62 = vsel %vm1135_vm8, %v337_v56, %v341_v43  ;;  %v862_v9 = vrot.slane %v1093_v21, 9  ;;  %v574_v11 = vrot.slane %v1108_v27, 7  ;;  %v695_v43 = vld [vmem:[%s261_s28 + $0x4] sm:$0x3] }
  0x1e   : > { %v356_v63 = vsel %vm1135_vm8, %v351_v57, %v355_v44  ;;  %v378_v0 = vor.u32 %v377_v61, %v374_v58  ;;  %v863_v12 = vrot.slane %v1096_v22, 9  ;;  %v578_v13 = vrot.slane %v1112_v28, 7  ;;  %v974_v22 = vld [vmem:[%s1201_s1 + $0x48] sm:$0xff]   ;;  %v975_v28 = vld [vmem:[%s1201_s1 + $0x50] sm:$0xff]   ;;  %v696_v44 = vld [vmem:[%s261_s28 + $0x6] sm:$0x3] }
  0x1f   : > { %v394_v3 = vcombine.low %v342_v62, %v356_v63  ;;  %v370_v4 = vsel %vm1135_vm8, %v365_v59, %v369_v60  ;;  %v864_v15 = vrot.slane %v1099_v23, 9  ;;  %v582_v16 = vrot.slane %v1116_v29, 7 }
  0x20   : > { %v379_v5 = vrot.slane %v378_v0, 2  ;;  %v865_v17 = vrot.slane %v1102_v24, 9  ;;  %v586_v18 = vrot.slane %v1120_v30, 7  ;;  %v575_v21 = vsel %vm571_vm15, %v862_v9, %v574_v11 }
  0x21   : > { %v402_v8 = vrot.slane %v394_v3, %v1089_v20  ;;  %v579_v25 = vsel %vm571_vm15, %v863_v12, %v578_v13  ;;  %v583_v23 = vsel %vm571_vm15, %v864_v15, %v582_v16  ;;  %v698_v46 = vunpack.c.l.bf16 %v694_v42 }
  0x22   : > { %v384_v6 = vsel %vm1135_vm8, %v379_v5, %v383_v2  ;;  %v587_v26 = vsel %vm571_vm15, %v865_v17, %v586_v18  ;;  %v597_v24 = vcombine.low %v575_v21, %v579_v25  ;;  %v699_v47 = vunpack.c.l.bf16 %v695_v43 }
  0x23   : > { %v395_v7 = vcombine.low %v370_v4, %v384_v6  ;;  %v598_v27 = vcombine.low %v583_v23, %v587_v26  ;;  %v700_v48 = vunpack.c.l.bf16 %v696_v44 }
  0x24   : > { %v605_v29 = vrot.slane %v597_v24, %v1089_v20 }
  0x25   : > { %v409_v10 = vrot.slane %v395_v7, %v1089_v20  ;;  %v612_v30 = vrot.slane %v598_v27, %v1089_v20  ;;  %v706_v57 = vcombine.low %v699_v47, %v700_v48 }
  0x27   : > { %v410_v19 = vcombine.low %v402_v8, %v409_v10  ;;  %v613_v32 = vcombine.low %v605_v29, %v612_v30 }
  0x29   : > { %909 = vmatmul.mubr.msk.bf16.vlgmr.msra.gmra.mrb[0].mxu0 %vm435_vm3, %v410_v19 }
  0x2a   : > { %925 = vmatpush3.bf16.msra.mxu0 %v973_v14  ;;  %932 = vmatprep.mubr.msk.bf16.mxu0 %vm1002_vm0, %v1001_v1  ;;  %vm723_vm0 = vcmask 517120  }
  0x2b   : > { %926 = vmatprep.subr.bf16.mxu0 %v1001_v1 }
  0x2e   : > { %927 = vmatpush3.bf16.msra.mxu0 %v974_v22 }
  0x2f   : > { %928 = vmatprep.subr.bf16.mxu0 %v1001_v1 }
  0x32   : > { %929 = vmatpush3.bf16.msra.mxu0 %v975_v28 }
  0x33   : > { %930 = vmatprep.subr.bf16.mxu0 %v1001_v1  ;;  %v693_v1 = vld [vmem:[%s261_s28] sm:$0x3] }
  0x34   : > { %v697_v45 = vunpack.c.l.bf16 %v693_v1 }
  0x36   : > { %931 = vmatpush3.bf16.msra.mxu0 %v976_v31  ;;  %v705_v52 = vcombine.low %v697_v45, %v698_v46 }
  0x39   : > { %933 = vmatmul.mubr.msk.bf16.vlgmr.msra.gmra.mrb[4].mxu0 %vm435_vm3, %v613_v32 }
  0xf0   : > { %v558_v33 = vpop.f32.mrb[0].mxu1 }
  0xf1   : > { %v922_v34 = vpop.f32.mrb[1].mxu1 }
  0xf2   : > { %v561_v35 = vpop.f32.mrb[2].mxu1 }
  0xf3   : > { %v923_v36 = vpop.f32.mrb[3].mxu1 }
  0xfc   : > { %v473_v37 = vpop.f32.mrb[0].mxu0 }
  0xfd   : > { %v559_v38 = vadd.f32 %v558_v33, %v473_v37  ;;  %v910_v39 = vpop.f32.mrb[1].mxu0 }
  0xfe   : > { %v476_v20 = vpop.f32.mrb[2].mxu0 }
  0xff   : > { %v562_v40 = vadd.f32 %v561_v35, %v476_v20  ;;  %v911_v41 = vpop.f32.mrb[3].mxu0 }
 0x10c   : > { %v675_v49 = vpop.f32.mrb[4].mxu0 }
 0x10d   : > { %v682_v51 = vadd.f32 %v675_v49, %v559_v38  ;;  %v934_v53 = vpop.f32.mrb[5].mxu0 }
 0x10e   : > { %v678_v54 = vpop.f32.mrb[6].mxu0 }
 0x10f   : > { %v691_v55 = vadd.f32 %v879_v50, %v682_v51  ;;  %v683_v56 = vadd.f32 %v678_v54, %v562_v40  ;;  %v935_v58 = vpop.f32.mrb[7].mxu0 }
 0x111   : > { %v709_v59 = vadd.f32 %v705_v52, %v691_v55  ;;  %v692_v60 = vadd.f32 %v879_v50, %v683_v56 }
 0x113   : > { %v711_v61 = vmax.f32 %v709_v59, 0.0  ;;  %v710_v62 = vadd.f32 %v706_v57, %v692_v60 }
 0x115   : > { %v715_v63 = vcombine.high %v711_v61, %v711_v61  ;;  %v719_v0 = vpack.c.bf16 %v711_v61, %v711_v61  ;;  %v712_v2 = vmax.f32 %v710_v62, 0.0 }
 0x117   : > { %v720_v3 = vpack.c.bf16 %v715_v63, %v715_v63  ;;  %724 = vst.msk [vmem:[%s271_s6] sm:$0x3] %vm723_vm0, %v719_v0  ;;  %v716_v4 = vcombine.high %v712_v2, %v712_v2  ;;  %v721_v5 = vpack.c.bf16 %v712_v2, %v712_v2 }
 0x119   : > { %725 = vst.msk [vmem:[%s271_s6 + $0x2] sm:$0x3] %vm723_vm0, %v720_v3  ;;  %v722_v6 = vpack.c.bf16 %v716_v4, %v716_v4  ;;  %726 = vst.msk [vmem:[%s271_s6 + $0x4] sm:$0x3] %vm723_vm0, %v721_v5 }
 0x11b   : > { %727 = vst.msk [vmem:[%s271_s6 + $0x6] sm:$0x3] %vm723_vm0, %v722_v6 }
 0x11c PF: > { %s14_s17 = sadd.s32 1, %s999_s17   ;;  %s1207_s15 = smov %s995_s16 }
 0x11d   : > { %p11_p5 = scmp.ge.s32.totalorder %s14_s17, 4   ;;  %s1208_s16 = smov %s1210_s18 }
 0x11f   :  { %13 = sbr.rel (!%p11_p5) target bundleno = 2 (0x2), region = 71 }

// kernel: erfnet_forward.102
= control target key start
LH: loop header
LB: loop body
LE: loop exit
PB: predicated region body
PF: predicated region fallthrough
CT: control target
= control target key end

     0   :  { %s112_s0 = inlined_call_operand.vmem [shape: bf16[4,128], index: 0, kind: input, shape index: {}]   ;;  %s113_s1 = inlined_call_operand.vmem [shape: bf16[4,128], index: 1, kind: input, shape index: {}]   ;;  %s114_s2 = inlined_call_operand.vmem [shape: bf16[4,128], index: 2, kind: input, shape index: {}]   ;;  %s115_s3 = inlined_call_operand.vmem [shape: bf16[4,128], index: 3, kind: input, shape index: {}]   ;;  %s116_s4 = inlined_call_operand.vmem [shape: f32[1,128], index: 4, kind: input, shape index: {}]   ;;  %s117_s5 = inlined_call_operand.vmem [shape: f32[1,128], index: 5, kind: input, shape index: {}]   ;;  %s118_s6 = inlined_call_operand.vmem [shape: bf16[4,128], index: 6, kind: output, shape index: {}]  }
   0x1   :  { %v23_v0 = vld [vmem:[%s112_s0] sm:$0x3] }
   0x2   :  { %v24_v1 = vld [vmem:[%s113_s1] sm:$0x3] }
   0x3   :  { %v26_v2 = vld [vmem:[%s114_s2] sm:$0x3]  ;;  %v25_v3 = vmax.bf16 %v24_v1, %v23_v0 }
   0x4   :  { %v27_v4 = vld [vmem:[%s115_s3] sm:$0x3] }
   0x5   :  { %v28_v5 = vmax.bf16 %v27_v4, %v26_v2  ;;  %v54_v7 = vld [vmem:[%s116_s4] ss:$0 sm:$0xff] }
   0x6   :  { %v55_v9 = vld [vmem:[%s117_s5] ss:$0 sm:$0xff] }
   0x7   :  { %v29_v6 = vmax.bf16 %v28_v5, %v25_v3 }
   0x9   :  { %v30_v8 = vunpack.c.l.bf16 %v29_v6 }
   0xb   :  { %v38_v10 = vmul.f32 %v54_v7, %v30_v8 }
   0xd   :  { %v46_v11 = vadd.f32 %v55_v9, %v38_v10 }
   0xf   :  { %v47_v12 = vmax.f32 %v46_v11, 0.0 }
  0x11   :  { %v48_v13 = vpack.c.bf16 %v47_v12, %v47_v12 }
  0x13   :  { %49 = vst [vmem:[%s118_s6] sm:$0x3] %v48_v13 }

// kernel: erfnet_forward.101
= control target key start
LH: loop header
LB: loop body
LE: loop exit
PB: predicated region body
PF: predicated region fallthrough
CT: control target
= control target key end

     0   :  { %v609_v35 = vmov 0.0   ;;  %vm610_vm0 = vmmov 0   ;;  %vm330_vm1 = vcmask 523264   ;;  %vm456_vm2 = vcmask 519168   ;;  %s754_s1 = inlined_call_operand.vmem [shape: bf16[576,64], index: 1, kind: input, shape index: {}]   ;;  %s755_s0 = inlined_call_operand.vmem [shape: bf16[8,576], index: 0, kind: input, shape index: {}]   ;;  %s756_s2 = inlined_call_operand.vmem [shape: f32[1,64], index: 2, kind: input, shape index: {}]   ;;  %s757_s3 = inlined_call_operand.vmem [shape: bf16[8,64], index: 3, kind: output, shape index: {}]  }
   0x1   :  { %v568_v0 = vld [vmem:[%s754_s1 + $0x40] sm:$0xff]   ;;  %v572_v4 = vld [vmem:[%s754_s1 + $0x48] sm:$0xff]   ;;  %v576_v8 = vld [vmem:[%s754_s1 + $0x50] sm:$0xff]  }
   0x2   :  { %v569_v1 = vld [vmem:[%s754_s1] sm:$0xff]   ;;  %505 = vmatprep.subr.bf16.mxu0 %v568_v0  ;;  %v573_v5 = vld [vmem:[%s754_s1 + $0x8] sm:$0xff]   ;;  %v577_v9 = vld [vmem:[%s754_s1 + $0x10] sm:$0xff]  }
   0x3   :  { %v570_v2 = vld [vmem:[%s754_s1 + $0xc0] sm:$0xff]   ;;  %506 = vmatpush3.bf16.msra.mxu0 %v569_v1  ;;  %v574_v6 = vld [vmem:[%s754_s1 + $0xc8] sm:$0xff]   ;;  %v578_v10 = vld [vmem:[%s754_s1 + $0xd0] sm:$0xff]  }
   0x4   :  { %v571_v3 = vld [vmem:[%s754_s1 + $0x80] sm:$0xff]   ;;  %527 = vmatprep.subr.bf16.mxu1 %v570_v2  ;;  %507 = vmatprep.subr.bf16.mxu0 %v572_v4  ;;  %v575_v7 = vld [vmem:[%s754_s1 + $0x88] sm:$0xff]   ;;  %v579_v11 = vld [vmem:[%s754_s1 + $0x90] sm:$0xff]  }
   0x5   :  { %528 = vmatpush3.bf16.msra.mxu1 %v571_v3  ;;  %v580_v12 = vld [vmem:[%s754_s1 + $0x58] sm:$0xff]   ;;  %v584_v16 = vld [vmem:[%s754_s1 + $0x60] sm:$0xff]   ;;  %v588_v20 = vld [vmem:[%s754_s1 + $0x68] sm:$0xff]  }
   0x6   :  { %529 = vmatprep.subr.bf16.mxu1 %v574_v6  ;;  %v581_v13 = vld [vmem:[%s754_s1 + $0x18] sm:$0xff]   ;;  %v585_v17 = vld [vmem:[%s754_s1 + $0x20] sm:$0xff]   ;;  %v589_v21 = vld [vmem:[%s754_s1 + $0x28] sm:$0xff]  }
   0x7   :  { %508 = vmatpush3.bf16.msra.mxu0 %v573_v5  ;;  %v582_v14 = vld [vmem:[%s754_s1 + $0xd8] sm:$0xff]   ;;  %v586_v18 = vld [vmem:[%s754_s1 + $0xe0] sm:$0xff]   ;;  %v590_v22 = vld [vmem:[%s754_s1 + $0xe8] sm:$0xff]  }
   0x8   :  { %509 = vmatprep.subr.bf16.mxu0 %v576_v8  ;;  %v583_v15 = vld [vmem:[%s754_s1 + $0x98] sm:$0xff]   ;;  %v587_v19 = vld [vmem:[%s754_s1 + $0xa0] sm:$0xff]   ;;  %v591_v23 = vld [vmem:[%s754_s1 + $0xa8] sm:$0xff]  }
   0x9   :  { %530 = vmatpush3.bf16.msra.mxu1 %v575_v7  ;;  %v592_v24 = vld [vmem:[%s754_s1 + $0x70] sm:$0xff]   ;;  %v596_v28 = vld [vmem:[%s754_s1 + $0x78] sm:$0xff]   ;;  %v15_v31 = vld [vmem:[%s755_s0] sm:$0xff] }
   0xa   :  { %531 = vmatprep.subr.bf16.mxu1 %v578_v10  ;;  %v593_v25 = vld [vmem:[%s754_s1 + $0x30] sm:$0xff]   ;;  %v597_v29 = vld [vmem:[%s754_s1 + $0x38] sm:$0xff]   ;;  %v463_v32 = vcombine.low %v15_v31, %v15_v31  ;;  %v464_v33 = vcombine.high %v15_v31, %v15_v31  ;;  %v16_v36 = vld [vmem:[%s755_s0 + $0x8] sm:$0xff] }
   0xb   :  { %510 = vmatpush3.bf16.msra.mxu0 %v577_v9  ;;  %v594_v26 = vld [vmem:[%s754_s1 + $0xf0] sm:$0xff]   ;;  %v598_v30 = vld [vmem:[%s754_s1 + $0xf8] sm:$0xff]   ;;  %v465_v37 = vcombine.low %v16_v36, %v16_v36  ;;  %v466_v38 = vcombine.high %v16_v36, %v16_v36  ;;  %v605_v39 = vld [vmem:[%s754_s1 + $0x100] sm:$0xff]  }
   0xc   :  { %511 = vmatprep.subr.bf16.mxu0 %v580_v12  ;;  %v595_v27 = vld [vmem:[%s754_s1 + $0xb0] sm:$0xff]   ;;  %v602_v34 = vld [vmem:[%s754_s1 + $0xb8] sm:$0xff]   ;;  %366 = vmatprep.mubr.bf16.mxu0 %v464_v33  ;;  %v606_v40 = vld [vmem:[%s754_s1 + $0x108] sm:$0xff]  }
   0xd   :  { %532 = vmatpush3.bf16.msra.mxu1 %v579_v11  ;;  %406 = vmatprep.mubr.bf16.mxu1 %v466_v38  ;;  %v607_v41 = vld [vmem:[%s754_s1 + $0x110] sm:$0xff]   ;;  %v608_v42 = vld [vmem:[%s754_s1 + $0x118] sm:$0xff]   ;;  %v462_v45 = vld [vmem:[%s756_s2] ss:$0 sm:$0xff] }
   0xe   :  { %533 = vmatprep.subr.bf16.mxu1 %v582_v14  ;;  %v601_v43 = vld [vmem:[%s755_s0 + $0x10] ss:$0 sps:$4 sm:$0xff]  }
   0xf   :  { %512 = vmatpush3.bf16.msra.mxu0 %v581_v13 }
  0x10   :  { %513 = vmatprep.subr.bf16.mxu0 %v584_v16 }
  0x11   :  { %534 = vmatpush3.bf16.msra.mxu1 %v583_v15 }
  0x12   :  { %535 = vmatprep.subr.bf16.mxu1 %v586_v18 }
  0x13   :  { %514 = vmatpush3.bf16.msra.mxu0 %v585_v17 }
  0x14   :  { %515 = vmatprep.subr.bf16.mxu0 %v588_v20 }
  0x15   :  { %536 = vmatpush3.bf16.msra.mxu1 %v587_v19 }
  0x16   :  { %537 = vmatprep.subr.bf16.mxu1 %v590_v22 }
  0x17   :  { %516 = vmatpush3.bf16.msra.mxu0 %v589_v21 }
  0x18   :  { %517 = vmatprep.subr.bf16.mxu0 %v592_v24 }
  0x19   :  { %538 = vmatpush3.bf16.msra.mxu1 %v591_v23 }
  0x1a   :  { %539 = vmatprep.subr.bf16.mxu1 %v594_v26 }
  0x1b   :  { %518 = vmatpush3.bf16.msra.mxu0 %v593_v25 }
  0x1c   :  { %519 = vmatprep.subr.bf16.mxu0 %v596_v28 }
  0x1d   :  { %540 = vmatpush3.bf16.msra.mxu1 %v595_v27 }
  0x1e   :  { %541 = vmatprep.subr.bf16.mxu1 %v598_v30 }
  0x1f   :  { %520 = vmatpush3.bf16.msra.mxu0 %v597_v29 }
  0x20   :  { %554 = vmatprep.subr.bf16.mxu0 %v609_v35 }
  0x21   :  { %542 = vmatpush3.bf16.msra.mxu1 %v602_v34 }
  0x22   :  { %367 = vmatmul.mubr.bf16.vlgmr.msra.gmra.mrb[0].mxu0 %v463_v32 }
  0x23   :  { %555 = vmatpush3.bf16.msra.mxu0 %v605_v39  ;;  %562 = vmatprep.mubr.msk.bf16.mxu0 %vm610_vm0, %v609_v35 }
  0x24   :  { %407 = vmatmul.mubr.bf16.vlgmr.msra.gmra.mrb[0].mxu1 %v465_v37  ;;  %556 = vmatprep.subr.bf16.mxu0 %v609_v35 }
  0x27   :  { %557 = vmatpush3.bf16.msra.mxu0 %v606_v40 }
  0x28   :  { %558 = vmatprep.subr.bf16.mxu0 %v609_v35 }
  0x2b   :  { %559 = vmatpush3.bf16.msra.mxu0 %v607_v41 }
  0x2c   :  { %560 = vmatprep.subr.bf16.mxu0 %v609_v35 }
  0x2f   :  { %561 = vmatpush3.bf16.msra.mxu0 %v608_v42 }
  0x32   :  { %563 = vmatmul.mubr.msk.bf16.vlgmr.msra.gmra.mrb[4].mxu0 %vm330_vm1, %v601_v43 }
  0xf5   :  { %v521_v44 = vpop.f32.mrb[0].mxu0 }
  0xf6   :  { %v522_v46 = vpop.f32.mrb[1].mxu0 }
  0xf7   :  { %v523_v47 = vadd.f32 %v522_v46, %v521_v44  ;;  %v524_v48 = vpop.f32.mrb[2].mxu0  ;;  %v543_v49 = vpop.f32.mrb[0].mxu1 }
  0xf8   :  { %v525_v50 = vpop.f32.mrb[3].mxu0  ;;  %v544_v51 = vpop.f32.mrb[1].mxu1 }
  0xf9   :  { %v369_v52 = vadd.f32 %v523_v47, %v462_v45  ;;  %v545_v53 = vadd.f32 %v544_v51, %v543_v49  ;;  %v546_v54 = vpop.f32.mrb[2].mxu1 }
  0xfa   :  { %v547_v55 = vpop.f32.mrb[3].mxu1 }
  0xfb   :  { %v409_v56 = vadd.f32 %v545_v53, %v369_v52 }
 0x105   :  { %v448_v57 = vpop.f32.mrb[4].mxu0 }
 0x106   :  { %v449_v58 = vadd.f32 %v448_v57, %v409_v56  ;;  %v564_v59 = vpop.f32.mrb[5].mxu0 }
 0x107   :  { %v451_v60 = vpop.f32.mrb[6].mxu0 }
 0x108   :  { %v454_v61 = vmax.f32 %v449_v58, 0.0  ;;  %v565_v62 = vpop.f32.mrb[7].mxu0 }
 0x10a   :  { %v455_v63 = vpack.c.bf16 %v454_v61, %v454_v61 }
 0x10c   :  { %457 = vst.msk [vmem:[%s757_s3] sm:$0xf] %vm456_vm2, %v455_v63 }

// kernel: erfnet_forward.103
= control target key start
LH: loop header
LB: loop body
LE: loop exit
PB: predicated region body
PF: predicated region fallthrough
CT: control target
= control target key end

     0   :  { %s920_s12 = smov 0   ;;  %s922_s13 = smov 0   ;;  %s1076_s0 = inlined_call_operand.vmem [shape: bf16[2,4,2,128], index: 0, kind: input, shape index: {}]   ;;  %s1077_s1 = inlined_call_operand.vmem [shape: bf16[3,128,128], index: 1, kind: input, shape index: {}]   ;;  %s1078_s2 = inlined_call_operand.vmem [shape: f32[1,128], index: 2, kind: input, shape index: {}]   ;;  %s1079_s3 = inlined_call_operand.vmem [shape: bf16[2,2,2,128], index: 3, kind: output, shape index: {}]  }
   0x1   :  { %s924_s14 = smov 0  }
   0x2 LB: > { %s25_s15 = sadd.s32 1, %s890_s13  ;;  %p671_p0 = scmp.ge.s32.totalorder %s894_s14, 1  ;;  %s894_s14 = sphi %s924_s14, %s13_s14   ;;  %s890_s13 = sphi %s922_s13, %s1081_s13   ;;  %s886_s12 = sphi %s920_s12, %s1080_s12  }
   0x3   : > { %p27_p1 = scmp.ge.s32.totalorder %s25_s15, 2  ;;  %p155_p2 = scmp.lt.s32.totalorder %s894_s14, 3 }
   0x5   : > { %s1083_s15 = smov (%p27_p1, %s25_s15), 0  ;;  %p156_p3 = pnand %p671_p0, %p155_p2 }
   0x6   : > { %v848_v0 = vld [vmem:[%s1077_s1 + $0x40] sm:$0xff] (!%p156_p3)   ;;  %v896_v1 = vmov (!%p156_p3), 0.0   ;;  %v850_v3 = vld [vmem:[%s1077_s1 + $0x48] sm:$0xff] (!%p156_p3)   ;;  %vm897_vm0 = vmmov (!%p156_p3), 0   ;;  %p183_p4 = scmp.lt.s32.totalorder (!%p156_p3), %s886_s12, 1  ;;  %v852_v5 = vld [vmem:[%s1077_s1 + $0x50] sm:$0xff] (!%p156_p3)   ;;  %v241_v9 = vlaneseq (!%p156_p3) }
   0x7   : > { %159 = sbr.rel (%p156_p3) target bundleno = 296 (0x128), region = 32  ;;  %760 = vmatprep.subr.bf16.mxu0 (!%p156_p3), %v896_v1  ;;  %780 = vmatprep.subr.bf16.mxu1 (!%p156_p3), %v896_v1  ;;  %v849_v2 = vld [vmem:[%s1077_s1] sm:$0xff] (!%p156_p3)   ;;  %v851_v4 = vld [vmem:[%s1077_s1 + $0x8] sm:$0xff] (!%p156_p3)   ;;  %v853_v6 = vld [vmem:[%s1077_s1 + $0x10] sm:$0xff] (!%p156_p3)   ;;  %v898_v17 = vmov (!%p156_p3), 1966171168  }
   0x8   : > { %761 = vmatpush3.bf16.msra.mxu0 (!%p156_p3), %v848_v0  ;;  %776 = vmatprep.mubr.msk.bf16.mxu0 (!%p156_p3), %vm897_vm0, %v896_v1  ;;  %v854_v7 = vld [vmem:[%s1077_s1 + $0x58] sm:$0xff] (!%p156_p3)   ;;  %v856_v10 = vld [vmem:[%s1077_s1 + $0x60] sm:$0xff] (!%p156_p3)   ;;  %v858_v12 = vld [vmem:[%s1077_s1 + $0x68] sm:$0xff] (!%p156_p3)   ;;  %v997_v13 = vshrl.u32 (!%p156_p3), %v241_v9, 7  ;;  %v239_v18 = vunpack.c.l.s4 (!%p156_p3), %v898_v17  ;;  %v899_v53 = vmov (!%p156_p3), 1983009808  }
   0x9   : > { %781 = vmatpush3.bf16.msra.mxu1 (!%p156_p3), %v849_v2  ;;  %762 = vmatprep.subr.bf16.mxu0 (!%p156_p3), %v896_v1  ;;  %v855_v8 = vld [vmem:[%s1077_s1 + $0x18] sm:$0xff] (!%p156_p3)   ;;  %v857_v11 = vld [vmem:[%s1077_s1 + $0x20] sm:$0xff] (!%p156_p3)   ;;  %v859_v14 = vld [vmem:[%s1077_s1 + $0x28] sm:$0xff] (!%p156_p3)   ;;  %v580_v54 = vunpack.c.l.s4 (!%p156_p3), %v899_v53 }
   0xa   : > { %782 = vmatprep.subr.bf16.mxu1 (!%p156_p3), %v896_v1  ;;  %796 = vmatprep.mubr.msk.bf16.mxu1 (!%p156_p3), %vm897_vm0, %v896_v1  ;;  %v240_v20 = vunpack.c.0.s8 (!%p156_p3), %v239_v18  ;;  %v860_v22 = vld [vmem:[%s1077_s1 + $0x70] sm:$0xff] (!%p156_p3)   ;;  %v862_v27 = vld [vmem:[%s1077_s1 + $0x78] sm:$0xff] (!%p156_p3)   ;;  %v864_v32 = vld [vmem:[%s1077_s1 + $0x80] sm:$0xff] (!%p156_p3)  }
   0xb   : > { %v861_v25 = vld [vmem:[%s1077_s1 + $0x30] sm:$0xff] (!%p156_p3)   ;;  %v863_v29 = vld [vmem:[%s1077_s1 + $0x38] sm:$0xff] (!%p156_p3)   ;;  %v865_v33 = vld [vmem:[%s1077_s1 + $0x88] sm:$0xff] (!%p156_p3)   ;;  %v581_v55 = vunpack.c.0.s8 (!%p156_p3), %v580_v54 }
   0xc   : > { %763 = vmatpush3.bf16.msra.mxu0 (!%p156_p3), %v850_v3  ;;  %v243_v23 = vsub.s32 (!%p156_p3), %v240_v20, %v997_v13  ;;  %v866_v34 = vld [vmem:[%s1077_s1 + $0x90] sm:$0xff] (!%p156_p3)   ;;  %v867_v35 = vld [vmem:[%s1077_s1 + $0x98] sm:$0xff] (!%p156_p3)   ;;  %v868_v36 = vld [vmem:[%s1077_s1 + $0xa0] sm:$0xff] (!%p156_p3)  }
   0xd   : > { %783 = vmatpush3.bf16.msra.mxu1 (!%p156_p3), %v851_v4  ;;  %764 = vmatprep.subr.bf16.mxu0 (!%p156_p3), %v896_v1  ;;  %v869_v38 = vld [vmem:[%s1077_s1 + $0xa8] sm:$0xff] (!%p156_p3)   ;;  %v870_v40 = vld [vmem:[%s1077_s1 + $0xb0] sm:$0xff] (!%p156_p3)   ;;  %v871_v42 = vld [vmem:[%s1077_s1 + $0xb8] sm:$0xff] (!%p156_p3)   ;;  %v584_v62 = vsub.s32 (!%p156_p3), %v581_v55, %v997_v13 }
   0xe   : > { %s1085_s12 = smov (!%p183_p4, %s886_s12), 1  ;;  %784 = vmatprep.subr.bf16.mxu1 %v896_v1  ;;  %v730_v57 = vld [vmem:[%s1078_s2] ss:$0 sm:$0xff] }
   0xf   : > { %s672_s5 = sshll.u32 %s1085_s12, 2  ;;  %s673_s24 = sshll.u32 %s1085_s12, 1 }
  0x10   : > { %765 = vmatpush3.bf16.msra.mxu0 %v852_v5  ;;  %s987_s10 = scalar_lea.vmem %s1076_s0, %s672_s5  ;;  %s196_s27 = scalar_lea.vmem %s1079_s3, %s673_s24 }
  0x11   : > { %785 = vmatpush3.bf16.msra.mxu1 %v853_v6  ;;  %766 = vmatprep.subr.bf16.mxu0 %v896_v1  ;;  %v199_v15 = vld [vmem:[%s987_s10 + $0x1] sm:$0x1]  ;;  %v200_v16 = vld [vmem:[%s987_s10 + $0x2] sm:$0x1]  ;;  %v198_v19 = vld [vmem:[%s987_s10] sm:$0x1] }
  0x12   : > { %786 = vmatprep.subr.bf16.mxu1 %v896_v1  ;;  %v237_v21 = vcombine.low %v199_v15, %v200_v16  ;;  %v342_v24 = vcombine.low %v198_v19, %v199_v15  ;;  %v201_v37 = vld [vmem:[%s987_s10 + $0x3] sm:$0x1] }
  0x13   : > { %v464_v39 = vcombine.low %v200_v16, %v201_v37 }
  0x14   : > { %767 = vmatpush3.bf16.msra.mxu0 %v854_v7  ;;  %v244_v26 = vrot.slane %v237_v21, %v243_v23  ;;  %v349_v28 = vrot.slane %v342_v24, %v243_v23 }
  0x15   : > { %787 = vmatpush3.bf16.msra.mxu1 %v855_v8  ;;  %768 = vmatprep.subr.bf16.mxu0 %v896_v1  ;;  %v471_v41 = vrot.slane %v464_v39, %v243_v23 }
  0x16   : > { %788 = vmatprep.subr.bf16.mxu1 %v896_v1  ;;  %v251_v30 = vrot.slane %v244_v26, %v243_v23  ;;  %v356_v31 = vrot.slane %v349_v28, %v243_v23 }
  0x17   : > { %v478_v43 = vrot.slane %v471_v41, %v243_v23 }
  0x18   : > { %769 = vmatpush3.bf16.msra.mxu0 %v856_v10 }
  0x19   : > { %789 = vmatpush3.bf16.msra.mxu1 %v857_v11  ;;  %770 = vmatprep.subr.bf16.mxu0 %v896_v1 }
  0x1a   : > { %790 = vmatprep.subr.bf16.mxu1 %v896_v1 }
  0x1c   : > { %771 = vmatpush3.bf16.msra.mxu0 %v858_v12 }
  0x1d   : > { %791 = vmatpush3.bf16.msra.mxu1 %v859_v14  ;;  %772 = vmatprep.subr.bf16.mxu0 %v896_v1 }
  0x1e   : > { %792 = vmatprep.subr.bf16.mxu1 %v896_v1 }
  0x20   : > { %773 = vmatpush3.bf16.msra.mxu0 %v860_v22 }
  0x21   : > { %793 = vmatpush3.bf16.msra.mxu1 %v861_v25  ;;  %774 = vmatprep.subr.bf16.mxu0 %v896_v1 }
  0x22   : > { %794 = vmatprep.subr.bf16.mxu1 %v896_v1 }
  0x24   : > { %775 = vmatpush3.bf16.msra.mxu0 %v862_v27 }
  0x25   : > { %795 = vmatpush3.bf16.msra.mxu1 %v863_v29  ;;  %800 = vmatprep.subr.bf16.mxu0 %v896_v1 }
  0x27   : > { %777 = vmatmul.mubr.bf16.vlgmr.msra.gmra.mrb[0].mxu0 %v251_v30 }
  0x28   : > { %797 = vmatmul.mubr.bf16.vlgmr.msra.gmra.mrb[0].mxu1 %v356_v31  ;;  %801 = vmatpush3.bf16.msra.mxu0 %v864_v32 }
  0x29   : > { %802 = vmatprep.subr.bf16.mxu0 %v896_v1  ;;  %816 = vmatprep.mubr.msk.bf16.mxu0 %vm897_vm0, %v896_v1 }
  0x2c   : > { %803 = vmatpush3.bf16.msra.mxu0 %v865_v33 }
  0x2d   : > { %804 = vmatprep.subr.bf16.mxu0 %v896_v1 }
  0x30   : > { %805 = vmatpush3.bf16.msra.mxu0 %v866_v34 }
  0x31   : > { %806 = vmatprep.subr.bf16.mxu0 %v896_v1 }
  0x34   : > { %807 = vmatpush3.bf16.msra.mxu0 %v867_v35 }
  0x35   : > { %808 = vmatprep.subr.bf16.mxu0 %v896_v1 }
  0x38   : > { %809 = vmatpush3.bf16.msra.mxu0 %v868_v36 }
  0x39   : > { %810 = vmatprep.subr.bf16.mxu0 %v896_v1 }
  0x3c   : > { %811 = vmatpush3.bf16.msra.mxu0 %v869_v38 }
  0x3d   : > { %812 = vmatprep.subr.bf16.mxu0 %v896_v1 }
  0x40   : > { %813 = vmatpush3.bf16.msra.mxu0 %v870_v40 }
  0x41   : > { %814 = vmatprep.subr.bf16.mxu0 %v896_v1 }
  0x44   : > { %815 = vmatpush3.bf16.msra.mxu0 %v871_v42 }
  0x47   : > { %817 = vmatmul.mubr.bf16.vlgmr.msra.gmra.mrb[4].mxu0 %v478_v43 }
  0xfa   : > { %v335_v44 = vpop.f32.mrb[0].mxu0 }
  0xfb   : > { %v778_v45 = vpop.f32.mrb[1].mxu0  ;;  %v440_v46 = vpop.f32.mrb[0].mxu1 }
  0xfc   : > { %v441_v47 = vadd.f32 %v440_v46, %v335_v44  ;;  %v338_v48 = vpop.f32.mrb[2].mxu0  ;;  %v798_v49 = vpop.f32.mrb[1].mxu1 }
  0xfd   : > { %v779_v50 = vpop.f32.mrb[3].mxu0  ;;  %v443_v51 = vpop.f32.mrb[2].mxu1 }
  0xfe   : > { %v799_v52 = vpop.f32.mrb[3].mxu1 }
 0x11a   : > { %v562_v56 = vpop.f32.mrb[4].mxu0 }
 0x11b   : > { %v568_v58 = vadd.f32 %v562_v56, %v441_v47  ;;  %v818_v59 = vpop.f32.mrb[5].mxu0 }
 0x11c   : > { %v565_v60 = vpop.f32.mrb[6].mxu0 }
 0x11d   : > { %v576_v61 = vadd.f32 %v730_v57, %v568_v58  ;;  %v819_v63 = vpop.f32.mrb[7].mxu0 }
 0x11f   : > { %v577_v0 = vmax.f32 %v576_v61, 0.0 }
 0x121   : > { %v585_v1 = vrot.slane %v577_v0, %v584_v62 }
 0x123   : > { %v586_v2 = vcombine.high %v585_v1, %v585_v1  ;;  %v589_v3 = vpack.c.bf16 %v585_v1, %v585_v1 }
 0x125   : > { %v590_v4 = vpack.c.bf16 %v586_v2, %v586_v2  ;;  %591 = vst [vmem:[%s196_s27] sm:$0x1] %v589_v3 }
 0x127   : > { %592 = vst [vmem:[%s196_s27 + $0x1] sm:$0x1] %v590_v4 }
 0x128 PF: > { %s13_s14 = sadd.s32 1, %s894_s14   ;;  %s1080_s12 = smov %s890_s13 }
 0x129   : > { %p10_p5 = scmp.ge.s32.totalorder %s13_s14, 4   ;;  %s1081_s13 = smov %s1083_s15 }
 0x12b   :  { %12 = sbr.rel (!%p10_p5) target bundleno = 2 (0x2), region = 64 }

// kernel: erfnet_forward.105
= control target key start
LH: loop header
LB: loop body
LE: loop exit
PB: predicated region body
PF: predicated region fallthrough
CT: control target
= control target key end

     0   :  { %s924_s12 = smov 0   ;;  %s926_s13 = smov 0   ;;  %s1078_s0 = inlined_call_operand.vmem [shape: bf16[2,6,2,128], index: 0, kind: input, shape index: {}]   ;;  %s1079_s1 = inlined_call_operand.vmem [shape: bf16[3,128,128], index: 1, kind: input, shape index: {}]   ;;  %s1080_s2 = inlined_call_operand.vmem [shape: f32[1,128], index: 2, kind: input, shape index: {}]   ;;  %s1081_s3 = inlined_call_operand.vmem [shape: bf16[2,2,2,128], index: 3, kind: output, shape index: {}]  }
   0x1   :  { %s928_s14 = smov 0  }
   0x2 LB: > { %s25_s15 = sadd.s32 1, %s894_s13  ;;  %p675_p0 = scmp.ge.s32.totalorder %s898_s14, 1  ;;  %s898_s14 = sphi %s928_s14, %s13_s14   ;;  %s894_s13 = sphi %s926_s13, %s1083_s13   ;;  %s890_s12 = sphi %s924_s12, %s1082_s12  }
   0x3   : > { %p27_p1 = scmp.ge.s32.totalorder %s25_s15, 2  ;;  %p155_p2 = scmp.lt.s32.totalorder %s898_s14, 3 }
   0x5   : > { %s1085_s15 = smov (%p27_p1, %s25_s15), 0  ;;  %p156_p3 = pnand %p675_p0, %p155_p2 }
   0x6   : > { %v852_v0 = vld [vmem:[%s1079_s1 + $0x40] sm:$0xff] (!%p156_p3)   ;;  %v900_v1 = vmov (!%p156_p3), 0.0   ;;  %v854_v3 = vld [vmem:[%s1079_s1 + $0x48] sm:$0xff] (!%p156_p3)   ;;  %vm901_vm0 = vmmov (!%p156_p3), 0   ;;  %p183_p4 = scmp.lt.s32.totalorder (!%p156_p3), %s890_s12, 1  ;;  %v856_v5 = vld [vmem:[%s1079_s1 + $0x50] sm:$0xff] (!%p156_p3)   ;;  %v243_v9 = vlaneseq (!%p156_p3) }
   0x7   : > { %159 = sbr.rel (%p156_p3) target bundleno = 296 (0x128), region = 32  ;;  %763 = vmatprep.subr.bf16.mxu0 (!%p156_p3), %v900_v1  ;;  %783 = vmatprep.subr.bf16.mxu1 (!%p156_p3), %v900_v1  ;;  %v853_v2 = vld [vmem:[%s1079_s1] sm:$0xff] (!%p156_p3)   ;;  %v855_v4 = vld [vmem:[%s1079_s1 + $0x8] sm:$0xff] (!%p156_p3)   ;;  %v857_v6 = vld [vmem:[%s1079_s1 + $0x10] sm:$0xff] (!%p156_p3)   ;;  %v902_v17 = vmov (!%p156_p3), 1966171168  }
   0x8   : > { %764 = vmatpush3.bf16.msra.mxu0 (!%p156_p3), %v852_v0  ;;  %779 = vmatprep.mubr.msk.bf16.mxu0 (!%p156_p3), %vm901_vm0, %v900_v1  ;;  %v858_v7 = vld [vmem:[%s1079_s1 + $0x58] sm:$0xff] (!%p156_p3)   ;;  %v860_v10 = vld [vmem:[%s1079_s1 + $0x60] sm:$0xff] (!%p156_p3)   ;;  %v862_v12 = vld [vmem:[%s1079_s1 + $0x68] sm:$0xff] (!%p156_p3)   ;;  %v997_v13 = vshrl.u32 (!%p156_p3), %v243_v9, 7  ;;  %v241_v18 = vunpack.c.l.s4 (!%p156_p3), %v902_v17  ;;  %v903_v55 = vmov (!%p156_p3), 1983009808  }
   0x9   : > { %784 = vmatpush3.bf16.msra.mxu1 (!%p156_p3), %v853_v2  ;;  %765 = vmatprep.subr.bf16.mxu0 (!%p156_p3), %v900_v1  ;;  %v859_v8 = vld [vmem:[%s1079_s1 + $0x18] sm:$0xff] (!%p156_p3)   ;;  %v861_v11 = vld [vmem:[%s1079_s1 + $0x20] sm:$0xff] (!%p156_p3)   ;;  %v863_v14 = vld [vmem:[%s1079_s1 + $0x28] sm:$0xff] (!%p156_p3)   ;;  %v584_v56 = vunpack.c.l.s4 (!%p156_p3), %v903_v55 }
   0xa   : > { %785 = vmatprep.subr.bf16.mxu1 (!%p156_p3), %v900_v1  ;;  %799 = vmatprep.mubr.msk.bf16.mxu1 (!%p156_p3), %vm901_vm0, %v900_v1  ;;  %v242_v20 = vunpack.c.0.s8 (!%p156_p3), %v241_v18  ;;  %v864_v24 = vld [vmem:[%s1079_s1 + $0x70] sm:$0xff] (!%p156_p3)   ;;  %v866_v28 = vld [vmem:[%s1079_s1 + $0x78] sm:$0xff] (!%p156_p3)   ;;  %v868_v33 = vld [vmem:[%s1079_s1 + $0x80] sm:$0xff] (!%p156_p3)  }
   0xb   : > { %v865_v26 = vld [vmem:[%s1079_s1 + $0x30] sm:$0xff] (!%p156_p3)   ;;  %v867_v30 = vld [vmem:[%s1079_s1 + $0x38] sm:$0xff] (!%p156_p3)   ;;  %v869_v34 = vld [vmem:[%s1079_s1 + $0x88] sm:$0xff] (!%p156_p3)   ;;  %v585_v57 = vunpack.c.0.s8 (!%p156_p3), %v584_v56 }
   0xc   : > { %766 = vmatpush3.bf16.msra.mxu0 (!%p156_p3), %v854_v3  ;;  %v245_v23 = vsub.s32 (!%p156_p3), %v242_v20, %v997_v13  ;;  %v870_v35 = vld [vmem:[%s1079_s1 + $0x90] sm:$0xff] (!%p156_p3)   ;;  %v871_v36 = vld [vmem:[%s1079_s1 + $0x98] sm:$0xff] (!%p156_p3)   ;;  %v872_v37 = vld [vmem:[%s1079_s1 + $0xa0] sm:$0xff] (!%p156_p3)  }
   0xd   : > { %786 = vmatpush3.bf16.msra.mxu1 (!%p156_p3), %v855_v4  ;;  %767 = vmatprep.subr.bf16.mxu0 (!%p156_p3), %v900_v1  ;;  %v873_v38 = vld [vmem:[%s1079_s1 + $0xa8] sm:$0xff] (!%p156_p3)   ;;  %v874_v42 = vld [vmem:[%s1079_s1 + $0xb0] sm:$0xff] (!%p156_p3)   ;;  %v875_v44 = vld [vmem:[%s1079_s1 + $0xb8] sm:$0xff] (!%p156_p3)   ;;  %v588_v0 = vsub.s32 (!%p156_p3), %v585_v57, %v997_v13 }
   0xe   : > { %s1087_s12 = smov (!%p183_p4, %s890_s12), 1  ;;  %787 = vmatprep.subr.bf16.mxu1 %v900_v1  ;;  %v733_v59 = vld [vmem:[%s1080_s2] ss:$0 sm:$0xff] }
   0xf   : > { %s823_s30 = smul.u32 6, %s1087_s12  ;;  %s676_s24 = sshll.u32 %s1087_s12, 1 }
  0x10   : > { %768 = vmatpush3.bf16.msra.mxu0 %v856_v5  ;;  %s196_s27 = scalar_lea.vmem %s1081_s3, %s676_s24 }
  0x11   : > { %788 = vmatpush3.bf16.msra.mxu1 %v857_v6  ;;  %769 = vmatprep.subr.bf16.mxu0 %v900_v1  ;;  %s987_s10 = scalar_lea.vmem %s1078_s0, %s823_s30 }
  0x12   : > { %789 = vmatprep.subr.bf16.mxu1 %v900_v1  ;;  %v200_v15 = vld [vmem:[%s987_s10 + $0x2] sm:$0x1]  ;;  %v201_v16 = vld [vmem:[%s987_s10 + $0x3] sm:$0x1]  ;;  %v198_v19 = vld [vmem:[%s987_s10] sm:$0x1] }
  0x13   : > { %v199_v21 = vld [vmem:[%s987_s10 + $0x1] sm:$0x1]  ;;  %v239_v22 = vcombine.low %v200_v15, %v201_v16  ;;  %v202_v39 = vld [vmem:[%s987_s10 + $0x4] sm:$0x1]  ;;  %v203_v40 = vld [vmem:[%s987_s10 + $0x5] sm:$0x1] }
  0x14   : > { %770 = vmatpush3.bf16.msra.mxu0 %v858_v7  ;;  %v345_v25 = vcombine.low %v198_v19, %v199_v21  ;;  %v468_v41 = vcombine.low %v202_v39, %v203_v40 }
  0x15   : > { %790 = vmatpush3.bf16.msra.mxu1 %v859_v8  ;;  %771 = vmatprep.subr.bf16.mxu0 %v900_v1  ;;  %v246_v27 = vrot.slane %v239_v22, %v245_v23 }
  0x16   : > { %791 = vmatprep.subr.bf16.mxu1 %v900_v1  ;;  %v352_v29 = vrot.slane %v345_v25, %v245_v23  ;;  %v475_v43 = vrot.slane %v468_v41, %v245_v23 }
  0x17   : > { %v253_v31 = vrot.slane %v246_v27, %v245_v23 }
  0x18   : > { %772 = vmatpush3.bf16.msra.mxu0 %v860_v10  ;;  %v359_v32 = vrot.slane %v352_v29, %v245_v23  ;;  %v482_v45 = vrot.slane %v475_v43, %v245_v23 }
  0x19   : > { %792 = vmatpush3.bf16.msra.mxu1 %v861_v11  ;;  %773 = vmatprep.subr.bf16.mxu0 %v900_v1 }
  0x1a   : > { %793 = vmatprep.subr.bf16.mxu1 %v900_v1 }
  0x1c   : > { %774 = vmatpush3.bf16.msra.mxu0 %v862_v12 }
  0x1d   : > { %794 = vmatpush3.bf16.msra.mxu1 %v863_v14  ;;  %775 = vmatprep.subr.bf16.mxu0 %v900_v1 }
  0x1e   : > { %795 = vmatprep.subr.bf16.mxu1 %v900_v1 }
  0x20   : > { %776 = vmatpush3.bf16.msra.mxu0 %v864_v24 }
  0x21   : > { %796 = vmatpush3.bf16.msra.mxu1 %v865_v26  ;;  %777 = vmatprep.subr.bf16.mxu0 %v900_v1 }
  0x22   : > { %797 = vmatprep.subr.bf16.mxu1 %v900_v1 }
  0x24   : > { %778 = vmatpush3.bf16.msra.mxu0 %v866_v28 }
  0x25   : > { %798 = vmatpush3.bf16.msra.mxu1 %v867_v30  ;;  %803 = vmatprep.subr.bf16.mxu0 %v900_v1 }
  0x27   : > { %780 = vmatmul.mubr.bf16.vlgmr.msra.gmra.mrb[0].mxu0 %v253_v31 }
  0x28   : > { %800 = vmatmul.mubr.bf16.vlgmr.msra.gmra.mrb[0].mxu1 %v359_v32  ;;  %804 = vmatpush3.bf16.msra.mxu0 %v868_v33 }
  0x29   : > { %805 = vmatprep.subr.bf16.mxu0 %v900_v1  ;;  %819 = vmatprep.mubr.msk.bf16.mxu0 %vm901_vm0, %v900_v1 }
  0x2c   : > { %806 = vmatpush3.bf16.msra.mxu0 %v869_v34 }
  0x2d   : > { %807 = vmatprep.subr.bf16.mxu0 %v900_v1 }
  0x30   : > { %808 = vmatpush3.bf16.msra.mxu0 %v870_v35 }
  0x31   : > { %809 = vmatprep.subr.bf16.mxu0 %v900_v1 }
  0x34   : > { %810 = vmatpush3.bf16.msra.mxu0 %v871_v36 }
  0x35   : > { %811 = vmatprep.subr.bf16.mxu0 %v900_v1 }
  0x38   : > { %812 = vmatpush3.bf16.msra.mxu0 %v872_v37 }
  0x39   : > { %813 = vmatprep.subr.bf16.mxu0 %v900_v1 }
  0x3c   : > { %814 = vmatpush3.bf16.msra.mxu0 %v873_v38 }
  0x3d   : > { %815 = vmatprep.subr.bf16.mxu0 %v900_v1 }
  0x40   : > { %816 = vmatpush3.bf16.msra.mxu0 %v874_v42 }
  0x41   : > { %817 = vmatprep.subr.bf16.mxu0 %v900_v1 }
  0x44   : > { %818 = vmatpush3.bf16.msra.mxu0 %v875_v44 }
  0x47   : > { %820 = vmatmul.mubr.bf16.vlgmr.msra.gmra.mrb[4].mxu0 %v482_v45 }
  0xfa   : > { %v337_v46 = vpop.f32.mrb[0].mxu0 }
  0xfb   : > { %v781_v47 = vpop.f32.mrb[1].mxu0  ;;  %v443_v48 = vpop.f32.mrb[0].mxu1 }
  0xfc   : > { %v444_v49 = vadd.f32 %v443_v48, %v337_v46  ;;  %v340_v50 = vpop.f32.mrb[2].mxu0  ;;  %v801_v51 = vpop.f32.mrb[1].mxu1 }
  0xfd   : > { %v782_v52 = vpop.f32.mrb[3].mxu0  ;;  %v446_v53 = vpop.f32.mrb[2].mxu1 }
  0xfe   : > { %v802_v54 = vpop.f32.mrb[3].mxu1 }
 0x11a   : > { %v566_v58 = vpop.f32.mrb[4].mxu0 }
 0x11b   : > { %v572_v60 = vadd.f32 %v566_v58, %v444_v49  ;;  %v821_v61 = vpop.f32.mrb[5].mxu0 }
 0x11c   : > { %v569_v62 = vpop.f32.mrb[6].mxu0 }
 0x11d   : > { %v580_v63 = vadd.f32 %v733_v59, %v572_v60  ;;  %v822_v1 = vpop.f32.mrb[7].mxu0 }
 0x11f   : > { %v581_v2 = vmax.f32 %v580_v63, 0.0 }
 0x121   : > { %v589_v3 = vrot.slane %v581_v2, %v588_v0 }
 0x123   : > { %v590_v4 = vcombine.high %v589_v3, %v589_v3  ;;  %v593_v5 = vpack.c.bf16 %v589_v3, %v589_v3 }
 0x125   : > { %v594_v6 = vpack.c.bf16 %v590_v4, %v590_v4  ;;  %595 = vst [vmem:[%s196_s27] sm:$0x1] %v593_v5 }
 0x127   : > { %596 = vst [vmem:[%s196_s27 + $0x1] sm:$0x1] %v594_v6 }
 0x128 PF: > { %s13_s14 = sadd.s32 1, %s898_s14   ;;  %s1082_s12 = smov %s894_s13 }
 0x129   : > { %p10_p5 = scmp.ge.s32.totalorder %s13_s14, 4   ;;  %s1083_s13 = smov %s1085_s15 }
 0x12b   :  { %12 = sbr.rel (!%p10_p5) target bundleno = 2 (0x2), region = 64 }

// kernel: erfnet_forward.106
= control target key start
LH: loop header
LB: loop body
LE: loop exit
PB: predicated region body
PF: predicated region fallthrough
CT: control target
= control target key end

     0   :  { %s1081_s15 = smov 0   ;;  %s1083_s16 = smov 0   ;;  %s1234_s0 = inlined_call_operand.vmem [shape: bf16[2,2,6,128], index: 0, kind: input, shape index: {}]   ;;  %s1235_s1 = inlined_call_operand.vmem [shape: bf16[3,128,128], index: 1, kind: input, shape index: {}]   ;;  %s1236_s2 = inlined_call_operand.vmem [shape: f32[1,128], index: 2, kind: input, shape index: {}]   ;;  %s1237_s3 = inlined_call_operand.vmem [shape: bf16[2,2,2,128], index: 3, kind: input, shape index: {}]   ;;  %s1238_s4 = inlined_call_operand.vmem [shape: bf16[2,2,2,128], index: 4, kind: output, shape index: {}]  }
   0x1   :  { %s1085_s17 = smov 0  }
   0x2 LB: > { %s26_s18 = sadd.s32 1, %s1046_s16  ;;  %p822_p0 = scmp.ge.s32.totalorder %s1050_s17, 1  ;;  %s1050_s17 = sphi %s1085_s17, %s14_s17   ;;  %s1046_s16 = sphi %s1083_s16, %s1240_s16   ;;  %s1042_s15 = sphi %s1081_s15, %s1239_s15  }
   0x3   : > { %p28_p1 = scmp.ge.s32.totalorder %s26_s18, 2  ;;  %p199_p2 = scmp.lt.s32.totalorder %s1050_s17, 3 }
   0x5   : > { %s1242_s18 = smov (%p28_p1, %s26_s18), 0  ;;  %p200_p3 = pnand %p822_p0, %p199_p2 }
   0x6   : > { %v1003_v0 = vld [vmem:[%s1235_s1 + $0x40] sm:$0xff] (!%p200_p3)   ;;  %v1052_v1 = vmov (!%p200_p3), 0.0   ;;  %v1005_v3 = vld [vmem:[%s1235_s1 + $0x48] sm:$0xff] (!%p200_p3)   ;;  %vm1053_vm0 = vmmov (!%p200_p3), 0   ;;  %p241_p4 = scmp.lt.s32.totalorder (!%p200_p3), %s1042_s15, 1  ;;  %v1007_v5 = vld [vmem:[%s1235_s1 + $0x50] sm:$0xff] (!%p200_p3)   ;;  %v292_v9 = vlaneseq (!%p200_p3) }
   0x7   : > { %203 = sbr.rel (%p200_p3) target bundleno = 298 (0x12a), region = 36  ;;  %915 = vmatprep.subr.bf16.mxu0 (!%p200_p3), %v1052_v1  ;;  %935 = vmatprep.subr.bf16.mxu1 (!%p200_p3), %v1052_v1  ;;  %v1004_v2 = vld [vmem:[%s1235_s1] sm:$0xff] (!%p200_p3)   ;;  %v1006_v4 = vld [vmem:[%s1235_s1 + $0x8] sm:$0xff] (!%p200_p3)   ;;  %v1008_v6 = vld [vmem:[%s1235_s1 + $0x10] sm:$0xff] (!%p200_p3)   ;;  %v1054_v13 = vmov (!%p200_p3), 1966171168  }
   0x8   : > { %916 = vmatpush3.bf16.msra.mxu0 (!%p200_p3), %v1003_v0  ;;  %931 = vmatprep.mubr.msk.bf16.mxu0 (!%p200_p3), %vm1053_vm0, %v1052_v1  ;;  %v1009_v7 = vld [vmem:[%s1235_s1 + $0x58] sm:$0xff] (!%p200_p3)   ;;  %v1011_v10 = vld [vmem:[%s1235_s1 + $0x60] sm:$0xff] (!%p200_p3)   ;;  %v1013_v12 = vld [vmem:[%s1235_s1 + $0x68] sm:$0xff] (!%p200_p3)   ;;  %v290_v14 = vunpack.c.l.s4 (!%p200_p3), %v1054_v13  ;;  %v1156_v15 = vshrl.u32 (!%p200_p3), %v292_v9, 7  ;;  %v1055_v59 = vmov (!%p200_p3), 1983009808  }
   0x9   : > { %936 = vmatpush3.bf16.msra.mxu1 (!%p200_p3), %v1004_v2  ;;  %917 = vmatprep.subr.bf16.mxu0 (!%p200_p3), %v1052_v1  ;;  %v1010_v8 = vld [vmem:[%s1235_s1 + $0x18] sm:$0xff] (!%p200_p3)   ;;  %v1012_v11 = vld [vmem:[%s1235_s1 + $0x20] sm:$0xff] (!%p200_p3)   ;;  %v1014_v16 = vld [vmem:[%s1235_s1 + $0x28] sm:$0xff] (!%p200_p3)   ;;  %v698_v60 = vunpack.c.l.s4 (!%p200_p3), %v1055_v59 }
   0xa   : > { %937 = vmatprep.subr.bf16.mxu1 (!%p200_p3), %v1052_v1  ;;  %951 = vmatprep.mubr.msk.bf16.mxu1 (!%p200_p3), %vm1053_vm0, %v1052_v1  ;;  %v291_v18 = vunpack.c.0.s8 (!%p200_p3), %v290_v14  ;;  %v1015_v21 = vld [vmem:[%s1235_s1 + $0x70] sm:$0xff] (!%p200_p3)   ;;  %v1017_v28 = vld [vmem:[%s1235_s1 + $0x78] sm:$0xff] (!%p200_p3)   ;;  %v1020_v36 = vld [vmem:[%s1235_s1 + $0x80] sm:$0xff] (!%p200_p3)  }
   0xb   : > { %v1016_v23 = vld [vmem:[%s1235_s1 + $0x30] sm:$0xff] (!%p200_p3)   ;;  %v1018_v30 = vld [vmem:[%s1235_s1 + $0x38] sm:$0xff] (!%p200_p3)   ;;  %v1021_v38 = vld [vmem:[%s1235_s1 + $0x88] sm:$0xff] (!%p200_p3)  }
   0xc   : > { %918 = vmatpush3.bf16.msra.mxu0 (!%p200_p3), %v1005_v3  ;;  %v294_v20 = vsub.s32 (!%p200_p3), %v291_v18, %v1156_v15  ;;  %v1022_v39 = vld [vmem:[%s1235_s1 + $0x90] sm:$0xff] (!%p200_p3)   ;;  %v1023_v40 = vld [vmem:[%s1235_s1 + $0x98] sm:$0xff] (!%p200_p3)   ;;  %v1024_v41 = vld [vmem:[%s1235_s1 + $0xa0] sm:$0xff] (!%p200_p3)  }
   0xd   : > { %938 = vmatpush3.bf16.msra.mxu1 (!%p200_p3), %v1006_v4  ;;  %919 = vmatprep.subr.bf16.mxu0 (!%p200_p3), %v1052_v1  ;;  %v1025_v44 = vld [vmem:[%s1235_s1 + $0xa8] sm:$0xff] (!%p200_p3)   ;;  %v1026_v46 = vld [vmem:[%s1235_s1 + $0xb0] sm:$0xff] (!%p200_p3)   ;;  %v1027_v48 = vld [vmem:[%s1235_s1 + $0xb8] sm:$0xff] (!%p200_p3)  }
   0xe   : > { %939 = vmatprep.subr.bf16.mxu1 %v1052_v1  ;;  %s1244_s15 = smov (!%p241_p4, %s1042_s15), 1 }
   0xf   : > { %s887_s9 = sshll.u32 %s1244_s15, 3  ;;  %s825_s27 = sshll.u32 %s1244_s15, 1 }
  0x10   : > { %920 = vmatpush3.bf16.msra.mxu0 %v1007_v5  ;;  %s248_s20 = scalar_lea.vmem %s1234_s0, %s887_s9  ;;  %s257_s30 = scalar_lea.vmem %s1237_s3, %s825_s27  ;;  %v884_v5 = vld [vmem:[%s1236_s2] ss:$0 sm:$0xff] }
  0x11   : > { %940 = vmatpush3.bf16.msra.mxu1 %v1008_v6  ;;  %921 = vmatprep.subr.bf16.mxu0 %v1052_v1  ;;  %v269_v17 = vld [vmem:[%s248_s20] sm:$0x7]  ;;  %v270_v19 = vld [vmem:[%s248_s20 + $0x4] sm:$0x7]  ;;  %s266_s8 = scalar_lea.vmem %s1238_s4, %s825_s27 }
  0x12   : > { %941 = vmatprep.subr.bf16.mxu1 %v1052_v1  ;;  %v454_v22 = vcombine.low %v269_v17, %v270_v19  ;;  %v295_v24 = vrot.slane %v269_v17, %v294_v20  ;;  %v317_v25 = vrot.slane %v270_v19, %v294_v20  ;;  %v690_v61 = vld [vmem:[%s257_s30] sm:$0x1]  ;;  %v691_v62 = vld [vmem:[%s257_s30 + $0x1] sm:$0x1] }
  0x13   : > { %v692_v63 = vunpack.c.l.bf16 %v690_v61  ;;  %v693_v0 = vunpack.c.l.bf16 %v691_v62 }
  0x14   : > { %922 = vmatpush3.bf16.msra.mxu0 %v1009_v7  ;;  %v296_v26 = vcombine.high %v295_v24, %v295_v24  ;;  %v318_v27 = vcombine.high %v317_v25, %v317_v25  ;;  %v461_v29 = vrot.slane %v454_v22, %v294_v20  ;;  %v303_v42 = vrot.slane %v295_v24, %v294_v20 }
  0x15   : > { %942 = vmatpush3.bf16.msra.mxu1 %v1010_v8  ;;  %923 = vmatprep.subr.bf16.mxu0 %v1052_v1  ;;  %v325_v43 = vrot.slane %v317_v25, %v294_v20  ;;  %v696_v2 = vcombine.low %v692_v63, %v693_v0 }
  0x16   : > { %943 = vmatprep.subr.bf16.mxu1 %v1052_v1  ;;  %v310_v31 = vrot.slane %v296_v26, %v294_v20  ;;  %v332_v32 = vrot.slane %v318_v27, %v294_v20  ;;  %v468_v34 = vrot.slane %v461_v29, %v294_v20 }
  0x17   : > { %v875_v45 = vcombine.high %v303_v42, %v325_v43 }
  0x18   : > { %924 = vmatpush3.bf16.msra.mxu0 %v1011_v10  ;;  %v350_v33 = vcombine.low %v310_v31, %v332_v32 }
  0x19   : > { %944 = vmatpush3.bf16.msra.mxu1 %v1012_v11  ;;  %925 = vmatprep.subr.bf16.mxu0 %v1052_v1  ;;  %v584_v47 = vrot.slane %v875_v45, %v294_v20 }
  0x1a   : > { %945 = vmatprep.subr.bf16.mxu1 %v1052_v1  ;;  %v357_v35 = vrot.slane %v350_v33, %v294_v20 }
  0x1b   : > { %v591_v49 = vrot.slane %v584_v47, %v294_v20 }
  0x1c   : > { %926 = vmatpush3.bf16.msra.mxu0 %v1013_v12  ;;  %v364_v37 = vrot.slane %v357_v35, %v294_v20 }
  0x1d   : > { %946 = vmatpush3.bf16.msra.mxu1 %v1014_v16  ;;  %927 = vmatprep.subr.bf16.mxu0 %v1052_v1 }
  0x1e   : > { %947 = vmatprep.subr.bf16.mxu1 %v1052_v1 }
  0x20   : > { %928 = vmatpush3.bf16.msra.mxu0 %v1015_v21 }
  0x21   : > { %948 = vmatpush3.bf16.msra.mxu1 %v1016_v23  ;;  %929 = vmatprep.subr.bf16.mxu0 %v1052_v1 }
  0x22   : > { %949 = vmatprep.subr.bf16.mxu1 %v1052_v1 }
  0x24   : > { %930 = vmatpush3.bf16.msra.mxu0 %v1017_v28 }
  0x25   : > { %950 = vmatpush3.bf16.msra.mxu1 %v1018_v30  ;;  %955 = vmatprep.subr.bf16.mxu0 %v1052_v1 }
  0x27   : > { %932 = vmatmul.mubr.bf16.vlgmr.msra.gmra.mrb[0].mxu0 %v364_v37 }
  0x28   : > { %952 = vmatmul.mubr.bf16.vlgmr.msra.gmra.mrb[0].mxu1 %v468_v34  ;;  %956 = vmatpush3.bf16.msra.mxu0 %v1020_v36 }
  0x29   : > { %971 = vmatprep.mubr.msk.bf16.mxu0 %vm1053_vm0, %v1052_v1  ;;  %957 = vmatprep.subr.bf16.mxu0 %v1052_v1 }
  0x2c   : > { %958 = vmatpush3.bf16.msra.mxu0 %v1021_v38 }
  0x2d   : > { %959 = vmatprep.subr.bf16.mxu0 %v1052_v1 }
  0x30   : > { %960 = vmatpush3.bf16.msra.mxu0 %v1022_v39 }
  0x31   : > { %961 = vmatprep.subr.bf16.mxu0 %v1052_v1 }
  0x34   : > { %962 = vmatpush3.bf16.msra.mxu0 %v1023_v40 }
  0x35   : > { %963 = vmatprep.subr.bf16.mxu0 %v1052_v1 }
  0x38   : > { %964 = vmatpush3.bf16.msra.mxu0 %v1024_v41 }
  0x39   : > { %965 = vmatprep.subr.bf16.mxu0 %v1052_v1 }
  0x3c   : > { %966 = vmatpush3.bf16.msra.mxu0 %v1025_v44 }
  0x3d   : > { %967 = vmatprep.subr.bf16.mxu0 %v1052_v1 }
  0x40   : > { %968 = vmatpush3.bf16.msra.mxu0 %v1026_v46 }
  0x41   : > { %969 = vmatprep.subr.bf16.mxu0 %v1052_v1  ;;  %v699_v1 = vunpack.c.0.s8 %v698_v60 }
  0x43   : > { %v702_v3 = vsub.s32 %v699_v1, %v1156_v15 }
  0x44   : > { %970 = vmatpush3.bf16.msra.mxu0 %v1027_v48 }
  0x45   : > { %v703_v7 = vrot.slane %v696_v2, %v702_v3 }
  0x47   : > { %972 = vmatmul.mubr.bf16.vlgmr.msra.gmra.mrb[4].mxu0 %v591_v49 }
  0xfa   : > { %v448_v51 = vpop.f32.mrb[0].mxu0 }
  0xfb   : > { %v552_v50 = vpop.f32.mrb[0].mxu1  ;;  %v933_v53 = vpop.f32.mrb[1].mxu0 }
  0xfc   : > { %v953_v52 = vpop.f32.mrb[1].mxu1  ;;  %v553_v54 = vadd.f32 %v552_v50, %v448_v51  ;;  %v451_v56 = vpop.f32.mrb[2].mxu0 }
  0xfd   : > { %v555_v55 = vpop.f32.mrb[2].mxu1  ;;  %v934_v58 = vpop.f32.mrb[3].mxu0 }
  0xfe   : > { %v954_v57 = vpop.f32.mrb[3].mxu1 }
 0x11a   : > { %v675_v4 = vpop.f32.mrb[4].mxu0 }
 0x11b   : > { %v681_v6 = vadd.f32 %v675_v4, %v553_v54  ;;  %v973_v8 = vpop.f32.mrb[5].mxu0 }
 0x11c   : > { %v678_v9 = vpop.f32.mrb[6].mxu0 }
 0x11d   : > { %v689_v10 = vadd.f32 %v884_v5, %v681_v6  ;;  %v974_v11 = vpop.f32.mrb[7].mxu0 }
 0x11f   : > { %v705_v12 = vadd.f32 %v703_v7, %v689_v10 }
 0x121   : > { %v706_v13 = vmax.f32 %v705_v12, 0.0 }
 0x123   : > { %v714_v14 = vrot.slane %v706_v13, %v702_v3 }
 0x125   : > { %v715_v16 = vcombine.high %v714_v14, %v714_v14  ;;  %v718_v15 = vpack.c.bf16 %v714_v14, %v714_v14 }
 0x127   : > { %v719_v17 = vpack.c.bf16 %v715_v16, %v715_v16  ;;  %720 = vst [vmem:[%s266_s8] sm:$0x1] %v718_v15 }
 0x129   : > { %721 = vst [vmem:[%s266_s8 + $0x1] sm:$0x1] %v719_v17 }
 0x12a PF: > { %s14_s17 = sadd.s32 1, %s1050_s17   ;;  %s1239_s15 = smov %s1046_s16 }
 0x12b   : > { %p11_p5 = scmp.ge.s32.totalorder %s14_s17, 4   ;;  %s1240_s16 = smov %s1242_s18 }
 0x12d   :  { %13 = sbr.rel (!%p11_p5) target bundleno = 2 (0x2), region = 71 }

// kernel: erfnet_forward.104
= control target key start
LH: loop header
LB: loop body
LE: loop exit
PB: predicated region body
PF: predicated region fallthrough
CT: control target
= control target key end

     0   :  { %s988_s12 = smov 0   ;;  %s990_s13 = smov 0   ;;  %s1148_s0 = inlined_call_operand.vmem [shape: bf16[2,2,4,128], index: 0, kind: input, shape index: {}]   ;;  %s1149_s1 = inlined_call_operand.vmem [shape: bf16[3,128,128], index: 1, kind: input, shape index: {}]   ;;  %s1150_s2 = inlined_call_operand.vmem [shape: f32[1,128], index: 2, kind: input, shape index: {}]   ;;  %s1151_s3 = inlined_call_operand.vmem [shape: bf16[2,2,2,128], index: 3, kind: output, shape index: {}]  }
   0x1   :  { %s992_s14 = smov 0  }
   0x2 LB: > { %s25_s15 = sadd.s32 1, %s958_s13  ;;  %p734_p0 = scmp.ge.s32.totalorder %s962_s14, 1  ;;  %s962_s14 = sphi %s992_s14, %s13_s14   ;;  %s958_s13 = sphi %s990_s13, %s1153_s13   ;;  %s954_s12 = sphi %s988_s12, %s1152_s12  }
   0x3   : > { %p27_p1 = scmp.ge.s32.totalorder %s25_s15, 2  ;;  %p158_p2 = scmp.lt.s32.totalorder %s962_s14, 3 }
   0x5   : > { %s1155_s15 = smov (%p27_p1, %s25_s15), 0  ;;  %p159_p3 = pnand %p734_p0, %p158_p2 }
   0x6   : > { %v916_v0 = vld [vmem:[%s1149_s1 + $0x40] sm:$0xff] (!%p159_p3)   ;;  %v964_v1 = vmov (!%p159_p3), 0.0   ;;  %v918_v3 = vld [vmem:[%s1149_s1 + $0x48] sm:$0xff] (!%p159_p3)   ;;  %vm965_vm0 = vmmov (!%p159_p3), 0   ;;  %p190_p4 = scmp.lt.s32.totalorder (!%p159_p3), %s954_s12, 1  ;;  %v920_v5 = vld [vmem:[%s1149_s1 + $0x50] sm:$0xff] (!%p159_p3)   ;;  %v232_v9 = vlaneseq (!%p159_p3) }
   0x7   : > { %162 = sbr.rel (%p159_p3) target bundleno = 296 (0x128), region = 32  ;;  %828 = vmatprep.subr.bf16.mxu0 (!%p159_p3), %v964_v1  ;;  %848 = vmatprep.subr.bf16.mxu1 (!%p159_p3), %v964_v1  ;;  %v917_v2 = vld [vmem:[%s1149_s1] sm:$0xff] (!%p159_p3)   ;;  %v919_v4 = vld [vmem:[%s1149_s1 + $0x8] sm:$0xff] (!%p159_p3)   ;;  %v921_v6 = vld [vmem:[%s1149_s1 + $0x10] sm:$0xff] (!%p159_p3)   ;;  %v966_v13 = vmov (!%p159_p3), 1966171168  }
   0x8   : > { %829 = vmatpush3.bf16.msra.mxu0 (!%p159_p3), %v916_v0  ;;  %844 = vmatprep.mubr.msk.bf16.mxu0 (!%p159_p3), %vm965_vm0, %v964_v1  ;;  %v922_v7 = vld [vmem:[%s1149_s1 + $0x58] sm:$0xff] (!%p159_p3)   ;;  %v924_v10 = vld [vmem:[%s1149_s1 + $0x60] sm:$0xff] (!%p159_p3)   ;;  %v1060_v12 = vshrl.u32 (!%p159_p3), %v232_v9, 7  ;;  %v230_v14 = vunpack.c.l.s4 (!%p159_p3), %v966_v13  ;;  %vm245_vm1 = vsmask.f32 (!%p159_p3), 256  ;;  %v926_v15 = vld [vmem:[%s1149_s1 + $0x68] sm:$0xff] (!%p159_p3)  }
   0x9   : > { %849 = vmatpush3.bf16.msra.mxu1 (!%p159_p3), %v917_v2  ;;  %830 = vmatprep.subr.bf16.mxu0 (!%p159_p3), %v964_v1  ;;  %v923_v8 = vld [vmem:[%s1149_s1 + $0x18] sm:$0xff] (!%p159_p3)   ;;  %v925_v11 = vld [vmem:[%s1149_s1 + $0x20] sm:$0xff] (!%p159_p3)   ;;  %vm246_vm2 = vsmask.f32 (!%p159_p3), 1284  ;;  %vm248_vm3 = vsmask.f32 (!%p159_p3), 2312 }
   0xa   : > { %850 = vmatprep.subr.bf16.mxu1 (!%p159_p3), %v964_v1  ;;  %864 = vmatprep.mubr.msk.bf16.mxu1 (!%p159_p3), %vm965_vm0, %v964_v1  ;;  %v927_v16 = vld [vmem:[%s1149_s1 + $0x28] sm:$0xff] (!%p159_p3)   ;;  %vm247_vm4 = vmor (!%p159_p3), %vm245_vm1, %vm246_vm2  ;;  %vm250_vm5 = vsmask.f32 (!%p159_p3), 3340  ;;  %vm252_vm6 = vsmask.f32 (!%p159_p3), 4368  ;;  %v231_v18 = vunpack.c.0.s8 (!%p159_p3), %v230_v14  ;;  %v928_v21 = vld [vmem:[%s1149_s1 + $0x70] sm:$0xff] (!%p159_p3)  }
   0xb   : > { %vm249_vm7 = vmor (!%p159_p3), %vm247_vm4, %vm248_vm3  ;;  %vm254_vm8 = vsmask.f32 (!%p159_p3), 5396  ;;  %vm256_vm10 = vsmask.f32 (!%p159_p3), 6424  ;;  %vm258_vm13 = vsmask.f32 (!%p159_p3), 7452 }
   0xc   : > { %831 = vmatpush3.bf16.msra.mxu0 (!%p159_p3), %v918_v3  ;;  %vm251_vm9 = vmor (!%p159_p3), %vm249_vm7, %vm250_vm5  ;;  %v1071_v20 = vsub.s32 (!%p159_p3), %v231_v18, %v1060_v12  ;;  %v929_v23 = vld [vmem:[%s1149_s1 + $0x30] sm:$0xff] (!%p159_p3)   ;;  %v930_v26 = vld [vmem:[%s1149_s1 + $0x78] sm:$0xff] (!%p159_p3)   ;;  %v967_v61 = vmov (!%p159_p3), 1983009808  }
   0xd   : > { %851 = vmatpush3.bf16.msra.mxu1 (!%p159_p3), %v919_v4  ;;  %832 = vmatprep.subr.bf16.mxu0 (!%p159_p3), %v964_v1  ;;  %vm253_vm11 = vmor (!%p159_p3), %vm251_vm9, %vm252_vm6  ;;  %v931_v32 = vld [vmem:[%s1149_s1 + $0x38] sm:$0xff] (!%p159_p3)   ;;  %v932_v40 = vld [vmem:[%s1149_s1 + $0x80] sm:$0xff] (!%p159_p3)   ;;  %v636_v62 = vunpack.c.l.s4 (!%p159_p3), %v967_v61 }
   0xe   : > { %852 = vmatprep.subr.bf16.mxu1 %v964_v1  ;;  %s1157_s12 = smov (!%p190_p4, %s954_s12), 1  ;;  %vm255_vm12 = vmor %vm253_vm11, %vm254_vm8  ;;  %v933_v42 = vld [vmem:[%s1149_s1 + $0x88] sm:$0xff]   ;;  %v934_v43 = vld [vmem:[%s1149_s1 + $0x90] sm:$0xff]  }
   0xf   : > { %s800_s5 = sshll.u32 %s1157_s12, 2  ;;  %vm257_vm14 = vmor %vm255_vm12, %vm256_vm10  ;;  %v935_v44 = vld [vmem:[%s1149_s1 + $0x98] sm:$0xff]   ;;  %v936_v45 = vld [vmem:[%s1149_s1 + $0xa0] sm:$0xff]   ;;  %v637_v63 = vunpack.c.0.s8 %v636_v62  ;;  %s737_s24 = sshll.u32 %s1157_s12, 1 }
  0x10   : > { %833 = vmatpush3.bf16.msra.mxu0 %v920_v5  ;;  %s197_s16 = scalar_lea.vmem %s1148_s0, %s800_s5  ;;  %vm259_vm15 = vmor %vm257_vm14, %vm258_vm13  ;;  %v937_v46 = vld [vmem:[%s1149_s1 + $0xa8] sm:$0xff]   ;;  %v938_v48 = vld [vmem:[%s1149_s1 + $0xb0] sm:$0xff]   ;;  %s206_s27 = scalar_lea.vmem %s1151_s3, %s737_s24 }
  0x11   : > { %853 = vmatpush3.bf16.msra.mxu1 %v921_v6  ;;  %834 = vmatprep.subr.bf16.mxu0 %v964_v1  ;;  %v209_v17 = vld [vmem:[%s197_s16] sm:$0x3]  ;;  %v210_v19 = vld [vmem:[%s197_s16 + $0x2] sm:$0x3]  ;;  %v939_v50 = vld [vmem:[%s1149_s1 + $0xb8] sm:$0xff]   ;;  %v640_v6 = vsub.s32 %v637_v63, %v1060_v12 }
  0x12   : > { %854 = vmatprep.subr.bf16.mxu1 %v964_v1  ;;  %v399_v22 = vcombine.low %v209_v17, %v210_v19  ;;  %v235_v24 = vrot.slane %v209_v17, %v1071_v20  ;;  %v243_v25 = vrot.slane %v210_v19, %v1071_v20 }
  0x14   : > { %835 = vmatpush3.bf16.msra.mxu0 %v922_v7  ;;  %v236_v27 = vcombine.high %v235_v24, %v235_v24  ;;  %v244_v28 = vcombine.high %v243_v25, %v243_v25  ;;  %v261_v29 = vshrl.u32 %v235_v24, 16  ;;  %v270_v30 = vshrl.u32 %v243_v25, 16 }
  0x15   : > { %855 = vmatpush3.bf16.msra.mxu1 %v923_v8  ;;  %836 = vmatprep.subr.bf16.mxu0 %v964_v1  ;;  %v406_v31 = vrot.slane %v399_v22, %v1071_v20  ;;  %v788_v47 = vcombine.high %v235_v24, %v243_v25 }
  0x16   : > { %856 = vmatprep.subr.bf16.mxu1 %v964_v1  ;;  %v266_v33 = vshll.u32 %v236_v27, 16  ;;  %v275_v34 = vshll.u32 %v244_v28, 16 }
  0x17   : > { %v413_v38 = vrot.slane %v406_v31, %v1071_v20  ;;  %v527_v49 = vrot.slane %v788_v47, %v1071_v20 }
  0x18   : > { %837 = vmatpush3.bf16.msra.mxu0 %v924_v10  ;;  %v268_v35 = vsel %vm259_vm15, %v261_v29, %v266_v33  ;;  %v277_v36 = vsel %vm259_vm15, %v270_v30, %v275_v34 }
  0x19   : > { %857 = vmatpush3.bf16.msra.mxu1 %v925_v11  ;;  %838 = vmatprep.subr.bf16.mxu0 %v964_v1  ;;  %v295_v37 = vcombine.low %v268_v35, %v277_v36  ;;  %v534_v51 = vrot.slane %v527_v49, %v1071_v20 }
  0x1a   : > { %858 = vmatprep.subr.bf16.mxu1 %v964_v1 }
  0x1b   : > { %v302_v39 = vrot.slane %v295_v37, %v1071_v20 }
  0x1c   : > { %839 = vmatpush3.bf16.msra.mxu0 %v926_v15 }
  0x1d   : > { %859 = vmatpush3.bf16.msra.mxu1 %v927_v16  ;;  %840 = vmatprep.subr.bf16.mxu0 %v964_v1  ;;  %v309_v41 = vrot.slane %v302_v39, %v1071_v20 }
  0x1e   : > { %860 = vmatprep.subr.bf16.mxu1 %v964_v1 }
  0x20   : > { %841 = vmatpush3.bf16.msra.mxu0 %v928_v21 }
  0x21   : > { %861 = vmatpush3.bf16.msra.mxu1 %v929_v23  ;;  %842 = vmatprep.subr.bf16.mxu0 %v964_v1 }
  0x22   : > { %862 = vmatprep.subr.bf16.mxu1 %v964_v1 }
  0x24   : > { %843 = vmatpush3.bf16.msra.mxu0 %v930_v26 }
  0x25   : > { %863 = vmatpush3.bf16.msra.mxu1 %v931_v32  ;;  %868 = vmatprep.subr.bf16.mxu0 %v964_v1 }
  0x27   : > { %845 = vmatmul.mubr.bf16.vlgmr.msra.gmra.mrb[0].mxu0 %v309_v41 }
  0x28   : > { %865 = vmatmul.mubr.bf16.vlgmr.msra.gmra.mrb[0].mxu1 %v413_v38  ;;  %869 = vmatpush3.bf16.msra.mxu0 %v932_v40 }
  0x29   : > { %884 = vmatprep.mubr.msk.bf16.mxu0 %vm965_vm0, %v964_v1  ;;  %870 = vmatprep.subr.bf16.mxu0 %v964_v1 }
  0x2c   : > { %871 = vmatpush3.bf16.msra.mxu0 %v933_v42 }
  0x2d   : > { %872 = vmatprep.subr.bf16.mxu0 %v964_v1 }
  0x30   : > { %873 = vmatpush3.bf16.msra.mxu0 %v934_v43 }
  0x31   : > { %874 = vmatprep.subr.bf16.mxu0 %v964_v1 }
  0x34   : > { %875 = vmatpush3.bf16.msra.mxu0 %v935_v44 }
  0x35   : > { %876 = vmatprep.subr.bf16.mxu0 %v964_v1 }
  0x38   : > { %877 = vmatpush3.bf16.msra.mxu0 %v936_v45 }
  0x39   : > { %878 = vmatprep.subr.bf16.mxu0 %v964_v1 }
  0x3c   : > { %879 = vmatpush3.bf16.msra.mxu0 %v937_v46 }
  0x3d   : > { %880 = vmatprep.subr.bf16.mxu0 %v964_v1 }
  0x40   : > { %881 = vmatpush3.bf16.msra.mxu0 %v938_v48 }
  0x41   : > { %882 = vmatprep.subr.bf16.mxu0 %v964_v1  ;;  %v797_v1 = vld [vmem:[%s1150_s2] ss:$0 sm:$0xff] }
  0x44   : > { %883 = vmatpush3.bf16.msra.mxu0 %v939_v50 }
  0x47   : > { %885 = vmatmul.mubr.bf16.vlgmr.msra.gmra.mrb[4].mxu0 %v534_v51 }
  0xfa   : > { %v393_v54 = vpop.f32.mrb[0].mxu0 }
  0xfb   : > { %v497_v52 = vpop.f32.mrb[0].mxu1  ;;  %v846_v56 = vpop.f32.mrb[1].mxu0 }
  0xfc   : > { %v866_v53 = vpop.f32.mrb[1].mxu1  ;;  %v498_v57 = vadd.f32 %v497_v52, %v393_v54  ;;  %v396_v59 = vpop.f32.mrb[2].mxu0 }
  0xfd   : > { %v500_v55 = vpop.f32.mrb[2].mxu1  ;;  %v847_v60 = vpop.f32.mrb[3].mxu0 }
  0xfe   : > { %v867_v58 = vpop.f32.mrb[3].mxu1 }
 0x11a   : > { %v618_v0 = vpop.f32.mrb[4].mxu0 }
 0x11b   : > { %v624_v2 = vadd.f32 %v618_v0, %v498_v57  ;;  %v886_v3 = vpop.f32.mrb[5].mxu0 }
 0x11c   : > { %v621_v4 = vpop.f32.mrb[6].mxu0 }
 0x11d   : > { %v632_v5 = vadd.f32 %v797_v1, %v624_v2  ;;  %v887_v7 = vpop.f32.mrb[7].mxu0 }
 0x11f   : > { %v633_v8 = vmax.f32 %v632_v5, 0.0 }
 0x121   : > { %v641_v9 = vrot.slane %v633_v8, %v640_v6 }
 0x123   : > { %v642_v10 = vcombine.high %v641_v9, %v641_v9  ;;  %v645_v11 = vpack.c.bf16 %v641_v9, %v641_v9 }
 0x125   : > { %v646_v13 = vpack.c.bf16 %v642_v10, %v642_v10  ;;  %647 = vst [vmem:[%s206_s27] sm:$0x1] %v645_v11 }
 0x127   : > { %648 = vst [vmem:[%s206_s27 + $0x1] sm:$0x1] %v646_v13 }
 0x128 PF: > { %s13_s14 = sadd.s32 1, %s962_s14   ;;  %s1152_s12 = smov %s958_s13 }
 0x129   : > { %p10_p5 = scmp.ge.s32.totalorder %s13_s14, 4   ;;  %s1153_s13 = smov %s1155_s15 }
 0x12b   :  { %12 = sbr.rel (!%p10_p5) target bundleno = 2 (0x2), region = 64 }

// kernel: erfnet_forward.109
= control target key start
LH: loop header
LB: loop body
LE: loop exit
PB: predicated region body
PF: predicated region fallthrough
CT: control target
= control target key end

     0   :  { %s924_s12 = smov 0   ;;  %s926_s13 = smov 0   ;;  %s1078_s0 = inlined_call_operand.vmem [shape: bf16[2,10,2,128], index: 0, kind: input, shape index: {}]   ;;  %s1079_s1 = inlined_call_operand.vmem [shape: bf16[3,128,128], index: 1, kind: input, shape index: {}]   ;;  %s1080_s2 = inlined_call_operand.vmem [shape: f32[1,128], index: 2, kind: input, shape index: {}]   ;;  %s1081_s3 = inlined_call_operand.vmem [shape: bf16[2,2,2,128], index: 3, kind: output, shape index: {}]  }
   0x1   :  { %s928_s14 = smov 0  }
   0x2 LB: > { %s25_s15 = sadd.s32 1, %s894_s13  ;;  %p675_p0 = scmp.ge.s32.totalorder %s898_s14, 1  ;;  %s898_s14 = sphi %s928_s14, %s13_s14   ;;  %s894_s13 = sphi %s926_s13, %s1083_s13   ;;  %s890_s12 = sphi %s924_s12, %s1082_s12  }
   0x3   : > { %p27_p1 = scmp.ge.s32.totalorder %s25_s15, 2  ;;  %p155_p2 = scmp.lt.s32.totalorder %s898_s14, 3 }
   0x5   : > { %s1085_s15 = smov (%p27_p1, %s25_s15), 0  ;;  %p156_p3 = pnand %p675_p0, %p155_p2 }
   0x6   : > { %v852_v0 = vld [vmem:[%s1079_s1 + $0x40] sm:$0xff] (!%p156_p3)   ;;  %v900_v1 = vmov (!%p156_p3), 0.0   ;;  %v854_v3 = vld [vmem:[%s1079_s1 + $0x48] sm:$0xff] (!%p156_p3)   ;;  %vm901_vm0 = vmmov (!%p156_p3), 0   ;;  %p183_p4 = scmp.lt.s32.totalorder (!%p156_p3), %s890_s12, 1  ;;  %v856_v5 = vld [vmem:[%s1079_s1 + $0x50] sm:$0xff] (!%p156_p3)   ;;  %v243_v9 = vlaneseq (!%p156_p3) }
   0x7   : > { %159 = sbr.rel (%p156_p3) target bundleno = 296 (0x128), region = 32  ;;  %763 = vmatprep.subr.bf16.mxu0 (!%p156_p3), %v900_v1  ;;  %783 = vmatprep.subr.bf16.mxu1 (!%p156_p3), %v900_v1  ;;  %v853_v2 = vld [vmem:[%s1079_s1] sm:$0xff] (!%p156_p3)   ;;  %v855_v4 = vld [vmem:[%s1079_s1 + $0x8] sm:$0xff] (!%p156_p3)   ;;  %v857_v6 = vld [vmem:[%s1079_s1 + $0x10] sm:$0xff] (!%p156_p3)   ;;  %v902_v17 = vmov (!%p156_p3), 1966171168  }
   0x8   : > { %764 = vmatpush3.bf16.msra.mxu0 (!%p156_p3), %v852_v0  ;;  %779 = vmatprep.mubr.msk.bf16.mxu0 (!%p156_p3), %vm901_vm0, %v900_v1  ;;  %v858_v7 = vld [vmem:[%s1079_s1 + $0x58] sm:$0xff] (!%p156_p3)   ;;  %v860_v10 = vld [vmem:[%s1079_s1 + $0x60] sm:$0xff] (!%p156_p3)   ;;  %v862_v12 = vld [vmem:[%s1079_s1 + $0x68] sm:$0xff] (!%p156_p3)   ;;  %v997_v13 = vshrl.u32 (!%p156_p3), %v243_v9, 7  ;;  %v241_v18 = vunpack.c.l.s4 (!%p156_p3), %v902_v17  ;;  %v903_v55 = vmov (!%p156_p3), 1983009808  }
   0x9   : > { %784 = vmatpush3.bf16.msra.mxu1 (!%p156_p3), %v853_v2  ;;  %765 = vmatprep.subr.bf16.mxu0 (!%p156_p3), %v900_v1  ;;  %v859_v8 = vld [vmem:[%s1079_s1 + $0x18] sm:$0xff] (!%p156_p3)   ;;  %v861_v11 = vld [vmem:[%s1079_s1 + $0x20] sm:$0xff] (!%p156_p3)   ;;  %v863_v14 = vld [vmem:[%s1079_s1 + $0x28] sm:$0xff] (!%p156_p3)   ;;  %v584_v56 = vunpack.c.l.s4 (!%p156_p3), %v903_v55 }
   0xa   : > { %785 = vmatprep.subr.bf16.mxu1 (!%p156_p3), %v900_v1  ;;  %799 = vmatprep.mubr.msk.bf16.mxu1 (!%p156_p3), %vm901_vm0, %v900_v1  ;;  %v242_v20 = vunpack.c.0.s8 (!%p156_p3), %v241_v18  ;;  %v864_v24 = vld [vmem:[%s1079_s1 + $0x70] sm:$0xff] (!%p156_p3)   ;;  %v866_v28 = vld [vmem:[%s1079_s1 + $0x78] sm:$0xff] (!%p156_p3)   ;;  %v868_v33 = vld [vmem:[%s1079_s1 + $0x80] sm:$0xff] (!%p156_p3)  }
   0xb   : > { %v865_v26 = vld [vmem:[%s1079_s1 + $0x30] sm:$0xff] (!%p156_p3)   ;;  %v867_v30 = vld [vmem:[%s1079_s1 + $0x38] sm:$0xff] (!%p156_p3)   ;;  %v869_v34 = vld [vmem:[%s1079_s1 + $0x88] sm:$0xff] (!%p156_p3)   ;;  %v585_v57 = vunpack.c.0.s8 (!%p156_p3), %v584_v56 }
   0xc   : > { %766 = vmatpush3.bf16.msra.mxu0 (!%p156_p3), %v854_v3  ;;  %v245_v23 = vsub.s32 (!%p156_p3), %v242_v20, %v997_v13  ;;  %v870_v35 = vld [vmem:[%s1079_s1 + $0x90] sm:$0xff] (!%p156_p3)   ;;  %v871_v36 = vld [vmem:[%s1079_s1 + $0x98] sm:$0xff] (!%p156_p3)   ;;  %v872_v37 = vld [vmem:[%s1079_s1 + $0xa0] sm:$0xff] (!%p156_p3)  }
   0xd   : > { %786 = vmatpush3.bf16.msra.mxu1 (!%p156_p3), %v855_v4  ;;  %767 = vmatprep.subr.bf16.mxu0 (!%p156_p3), %v900_v1  ;;  %v873_v38 = vld [vmem:[%s1079_s1 + $0xa8] sm:$0xff] (!%p156_p3)   ;;  %v874_v42 = vld [vmem:[%s1079_s1 + $0xb0] sm:$0xff] (!%p156_p3)   ;;  %v875_v44 = vld [vmem:[%s1079_s1 + $0xb8] sm:$0xff] (!%p156_p3)   ;;  %v588_v0 = vsub.s32 (!%p156_p3), %v585_v57, %v997_v13 }
   0xe   : > { %s1087_s12 = smov (!%p183_p4, %s890_s12), 1  ;;  %787 = vmatprep.subr.bf16.mxu1 %v900_v1  ;;  %v733_v59 = vld [vmem:[%s1080_s2] ss:$0 sm:$0xff] }
   0xf   : > { %s823_s30 = smul.u32 10, %s1087_s12  ;;  %s676_s24 = sshll.u32 %s1087_s12, 1 }
  0x10   : > { %768 = vmatpush3.bf16.msra.mxu0 %v856_v5  ;;  %s196_s27 = scalar_lea.vmem %s1081_s3, %s676_s24 }
  0x11   : > { %788 = vmatpush3.bf16.msra.mxu1 %v857_v6  ;;  %769 = vmatprep.subr.bf16.mxu0 %v900_v1  ;;  %s987_s10 = scalar_lea.vmem %s1078_s0, %s823_s30 }
  0x12   : > { %789 = vmatprep.subr.bf16.mxu1 %v900_v1  ;;  %v200_v15 = vld [vmem:[%s987_s10 + $0x4] sm:$0x1]  ;;  %v201_v16 = vld [vmem:[%s987_s10 + $0x5] sm:$0x1]  ;;  %v198_v19 = vld [vmem:[%s987_s10] sm:$0x1] }
  0x13   : > { %v199_v21 = vld [vmem:[%s987_s10 + $0x1] sm:$0x1]  ;;  %v239_v22 = vcombine.low %v200_v15, %v201_v16  ;;  %v202_v39 = vld [vmem:[%s987_s10 + $0x8] sm:$0x1]  ;;  %v203_v40 = vld [vmem:[%s987_s10 + $0x9] sm:$0x1] }
  0x14   : > { %770 = vmatpush3.bf16.msra.mxu0 %v858_v7  ;;  %v345_v25 = vcombine.low %v198_v19, %v199_v21  ;;  %v468_v41 = vcombine.low %v202_v39, %v203_v40 }
  0x15   : > { %790 = vmatpush3.bf16.msra.mxu1 %v859_v8  ;;  %771 = vmatprep.subr.bf16.mxu0 %v900_v1  ;;  %v246_v27 = vrot.slane %v239_v22, %v245_v23 }
  0x16   : > { %791 = vmatprep.subr.bf16.mxu1 %v900_v1  ;;  %v352_v29 = vrot.slane %v345_v25, %v245_v23  ;;  %v475_v43 = vrot.slane %v468_v41, %v245_v23 }
  0x17   : > { %v253_v31 = vrot.slane %v246_v27, %v245_v23 }
  0x18   : > { %772 = vmatpush3.bf16.msra.mxu0 %v860_v10  ;;  %v359_v32 = vrot.slane %v352_v29, %v245_v23  ;;  %v482_v45 = vrot.slane %v475_v43, %v245_v23 }
  0x19   : > { %792 = vmatpush3.bf16.msra.mxu1 %v861_v11  ;;  %773 = vmatprep.subr.bf16.mxu0 %v900_v1 }
  0x1a   : > { %793 = vmatprep.subr.bf16.mxu1 %v900_v1 }
  0x1c   : > { %774 = vmatpush3.bf16.msra.mxu0 %v862_v12 }
  0x1d   : > { %794 = vmatpush3.bf16.msra.mxu1 %v863_v14  ;;  %775 = vmatprep.subr.bf16.mxu0 %v900_v1 }
  0x1e   : > { %795 = vmatprep.subr.bf16.mxu1 %v900_v1 }
  0x20   : > { %776 = vmatpush3.bf16.msra.mxu0 %v864_v24 }
  0x21   : > { %796 = vmatpush3.bf16.msra.mxu1 %v865_v26  ;;  %777 = vmatprep.subr.bf16.mxu0 %v900_v1 }
  0x22   : > { %797 = vmatprep.subr.bf16.mxu1 %v900_v1 }
  0x24   : > { %778 = vmatpush3.bf16.msra.mxu0 %v866_v28 }
  0x25   : > { %798 = vmatpush3.bf16.msra.mxu1 %v867_v30  ;;  %803 = vmatprep.subr.bf16.mxu0 %v900_v1 }
  0x27   : > { %780 = vmatmul.mubr.bf16.vlgmr.msra.gmra.mrb[0].mxu0 %v253_v31 }
  0x28   : > { %800 = vmatmul.mubr.bf16.vlgmr.msra.gmra.mrb[0].mxu1 %v359_v32  ;;  %804 = vmatpush3.bf16.msra.mxu0 %v868_v33 }
  0x29   : > { %805 = vmatprep.subr.bf16.mxu0 %v900_v1  ;;  %819 = vmatprep.mubr.msk.bf16.mxu0 %vm901_vm0, %v900_v1 }
  0x2c   : > { %806 = vmatpush3.bf16.msra.mxu0 %v869_v34 }
  0x2d   : > { %807 = vmatprep.subr.bf16.mxu0 %v900_v1 }
  0x30   : > { %808 = vmatpush3.bf16.msra.mxu0 %v870_v35 }
  0x31   : > { %809 = vmatprep.subr.bf16.mxu0 %v900_v1 }
  0x34   : > { %810 = vmatpush3.bf16.msra.mxu0 %v871_v36 }
  0x35   : > { %811 = vmatprep.subr.bf16.mxu0 %v900_v1 }
  0x38   : > { %812 = vmatpush3.bf16.msra.mxu0 %v872_v37 }
  0x39   : > { %813 = vmatprep.subr.bf16.mxu0 %v900_v1 }
  0x3c   : > { %814 = vmatpush3.bf16.msra.mxu0 %v873_v38 }
  0x3d   : > { %815 = vmatprep.subr.bf16.mxu0 %v900_v1 }
  0x40   : > { %816 = vmatpush3.bf16.msra.mxu0 %v874_v42 }
  0x41   : > { %817 = vmatprep.subr.bf16.mxu0 %v900_v1 }
  0x44   : > { %818 = vmatpush3.bf16.msra.mxu0 %v875_v44 }
  0x47   : > { %820 = vmatmul.mubr.bf16.vlgmr.msra.gmra.mrb[4].mxu0 %v482_v45 }
  0xfa   : > { %v337_v46 = vpop.f32.mrb[0].mxu0 }
  0xfb   : > { %v781_v47 = vpop.f32.mrb[1].mxu0  ;;  %v443_v48 = vpop.f32.mrb[0].mxu1 }
  0xfc   : > { %v444_v49 = vadd.f32 %v443_v48, %v337_v46  ;;  %v340_v50 = vpop.f32.mrb[2].mxu0  ;;  %v801_v51 = vpop.f32.mrb[1].mxu1 }
  0xfd   : > { %v782_v52 = vpop.f32.mrb[3].mxu0  ;;  %v446_v53 = vpop.f32.mrb[2].mxu1 }
  0xfe   : > { %v802_v54 = vpop.f32.mrb[3].mxu1 }
 0x11a   : > { %v566_v58 = vpop.f32.mrb[4].mxu0 }
 0x11b   : > { %v572_v60 = vadd.f32 %v566_v58, %v444_v49  ;;  %v821_v61 = vpop.f32.mrb[5].mxu0 }
 0x11c   : > { %v569_v62 = vpop.f32.mrb[6].mxu0 }
 0x11d   : > { %v580_v63 = vadd.f32 %v733_v59, %v572_v60  ;;  %v822_v1 = vpop.f32.mrb[7].mxu0 }
 0x11f   : > { %v581_v2 = vmax.f32 %v580_v63, 0.0 }
 0x121   : > { %v589_v3 = vrot.slane %v581_v2, %v588_v0 }
 0x123   : > { %v590_v4 = vcombine.high %v589_v3, %v589_v3  ;;  %v593_v5 = vpack.c.bf16 %v589_v3, %v589_v3 }
 0x125   : > { %v594_v6 = vpack.c.bf16 %v590_v4, %v590_v4  ;;  %595 = vst [vmem:[%s196_s27] sm:$0x1] %v593_v5 }
 0x127   : > { %596 = vst [vmem:[%s196_s27 + $0x1] sm:$0x1] %v594_v6 }
 0x128 PF: > { %s13_s14 = sadd.s32 1, %s898_s14   ;;  %s1082_s12 = smov %s894_s13 }
 0x129   : > { %p10_p5 = scmp.ge.s32.totalorder %s13_s14, 4   ;;  %s1083_s13 = smov %s1085_s15 }
 0x12b   :  { %12 = sbr.rel (!%p10_p5) target bundleno = 2 (0x2), region = 64 }

// kernel: erfnet_forward.113
= control target key start
LH: loop header
LB: loop body
LE: loop exit
PB: predicated region body
PF: predicated region fallthrough
CT: control target
= control target key end

     0   :  { %s924_s12 = smov 0   ;;  %s926_s13 = smov 0   ;;  %s1078_s0 = inlined_call_operand.vmem [shape: bf16[2,18,2,128], index: 0, kind: input, shape index: {}]   ;;  %s1079_s1 = inlined_call_operand.vmem [shape: bf16[3,128,128], index: 1, kind: input, shape index: {}]   ;;  %s1080_s2 = inlined_call_operand.vmem [shape: f32[1,128], index: 2, kind: input, shape index: {}]   ;;  %s1081_s3 = inlined_call_operand.vmem [shape: bf16[2,2,2,128], index: 3, kind: output, shape index: {}]  }
   0x1   :  { %s928_s14 = smov 0  }
   0x2 LB: > { %s25_s15 = sadd.s32 1, %s894_s13  ;;  %p675_p0 = scmp.ge.s32.totalorder %s898_s14, 1  ;;  %s898_s14 = sphi %s928_s14, %s13_s14   ;;  %s894_s13 = sphi %s926_s13, %s1083_s13   ;;  %s890_s12 = sphi %s924_s12, %s1082_s12  }
   0x3   : > { %p27_p1 = scmp.ge.s32.totalorder %s25_s15, 2  ;;  %p155_p2 = scmp.lt.s32.totalorder %s898_s14, 3 }
   0x5   : > { %s1085_s15 = smov (%p27_p1, %s25_s15), 0  ;;  %p156_p3 = pnand %p675_p0, %p155_p2 }
   0x6   : > { %v852_v0 = vld [vmem:[%s1079_s1 + $0x40] sm:$0xff] (!%p156_p3)   ;;  %v900_v1 = vmov (!%p156_p3), 0.0   ;;  %v854_v3 = vld [vmem:[%s1079_s1 + $0x48] sm:$0xff] (!%p156_p3)   ;;  %vm901_vm0 = vmmov (!%p156_p3), 0   ;;  %p183_p4 = scmp.lt.s32.totalorder (!%p156_p3), %s890_s12, 1  ;;  %v856_v5 = vld [vmem:[%s1079_s1 + $0x50] sm:$0xff] (!%p156_p3)   ;;  %v243_v9 = vlaneseq (!%p156_p3) }
   0x7   : > { %159 = sbr.rel (%p156_p3) target bundleno = 296 (0x128), region = 32  ;;  %763 = vmatprep.subr.bf16.mxu0 (!%p156_p3), %v900_v1  ;;  %783 = vmatprep.subr.bf16.mxu1 (!%p156_p3), %v900_v1  ;;  %v853_v2 = vld [vmem:[%s1079_s1] sm:$0xff] (!%p156_p3)   ;;  %v855_v4 = vld [vmem:[%s1079_s1 + $0x8] sm:$0xff] (!%p156_p3)   ;;  %v857_v6 = vld [vmem:[%s1079_s1 + $0x10] sm:$0xff] (!%p156_p3)   ;;  %v902_v17 = vmov (!%p156_p3), 1966171168  }
   0x8   : > { %764 = vmatpush3.bf16.msra.mxu0 (!%p156_p3), %v852_v0  ;;  %779 = vmatprep.mubr.msk.bf16.mxu0 (!%p156_p3), %vm901_vm0, %v900_v1  ;;  %v858_v7 = vld [vmem:[%s1079_s1 + $0x58] sm:$0xff] (!%p156_p3)   ;;  %v860_v10 = vld [vmem:[%s1079_s1 + $0x60] sm:$0xff] (!%p156_p3)   ;;  %v862_v12 = vld [vmem:[%s1079_s1 + $0x68] sm:$0xff] (!%p156_p3)   ;;  %v997_v13 = vshrl.u32 (!%p156_p3), %v243_v9, 7  ;;  %v241_v18 = vunpack.c.l.s4 (!%p156_p3), %v902_v17  ;;  %v903_v55 = vmov (!%p156_p3), 1983009808  }
   0x9   : > { %784 = vmatpush3.bf16.msra.mxu1 (!%p156_p3), %v853_v2  ;;  %765 = vmatprep.subr.bf16.mxu0 (!%p156_p3), %v900_v1  ;;  %v859_v8 = vld [vmem:[%s1079_s1 + $0x18] sm:$0xff] (!%p156_p3)   ;;  %v861_v11 = vld [vmem:[%s1079_s1 + $0x20] sm:$0xff] (!%p156_p3)   ;;  %v863_v14 = vld [vmem:[%s1079_s1 + $0x28] sm:$0xff] (!%p156_p3)   ;;  %v584_v56 = vunpack.c.l.s4 (!%p156_p3), %v903_v55 }
   0xa   : > { %785 = vmatprep.subr.bf16.mxu1 (!%p156_p3), %v900_v1  ;;  %799 = vmatprep.mubr.msk.bf16.mxu1 (!%p156_p3), %vm901_vm0, %v900_v1  ;;  %v242_v20 = vunpack.c.0.s8 (!%p156_p3), %v241_v18  ;;  %v864_v24 = vld [vmem:[%s1079_s1 + $0x70] sm:$0xff] (!%p156_p3)   ;;  %v866_v28 = vld [vmem:[%s1079_s1 + $0x78] sm:$0xff] (!%p156_p3)   ;;  %v868_v33 = vld [vmem:[%s1079_s1 + $0x80] sm:$0xff] (!%p156_p3)  }
   0xb   : > { %v865_v26 = vld [vmem:[%s1079_s1 + $0x30] sm:$0xff] (!%p156_p3)   ;;  %v867_v30 = vld [vmem:[%s1079_s1 + $0x38] sm:$0xff] (!%p156_p3)   ;;  %v869_v34 = vld [vmem:[%s1079_s1 + $0x88] sm:$0xff] (!%p156_p3)   ;;  %v585_v57 = vunpack.c.0.s8 (!%p156_p3), %v584_v56 }
   0xc   : > { %766 = vmatpush3.bf16.msra.mxu0 (!%p156_p3), %v854_v3  ;;  %v245_v23 = vsub.s32 (!%p156_p3), %v242_v20, %v997_v13  ;;  %v870_v35 = vld [vmem:[%s1079_s1 + $0x90] sm:$0xff] (!%p156_p3)   ;;  %v871_v36 = vld [vmem:[%s1079_s1 + $0x98] sm:$0xff] (!%p156_p3)   ;;  %v872_v37 = vld [vmem:[%s1079_s1 + $0xa0] sm:$0xff] (!%p156_p3)  }
   0xd   : > { %786 = vmatpush3.bf16.msra.mxu1 (!%p156_p3), %v855_v4  ;;  %767 = vmatprep.subr.bf16.mxu0 (!%p156_p3), %v900_v1  ;;  %v873_v38 = vld [vmem:[%s1079_s1 + $0xa8] sm:$0xff] (!%p156_p3)   ;;  %v874_v42 = vld [vmem:[%s1079_s1 + $0xb0] sm:$0xff] (!%p156_p3)   ;;  %v875_v44 = vld [vmem:[%s1079_s1 + $0xb8] sm:$0xff] (!%p156_p3)   ;;  %v588_v0 = vsub.s32 (!%p156_p3), %v585_v57, %v997_v13 }
   0xe   : > { %s1087_s12 = smov (!%p183_p4, %s890_s12), 1  ;;  %787 = vmatprep.subr.bf16.mxu1 %v900_v1  ;;  %v733_v59 = vld [vmem:[%s1080_s2] ss:$0 sm:$0xff] }
   0xf   : > { %s823_s30 = smul.u32 18, %s1087_s12  ;;  %s676_s24 = sshll.u32 %s1087_s12, 1 }
  0x10   : > { %768 = vmatpush3.bf16.msra.mxu0 %v856_v5  ;;  %s196_s27 = scalar_lea.vmem %s1081_s3, %s676_s24 }
  0x11   : > { %788 = vmatpush3.bf16.msra.mxu1 %v857_v6  ;;  %769 = vmatprep.subr.bf16.mxu0 %v900_v1  ;;  %s987_s10 = scalar_lea.vmem %s1078_s0, %s823_s30 }
  0x12   : > { %789 = vmatprep.subr.bf16.mxu1 %v900_v1  ;;  %v200_v15 = vld [vmem:[%s987_s10 + $0x8] sm:$0x1]  ;;  %v201_v16 = vld [vmem:[%s987_s10 + $0x9] sm:$0x1]  ;;  %v198_v19 = vld [vmem:[%s987_s10] sm:$0x1] }
  0x13   : > { %v199_v21 = vld [vmem:[%s987_s10 + $0x1] sm:$0x1]  ;;  %v239_v22 = vcombine.low %v200_v15, %v201_v16  ;;  %v202_v39 = vld [vmem:[%s987_s10 + $0x10] sm:$0x1]  ;;  %v203_v40 = vld [vmem:[%s987_s10 + $0x11] sm:$0x1] }
  0x14   : > { %770 = vmatpush3.bf16.msra.mxu0 %v858_v7  ;;  %v345_v25 = vcombine.low %v198_v19, %v199_v21  ;;  %v468_v41 = vcombine.low %v202_v39, %v203_v40 }
  0x15   : > { %790 = vmatpush3.bf16.msra.mxu1 %v859_v8  ;;  %771 = vmatprep.subr.bf16.mxu0 %v900_v1  ;;  %v246_v27 = vrot.slane %v239_v22, %v245_v23 }
  0x16   : > { %791 = vmatprep.subr.bf16.mxu1 %v900_v1  ;;  %v352_v29 = vrot.slane %v345_v25, %v245_v23  ;;  %v475_v43 = vrot.slane %v468_v41, %v245_v23 }
  0x17   : > { %v253_v31 = vrot.slane %v246_v27, %v245_v23 }
  0x18   : > { %772 = vmatpush3.bf16.msra.mxu0 %v860_v10  ;;  %v359_v32 = vrot.slane %v352_v29, %v245_v23  ;;  %v482_v45 = vrot.slane %v475_v43, %v245_v23 }
  0x19   : > { %792 = vmatpush3.bf16.msra.mxu1 %v861_v11  ;;  %773 = vmatprep.subr.bf16.mxu0 %v900_v1 }
  0x1a   : > { %793 = vmatprep.subr.bf16.mxu1 %v900_v1 }
  0x1c   : > { %774 = vmatpush3.bf16.msra.mxu0 %v862_v12 }
  0x1d   : > { %794 = vmatpush3.bf16.msra.mxu1 %v863_v14  ;;  %775 = vmatprep.subr.bf16.mxu0 %v900_v1 }
  0x1e   : > { %795 = vmatprep.subr.bf16.mxu1 %v900_v1 }
  0x20   : > { %776 = vmatpush3.bf16.msra.mxu0 %v864_v24 }
  0x21   : > { %796 = vmatpush3.bf16.msra.mxu1 %v865_v26  ;;  %777 = vmatprep.subr.bf16.mxu0 %v900_v1 }
  0x22   : > { %797 = vmatprep.subr.bf16.mxu1 %v900_v1 }
  0x24   : > { %778 = vmatpush3.bf16.msra.mxu0 %v866_v28 }
  0x25   : > { %798 = vmatpush3.bf16.msra.mxu1 %v867_v30  ;;  %803 = vmatprep.subr.bf16.mxu0 %v900_v1 }
  0x27   : > { %780 = vmatmul.mubr.bf16.vlgmr.msra.gmra.mrb[0].mxu0 %v253_v31 }
  0x28   : > { %800 = vmatmul.mubr.bf16.vlgmr.msra.gmra.mrb[0].mxu1 %v359_v32  ;;  %804 = vmatpush3.bf16.msra.mxu0 %v868_v33 }
  0x29   : > { %805 = vmatprep.subr.bf16.mxu0 %v900_v1  ;;  %819 = vmatprep.mubr.msk.bf16.mxu0 %vm901_vm0, %v900_v1 }
  0x2c   : > { %806 = vmatpush3.bf16.msra.mxu0 %v869_v34 }
  0x2d   : > { %807 = vmatprep.subr.bf16.mxu0 %v900_v1 }
  0x30   : > { %808 = vmatpush3.bf16.msra.mxu0 %v870_v35 }
  0x31   : > { %809 = vmatprep.subr.bf16.mxu0 %v900_v1 }
  0x34   : > { %810 = vmatpush3.bf16.msra.mxu0 %v871_v36 }
  0x35   : > { %811 = vmatprep.subr.bf16.mxu0 %v900_v1 }
  0x38   : > { %812 = vmatpush3.bf16.msra.mxu0 %v872_v37 }
  0x39   : > { %813 = vmatprep.subr.bf16.mxu0 %v900_v1 }
  0x3c   : > { %814 = vmatpush3.bf16.msra.mxu0 %v873_v38 }
  0x3d   : > { %815 = vmatprep.subr.bf16.mxu0 %v900_v1 }
  0x40   : > { %816 = vmatpush3.bf16.msra.mxu0 %v874_v42 }
  0x41   : > { %817 = vmatprep.subr.bf16.mxu0 %v900_v1 }
  0x44   : > { %818 = vmatpush3.bf16.msra.mxu0 %v875_v44 }
  0x47   : > { %820 = vmatmul.mubr.bf16.vlgmr.msra.gmra.mrb[4].mxu0 %v482_v45 }
  0xfa   : > { %v337_v46 = vpop.f32.mrb[0].mxu0 }
  0xfb   : > { %v781_v47 = vpop.f32.mrb[1].mxu0  ;;  %v443_v48 = vpop.f32.mrb[0].mxu1 }
  0xfc   : > { %v444_v49 = vadd.f32 %v443_v48, %v337_v46  ;;  %v340_v50 = vpop.f32.mrb[2].mxu0  ;;  %v801_v51 = vpop.f32.mrb[1].mxu1 }
  0xfd   : > { %v782_v52 = vpop.f32.mrb[3].mxu0  ;;  %v446_v53 = vpop.f32.mrb[2].mxu1 }
  0xfe   : > { %v802_v54 = vpop.f32.mrb[3].mxu1 }
 0x11a   : > { %v566_v58 = vpop.f32.mrb[4].mxu0 }
 0x11b   : > { %v572_v60 = vadd.f32 %v566_v58, %v444_v49  ;;  %v821_v61 = vpop.f32.mrb[5].mxu0 }
 0x11c   : > { %v569_v62 = vpop.f32.mrb[6].mxu0 }
 0x11d   : > { %v580_v63 = vadd.f32 %v733_v59, %v572_v60  ;;  %v822_v1 = vpop.f32.mrb[7].mxu0 }
 0x11f   : > { %v581_v2 = vmax.f32 %v580_v63, 0.0 }
 0x121   : > { %v589_v3 = vrot.slane %v581_v2, %v588_v0 }
 0x123   : > { %v590_v4 = vcombine.high %v589_v3, %v589_v3  ;;  %v593_v5 = vpack.c.bf16 %v589_v3, %v589_v3 }
 0x125   : > { %v594_v6 = vpack.c.bf16 %v590_v4, %v590_v4  ;;  %595 = vst [vmem:[%s196_s27] sm:$0x1] %v593_v5 }
 0x127   : > { %596 = vst [vmem:[%s196_s27 + $0x1] sm:$0x1] %v594_v6 }
 0x128 PF: > { %s13_s14 = sadd.s32 1, %s898_s14   ;;  %s1082_s12 = smov %s894_s13 }
 0x129   : > { %p10_p5 = scmp.ge.s32.totalorder %s13_s14, 4   ;;  %s1083_s13 = smov %s1085_s15 }
 0x12b   :  { %12 = sbr.rel (!%p10_p5) target bundleno = 2 (0x2), region = 64 }

// kernel: erfnet_forward.110
= control target key start
LH: loop header
LB: loop body
LE: loop exit
PB: predicated region body
PF: predicated region fallthrough
CT: control target
= control target key end

     0   :  { %s1076_s15 = smov 0   ;;  %s1078_s16 = smov 0   ;;  %s1234_s0 = inlined_call_operand.vmem [shape: bf16[2,2,10,128], index: 0, kind: input, shape index: {}]   ;;  %s1235_s1 = inlined_call_operand.vmem [shape: bf16[3,128,128], index: 1, kind: input, shape index: {}]   ;;  %s1236_s2 = inlined_call_operand.vmem [shape: f32[1,128], index: 2, kind: input, shape index: {}]   ;;  %s1237_s3 = inlined_call_operand.vmem [shape: bf16[2,2,2,128], index: 3, kind: input, shape index: {}]   ;;  %s1238_s4 = inlined_call_operand.vmem [shape: bf16[2,2,2,128], index: 4, kind: output, shape index: {}]  }
   0x1   :  { %s1080_s17 = smov 0  }
   0x2 LB: > { %s26_s18 = sadd.s32 1, %s1041_s16  ;;  %p816_p0 = scmp.ge.s32.totalorder %s1045_s17, 1  ;;  %s1045_s17 = sphi %s1080_s17, %s14_s17   ;;  %s1041_s16 = sphi %s1078_s16, %s1240_s16   ;;  %s1037_s15 = sphi %s1076_s15, %s1239_s15  }
   0x3   : > { %p28_p1 = scmp.ge.s32.totalorder %s26_s18, 2  ;;  %p200_p2 = scmp.lt.s32.totalorder %s1045_s17, 3 }
   0x5   : > { %s1242_s18 = smov (%p28_p1, %s26_s18), 0  ;;  %p201_p3 = pnand %p816_p0, %p200_p2 }
   0x6   : > { %v997_v0 = vld [vmem:[%s1235_s1 + $0x40] sm:$0xff] (!%p201_p3)   ;;  %v1047_v1 = vmov (!%p201_p3), 0.0   ;;  %v999_v3 = vld [vmem:[%s1235_s1 + $0x48] sm:$0xff] (!%p201_p3)   ;;  %vm1048_vm0 = vmmov (!%p201_p3), 0   ;;  %p243_p4 = scmp.lt.s32.totalorder (!%p201_p3), %s1037_s15, 1  ;;  %v1001_v5 = vld [vmem:[%s1235_s1 + $0x50] sm:$0xff] (!%p201_p3)   ;;  %v297_v9 = vlaneseq (!%p201_p3) }
   0x7   : > { %204 = sbr.rel (%p201_p3) target bundleno = 298 (0x12a), region = 36  ;;  %909 = vmatprep.subr.bf16.mxu0 (!%p201_p3), %v1047_v1  ;;  %929 = vmatprep.subr.bf16.mxu1 (!%p201_p3), %v1047_v1  ;;  %v998_v2 = vld [vmem:[%s1235_s1] sm:$0xff] (!%p201_p3)   ;;  %v1000_v4 = vld [vmem:[%s1235_s1 + $0x8] sm:$0xff] (!%p201_p3)   ;;  %v1002_v6 = vld [vmem:[%s1235_s1 + $0x10] sm:$0xff] (!%p201_p3)   ;;  %v1049_v13 = vmov (!%p201_p3), 1966171168  }
   0x8   : > { %910 = vmatpush3.bf16.msra.mxu0 (!%p201_p3), %v997_v0  ;;  %925 = vmatprep.mubr.msk.bf16.mxu0 (!%p201_p3), %vm1048_vm0, %v1047_v1  ;;  %v1003_v7 = vld [vmem:[%s1235_s1 + $0x58] sm:$0xff] (!%p201_p3)   ;;  %v1005_v10 = vld [vmem:[%s1235_s1 + $0x60] sm:$0xff] (!%p201_p3)   ;;  %v1007_v12 = vld [vmem:[%s1235_s1 + $0x68] sm:$0xff] (!%p201_p3)   ;;  %v295_v14 = vunpack.c.l.s4 (!%p201_p3), %v1049_v13  ;;  %v1153_v15 = vshrl.u32 (!%p201_p3), %v297_v9, 7  ;;  %v1050_v55 = vmov (!%p201_p3), 1983009808  }
   0x9   : > { %930 = vmatpush3.bf16.msra.mxu1 (!%p201_p3), %v998_v2  ;;  %911 = vmatprep.subr.bf16.mxu0 (!%p201_p3), %v1047_v1  ;;  %v1004_v8 = vld [vmem:[%s1235_s1 + $0x18] sm:$0xff] (!%p201_p3)   ;;  %v1006_v11 = vld [vmem:[%s1235_s1 + $0x20] sm:$0xff] (!%p201_p3)   ;;  %v1008_v16 = vld [vmem:[%s1235_s1 + $0x28] sm:$0xff] (!%p201_p3)   ;;  %v689_v56 = vunpack.c.l.s4 (!%p201_p3), %v1050_v55 }
   0xa   : > { %931 = vmatprep.subr.bf16.mxu1 (!%p201_p3), %v1047_v1  ;;  %945 = vmatprep.mubr.msk.bf16.mxu1 (!%p201_p3), %vm1048_vm0, %v1047_v1  ;;  %v296_v18 = vunpack.c.0.s8 (!%p201_p3), %v295_v14  ;;  %v1009_v21 = vld [vmem:[%s1235_s1 + $0x70] sm:$0xff] (!%p201_p3)   ;;  %v1011_v28 = vld [vmem:[%s1235_s1 + $0x78] sm:$0xff] (!%p201_p3)   ;;  %v1014_v34 = vld [vmem:[%s1235_s1 + $0x80] sm:$0xff] (!%p201_p3)  }
   0xb   : > { %v1010_v23 = vld [vmem:[%s1235_s1 + $0x30] sm:$0xff] (!%p201_p3)   ;;  %v1012_v30 = vld [vmem:[%s1235_s1 + $0x38] sm:$0xff] (!%p201_p3)   ;;  %v1015_v36 = vld [vmem:[%s1235_s1 + $0x88] sm:$0xff] (!%p201_p3)   ;;  %v690_v61 = vunpack.c.0.s8 (!%p201_p3), %v689_v56 }
   0xc   : > { %912 = vmatpush3.bf16.msra.mxu0 (!%p201_p3), %v999_v3  ;;  %v299_v20 = vsub.s32 (!%p201_p3), %v296_v18, %v1153_v15  ;;  %v1016_v37 = vld [vmem:[%s1235_s1 + $0x90] sm:$0xff] (!%p201_p3)   ;;  %v1017_v38 = vld [vmem:[%s1235_s1 + $0x98] sm:$0xff] (!%p201_p3)   ;;  %v1018_v39 = vld [vmem:[%s1235_s1 + $0xa0] sm:$0xff] (!%p201_p3)  }
   0xd   : > { %932 = vmatpush3.bf16.msra.mxu1 (!%p201_p3), %v1000_v4  ;;  %913 = vmatprep.subr.bf16.mxu0 (!%p201_p3), %v1047_v1  ;;  %v1019_v40 = vld [vmem:[%s1235_s1 + $0xa8] sm:$0xff] (!%p201_p3)   ;;  %v1020_v42 = vld [vmem:[%s1235_s1 + $0xb0] sm:$0xff] (!%p201_p3)   ;;  %v1021_v44 = vld [vmem:[%s1235_s1 + $0xb8] sm:$0xff] (!%p201_p3)   ;;  %v693_v63 = vsub.s32 (!%p201_p3), %v690_v61, %v1153_v15 }
   0xe   : > { %933 = vmatprep.subr.bf16.mxu1 %v1047_v1  ;;  %s1244_s15 = smov (!%p243_p4, %s1037_s15), 1 }
   0xf   : > { %s881_s9 = sshll.u32 %s1244_s15, 4 }
  0x10   : > { %914 = vmatpush3.bf16.msra.mxu0 %v1001_v5  ;;  %s1148_s20 = scalar_lea.vmem %s1234_s0, %s881_s9 }
  0x11   : > { %934 = vmatpush3.bf16.msra.mxu1 %v1002_v6  ;;  %915 = vmatprep.subr.bf16.mxu0 %v1047_v1  ;;  %v272_v17 = vld [vmem:[%s1148_s20] sm:$0xf]  ;;  %v274_v19 = vld [vmem:[%s1148_s20 + $0x8] sm:$0xf] }
  0x12   : > { %935 = vmatprep.subr.bf16.mxu1 %v1047_v1  ;;  %v445_v22 = vcombine.low %v272_v17, %v274_v19  ;;  %v300_v24 = vrot.slane %v272_v17, %v299_v20  ;;  %v315_v25 = vrot.slane %v274_v19, %v299_v20  ;;  %v1022_v41 = vld [vmem:[%s1148_s20 + $0x4] ss:$8 sps:$4 sm:$0x11]   ;;  %s819_s20 = sshll.u32 %s1244_s15, 1 }
  0x13   : > { %v575_v43 = vrot.slane %v1022_v41, %v299_v20  ;;  %s260_s30 = scalar_lea.vmem %s1237_s3, %s819_s20  ;;  %s269_s8 = scalar_lea.vmem %s1238_s4, %s819_s20 }
  0x14   : > { %916 = vmatpush3.bf16.msra.mxu0 %v1003_v7  ;;  %v307_v26 = vrot.slane %v300_v24, %v299_v20  ;;  %v322_v27 = vrot.slane %v315_v25, %v299_v20  ;;  %v452_v29 = vrot.slane %v445_v22, %v299_v20  ;;  %v681_v57 = vld [vmem:[%s260_s30] sm:$0x1]  ;;  %v682_v58 = vld [vmem:[%s260_s30 + $0x1] sm:$0x1] }
  0x15   : > { %936 = vmatpush3.bf16.msra.mxu1 %v1004_v8  ;;  %917 = vmatprep.subr.bf16.mxu0 %v1047_v1  ;;  %v582_v45 = vrot.slane %v575_v43, %v299_v20  ;;  %v683_v59 = vunpack.c.l.bf16 %v681_v57  ;;  %v684_v60 = vunpack.c.l.bf16 %v682_v58 }
  0x16   : > { %937 = vmatprep.subr.bf16.mxu1 %v1047_v1  ;;  %v837_v31 = vcombine.high %v307_v26, %v322_v27  ;;  %v459_v33 = vrot.slane %v452_v29, %v299_v20 }
  0x17   : > { %v687_v62 = vcombine.low %v683_v59, %v684_v60 }
  0x18   : > { %918 = vmatpush3.bf16.msra.mxu0 %v1005_v10  ;;  %v348_v32 = vrot.slane %v837_v31, %v299_v20 }
  0x19   : > { %938 = vmatpush3.bf16.msra.mxu1 %v1006_v11  ;;  %919 = vmatprep.subr.bf16.mxu0 %v1047_v1  ;;  %v694_v3 = vrot.slane %v687_v62, %v693_v63 }
  0x1a   : > { %939 = vmatprep.subr.bf16.mxu1 %v1047_v1  ;;  %v355_v35 = vrot.slane %v348_v32, %v299_v20 }
  0x1c   : > { %920 = vmatpush3.bf16.msra.mxu0 %v1007_v12 }
  0x1d   : > { %940 = vmatpush3.bf16.msra.mxu1 %v1008_v16  ;;  %921 = vmatprep.subr.bf16.mxu0 %v1047_v1 }
  0x1e   : > { %941 = vmatprep.subr.bf16.mxu1 %v1047_v1 }
  0x20   : > { %922 = vmatpush3.bf16.msra.mxu0 %v1009_v21 }
  0x21   : > { %942 = vmatpush3.bf16.msra.mxu1 %v1010_v23  ;;  %923 = vmatprep.subr.bf16.mxu0 %v1047_v1 }
  0x22   : > { %943 = vmatprep.subr.bf16.mxu1 %v1047_v1 }
  0x24   : > { %924 = vmatpush3.bf16.msra.mxu0 %v1011_v28 }
  0x25   : > { %944 = vmatpush3.bf16.msra.mxu1 %v1012_v30  ;;  %949 = vmatprep.subr.bf16.mxu0 %v1047_v1 }
  0x27   : > { %926 = vmatmul.mubr.bf16.vlgmr.msra.gmra.mrb[0].mxu0 %v355_v35 }
  0x28   : > { %946 = vmatmul.mubr.bf16.vlgmr.msra.gmra.mrb[0].mxu1 %v459_v33  ;;  %950 = vmatpush3.bf16.msra.mxu0 %v1014_v34 }
  0x29   : > { %951 = vmatprep.subr.bf16.mxu0 %v1047_v1  ;;  %965 = vmatprep.mubr.msk.bf16.mxu0 %vm1048_vm0, %v1047_v1 }
  0x2c   : > { %952 = vmatpush3.bf16.msra.mxu0 %v1015_v36 }
  0x2d   : > { %953 = vmatprep.subr.bf16.mxu0 %v1047_v1 }
  0x30   : > { %954 = vmatpush3.bf16.msra.mxu0 %v1016_v37 }
  0x31   : > { %955 = vmatprep.subr.bf16.mxu0 %v1047_v1 }
  0x34   : > { %956 = vmatpush3.bf16.msra.mxu0 %v1017_v38 }
  0x35   : > { %957 = vmatprep.subr.bf16.mxu0 %v1047_v1 }
  0x38   : > { %958 = vmatpush3.bf16.msra.mxu0 %v1018_v39 }
  0x39   : > { %959 = vmatprep.subr.bf16.mxu0 %v1047_v1 }
  0x3c   : > { %960 = vmatpush3.bf16.msra.mxu0 %v1019_v40 }
  0x3d   : > { %961 = vmatprep.subr.bf16.mxu0 %v1047_v1 }
  0x40   : > { %962 = vmatpush3.bf16.msra.mxu0 %v1020_v42 }
  0x41   : > { %963 = vmatprep.subr.bf16.mxu0 %v1047_v1  ;;  %v878_v1 = vld [vmem:[%s1236_s2] ss:$0 sm:$0xff] }
  0x44   : > { %964 = vmatpush3.bf16.msra.mxu0 %v1021_v44 }
  0x47   : > { %966 = vmatmul.mubr.bf16.vlgmr.msra.gmra.mrb[4].mxu0 %v582_v45 }
  0xfa   : > { %v439_v46 = vpop.f32.mrb[0].mxu0 }
  0xfb   : > { %v927_v47 = vpop.f32.mrb[1].mxu0  ;;  %v543_v48 = vpop.f32.mrb[0].mxu1 }
  0xfc   : > { %v544_v49 = vadd.f32 %v543_v48, %v439_v46  ;;  %v442_v50 = vpop.f32.mrb[2].mxu0  ;;  %v947_v51 = vpop.f32.mrb[1].mxu1 }
  0xfd   : > { %v928_v52 = vpop.f32.mrb[3].mxu0  ;;  %v546_v53 = vpop.f32.mrb[2].mxu1 }
  0xfe   : > { %v948_v54 = vpop.f32.mrb[3].mxu1 }
 0x11a   : > { %v666_v0 = vpop.f32.mrb[4].mxu0 }
 0x11b   : > { %v672_v2 = vadd.f32 %v666_v0, %v544_v49  ;;  %v967_v4 = vpop.f32.mrb[5].mxu0 }
 0x11c   : > { %v669_v5 = vpop.f32.mrb[6].mxu0 }
 0x11d   : > { %v680_v6 = vadd.f32 %v878_v1, %v672_v2  ;;  %v968_v7 = vpop.f32.mrb[7].mxu0 }
 0x11f   : > { %v696_v8 = vadd.f32 %v694_v3, %v680_v6 }
 0x121   : > { %v697_v9 = vmax.f32 %v696_v8, 0.0 }
 0x123   : > { %v705_v10 = vrot.slane %v697_v9, %v693_v63 }
 0x125   : > { %v706_v11 = vcombine.high %v705_v10, %v705_v10  ;;  %v709_v12 = vpack.c.bf16 %v705_v10, %v705_v10 }
 0x127   : > { %v710_v13 = vpack.c.bf16 %v706_v11, %v706_v11  ;;  %711 = vst [vmem:[%s269_s8] sm:$0x1] %v709_v12 }
 0x129   : > { %712 = vst [vmem:[%s269_s8 + $0x1] sm:$0x1] %v710_v13 }
 0x12a PF: > { %s14_s17 = sadd.s32 1, %s1045_s17   ;;  %s1239_s15 = smov %s1041_s16 }
 0x12b   : > { %p11_p5 = scmp.ge.s32.totalorder %s14_s17, 4   ;;  %s1240_s16 = smov %s1242_s18 }
 0x12d   :  { %13 = sbr.rel (!%p11_p5) target bundleno = 2 (0x2), region = 71 }

// kernel: erfnet_forward.114
= control target key start
LH: loop header
LB: loop body
LE: loop exit
PB: predicated region body
PF: predicated region fallthrough
CT: control target
= control target key end

     0   :  { %s1049_s15 = smov 0   ;;  %s1051_s16 = smov 0   ;;  %s1207_s0 = inlined_call_operand.vmem [shape: bf16[2,2,18,128], index: 0, kind: input, shape index: {}]   ;;  %s1208_s1 = inlined_call_operand.vmem [shape: bf16[3,128,128], index: 1, kind: input, shape index: {}]   ;;  %s1209_s2 = inlined_call_operand.vmem [shape: f32[1,128], index: 2, kind: input, shape index: {}]   ;;  %s1210_s3 = inlined_call_operand.vmem [shape: bf16[2,2,2,128], index: 3, kind: input, shape index: {}]   ;;  %s1211_s4 = inlined_call_operand.vmem [shape: bf16[2,2,2,128], index: 4, kind: output, shape index: {}]  }
   0x1   :  { %s1053_s17 = smov 0  }
   0x2 LB: > { %s26_s18 = sadd.s32 1, %s1014_s16  ;;  %p790_p0 = scmp.ge.s32.totalorder %s1018_s17, 1  ;;  %s1018_s17 = sphi %s1053_s17, %s14_s17   ;;  %s1014_s16 = sphi %s1051_s16, %s1213_s16   ;;  %s1010_s15 = sphi %s1049_s15, %s1212_s15  }
   0x3   : > { %p28_p1 = scmp.ge.s32.totalorder %s26_s18, 2  ;;  %p200_p2 = scmp.lt.s32.totalorder %s1018_s17, 3 }
   0x5   : > { %s1215_s18 = smov (%p28_p1, %s26_s18), 0  ;;  %p201_p3 = pnand %p790_p0, %p200_p2 }
   0x6   : > { %v969_v0 = vld [vmem:[%s1208_s1 + $0x40] sm:$0xff] (!%p201_p3)   ;;  %v1020_v1 = vmov (!%p201_p3), 0.0   ;;  %v971_v3 = vld [vmem:[%s1208_s1 + $0x48] sm:$0xff] (!%p201_p3)   ;;  %vm1021_vm0 = vmmov (!%p201_p3), 0   ;;  %p243_p4 = scmp.lt.s32.totalorder (!%p201_p3), %s1010_s15, 1  ;;  %v973_v5 = vld [vmem:[%s1208_s1 + $0x50] sm:$0xff] (!%p201_p3)   ;;  %v317_v10 = vlaneseq (!%p201_p3) }
   0x7   : > { %204 = sbr.rel (%p201_p3) target bundleno = 298 (0x12a), region = 36  ;;  %880 = vmatprep.subr.bf16.mxu0 (!%p201_p3), %v1020_v1  ;;  %900 = vmatprep.subr.bf16.mxu1 (!%p201_p3), %v1020_v1  ;;  %v970_v2 = vld [vmem:[%s1208_s1] sm:$0xff] (!%p201_p3)   ;;  %v972_v4 = vld [vmem:[%s1208_s1 + $0x8] sm:$0xff] (!%p201_p3)   ;;  %v974_v6 = vld [vmem:[%s1208_s1 + $0x10] sm:$0xff] (!%p201_p3)   ;;  %v1022_v13 = vmov (!%p201_p3), 1966171168  }
   0x8   : > { %881 = vmatpush3.bf16.msra.mxu0 (!%p201_p3), %v969_v0  ;;  %896 = vmatprep.mubr.msk.bf16.mxu0 (!%p201_p3), %vm1021_vm0, %v1020_v1  ;;  %v975_v7 = vld [vmem:[%s1208_s1 + $0x58] sm:$0xff] (!%p201_p3)   ;;  %v977_v9 = vld [vmem:[%s1208_s1 + $0x60] sm:$0xff] (!%p201_p3)   ;;  %v979_v12 = vld [vmem:[%s1208_s1 + $0x68] sm:$0xff] (!%p201_p3)   ;;  %v315_v14 = vunpack.c.l.s4 (!%p201_p3), %v1022_v13  ;;  %v1126_v15 = vshrl.u32 (!%p201_p3), %v317_v10, 7  ;;  %v1023_v49 = vmov (!%p201_p3), 1983009808  }
   0x9   : > { %901 = vmatpush3.bf16.msra.mxu1 (!%p201_p3), %v970_v2  ;;  %882 = vmatprep.subr.bf16.mxu0 (!%p201_p3), %v1020_v1  ;;  %v976_v8 = vld [vmem:[%s1208_s1 + $0x18] sm:$0xff] (!%p201_p3)   ;;  %v978_v11 = vld [vmem:[%s1208_s1 + $0x20] sm:$0xff] (!%p201_p3)   ;;  %v980_v16 = vld [vmem:[%s1208_s1 + $0x28] sm:$0xff] (!%p201_p3)   ;;  %v663_v50 = vunpack.c.l.s4 (!%p201_p3), %v1023_v49 }
   0xa   : > { %902 = vmatprep.subr.bf16.mxu1 (!%p201_p3), %v1020_v1  ;;  %916 = vmatprep.mubr.msk.bf16.mxu1 (!%p201_p3), %vm1021_vm0, %v1020_v1  ;;  %v981_v17 = vld [vmem:[%s1208_s1 + $0x70] sm:$0xff] (!%p201_p3)   ;;  %v316_v18 = vunpack.c.0.s8 (!%p201_p3), %v315_v14  ;;  %v983_v24 = vld [vmem:[%s1208_s1 + $0x78] sm:$0xff] (!%p201_p3)   ;;  %v987_v29 = vld [vmem:[%s1208_s1 + $0x80] sm:$0xff] (!%p201_p3)  }
   0xb   : > { %v982_v22 = vld [vmem:[%s1208_s1 + $0x30] sm:$0xff] (!%p201_p3)   ;;  %v984_v26 = vld [vmem:[%s1208_s1 + $0x38] sm:$0xff] (!%p201_p3)   ;;  %v988_v30 = vld [vmem:[%s1208_s1 + $0x88] sm:$0xff] (!%p201_p3)   ;;  %v664_v55 = vunpack.c.0.s8 (!%p201_p3), %v663_v50 }
   0xc   : > { %883 = vmatpush3.bf16.msra.mxu0 (!%p201_p3), %v971_v3  ;;  %v319_v20 = vsub.s32 (!%p201_p3), %v316_v18, %v1126_v15  ;;  %v989_v31 = vld [vmem:[%s1208_s1 + $0x90] sm:$0xff] (!%p201_p3)   ;;  %v990_v32 = vld [vmem:[%s1208_s1 + $0x98] sm:$0xff] (!%p201_p3)   ;;  %v991_v33 = vld [vmem:[%s1208_s1 + $0xa0] sm:$0xff] (!%p201_p3)  }
   0xd   : > { %903 = vmatpush3.bf16.msra.mxu1 (!%p201_p3), %v972_v4  ;;  %884 = vmatprep.subr.bf16.mxu0 (!%p201_p3), %v1020_v1  ;;  %v992_v34 = vld [vmem:[%s1208_s1 + $0xa8] sm:$0xff] (!%p201_p3)   ;;  %v993_v36 = vld [vmem:[%s1208_s1 + $0xb0] sm:$0xff] (!%p201_p3)   ;;  %v994_v38 = vld [vmem:[%s1208_s1 + $0xb8] sm:$0xff] (!%p201_p3)   ;;  %v667_v57 = vsub.s32 (!%p201_p3), %v664_v55, %v1126_v15 }
   0xe   : > { %s1217_s15 = smov (!%p243_p4, %s1010_s15), 1  ;;  %904 = vmatprep.subr.bf16.mxu1 %v1020_v1  ;;  %v850_v59 = vld [vmem:[%s1209_s2] ss:$0 sm:$0xff] }
   0xf   : > { %s940_s9 = smul.u32 24, %s1217_s15 }
  0x10   : > { %885 = vmatpush3.bf16.msra.mxu0 %v973_v5 }
  0x11   : > { %905 = vmatpush3.bf16.msra.mxu1 %v974_v6  ;;  %886 = vmatprep.subr.bf16.mxu0 %v1020_v1  ;;  %s1120_s20 = scalar_lea.vmem %s1207_s0, %s940_s9 }
  0x12   : > { %906 = vmatprep.subr.bf16.mxu1 %v1020_v1  ;;  %v985_v19 = vld [vmem:[%s1120_s20 + $0x4] ss:$12 sps:$4 sm:$0xff]   ;;  %v986_v21 = vld [vmem:[%s1120_s20] ss:$12 sps:$4 sm:$0xff]  }
  0x13   : > { %v320_v23 = vrot.slane %v985_v19, %v319_v20  ;;  %v426_v25 = vrot.slane %v986_v21, %v319_v20  ;;  %v995_v35 = vld [vmem:[%s1120_s20 + $0x8] ss:$12 sps:$4 sm:$0x11]   ;;  %s792_s20 = sshll.u32 %s1217_s15, 1 }
  0x14   : > { %887 = vmatpush3.bf16.msra.mxu0 %v975_v7  ;;  %v549_v37 = vrot.slane %v995_v35, %v319_v20  ;;  %s260_s30 = scalar_lea.vmem %s1210_s3, %s792_s20  ;;  %s269_s8 = scalar_lea.vmem %s1211_s4, %s792_s20 }
  0x15   : > { %907 = vmatpush3.bf16.msra.mxu1 %v976_v8  ;;  %888 = vmatprep.subr.bf16.mxu0 %v1020_v1  ;;  %v327_v27 = vrot.slane %v320_v23, %v319_v20  ;;  %v433_v28 = vrot.slane %v426_v25, %v319_v20  ;;  %v655_v51 = vld [vmem:[%s260_s30] sm:$0x1]  ;;  %v656_v52 = vld [vmem:[%s260_s30 + $0x1] sm:$0x1] }
  0x16   : > { %908 = vmatprep.subr.bf16.mxu1 %v1020_v1  ;;  %v556_v39 = vrot.slane %v549_v37, %v319_v20  ;;  %v657_v53 = vunpack.c.l.bf16 %v655_v51  ;;  %v658_v54 = vunpack.c.l.bf16 %v656_v52 }
  0x18   : > { %889 = vmatpush3.bf16.msra.mxu0 %v977_v9  ;;  %v661_v56 = vcombine.low %v657_v53, %v658_v54 }
  0x19   : > { %909 = vmatpush3.bf16.msra.mxu1 %v978_v11  ;;  %890 = vmatprep.subr.bf16.mxu0 %v1020_v1 }
  0x1a   : > { %910 = vmatprep.subr.bf16.mxu1 %v1020_v1  ;;  %v668_v61 = vrot.slane %v661_v56, %v667_v57 }
  0x1c   : > { %891 = vmatpush3.bf16.msra.mxu0 %v979_v12 }
  0x1d   : > { %911 = vmatpush3.bf16.msra.mxu1 %v980_v16  ;;  %892 = vmatprep.subr.bf16.mxu0 %v1020_v1 }
  0x1e   : > { %912 = vmatprep.subr.bf16.mxu1 %v1020_v1 }
  0x20   : > { %893 = vmatpush3.bf16.msra.mxu0 %v981_v17 }
  0x21   : > { %913 = vmatpush3.bf16.msra.mxu1 %v982_v22  ;;  %894 = vmatprep.subr.bf16.mxu0 %v1020_v1 }
  0x22   : > { %914 = vmatprep.subr.bf16.mxu1 %v1020_v1 }
  0x24   : > { %895 = vmatpush3.bf16.msra.mxu0 %v983_v24 }
  0x25   : > { %915 = vmatpush3.bf16.msra.mxu1 %v984_v26  ;;  %920 = vmatprep.subr.bf16.mxu0 %v1020_v1 }
  0x27   : > { %897 = vmatmul.mubr.bf16.vlgmr.msra.gmra.mrb[0].mxu0 %v327_v27 }
  0x28   : > { %917 = vmatmul.mubr.bf16.vlgmr.msra.gmra.mrb[0].mxu1 %v433_v28  ;;  %921 = vmatpush3.bf16.msra.mxu0 %v987_v29 }
  0x29   : > { %922 = vmatprep.subr.bf16.mxu0 %v1020_v1  ;;  %936 = vmatprep.mubr.msk.bf16.mxu0 %vm1021_vm0, %v1020_v1 }
  0x2c   : > { %923 = vmatpush3.bf16.msra.mxu0 %v988_v30 }
  0x2d   : > { %924 = vmatprep.subr.bf16.mxu0 %v1020_v1 }
  0x30   : > { %925 = vmatpush3.bf16.msra.mxu0 %v989_v31 }
  0x31   : > { %926 = vmatprep.subr.bf16.mxu0 %v1020_v1 }
  0x34   : > { %927 = vmatpush3.bf16.msra.mxu0 %v990_v32 }
  0x35   : > { %928 = vmatprep.subr.bf16.mxu0 %v1020_v1 }
  0x38   : > { %929 = vmatpush3.bf16.msra.mxu0 %v991_v33 }
  0x39   : > { %930 = vmatprep.subr.bf16.mxu0 %v1020_v1 }
  0x3c   : > { %931 = vmatpush3.bf16.msra.mxu0 %v992_v34 }
  0x3d   : > { %932 = vmatprep.subr.bf16.mxu0 %v1020_v1 }
  0x40   : > { %933 = vmatpush3.bf16.msra.mxu0 %v993_v36 }
  0x41   : > { %934 = vmatprep.subr.bf16.mxu0 %v1020_v1 }
  0x44   : > { %935 = vmatpush3.bf16.msra.mxu0 %v994_v38 }
  0x47   : > { %937 = vmatmul.mubr.bf16.vlgmr.msra.gmra.mrb[4].mxu0 %v556_v39 }
  0xfa   : > { %v411_v40 = vpop.f32.mrb[0].mxu0 }
  0xfb   : > { %v898_v41 = vpop.f32.mrb[1].mxu0  ;;  %v517_v42 = vpop.f32.mrb[0].mxu1 }
  0xfc   : > { %v518_v43 = vadd.f32 %v517_v42, %v411_v40  ;;  %v414_v44 = vpop.f32.mrb[2].mxu0  ;;  %v918_v45 = vpop.f32.mrb[1].mxu1 }
  0xfd   : > { %v899_v46 = vpop.f32.mrb[3].mxu0  ;;  %v520_v47 = vpop.f32.mrb[2].mxu1 }
  0xfe   : > { %v919_v48 = vpop.f32.mrb[3].mxu1 }
 0x11a   : > { %v640_v58 = vpop.f32.mrb[4].mxu0 }
 0x11b   : > { %v646_v60 = vadd.f32 %v640_v58, %v518_v43  ;;  %v938_v62 = vpop.f32.mrb[5].mxu0 }
 0x11c   : > { %v643_v63 = vpop.f32.mrb[6].mxu0 }
 0x11d   : > { %v654_v0 = vadd.f32 %v850_v59, %v646_v60  ;;  %v939_v1 = vpop.f32.mrb[7].mxu0 }
 0x11f   : > { %v670_v2 = vadd.f32 %v668_v61, %v654_v0 }
 0x121   : > { %v671_v3 = vmax.f32 %v670_v2, 0.0 }
 0x123   : > { %v679_v4 = vrot.slane %v671_v3, %v667_v57 }
 0x125   : > { %v680_v5 = vcombine.high %v679_v4, %v679_v4  ;;  %v683_v6 = vpack.c.bf16 %v679_v4, %v679_v4 }
 0x127   : > { %v684_v7 = vpack.c.bf16 %v680_v5, %v680_v5  ;;  %685 = vst [vmem:[%s269_s8] sm:$0x1] %v683_v6 }
 0x129   : > { %686 = vst [vmem:[%s269_s8 + $0x1] sm:$0x1] %v684_v7 }
 0x12a PF: > { %s14_s17 = sadd.s32 1, %s1018_s17   ;;  %s1212_s15 = smov %s1014_s16 }
 0x12b   : > { %p11_p5 = scmp.ge.s32.totalorder %s14_s17, 4   ;;  %s1213_s16 = smov %s1215_s18 }
 0x12d   :  { %13 = sbr.rel (!%p11_p5) target bundleno = 2 (0x2), region = 71 }

// kernel: erfnet_forward.117
= control target key start
LH: loop header
LB: loop body
LE: loop exit
PB: predicated region body
PF: predicated region fallthrough
CT: control target
= control target key end

     0   :  { %s924_s12 = smov 0   ;;  %s926_s13 = smov 0   ;;  %s1078_s0 = inlined_call_operand.vmem [shape: bf16[2,34,2,128], index: 0, kind: input, shape index: {}]   ;;  %s1079_s1 = inlined_call_operand.vmem [shape: bf16[3,128,128], index: 1, kind: input, shape index: {}]   ;;  %s1080_s2 = inlined_call_operand.vmem [shape: f32[1,128], index: 2, kind: input, shape index: {}]   ;;  %s1081_s3 = inlined_call_operand.vmem [shape: bf16[2,2,2,128], index: 3, kind: output, shape index: {}]  }
   0x1   :  { %s928_s14 = smov 0  }
   0x2 LB: > { %s25_s15 = sadd.s32 1, %s894_s13  ;;  %p675_p0 = scmp.ge.s32.totalorder %s898_s14, 1  ;;  %s898_s14 = sphi %s928_s14, %s13_s14   ;;  %s894_s13 = sphi %s926_s13, %s1083_s13   ;;  %s890_s12 = sphi %s924_s12, %s1082_s12  }
   0x3   : > { %p27_p1 = scmp.ge.s32.totalorder %s25_s15, 2  ;;  %p155_p2 = scmp.lt.s32.totalorder %s898_s14, 3 }
   0x5   : > { %s1085_s15 = smov (%p27_p1, %s25_s15), 0  ;;  %p156_p3 = pnand %p675_p0, %p155_p2 }
   0x6   : > { %v852_v0 = vld [vmem:[%s1079_s1 + $0x40] sm:$0xff] (!%p156_p3)   ;;  %v900_v1 = vmov (!%p156_p3), 0.0   ;;  %v854_v3 = vld [vmem:[%s1079_s1 + $0x48] sm:$0xff] (!%p156_p3)   ;;  %vm901_vm0 = vmmov (!%p156_p3), 0   ;;  %p183_p4 = scmp.lt.s32.totalorder (!%p156_p3), %s890_s12, 1  ;;  %v856_v5 = vld [vmem:[%s1079_s1 + $0x50] sm:$0xff] (!%p156_p3)   ;;  %v243_v9 = vlaneseq (!%p156_p3) }
   0x7   : > { %159 = sbr.rel (%p156_p3) target bundleno = 296 (0x128), region = 32  ;;  %763 = vmatprep.subr.bf16.mxu0 (!%p156_p3), %v900_v1  ;;  %783 = vmatprep.subr.bf16.mxu1 (!%p156_p3), %v900_v1  ;;  %v853_v2 = vld [vmem:[%s1079_s1] sm:$0xff] (!%p156_p3)   ;;  %v855_v4 = vld [vmem:[%s1079_s1 + $0x8] sm:$0xff] (!%p156_p3)   ;;  %v857_v6 = vld [vmem:[%s1079_s1 + $0x10] sm:$0xff] (!%p156_p3)   ;;  %v902_v17 = vmov (!%p156_p3), 1966171168  }
   0x8   : > { %764 = vmatpush3.bf16.msra.mxu0 (!%p156_p3), %v852_v0  ;;  %779 = vmatprep.mubr.msk.bf16.mxu0 (!%p156_p3), %vm901_vm0, %v900_v1  ;;  %v858_v7 = vld [vmem:[%s1079_s1 + $0x58] sm:$0xff] (!%p156_p3)   ;;  %v860_v10 = vld [vmem:[%s1079_s1 + $0x60] sm:$0xff] (!%p156_p3)   ;;  %v862_v12 = vld [vmem:[%s1079_s1 + $0x68] sm:$0xff] (!%p156_p3)   ;;  %v997_v13 = vshrl.u32 (!%p156_p3), %v243_v9, 7  ;;  %v241_v18 = vunpack.c.l.s4 (!%p156_p3), %v902_v17  ;;  %v903_v55 = vmov (!%p156_p3), 1983009808  }
   0x9   : > { %784 = vmatpush3.bf16.msra.mxu1 (!%p156_p3), %v853_v2  ;;  %765 = vmatprep.subr.bf16.mxu0 (!%p156_p3), %v900_v1  ;;  %v859_v8 = vld [vmem:[%s1079_s1 + $0x18] sm:$0xff] (!%p156_p3)   ;;  %v861_v11 = vld [vmem:[%s1079_s1 + $0x20] sm:$0xff] (!%p156_p3)   ;;  %v863_v14 = vld [vmem:[%s1079_s1 + $0x28] sm:$0xff] (!%p156_p3)   ;;  %v584_v56 = vunpack.c.l.s4 (!%p156_p3), %v903_v55 }
   0xa   : > { %785 = vmatprep.subr.bf16.mxu1 (!%p156_p3), %v900_v1  ;;  %799 = vmatprep.mubr.msk.bf16.mxu1 (!%p156_p3), %vm901_vm0, %v900_v1  ;;  %v242_v20 = vunpack.c.0.s8 (!%p156_p3), %v241_v18  ;;  %v864_v24 = vld [vmem:[%s1079_s1 + $0x70] sm:$0xff] (!%p156_p3)   ;;  %v866_v28 = vld [vmem:[%s1079_s1 + $0x78] sm:$0xff] (!%p156_p3)   ;;  %v868_v33 = vld [vmem:[%s1079_s1 + $0x80] sm:$0xff] (!%p156_p3)  }
   0xb   : > { %v865_v26 = vld [vmem:[%s1079_s1 + $0x30] sm:$0xff] (!%p156_p3)   ;;  %v867_v30 = vld [vmem:[%s1079_s1 + $0x38] sm:$0xff] (!%p156_p3)   ;;  %v869_v34 = vld [vmem:[%s1079_s1 + $0x88] sm:$0xff] (!%p156_p3)   ;;  %v585_v57 = vunpack.c.0.s8 (!%p156_p3), %v584_v56 }
   0xc   : > { %766 = vmatpush3.bf16.msra.mxu0 (!%p156_p3), %v854_v3  ;;  %v245_v23 = vsub.s32 (!%p156_p3), %v242_v20, %v997_v13  ;;  %v870_v35 = vld [vmem:[%s1079_s1 + $0x90] sm:$0xff] (!%p156_p3)   ;;  %v871_v36 = vld [vmem:[%s1079_s1 + $0x98] sm:$0xff] (!%p156_p3)   ;;  %v872_v37 = vld [vmem:[%s1079_s1 + $0xa0] sm:$0xff] (!%p156_p3)  }
   0xd   : > { %786 = vmatpush3.bf16.msra.mxu1 (!%p156_p3), %v855_v4  ;;  %767 = vmatprep.subr.bf16.mxu0 (!%p156_p3), %v900_v1  ;;  %v873_v38 = vld [vmem:[%s1079_s1 + $0xa8] sm:$0xff] (!%p156_p3)   ;;  %v874_v42 = vld [vmem:[%s1079_s1 + $0xb0] sm:$0xff] (!%p156_p3)   ;;  %v875_v44 = vld [vmem:[%s1079_s1 + $0xb8] sm:$0xff] (!%p156_p3)   ;;  %v588_v0 = vsub.s32 (!%p156_p3), %v585_v57, %v997_v13 }
   0xe   : > { %s1087_s12 = smov (!%p183_p4, %s890_s12), 1  ;;  %787 = vmatprep.subr.bf16.mxu1 %v900_v1  ;;  %v733_v59 = vld [vmem:[%s1080_s2] ss:$0 sm:$0xff] }
   0xf   : > { %s823_s30 = smul.u32 34, %s1087_s12  ;;  %s676_s24 = sshll.u32 %s1087_s12, 1 }
  0x10   : > { %768 = vmatpush3.bf16.msra.mxu0 %v856_v5  ;;  %s196_s27 = scalar_lea.vmem %s1081_s3, %s676_s24 }
  0x11   : > { %788 = vmatpush3.bf16.msra.mxu1 %v857_v6  ;;  %769 = vmatprep.subr.bf16.mxu0 %v900_v1  ;;  %s987_s10 = scalar_lea.vmem %s1078_s0, %s823_s30 }
  0x12   : > { %789 = vmatprep.subr.bf16.mxu1 %v900_v1  ;;  %v200_v15 = vld [vmem:[%s987_s10 + $0x10] sm:$0x1]  ;;  %v201_v16 = vld [vmem:[%s987_s10 + $0x11] sm:$0x1]  ;;  %v198_v19 = vld [vmem:[%s987_s10] sm:$0x1] }
  0x13   : > { %v199_v21 = vld [vmem:[%s987_s10 + $0x1] sm:$0x1]  ;;  %v239_v22 = vcombine.low %v200_v15, %v201_v16  ;;  %v202_v39 = vld [vmem:[%s987_s10 + $0x20] sm:$0x1] }
  0x14   : > { %770 = vmatpush3.bf16.msra.mxu0 %v858_v7  ;;  %v345_v25 = vcombine.low %v198_v19, %v199_v21  ;;  %v203_v40 = vld [vmem:[%s987_s10 + $0x21] sm:$0x1] }
  0x15   : > { %790 = vmatpush3.bf16.msra.mxu1 %v859_v8  ;;  %771 = vmatprep.subr.bf16.mxu0 %v900_v1  ;;  %v246_v27 = vrot.slane %v239_v22, %v245_v23  ;;  %v468_v41 = vcombine.low %v202_v39, %v203_v40 }
  0x16   : > { %791 = vmatprep.subr.bf16.mxu1 %v900_v1  ;;  %v352_v29 = vrot.slane %v345_v25, %v245_v23 }
  0x17   : > { %v253_v31 = vrot.slane %v246_v27, %v245_v23  ;;  %v475_v43 = vrot.slane %v468_v41, %v245_v23 }
  0x18   : > { %772 = vmatpush3.bf16.msra.mxu0 %v860_v10  ;;  %v359_v32 = vrot.slane %v352_v29, %v245_v23 }
  0x19   : > { %792 = vmatpush3.bf16.msra.mxu1 %v861_v11  ;;  %773 = vmatprep.subr.bf16.mxu0 %v900_v1  ;;  %v482_v45 = vrot.slane %v475_v43, %v245_v23 }
  0x1a   : > { %793 = vmatprep.subr.bf16.mxu1 %v900_v1 }
  0x1c   : > { %774 = vmatpush3.bf16.msra.mxu0 %v862_v12 }
  0x1d   : > { %794 = vmatpush3.bf16.msra.mxu1 %v863_v14  ;;  %775 = vmatprep.subr.bf16.mxu0 %v900_v1 }
  0x1e   : > { %795 = vmatprep.subr.bf16.mxu1 %v900_v1 }
  0x20   : > { %776 = vmatpush3.bf16.msra.mxu0 %v864_v24 }
  0x21   : > { %796 = vmatpush3.bf16.msra.mxu1 %v865_v26  ;;  %777 = vmatprep.subr.bf16.mxu0 %v900_v1 }
  0x22   : > { %797 = vmatprep.subr.bf16.mxu1 %v900_v1 }
  0x24   : > { %778 = vmatpush3.bf16.msra.mxu0 %v866_v28 }
  0x25   : > { %798 = vmatpush3.bf16.msra.mxu1 %v867_v30  ;;  %803 = vmatprep.subr.bf16.mxu0 %v900_v1 }
  0x27   : > { %780 = vmatmul.mubr.bf16.vlgmr.msra.gmra.mrb[0].mxu0 %v253_v31 }
  0x28   : > { %800 = vmatmul.mubr.bf16.vlgmr.msra.gmra.mrb[0].mxu1 %v359_v32  ;;  %804 = vmatpush3.bf16.msra.mxu0 %v868_v33 }
  0x29   : > { %805 = vmatprep.subr.bf16.mxu0 %v900_v1  ;;  %819 = vmatprep.mubr.msk.bf16.mxu0 %vm901_vm0, %v900_v1 }
  0x2c   : > { %806 = vmatpush3.bf16.msra.mxu0 %v869_v34 }
  0x2d   : > { %807 = vmatprep.subr.bf16.mxu0 %v900_v1 }
  0x30   : > { %808 = vmatpush3.bf16.msra.mxu0 %v870_v35 }
  0x31   : > { %809 = vmatprep.subr.bf16.mxu0 %v900_v1 }
  0x34   : > { %810 = vmatpush3.bf16.msra.mxu0 %v871_v36 }
  0x35   : > { %811 = vmatprep.subr.bf16.mxu0 %v900_v1 }
  0x38   : > { %812 = vmatpush3.bf16.msra.mxu0 %v872_v37 }
  0x39   : > { %813 = vmatprep.subr.bf16.mxu0 %v900_v1 }
  0x3c   : > { %814 = vmatpush3.bf16.msra.mxu0 %v873_v38 }
  0x3d   : > { %815 = vmatprep.subr.bf16.mxu0 %v900_v1 }
  0x40   : > { %816 = vmatpush3.bf16.msra.mxu0 %v874_v42 }
  0x41   : > { %817 = vmatprep.subr.bf16.mxu0 %v900_v1 }
  0x44   : > { %818 = vmatpush3.bf16.msra.mxu0 %v875_v44 }
  0x47   : > { %820 = vmatmul.mubr.bf16.vlgmr.msra.gmra.mrb[4].mxu0 %v482_v45 }
  0xfa   : > { %v337_v46 = vpop.f32.mrb[0].mxu0 }
  0xfb   : > { %v781_v47 = vpop.f32.mrb[1].mxu0  ;;  %v443_v48 = vpop.f32.mrb[0].mxu1 }
  0xfc   : > { %v444_v49 = vadd.f32 %v443_v48, %v337_v46  ;;  %v340_v50 = vpop.f32.mrb[2].mxu0  ;;  %v801_v51 = vpop.f32.mrb[1].mxu1 }
  0xfd   : > { %v782_v52 = vpop.f32.mrb[3].mxu0  ;;  %v446_v53 = vpop.f32.mrb[2].mxu1 }
  0xfe   : > { %v802_v54 = vpop.f32.mrb[3].mxu1 }
 0x11a   : > { %v566_v58 = vpop.f32.mrb[4].mxu0 }
 0x11b   : > { %v572_v60 = vadd.f32 %v566_v58, %v444_v49  ;;  %v821_v61 = vpop.f32.mrb[5].mxu0 }
 0x11c   : > { %v569_v62 = vpop.f32.mrb[6].mxu0 }
 0x11d   : > { %v580_v63 = vadd.f32 %v733_v59, %v572_v60  ;;  %v822_v1 = vpop.f32.mrb[7].mxu0 }
 0x11f   : > { %v581_v2 = vmax.f32 %v580_v63, 0.0 }
 0x121   : > { %v589_v3 = vrot.slane %v581_v2, %v588_v0 }
 0x123   : > { %v590_v4 = vcombine.high %v589_v3, %v589_v3  ;;  %v593_v5 = vpack.c.bf16 %v589_v3, %v589_v3 }
 0x125   : > { %v594_v6 = vpack.c.bf16 %v590_v4, %v590_v4  ;;  %595 = vst [vmem:[%s196_s27] sm:$0x1] %v593_v5 }
 0x127   : > { %596 = vst [vmem:[%s196_s27 + $0x1] sm:$0x1] %v594_v6 }
 0x128 PF: > { %s13_s14 = sadd.s32 1, %s898_s14   ;;  %s1082_s12 = smov %s894_s13 }
 0x129   : > { %p10_p5 = scmp.ge.s32.totalorder %s13_s14, 4   ;;  %s1083_s13 = smov %s1085_s15 }
 0x12b   :  { %12 = sbr.rel (!%p10_p5) target bundleno = 2 (0x2), region = 64 }

// kernel: erfnet_forward.118
= control target key start
LH: loop header
LB: loop body
LE: loop exit
PB: predicated region body
PF: predicated region fallthrough
CT: control target
= control target key end

     0   :  { %s1049_s15 = smov 0   ;;  %s1051_s16 = smov 0   ;;  %s1207_s0 = inlined_call_operand.vmem [shape: bf16[2,2,34,128], index: 0, kind: input, shape index: {}]   ;;  %s1208_s1 = inlined_call_operand.vmem [shape: bf16[3,128,128], index: 1, kind: input, shape index: {}]   ;;  %s1209_s2 = inlined_call_operand.vmem [shape: f32[1,128], index: 2, kind: input, shape index: {}]   ;;  %s1210_s3 = inlined_call_operand.vmem [shape: bf16[2,2,2,128], index: 3, kind: input, shape index: {}]   ;;  %s1211_s4 = inlined_call_operand.vmem [shape: bf16[2,2,2,128], index: 4, kind: output, shape index: {}]  }
   0x1   :  { %s1053_s17 = smov 0  }
   0x2 LB: > { %s26_s18 = sadd.s32 1, %s1014_s16  ;;  %p790_p0 = scmp.ge.s32.totalorder %s1018_s17, 1  ;;  %s1018_s17 = sphi %s1053_s17, %s14_s17   ;;  %s1014_s16 = sphi %s1051_s16, %s1213_s16   ;;  %s1010_s15 = sphi %s1049_s15, %s1212_s15  }
   0x3   : > { %p28_p1 = scmp.ge.s32.totalorder %s26_s18, 2  ;;  %p200_p2 = scmp.lt.s32.totalorder %s1018_s17, 3 }
   0x5   : > { %s1215_s18 = smov (%p28_p1, %s26_s18), 0  ;;  %p201_p3 = pnand %p790_p0, %p200_p2 }
   0x6   : > { %v969_v0 = vld [vmem:[%s1208_s1 + $0x40] sm:$0xff] (!%p201_p3)   ;;  %v1020_v1 = vmov (!%p201_p3), 0.0   ;;  %v971_v3 = vld [vmem:[%s1208_s1 + $0x48] sm:$0xff] (!%p201_p3)   ;;  %vm1021_vm0 = vmmov (!%p201_p3), 0   ;;  %p243_p4 = scmp.lt.s32.totalorder (!%p201_p3), %s1010_s15, 1  ;;  %v973_v5 = vld [vmem:[%s1208_s1 + $0x50] sm:$0xff] (!%p201_p3)   ;;  %v317_v10 = vlaneseq (!%p201_p3) }
   0x7   : > { %204 = sbr.rel (%p201_p3) target bundleno = 298 (0x12a), region = 36  ;;  %880 = vmatprep.subr.bf16.mxu0 (!%p201_p3), %v1020_v1  ;;  %900 = vmatprep.subr.bf16.mxu1 (!%p201_p3), %v1020_v1  ;;  %v970_v2 = vld [vmem:[%s1208_s1] sm:$0xff] (!%p201_p3)   ;;  %v972_v4 = vld [vmem:[%s1208_s1 + $0x8] sm:$0xff] (!%p201_p3)   ;;  %v974_v6 = vld [vmem:[%s1208_s1 + $0x10] sm:$0xff] (!%p201_p3)   ;;  %v1022_v13 = vmov (!%p201_p3), 1966171168  }
   0x8   : > { %881 = vmatpush3.bf16.msra.mxu0 (!%p201_p3), %v969_v0  ;;  %896 = vmatprep.mubr.msk.bf16.mxu0 (!%p201_p3), %vm1021_vm0, %v1020_v1  ;;  %v975_v7 = vld [vmem:[%s1208_s1 + $0x58] sm:$0xff] (!%p201_p3)   ;;  %v977_v9 = vld [vmem:[%s1208_s1 + $0x60] sm:$0xff] (!%p201_p3)   ;;  %v979_v12 = vld [vmem:[%s1208_s1 + $0x68] sm:$0xff] (!%p201_p3)   ;;  %v315_v14 = vunpack.c.l.s4 (!%p201_p3), %v1022_v13  ;;  %v1126_v15 = vshrl.u32 (!%p201_p3), %v317_v10, 7  ;;  %v1023_v49 = vmov (!%p201_p3), 1983009808  }
   0x9   : > { %901 = vmatpush3.bf16.msra.mxu1 (!%p201_p3), %v970_v2  ;;  %882 = vmatprep.subr.bf16.mxu0 (!%p201_p3), %v1020_v1  ;;  %v976_v8 = vld [vmem:[%s1208_s1 + $0x18] sm:$0xff] (!%p201_p3)   ;;  %v978_v11 = vld [vmem:[%s1208_s1 + $0x20] sm:$0xff] (!%p201_p3)   ;;  %v980_v16 = vld [vmem:[%s1208_s1 + $0x28] sm:$0xff] (!%p201_p3)   ;;  %v663_v50 = vunpack.c.l.s4 (!%p201_p3), %v1023_v49 }
   0xa   : > { %902 = vmatprep.subr.bf16.mxu1 (!%p201_p3), %v1020_v1  ;;  %916 = vmatprep.mubr.msk.bf16.mxu1 (!%p201_p3), %vm1021_vm0, %v1020_v1  ;;  %v981_v17 = vld [vmem:[%s1208_s1 + $0x70] sm:$0xff] (!%p201_p3)   ;;  %v316_v18 = vunpack.c.0.s8 (!%p201_p3), %v315_v14  ;;  %v983_v24 = vld [vmem:[%s1208_s1 + $0x78] sm:$0xff] (!%p201_p3)   ;;  %v987_v29 = vld [vmem:[%s1208_s1 + $0x80] sm:$0xff] (!%p201_p3)  }
   0xb   : > { %v982_v22 = vld [vmem:[%s1208_s1 + $0x30] sm:$0xff] (!%p201_p3)   ;;  %v984_v26 = vld [vmem:[%s1208_s1 + $0x38] sm:$0xff] (!%p201_p3)   ;;  %v988_v30 = vld [vmem:[%s1208_s1 + $0x88] sm:$0xff] (!%p201_p3)   ;;  %v664_v55 = vunpack.c.0.s8 (!%p201_p3), %v663_v50 }
   0xc   : > { %883 = vmatpush3.bf16.msra.mxu0 (!%p201_p3), %v971_v3  ;;  %v319_v20 = vsub.s32 (!%p201_p3), %v316_v18, %v1126_v15  ;;  %v989_v31 = vld [vmem:[%s1208_s1 + $0x90] sm:$0xff] (!%p201_p3)   ;;  %v990_v32 = vld [vmem:[%s1208_s1 + $0x98] sm:$0xff] (!%p201_p3)   ;;  %v991_v33 = vld [vmem:[%s1208_s1 + $0xa0] sm:$0xff] (!%p201_p3)  }
   0xd   : > { %903 = vmatpush3.bf16.msra.mxu1 (!%p201_p3), %v972_v4  ;;  %884 = vmatprep.subr.bf16.mxu0 (!%p201_p3), %v1020_v1  ;;  %v992_v34 = vld [vmem:[%s1208_s1 + $0xa8] sm:$0xff] (!%p201_p3)   ;;  %v993_v36 = vld [vmem:[%s1208_s1 + $0xb0] sm:$0xff] (!%p201_p3)   ;;  %v994_v38 = vld [vmem:[%s1208_s1 + $0xb8] sm:$0xff] (!%p201_p3)   ;;  %v667_v57 = vsub.s32 (!%p201_p3), %v664_v55, %v1126_v15 }
   0xe   : > { %s1217_s15 = smov (!%p243_p4, %s1010_s15), 1  ;;  %904 = vmatprep.subr.bf16.mxu1 %v1020_v1  ;;  %v850_v59 = vld [vmem:[%s1209_s2] ss:$0 sm:$0xff] }
   0xf   : > { %s940_s9 = smul.u32 40, %s1217_s15 }
  0x10   : > { %885 = vmatpush3.bf16.msra.mxu0 %v973_v5 }
  0x11   : > { %905 = vmatpush3.bf16.msra.mxu1 %v974_v6  ;;  %886 = vmatprep.subr.bf16.mxu0 %v1020_v1  ;;  %s1120_s20 = scalar_lea.vmem %s1207_s0, %s940_s9 }
  0x12   : > { %906 = vmatprep.subr.bf16.mxu1 %v1020_v1  ;;  %v985_v19 = vld [vmem:[%s1120_s20 + $0x8] ss:$20 sps:$4 sm:$0xff]   ;;  %v986_v21 = vld [vmem:[%s1120_s20] ss:$20 sps:$4 sm:$0xff]  }
  0x13   : > { %v320_v23 = vrot.slane %v985_v19, %v319_v20  ;;  %v426_v25 = vrot.slane %v986_v21, %v319_v20  ;;  %v995_v35 = vld [vmem:[%s1120_s20 + $0x10] ss:$20 sps:$4 sm:$0x11]   ;;  %s792_s20 = sshll.u32 %s1217_s15, 1 }
  0x14   : > { %887 = vmatpush3.bf16.msra.mxu0 %v975_v7  ;;  %v549_v37 = vrot.slane %v995_v35, %v319_v20  ;;  %s260_s30 = scalar_lea.vmem %s1210_s3, %s792_s20  ;;  %s269_s8 = scalar_lea.vmem %s1211_s4, %s792_s20 }
  0x15   : > { %907 = vmatpush3.bf16.msra.mxu1 %v976_v8  ;;  %888 = vmatprep.subr.bf16.mxu0 %v1020_v1  ;;  %v327_v27 = vrot.slane %v320_v23, %v319_v20  ;;  %v433_v28 = vrot.slane %v426_v25, %v319_v20  ;;  %v655_v51 = vld [vmem:[%s260_s30] sm:$0x1]  ;;  %v656_v52 = vld [vmem:[%s260_s30 + $0x1] sm:$0x1] }
  0x16   : > { %908 = vmatprep.subr.bf16.mxu1 %v1020_v1  ;;  %v556_v39 = vrot.slane %v549_v37, %v319_v20  ;;  %v657_v53 = vunpack.c.l.bf16 %v655_v51  ;;  %v658_v54 = vunpack.c.l.bf16 %v656_v52 }
  0x18   : > { %889 = vmatpush3.bf16.msra.mxu0 %v977_v9  ;;  %v661_v56 = vcombine.low %v657_v53, %v658_v54 }
  0x19   : > { %909 = vmatpush3.bf16.msra.mxu1 %v978_v11  ;;  %890 = vmatprep.subr.bf16.mxu0 %v1020_v1 }
  0x1a   : > { %910 = vmatprep.subr.bf16.mxu1 %v1020_v1  ;;  %v668_v61 = vrot.slane %v661_v56, %v667_v57 }
  0x1c   : > { %891 = vmatpush3.bf16.msra.mxu0 %v979_v12 }
  0x1d   : > { %911 = vmatpush3.bf16.msra.mxu1 %v980_v16  ;;  %892 = vmatprep.subr.bf16.mxu0 %v1020_v1 }
  0x1e   : > { %912 = vmatprep.subr.bf16.mxu1 %v1020_v1 }
  0x20   : > { %893 = vmatpush3.bf16.msra.mxu0 %v981_v17 }
  0x21   : > { %913 = vmatpush3.bf16.msra.mxu1 %v982_v22  ;;  %894 = vmatprep.subr.bf16.mxu0 %v1020_v1 }
  0x22   : > { %914 = vmatprep.subr.bf16.mxu1 %v1020_v1 }
  0x24   : > { %895 = vmatpush3.bf16.msra.mxu0 %v983_v24 }
  0x25   : > { %915 = vmatpush3.bf16.msra.mxu1 %v984_v26  ;;  %920 = vmatprep.subr.bf16.mxu0 %v1020_v1 }
  0x27   : > { %897 = vmatmul.mubr.bf16.vlgmr.msra.gmra.mrb[0].mxu0 %v327_v27 }
  0x28   : > { %917 = vmatmul.mubr.bf16.vlgmr.msra.gmra.mrb[0].mxu1 %v433_v28  ;;  %921 = vmatpush3.bf16.msra.mxu0 %v987_v29 }
  0x29   : > { %922 = vmatprep.subr.bf16.mxu0 %v1020_v1  ;;  %936 = vmatprep.mubr.msk.bf16.mxu0 %vm1021_vm0, %v1020_v1 }
  0x2c   : > { %923 = vmatpush3.bf16.msra.mxu0 %v988_v30 }
  0x2d   : > { %924 = vmatprep.subr.bf16.mxu0 %v1020_v1 }
  0x30   : > { %925 = vmatpush3.bf16.msra.mxu0 %v989_v31 }
  0x31   : > { %926 = vmatprep.subr.bf16.mxu0 %v1020_v1 }
  0x34   : > { %927 = vmatpush3.bf16.msra.mxu0 %v990_v32 }
  0x35   : > { %928 = vmatprep.subr.bf16.mxu0 %v1020_v1 }
  0x38   : > { %929 = vmatpush3.bf16.msra.mxu0 %v991_v33 }
  0x39   : > { %930 = vmatprep.subr.bf16.mxu0 %v1020_v1 }
  0x3c   : > { %931 = vmatpush3.bf16.msra.mxu0 %v992_v34 }
  0x3d   : > { %932 = vmatprep.subr.bf16.mxu0 %v1020_v1 }
  0x40   : > { %933 = vmatpush3.bf16.msra.mxu0 %v993_v36 }
  0x41   : > { %934 = vmatprep.subr.bf16.mxu0 %v1020_v1 }
  0x44   : > { %935 = vmatpush3.bf16.msra.mxu0 %v994_v38 }
  0x47   : > { %937 = vmatmul.mubr.bf16.vlgmr.msra.gmra.mrb[4].mxu0 %v556_v39 }
  0xfa   : > { %v411_v40 = vpop.f32.mrb[0].mxu0 }
  0xfb   : > { %v898_v41 = vpop.f32.mrb[1].mxu0  ;;  %v517_v42 = vpop.f32.mrb[0].mxu1 }
  0xfc   : > { %v518_v43 = vadd.f32 %v517_v42, %v411_v40  ;;  %v414_v44 = vpop.f32.mrb[2].mxu0  ;;  %v918_v45 = vpop.f32.mrb[1].mxu1 }
  0xfd   : > { %v899_v46 = vpop.f32.mrb[3].mxu0  ;;  %v520_v47 = vpop.f32.mrb[2].mxu1 }
  0xfe   : > { %v919_v48 = vpop.f32.mrb[3].mxu1 }
 0x11a   : > { %v640_v58 = vpop.f32.mrb[4].mxu0 }
 0x11b   : > { %v646_v60 = vadd.f32 %v640_v58, %v518_v43  ;;  %v938_v62 = vpop.f32.mrb[5].mxu0 }
 0x11c   : > { %v643_v63 = vpop.f32.mrb[6].mxu0 }
 0x11d   : > { %v654_v0 = vadd.f32 %v850_v59, %v646_v60  ;;  %v939_v1 = vpop.f32.mrb[7].mxu0 }
 0x11f   : > { %v670_v2 = vadd.f32 %v668_v61, %v654_v0 }
 0x121   : > { %v671_v3 = vmax.f32 %v670_v2, 0.0 }
 0x123   : > { %v679_v4 = vrot.slane %v671_v3, %v667_v57 }
 0x125   : > { %v680_v5 = vcombine.high %v679_v4, %v679_v4  ;;  %v683_v6 = vpack.c.bf16 %v679_v4, %v679_v4 }
 0x127   : > { %v684_v7 = vpack.c.bf16 %v680_v5, %v680_v5  ;;  %685 = vst [vmem:[%s269_s8] sm:$0x1] %v683_v6 }
 0x129   : > { %686 = vst [vmem:[%s269_s8 + $0x1] sm:$0x1] %v684_v7 }
 0x12a PF: > { %s14_s17 = sadd.s32 1, %s1018_s17   ;;  %s1212_s15 = smov %s1014_s16 }
 0x12b   : > { %p11_p5 = scmp.ge.s32.totalorder %s14_s17, 4   ;;  %s1213_s16 = smov %s1215_s18 }
 0x12d   :  { %13 = sbr.rel (!%p11_p5) target bundleno = 2 (0x2), region = 71 }

// kernel: erfnet_forward.135
= control target key start
LH: loop header
LB: loop body
LE: loop exit
PB: predicated region body
PF: predicated region fallthrough
CT: control target
= control target key end

     0   :  { %s921_s1 = inlined_call_operand.vmem [shape: bf16[512,256], index: 1, kind: input, shape index: {}]   ;;  %s922_s0 = inlined_call_operand.vmem [shape: bf16[8,512], index: 0, kind: input, shape index: {}]   ;;  %s923_s2 = inlined_call_operand.vmem [shape: f32[1,256], index: 2, kind: input, shape index: {}]   ;;  %s924_s3 = inlined_call_operand.vmem [shape: bf16[8,256], index: 3, kind: output, shape index: {}]  }
   0x1   :  { %v597_v0 = vld [vmem:[%s921_s1 + $0x4] ss:$8 sps:$4 sm:$0xff]   ;;  %v601_v2 = vld [vmem:[%s921_s1] ss:$8 sps:$4 sm:$0xff]   ;;  %v603_v4 = vld [vmem:[%s921_s1 + $0x14] ss:$8 sps:$4 sm:$0xff]  }
   0x2   :  { %v599_v1 = vld [vmem:[%s921_s1 + $0x104] ss:$8 sps:$4 sm:$0xff]   ;;  %426 = vmatprep.subr.bf16.mxu1 %v597_v0  ;;  %v602_v3 = vld [vmem:[%s921_s1 + $0x100] ss:$8 sps:$4 sm:$0xff]   ;;  %v605_v5 = vld [vmem:[%s921_s1 + $0x114] ss:$8 sps:$4 sm:$0xff]  }
   0x3   :  { %467 = vmatprep.subr.bf16.mxu0 %v599_v1  ;;  %427 = vmatpush1.bf16.msra.mxu1 %v601_v2  ;;  %v607_v6 = vld [vmem:[%s921_s1 + $0x10] ss:$8 sps:$4 sm:$0xff]   ;;  %v609_v8 = vld [vmem:[%s921_s1 + $0x24] ss:$8 sps:$4 sm:$0xff]   ;;  %v613_v10 = vld [vmem:[%s921_s1 + $0x20] ss:$8 sps:$4 sm:$0xff]  }
   0x4   :  { %468 = vmatpush1.bf16.msra.mxu0 %v602_v3  ;;  %428 = vmatprep.subr.bf16.mxu1 %v603_v4  ;;  %v608_v7 = vld [vmem:[%s921_s1 + $0x110] ss:$8 sps:$4 sm:$0xff]   ;;  %v611_v9 = vld [vmem:[%s921_s1 + $0x124] ss:$8 sps:$4 sm:$0xff]   ;;  %v614_v11 = vld [vmem:[%s921_s1 + $0x120] ss:$8 sps:$4 sm:$0xff]  }
   0x5   :  { %469 = vmatprep.subr.bf16.mxu0 %v605_v5  ;;  %v615_v12 = vld [vmem:[%s921_s1 + $0x34] ss:$8 sps:$4 sm:$0xff]   ;;  %v619_v14 = vld [vmem:[%s921_s1 + $0x30] ss:$8 sps:$4 sm:$0xff]   ;;  %v621_v16 = vld [vmem:[%s921_s1 + $0x44] ss:$8 sps:$4 sm:$0xff]  }
   0x6   :  { %v617_v13 = vld [vmem:[%s921_s1 + $0x134] ss:$8 sps:$4 sm:$0xff]   ;;  %v620_v15 = vld [vmem:[%s921_s1 + $0x130] ss:$8 sps:$4 sm:$0xff]   ;;  %v623_v17 = vld [vmem:[%s921_s1 + $0x144] ss:$8 sps:$4 sm:$0xff]  }
   0x7   :  { %429 = vmatpush1.bf16.msra.mxu1 %v607_v6  ;;  %v625_v18 = vld [vmem:[%s921_s1 + $0x40] ss:$8 sps:$4 sm:$0xff]   ;;  %v627_v20 = vld [vmem:[%s921_s1 + $0x54] ss:$8 sps:$4 sm:$0xff]   ;;  %v631_v22 = vld [vmem:[%s921_s1 + $0x50] ss:$8 sps:$4 sm:$0xff]   ;;  %v82_v6 = vlaneseq }
   0x8   :  { %470 = vmatpush1.bf16.msra.mxu0 %v608_v7  ;;  %430 = vmatprep.subr.bf16.mxu1 %v609_v8  ;;  %v626_v19 = vld [vmem:[%s921_s1 + $0x140] ss:$8 sps:$4 sm:$0xff]   ;;  %v629_v21 = vld [vmem:[%s921_s1 + $0x154] ss:$8 sps:$4 sm:$0xff]   ;;  %v632_v23 = vld [vmem:[%s921_s1 + $0x150] ss:$8 sps:$4 sm:$0xff]  }
   0x9   :  { %471 = vmatprep.subr.bf16.mxu0 %v611_v9  ;;  %v633_v24 = vld [vmem:[%s921_s1 + $0x64] ss:$8 sps:$4 sm:$0xff]   ;;  %v637_v26 = vld [vmem:[%s921_s1 + $0x60] ss:$8 sps:$4 sm:$0xff]   ;;  %v639_v28 = vld [vmem:[%s921_s1 + $0x74] ss:$8 sps:$4 sm:$0xff]  }
   0xa   :  { %v635_v25 = vld [vmem:[%s921_s1 + $0x164] ss:$8 sps:$4 sm:$0xff]   ;;  %v638_v27 = vld [vmem:[%s921_s1 + $0x160] ss:$8 sps:$4 sm:$0xff]   ;;  %v641_v29 = vld [vmem:[%s921_s1 + $0x174] ss:$8 sps:$4 sm:$0xff]  }
   0xb   :  { %431 = vmatpush1.bf16.msra.mxu1 %v613_v10  ;;  %v643_v30 = vld [vmem:[%s921_s1 + $0x70] ss:$8 sps:$4 sm:$0xff]   ;;  %v645_v32 = vld [vmem:[%s921_s1 + $0x84] ss:$8 sps:$4 sm:$0xff]   ;;  %v649_v34 = vld [vmem:[%s921_s1 + $0x80] ss:$8 sps:$4 sm:$0xff]  }
   0xc   :  { %472 = vmatpush1.bf16.msra.mxu0 %v614_v11  ;;  %432 = vmatprep.subr.bf16.mxu1 %v615_v12  ;;  %v644_v31 = vld [vmem:[%s921_s1 + $0x170] ss:$8 sps:$4 sm:$0xff]   ;;  %v647_v33 = vld [vmem:[%s921_s1 + $0x184] ss:$8 sps:$4 sm:$0xff]   ;;  %v650_v35 = vld [vmem:[%s921_s1 + $0x180] ss:$8 sps:$4 sm:$0xff]  }
   0xd   :  { %473 = vmatprep.subr.bf16.mxu0 %v617_v13  ;;  %v651_v36 = vld [vmem:[%s921_s1 + $0x94] ss:$8 sps:$4 sm:$0xff]   ;;  %v655_v38 = vld [vmem:[%s921_s1 + $0x90] ss:$8 sps:$4 sm:$0xff]   ;;  %v657_v40 = vld [vmem:[%s921_s1 + $0xa4] ss:$8 sps:$4 sm:$0xff]  }
   0xe   :  { %v653_v37 = vld [vmem:[%s921_s1 + $0x194] ss:$8 sps:$4 sm:$0xff]   ;;  %v656_v39 = vld [vmem:[%s921_s1 + $0x190] ss:$8 sps:$4 sm:$0xff]   ;;  %v659_v41 = vld [vmem:[%s921_s1 + $0x1a4] ss:$8 sps:$4 sm:$0xff]  }
   0xf   :  { %433 = vmatpush1.bf16.msra.mxu1 %v619_v14  ;;  %v661_v42 = vld [vmem:[%s921_s1 + $0xa0] ss:$8 sps:$4 sm:$0xff]   ;;  %v663_v44 = vld [vmem:[%s921_s1 + $0xb4] ss:$8 sps:$4 sm:$0xff]   ;;  %v667_v49 = vld [vmem:[%s921_s1 + $0xb0] ss:$8 sps:$4 sm:$0xff]  }
  0x10   :  { %474 = vmatpush1.bf16.msra.mxu0 %v620_v15  ;;  %434 = vmatprep.subr.bf16.mxu1 %v621_v16  ;;  %v662_v43 = vld [vmem:[%s921_s1 + $0x1a0] ss:$8 sps:$4 sm:$0xff]   ;;  %v665_v45 = vld [vmem:[%s921_s1 + $0x1b4] ss:$8 sps:$4 sm:$0xff]   ;;  %v668_v50 = vld [vmem:[%s921_s1 + $0x1b0] ss:$8 sps:$4 sm:$0xff]  }
  0x11   :  { %475 = vmatprep.subr.bf16.mxu0 %v623_v17  ;;  %v14_v46 = vld [vmem:[%s922_s0] sm:$0xff]  ;;  %v15_v48 = vld [vmem:[%s922_s0 + $0x8] sm:$0xff]  ;;  %v675_v56 = vld [vmem:[%s921_s1 + $0xd4] ss:$8 sps:$4 sm:$0xff]   ;;  %v83_v7 = vshrl.u32 %v82_v6, 7 }
  0x12   :  { %v524_v47 = vcombine.high %v14_v46, %v14_v46  ;;  %v526_v51 = vcombine.high %v15_v48, %v15_v48  ;;  %v669_v52 = vld [vmem:[%s921_s1 + $0xc4] ss:$8 sps:$4 sm:$0xff]   ;;  %v673_v54 = vld [vmem:[%s921_s1 + $0xc0] ss:$8 sps:$4 sm:$0xff]   ;;  %v677_v57 = vld [vmem:[%s921_s1 + $0x1d4] ss:$8 sps:$4 sm:$0xff]   ;;  %v523_v4 = vcombine.low %v14_v46, %v14_v46  ;;  %v525_v5 = vcombine.low %v15_v48, %v15_v48 }
  0x13   :  { %435 = vmatpush1.bf16.msra.mxu1 %v625_v18  ;;  %v671_v53 = vld [vmem:[%s921_s1 + $0x1c4] ss:$8 sps:$4 sm:$0xff]   ;;  %v674_v55 = vld [vmem:[%s921_s1 + $0x1c0] ss:$8 sps:$4 sm:$0xff]   ;;  %v679_v58 = vld [vmem:[%s921_s1 + $0xd0] ss:$8 sps:$4 sm:$0xff]  }
  0x14   :  { %476 = vmatpush1.bf16.msra.mxu0 %v626_v19  ;;  %436 = vmatprep.subr.bf16.mxu1 %v627_v20  ;;  %v680_v59 = vld [vmem:[%s921_s1 + $0x1d0] ss:$8 sps:$4 sm:$0xff]   ;;  %v681_v60 = vld [vmem:[%s921_s1 + $0xe4] ss:$8 sps:$4 sm:$0xff]   ;;  %v685_v62 = vld [vmem:[%s921_s1 + $0xe0] ss:$8 sps:$4 sm:$0xff]  }
  0x15   :  { %477 = vmatprep.subr.bf16.mxu0 %v629_v21  ;;  %458 = vmatprep.mubr.bf16.mxu1 %v524_v47  ;;  %v683_v61 = vld [vmem:[%s921_s1 + $0x1e4] ss:$8 sps:$4 sm:$0xff]   ;;  %v686_v63 = vld [vmem:[%s921_s1 + $0x1e0] ss:$8 sps:$4 sm:$0xff]   ;;  %v687_v0 = vld [vmem:[%s921_s1 + $0xf4] ss:$8 sps:$4 sm:$0xff]  }
  0x16   :  { %499 = vmatprep.mubr.bf16.mxu0 %v526_v51  ;;  %v689_v1 = vld [vmem:[%s921_s1 + $0x1f4] ss:$8 sps:$4 sm:$0xff]   ;;  %v691_v2 = vld [vmem:[%s921_s1 + $0xf0] ss:$8 sps:$4 sm:$0xff]   ;;  %v84_v8 = vsub.s32 0, %v83_v7  ;;  %v88_v10 = vsub.s32 1, %v83_v7 }
  0x17   :  { %437 = vmatpush1.bf16.msra.mxu1 %v631_v22  ;;  %v692_v3 = vld [vmem:[%s921_s1 + $0x1f0] ss:$8 sps:$4 sm:$0xff]   ;;  %v80_v9 = vld [vmem:[%s923_s2] sm:$0x3] }
  0x18   :  { %478 = vmatpush1.bf16.msra.mxu0 %v632_v23  ;;  %438 = vmatprep.subr.bf16.mxu1 %v633_v24  ;;  %v85_v11 = vrot.slane %v80_v9, %v84_v8  ;;  %v89_v12 = vrot.slane %v80_v9, %v88_v10 }
  0x19   :  { %479 = vmatprep.subr.bf16.mxu0 %v635_v25 }
  0x1b   :  { %439 = vmatpush1.bf16.msra.mxu1 %v637_v26 }
  0x1c   :  { %480 = vmatpush1.bf16.msra.mxu0 %v638_v27  ;;  %440 = vmatprep.subr.bf16.mxu1 %v639_v28 }
  0x1d   :  { %481 = vmatprep.subr.bf16.mxu0 %v641_v29 }
  0x1f   :  { %441 = vmatpush1.bf16.msra.mxu1 %v643_v30 }
  0x20   :  { %482 = vmatpush1.bf16.msra.mxu0 %v644_v31  ;;  %442 = vmatprep.subr.bf16.mxu1 %v645_v32 }
  0x21   :  { %483 = vmatprep.subr.bf16.mxu0 %v647_v33 }
  0x23   :  { %443 = vmatpush1.bf16.msra.mxu1 %v649_v34 }
  0x24   :  { %484 = vmatpush1.bf16.msra.mxu0 %v650_v35  ;;  %444 = vmatprep.subr.bf16.mxu1 %v651_v36 }
  0x25   :  { %485 = vmatprep.subr.bf16.mxu0 %v653_v37 }
  0x27   :  { %445 = vmatpush1.bf16.msra.mxu1 %v655_v38 }
  0x28   :  { %486 = vmatpush1.bf16.msra.mxu0 %v656_v39  ;;  %446 = vmatprep.subr.bf16.mxu1 %v657_v40 }
  0x29   :  { %487 = vmatprep.subr.bf16.mxu0 %v659_v41 }
  0x2b   :  { %447 = vmatpush1.bf16.msra.mxu1 %v661_v42 }
  0x2c   :  { %488 = vmatpush1.bf16.msra.mxu0 %v662_v43  ;;  %448 = vmatprep.subr.bf16.mxu1 %v663_v44 }
  0x2d   :  { %489 = vmatprep.subr.bf16.mxu0 %v665_v45 }
  0x2f   :  { %449 = vmatpush1.bf16.msra.mxu1 %v667_v49 }
  0x30   :  { %490 = vmatpush1.bf16.msra.mxu0 %v668_v50  ;;  %450 = vmatprep.subr.bf16.mxu1 %v669_v52 }
  0x31   :  { %491 = vmatprep.subr.bf16.mxu0 %v671_v53 }
  0x33   :  { %451 = vmatpush1.bf16.msra.mxu1 %v673_v54 }
  0x34   :  { %492 = vmatpush1.bf16.msra.mxu0 %v674_v55  ;;  %452 = vmatprep.subr.bf16.mxu1 %v675_v56 }
  0x35   :  { %493 = vmatprep.subr.bf16.mxu0 %v677_v57 }
  0x37   :  { %453 = vmatpush1.bf16.msra.mxu1 %v679_v58 }
  0x38   :  { %494 = vmatpush1.bf16.msra.mxu0 %v680_v59  ;;  %454 = vmatprep.subr.bf16.mxu1 %v681_v60 }
  0x39   :  { %495 = vmatprep.subr.bf16.mxu0 %v683_v61 }
  0x3b   :  { %455 = vmatpush1.bf16.msra.mxu1 %v685_v62 }
  0x3c   :  { %496 = vmatpush1.bf16.msra.mxu0 %v686_v63  ;;  %456 = vmatprep.subr.bf16.mxu1 %v687_v0 }
  0x3d   :  { %497 = vmatprep.subr.bf16.mxu0 %v689_v1 }
  0x3f   :  { %457 = vmatpush1.bf16.msra.mxu1 %v691_v2 }
  0x40   :  { %498 = vmatpush1.bf16.msra.mxu0 %v692_v3 }
  0x42   :  { %459 = vmatmul.mubr.bf16.vlgmr.msra.gmra.mrb[0].mxu1 %v523_v4 }
  0x43   :  { %500 = vmatmul.mubr.bf16.vlgmr.msra.gmra.mrb[0].mxu0 %v525_v5 }
 0x115   :  { %v460_v13 = vpop.f32.mrb[0].mxu1 }
 0x116   :  { %v501_v14 = vpop.f32.mrb[0].mxu0  ;;  %v461_v15 = vadd.f32 %v460_v13, %v85_v11  ;;  %v462_v16 = vpop.f32.mrb[1].mxu1 }
 0x117   :  { %v503_v17 = vpop.f32.mrb[1].mxu0  ;;  %v463_v18 = vadd.f32 %v462_v16, %v89_v12  ;;  %v464_v19 = vpop.f32.mrb[2].mxu1 }
 0x118   :  { %v505_v20 = vpop.f32.mrb[2].mxu0  ;;  %v502_v21 = vadd.f32 %v501_v14, %v461_v15  ;;  %v465_v22 = vpop.f32.mrb[3].mxu1 }
 0x119   :  { %v506_v23 = vpop.f32.mrb[3].mxu0  ;;  %v504_v24 = vadd.f32 %v503_v17, %v463_v18 }
 0x11a   :  { %v508_v25 = vmax.f32 %v502_v21, 0.0 }
 0x11b   :  { %v509_v26 = vmax.f32 %v504_v24, 0.0 }
 0x11d   :  { %v592_v27 = vpack.c.bf16 %v509_v26, %v508_v25 }
 0x11f   :  { %518 = vst [vmem:[%s924_s3] sm:$0xff] %v592_v27 }

// kernel: erfnet_forward.144
= control target key start
LH: loop header
LB: loop body
LE: loop exit
PB: predicated region body
PF: predicated region fallthrough
CT: control target
= control target key end

     0   :  { %vm243_vm0 = vcmask 519168   ;;  %s442_s1 = inlined_call_operand.vmem [shape: bf16[256,64], index: 1, kind: input, shape index: {}]   ;;  %s443_s0 = inlined_call_operand.vmem [shape: bf16[32,256], index: 0, kind: input, shape index: {}]   ;;  %s444_s2 = inlined_call_operand.vmem [shape: f32[1,64], index: 2, kind: input, shape index: {}]   ;;  %s445_s3 = inlined_call_operand.vmem [shape: bf16[32,64], index: 3, kind: output, shape index: {}]  }
   0x1   :  { %v325_v0 = vld [vmem:[%s442_s1 + $0x40] sm:$0xff]   ;;  %v327_v2 = vld [vmem:[%s442_s1 + $0x48] sm:$0xff]   ;;  %v329_v4 = vld [vmem:[%s442_s1 + $0x50] sm:$0xff]  }
   0x2   :  { %v326_v1 = vld [vmem:[%s442_s1] sm:$0xff]   ;;  %281 = vmatprep.subr.bf16.mxu0 %v325_v0  ;;  %309 = vmatprep.subr.bf16.mxu1 %v325_v0  ;;  %v328_v3 = vld [vmem:[%s442_s1 + $0x8] sm:$0xff]   ;;  %v330_v5 = vld [vmem:[%s442_s1 + $0x10] sm:$0xff]  }
   0x3   :  { %282 = vmatpush3.bf16.msra.mxu0 %v326_v1  ;;  %317 = vmatpush3.bf16.msra.mxu1 %v326_v1  ;;  %v331_v6 = vld [vmem:[%s442_s1 + $0x58] sm:$0xff]   ;;  %v333_v8 = vld [vmem:[%s442_s1 + $0x60] sm:$0xff]   ;;  %v335_v10 = vld [vmem:[%s442_s1 + $0x68] sm:$0xff]  }
   0x4   :  { %283 = vmatprep.subr.bf16.mxu0 %v327_v2  ;;  %310 = vmatprep.subr.bf16.mxu1 %v327_v2  ;;  %v332_v7 = vld [vmem:[%s442_s1 + $0x18] sm:$0xff]   ;;  %v334_v9 = vld [vmem:[%s442_s1 + $0x20] sm:$0xff]   ;;  %v336_v13 = vld [vmem:[%s442_s1 + $0x28] sm:$0xff]  }
   0x5   :  { %v343_v11 = vld [vmem:[%s443_s0 + $0x4] ss:$8 sps:$4 sm:$0xff]   ;;  %v346_v12 = vld [vmem:[%s443_s0 + $0x14] ss:$8 sps:$4 sm:$0xff]   ;;  %v341_v18 = vld [vmem:[%s443_s0] ss:$8 sps:$4 sm:$0xff]  }
   0x6   :  { %v337_v14 = vld [vmem:[%s442_s1 + $0x70] sm:$0xff]   ;;  %206 = vmatprep.mubr.bf16.mxu0 %v343_v11  ;;  %214 = vmatprep.mubr.bf16.mxu1 %v346_v12  ;;  %v339_v16 = vld [vmem:[%s442_s1 + $0x78] sm:$0xff]   ;;  %v252_v22 = vld [vmem:[%s444_s2] ss:$0 sm:$0xff] }
   0x7   :  { %284 = vmatpush3.bf16.msra.mxu0 %v328_v3  ;;  %318 = vmatpush3.bf16.msra.mxu1 %v328_v3  ;;  %v338_v15 = vld [vmem:[%s442_s1 + $0x30] sm:$0xff]   ;;  %v340_v17 = vld [vmem:[%s442_s1 + $0x38] sm:$0xff]  }
   0x8   :  { %285 = vmatprep.subr.bf16.mxu0 %v329_v4  ;;  %311 = vmatprep.subr.bf16.mxu1 %v329_v4  ;;  %v344_v19 = vld [vmem:[%s443_s0 + $0x10] ss:$8 sps:$4 sm:$0xff]  }
   0xb   :  { %286 = vmatpush3.bf16.msra.mxu0 %v330_v5  ;;  %319 = vmatpush3.bf16.msra.mxu1 %v330_v5 }
   0xc   :  { %287 = vmatprep.subr.bf16.mxu0 %v331_v6  ;;  %312 = vmatprep.subr.bf16.mxu1 %v331_v6 }
   0xf   :  { %288 = vmatpush3.bf16.msra.mxu0 %v332_v7  ;;  %320 = vmatpush3.bf16.msra.mxu1 %v332_v7 }
  0x10   :  { %289 = vmatprep.subr.bf16.mxu0 %v333_v8  ;;  %313 = vmatprep.subr.bf16.mxu1 %v333_v8 }
  0x13   :  { %290 = vmatpush3.bf16.msra.mxu0 %v334_v9  ;;  %321 = vmatpush3.bf16.msra.mxu1 %v334_v9 }
  0x14   :  { %291 = vmatprep.subr.bf16.mxu0 %v335_v10  ;;  %314 = vmatprep.subr.bf16.mxu1 %v335_v10 }
  0x17   :  { %292 = vmatpush3.bf16.msra.mxu0 %v336_v13  ;;  %322 = vmatpush3.bf16.msra.mxu1 %v336_v13 }
  0x18   :  { %293 = vmatprep.subr.bf16.mxu0 %v337_v14  ;;  %315 = vmatprep.subr.bf16.mxu1 %v337_v14 }
  0x1b   :  { %294 = vmatpush3.bf16.msra.mxu0 %v338_v15  ;;  %323 = vmatpush3.bf16.msra.mxu1 %v338_v15 }
  0x1c   :  { %295 = vmatprep.subr.bf16.mxu0 %v339_v16  ;;  %316 = vmatprep.subr.bf16.mxu1 %v339_v16 }
  0x1f   :  { %296 = vmatpush3.bf16.msra.mxu0 %v340_v17  ;;  %324 = vmatpush3.bf16.msra.mxu1 %v340_v17 }
  0x22   :  { %207 = vmatmul.mubr.bf16.vlgmr.msra.gmra.mrb[0].mxu0 %v341_v18  ;;  %215 = vmatmul.mubr.bf16.vlgmr.msra.gmra.mrb[0].mxu1 %v344_v19 }
  0xf5   :  { %v297_v20 = vpop.f32.mrb[0].mxu0  ;;  %v303_v21 = vpop.f32.mrb[0].mxu1 }
  0xf6   :  { %v298_v23 = vpop.f32.mrb[1].mxu0  ;;  %v304_v24 = vpop.f32.mrb[1].mxu1 }
  0xf7   :  { %v299_v25 = vadd.f32 %v298_v23, %v297_v20  ;;  %v305_v26 = vadd.f32 %v304_v24, %v303_v21  ;;  %v300_v27 = vpop.f32.mrb[2].mxu0  ;;  %v306_v28 = vpop.f32.mrb[2].mxu1 }
  0xf8   :  { %v301_v29 = vpop.f32.mrb[3].mxu0  ;;  %v307_v30 = vpop.f32.mrb[3].mxu1 }
  0xf9   :  { %v209_v31 = vadd.f32 %v299_v25, %v252_v22  ;;  %v217_v32 = vadd.f32 %v305_v26, %v252_v22  ;;  %v302_v33 = vadd.f32 %v301_v29, %v300_v27  ;;  %v308_v34 = vadd.f32 %v307_v30, %v306_v28 }
  0xfb   :  { %v223_v35 = vmax.f32 %v209_v31, 0.0  ;;  %v225_v36 = vmax.f32 %v217_v32, 0.0  ;;  %v212_v37 = vadd.f32 %v302_v33, %v252_v22  ;;  %v220_v38 = vadd.f32 %v308_v34, %v252_v22 }
  0xfd   :  { %v277_v39 = vpack.c.bf16 %v223_v35, %v223_v35  ;;  %v279_v40 = vpack.c.bf16 %v225_v36, %v225_v36  ;;  %v224_v41 = vmax.f32 %v212_v37, 0.0  ;;  %v226_v42 = vmax.f32 %v220_v38, 0.0 }
  0xff   :  { %244 = vst.msk [vmem:[%s445_s3] sm:$0xf] %vm243_vm0, %v277_v39  ;;  %246 = vst.msk [vmem:[%s445_s3 + $0x8] sm:$0xf] %vm243_vm0, %v279_v40  ;;  %v278_v43 = vpack.c.bf16 %v224_v41, %v224_v41  ;;  %v280_v44 = vpack.c.bf16 %v226_v42, %v226_v42 }
 0x101   :  { %245 = vst.msk [vmem:[%s445_s3 + $0x4] sm:$0xf] %vm243_vm0, %v278_v43  ;;  %247 = vst.msk [vmem:[%s445_s3 + $0xc] sm:$0xf] %vm243_vm0, %v280_v44 }

// kernel: erfnet_forward.153
= control target key start
LH: loop header
LB: loop body
LE: loop exit
PB: predicated region body
PF: predicated region fallthrough
CT: control target
= control target key end

     0   :  { %vm86_vm0 = vcmask 130048   ;;  %s406_s1 = inlined_call_operand.vmem [shape: bf16[16,16], index: 1, kind: input, shape index: {}]   ;;  %s407_s0 = inlined_call_operand.vmem [shape: bf16[128,16], index: 0, kind: input, shape index: {}]   ;;  %s408_s2 = inlined_call_operand.vmem [shape: f32[1,16], index: 2, kind: input, shape index: {}]   ;;  %s409_s3 = inlined_call_operand.vmem [shape: f32[128,16], index: 3, kind: output, shape index: {}]  }
   0x1   :  { %v275_v0 = vld [vmem:[%s406_s1] sm:$0xff]   ;;  %v278_v3 = vld [vmem:[%s407_s0 + $0x8] sm:$0xff]   ;;  %v280_v5 = vld [vmem:[%s407_s0 + $0x10] sm:$0xff]  }
   0x2   :  { %v276_v1 = vld [vmem:[%s407_s0] sm:$0xff]   ;;  %255 = vmatprep.subr.bf16.mxu0 %v275_v0  ;;  %273 = vmatprep.subr.bf16.mxu1 %v275_v0  ;;  %v279_v4 = vld [vmem:[%s407_s0 + $0x28] sm:$0xff]   ;;  %v281_v6 = vld [vmem:[%s407_s0 + $0x30] sm:$0xff]  }
   0x3   :  { %v277_v2 = vld [vmem:[%s407_s0 + $0x20] sm:$0xff]   ;;  %256 = vmatpush3.bf16.msra.mxu0 %v275_v0  ;;  %274 = vmatpush3.bf16.msra.mxu1 %v275_v0  ;;  %v282_v7 = vld [vmem:[%s407_s0 + $0x18] sm:$0xff]  }
   0x4   :  { %257 = vmatprep.mubr.msk.bf16.mxu0 %vm86_vm0, %v276_v1  ;;  %265 = vmatprep.mubr.msk.bf16.mxu1 %vm86_vm0, %v277_v2  ;;  %v283_v8 = vld [vmem:[%s407_s0 + $0x38] sm:$0xff]   ;;  %v228_v9 = vld [vmem:[%s408_s2] ss:$0 sm:$0xff] }
   0x6   :  { %258 = vmatmul.mubr.msk.bf16.vlgmr.msra.gmra.mrb[0].mxu0 %vm86_vm0, %v278_v3  ;;  %266 = vmatmul.mubr.msk.bf16.vlgmr.msra.gmra.mrb[0].mxu1 %vm86_vm0, %v279_v4 }
   0x7   :  { %261 = vmatprep.mubr.msk.bf16.mxu0 %vm86_vm0, %v280_v5  ;;  %269 = vmatprep.mubr.msk.bf16.mxu1 %vm86_vm0, %v281_v6 }
   0xe   :  { %262 = vmatmul.mubr.msk.bf16.gmra.mrb[4].mxu0 %vm86_vm0, %v282_v7  ;;  %270 = vmatmul.mubr.msk.bf16.gmra.mrb[4].mxu1 %vm86_vm0, %v283_v8 }
  0xd9   :  { %v259_v10 = vpop.f32.mrb[0].mxu0  ;;  %v267_v11 = vpop.f32.mrb[0].mxu1 }
  0xda   :  { %v154_v12 = vadd.f32 %v259_v10, %v228_v9  ;;  %v186_v13 = vadd.f32 %v267_v11, %v228_v9  ;;  %v145_v14 = vpop.f32.mrb[1].mxu0  ;;  %v177_v15 = vpop.f32.mrb[1].mxu1 }
  0xdb   :  { %v146_v16 = vadd.f32 %v228_v9, %v145_v14  ;;  %v178_v17 = vadd.f32 %v228_v9, %v177_v15  ;;  %v260_v18 = vpop.f32.mrb[2].mxu0  ;;  %v268_v19 = vpop.f32.mrb[2].mxu1 }
  0xdc   :  { %210 = vst.msk [vmem:[%s409_s3 + $0x10] sm:$0xff] %vm86_vm0, %v154_v12  ;;  %218 = vst.msk [vmem:[%s409_s3 + $0x50] sm:$0xff] %vm86_vm0, %v186_v13  ;;  %v157_v20 = vadd.f32 %v260_v18, %v228_v9  ;;  %v189_v21 = vadd.f32 %v268_v19, %v228_v9  ;;  %v148_v22 = vpop.f32.mrb[3].mxu0  ;;  %v180_v23 = vpop.f32.mrb[3].mxu1 }
  0xdd   :  { %208 = vst.msk [vmem:[%s409_s3] sm:$0xff] %vm86_vm0, %v146_v16  ;;  %216 = vst.msk [vmem:[%s409_s3 + $0x40] sm:$0xff] %vm86_vm0, %v178_v17  ;;  %v149_v24 = vadd.f32 %v228_v9, %v148_v22  ;;  %v181_v25 = vadd.f32 %v228_v9, %v180_v23 }
  0xde   :  { %211 = vst.msk [vmem:[%s409_s3 + $0x18] sm:$0xff] %vm86_vm0, %v157_v20  ;;  %219 = vst.msk [vmem:[%s409_s3 + $0x58] sm:$0xff] %vm86_vm0, %v189_v21 }
  0xdf   :  { %209 = vst.msk [vmem:[%s409_s3 + $0x8] sm:$0xff] %vm86_vm0, %v149_v24  ;;  %217 = vst.msk [vmem:[%s409_s3 + $0x48] sm:$0xff] %vm86_vm0, %v181_v25 }
  0xe1   :  { %v263_v26 = vpop.f32.mrb[4].mxu0  ;;  %v271_v27 = vpop.f32.mrb[4].mxu1 }
  0xe2   :  { %v170_v28 = vadd.f32 %v263_v26, %v228_v9  ;;  %v202_v29 = vadd.f32 %v271_v27, %v228_v9  ;;  %v161_v30 = vpop.f32.mrb[5].mxu0  ;;  %v193_v31 = vpop.f32.mrb[5].mxu1 }
  0xe3   :  { %v162_v32 = vadd.f32 %v228_v9, %v161_v30  ;;  %v194_v33 = vadd.f32 %v228_v9, %v193_v31  ;;  %v264_v34 = vpop.f32.mrb[6].mxu0  ;;  %v272_v35 = vpop.f32.mrb[6].mxu1 }
  0xe4   :  { %214 = vst.msk [vmem:[%s409_s3 + $0x30] sm:$0xff] %vm86_vm0, %v170_v28  ;;  %222 = vst.msk [vmem:[%s409_s3 + $0x70] sm:$0xff] %vm86_vm0, %v202_v29  ;;  %v173_v36 = vadd.f32 %v264_v34, %v228_v9  ;;  %v205_v37 = vadd.f32 %v272_v35, %v228_v9  ;;  %v164_v38 = vpop.f32.mrb[7].mxu0  ;;  %v196_v39 = vpop.f32.mrb[7].mxu1 }
  0xe5   :  { %212 = vst.msk [vmem:[%s409_s3 + $0x20] sm:$0xff] %vm86_vm0, %v162_v32  ;;  %220 = vst.msk [vmem:[%s409_s3 + $0x60] sm:$0xff] %vm86_vm0, %v194_v33  ;;  %v165_v40 = vadd.f32 %v228_v9, %v164_v38  ;;  %v197_v41 = vadd.f32 %v228_v9, %v196_v39 }
  0xe6   :  { %215 = vst.msk [vmem:[%s409_s3 + $0x38] sm:$0xff] %vm86_vm0, %v173_v36  ;;  %223 = vst.msk [vmem:[%s409_s3 + $0x78] sm:$0xff] %vm86_vm0, %v205_v37 }
  0xe7   :  { %213 = vst.msk [vmem:[%s409_s3 + $0x28] sm:$0xff] %vm86_vm0, %v165_v40  ;;  %221 = vst.msk [vmem:[%s409_s3 + $0x68] sm:$0xff] %vm86_vm0, %v197_v41 }

// kernel: erfnet_forward.148
= control target key start
LH: loop header
LB: loop body
LE: loop exit
PB: predicated region body
PF: predicated region fallthrough
CT: control target
= control target key end

     0   :  { %s1151_s15 = smov 0   ;;  %s1153_s16 = smov 0   ;;  %s1329_s0 = inlined_call_operand.vmem [shape: bf16[2,8,10,16], index: 0, kind: input, shape index: {}]   ;;  %s1330_s1 = inlined_call_operand.vmem [shape: bf16[3,16,16], index: 1, kind: input, shape index: {}]   ;;  %s1331_s2 = inlined_call_operand.vmem [shape: f32[1,16], index: 2, kind: input, shape index: {}]   ;;  %s1332_s3 = inlined_call_operand.vmem [shape: bf16[2,8,8,16], index: 3, kind: input, shape index: {}]   ;;  %s1333_s4 = inlined_call_operand.vmem [shape: bf16[2,8,8,16], index: 4, kind: output, shape index: {}]  }
   0x1   :  { %s1155_s17 = smov 0  }
   0x2 LB: > { %s26_s18 = sadd.s32 1, %s1120_s16  ;;  %p937_p0 = scmp.ge.s32.totalorder %s1124_s17, 1  ;;  %s1124_s17 = sphi %s1155_s17, %s14_s17   ;;  %s1120_s16 = sphi %s1153_s16, %s1339_s16   ;;  %s1116_s15 = sphi %s1151_s15, %s1338_s15  }
   0x3   : > { %p28_p1 = scmp.ge.s32.totalorder %s26_s18, 2  ;;  %p201_p2 = scmp.lt.s32.totalorder %s1124_s17, 3 }
   0x5   : > { %s1341_s18 = smov (%p28_p1, %s26_s18), 0  ;;  %p202_p3 = pnand %p937_p0, %p201_p2 }
   0x6   : > { %v1172_v0 = vld [vmem:[%s1330_s1] sm:$0xff] (!%p202_p3)   ;;  %p246_p4 = scmp.lt.s32.totalorder (!%p202_p3), %s1116_s15, 1  ;;  %v1098_v1 = vld [vmem:[%s1330_s1 + $0x8] sm:$0xff] (!%p202_p3)   ;;  %v1099_v2 = vld [vmem:[%s1330_s1 + $0x10] sm:$0xff] (!%p202_p3)   ;;  %vm431_vm0 = vcmask (!%p202_p3), 130048   ;;  %vm620_vm3 = vcmask (!%p202_p3), 1042432  }
   0x7   : > { %205 = sbr.rel (%p202_p3) target bundleno = 285 (0x11d), region = 36  ;;  %1033 = vmatprep.subr.bf16.mxu0 (!%p202_p3), %v1172_v0  ;;  %1023 = vmatprep.subr.bf16.mxu1 (!%p202_p3), %v1098_v1  ;;  %vm295_vm1 = vsmask.f32 (!%p202_p3), 3328  ;;  %vm296_vm2 = vsmask.f32 (!%p202_p3), 7440  ;;  %vm621_vm4 = vcmask (!%p202_p3), 1046532  }
   0x8   : > { %1034 = vmatpush3.bf16.msra.mxu0 (!%p202_p3), %v1172_v0  ;;  %1024 = vmatpush3.bf16.msra.mxu1 (!%p202_p3), %v1098_v1  ;;  %vm1203_vm5 = vmor (!%p202_p3), %vm295_vm1, %vm296_vm2  ;;  %vm816_vm7 = vcmask (!%p202_p3), 125952  }
   0x9   : > { %1043 = vmatprep.subr.bf16.mxu0 (!%p202_p3), %v1099_v2  ;;  %1053 = vmatprep.subr.bf16.mxu1 (!%p202_p3), %v1172_v0  ;;  %vm1209_vm6 = vmor (!%p202_p3), %vm620_vm3, %vm621_vm4 }
   0xe   : > { %s1343_s15 = smov (!%p246_p4, %s1116_s15), 1 }
   0xf   : > { %s986_s25 = sshll.u32 %s1343_s15, 6  ;;  %s987_s29 = sshll.u32 %s1343_s15, 5 }
  0x10   : > { %s1188_s28 = scalar_lea.vmem %s1329_s0, %s986_s25  ;;  %s1288_s6 = scalar_lea.vmem %s1332_s3, %s987_s29 }
  0x11   : > { %v277_v3 = vld [vmem:[%s1188_s28] sm:$0xf]  ;;  %v279_v4 = vld [vmem:[%s1188_s28 + $0x8] sm:$0xf]  ;;  %v281_v5 = vld [vmem:[%s1188_s28 + $0x10] sm:$0xf]  ;;  %s1300_s11 = scalar_lea.vmem %s1333_s4, %s987_s29 }
  0x12   : > { %v299_v6 = vshrl.u32 %v277_v3, 16  ;;  %v302_v7 = vshll.u32 %v277_v3, 16  ;;  %v313_v8 = vshrl.u32 %v279_v4, 16  ;;  %v316_v9 = vshll.u32 %v279_v4, 16  ;;  %v283_v10 = vld [vmem:[%s1188_s28 + $0x18] sm:$0xf] }
  0x13   : > { %v955_v11 = vcombine.low %v277_v3, %v279_v4  ;;  %v964_v12 = vrot.slane %v277_v3, 9  ;;  %v965_v13 = vrot.slane %v279_v4, 9  ;;  %v327_v14 = vshrl.u32 %v281_v5, 16  ;;  %v278_v15 = vld [vmem:[%s1188_s28 + $0x4] sm:$0x1]  ;;  %v1005_v35 = vld [vmem:[%s1288_s6 + $0x8] sm:$0xff]  }
  0x14   : > { %v330_v16 = vshll.u32 %v281_v5, 16  ;;  %v341_v17 = vshrl.u32 %v283_v10, 16  ;;  %v344_v18 = vshll.u32 %v283_v10, 16  ;;  %v956_v19 = vcombine.low %v281_v5, %v283_v10  ;;  %v280_v20 = vld [vmem:[%s1188_s28 + $0xc] sm:$0x1]  ;;  %v990_v44 = vld [vmem:[%s1288_s6] sm:$0xff]  }
  0x15   : > { %1035 = vmatprep.mubr.msk.bf16.mxu0 %vm431_vm0, %v955_v11  ;;  %v966_v21 = vrot.slane %v281_v5, 9  ;;  %v967_v22 = vrot.slane %v283_v10, 9  ;;  %v301_v23 = vrot.slane %v299_v6, 4  ;;  %v304_v24 = vrot.slane %v302_v7, 5  ;;  %v282_v29 = vld [vmem:[%s1188_s28 + $0x14] sm:$0x1] }
  0x16   : > { %1036 = vmatmul.mubr.msk.bf16.vlgmr.msra.gmra.mrb[0].mxu0 %vm431_vm0, %v956_v19  ;;  %v308_v25 = vshll.u32 %v278_v15, 16  ;;  %v315_v26 = vrot.slane %v313_v8, 4  ;;  %v318_v27 = vrot.slane %v316_v9, 5  ;;  %v322_v28 = vshll.u32 %v280_v20, 16  ;;  %v284_v33 = vld [vmem:[%s1188_s28 + $0x1c] sm:$0x1] }
  0x17   : > { %v305_v30 = vor.u32 %v304_v24, %v301_v23  ;;  %v625_v31 = vrot.slane %v278_v15, 5  ;;  %v629_v32 = vrot.slane %v280_v20, 5  ;;  %v329_v34 = vrot.slane %v327_v14, 4  ;;  %1044 = vmatpush3.bf16.msra.mxu0 %v1099_v2  ;;  %v1216_v53 = vld [vmem:[%s1188_s28 + $0x20] sm:$0xf] }
  0x18   : > { %v310_v36 = vrot.slane %v308_v25, 5  ;;  %v319_v37 = vor.u32 %v318_v27, %v315_v26  ;;  %v324_v38 = vrot.slane %v322_v28, 5  ;;  %v332_v39 = vrot.slane %v330_v16, 5  ;;  %v286_v58 = vld [vmem:[%s1188_s28 + $0x24] sm:$0x1] }
  0x19   : > { %v306_v40 = vrot.slane %v305_v30, 4  ;;  %v336_v41 = vshll.u32 %v282_v29, 16  ;;  %v343_v42 = vrot.slane %v341_v17, 4  ;;  %v346_v43 = vrot.slane %v344_v18, 5  ;;  %v1228_v63 = vld [vmem:[%s1188_s28 + $0x28] sm:$0xf] }
  0x1a   : > { %v320_v45 = vrot.slane %v319_v37, 4  ;;  %v333_v46 = vor.u32 %v332_v39, %v329_v34  ;;  %v350_v47 = vshll.u32 %v284_v33, 16  ;;  %v633_v48 = vrot.slane %v282_v29, 5  ;;  %v288_v4 = vld [vmem:[%s1188_s28 + $0x2c] sm:$0x1] }
  0x1b   : > { %v311_v49 = vsel %vm1203_vm5, %v306_v40, %v310_v36  ;;  %v338_v50 = vrot.slane %v336_v41, 5  ;;  %v347_v51 = vor.u32 %v346_v43, %v343_v42  ;;  %v637_v52 = vrot.slane %v284_v33, 5  ;;  %v1237_v6 = vld [vmem:[%s1188_s28 + $0x30] sm:$0xf]  ;;  %v290_v11 = vld [vmem:[%s1188_s28 + $0x34] sm:$0x1] }
  0x1c   : > { %v325_v54 = vsel %vm1203_vm5, %v320_v45, %v324_v38  ;;  %v334_v55 = vrot.slane %v333_v46, 4  ;;  %v352_v56 = vrot.slane %v350_v47, 5  ;;  %v626_v57 = vsel %vm1209_vm6, %v964_v12, %v625_v31  ;;  %v291_v16 = vld [vmem:[%s1188_s28 + $0x38] sm:$0xf]  ;;  %v292_v23 = vld [vmem:[%s1188_s28 + $0x3c] sm:$0x1] }
  0x1d   : > { %v946_v59 = vcombine.low %v311_v49, %v325_v54  ;;  %v348_v60 = vrot.slane %v347_v51, 4  ;;  %v630_v61 = vsel %vm1209_vm6, %v965_v13, %v629_v32  ;;  %v634_v62 = vsel %vm1209_vm6, %v966_v21, %v633_v48 }
  0x1e   : > { %v339_v1 = vsel %vm1203_vm5, %v334_v55, %v338_v50  ;;  %v974_v2 = vcombine.low %v626_v57, %v630_v61  ;;  %v638_v3 = vsel %vm1209_vm6, %v967_v22, %v637_v52  ;;  %v355_v5 = vshrl.u32 %v1216_v53, 16 }
  0x1f   : > { %1025 = vmatprep.mubr.msk.bf16.mxu1 %vm431_vm0, %v946_v59  ;;  %v353_v7 = vsel %vm1203_vm5, %v348_v60, %v352_v56  ;;  %v975_v8 = vcombine.low %v634_v62, %v638_v3  ;;  %v358_v9 = vshll.u32 %v1216_v53, 16  ;;  %v364_v10 = vshll.u32 %v286_v58, 16 }
  0x20   : > { %v947_v12 = vcombine.low %v339_v1, %v353_v7  ;;  %1045 = vmatprep.mubr.msk.bf16.mxu0 %vm431_vm0, %v974_v2  ;;  %v357_v13 = vrot.slane %v355_v5, 4  ;;  %v369_v14 = vshrl.u32 %v1228_v63, 16  ;;  %v372_v15 = vshll.u32 %v1228_v63, 16  ;;  %v983_v7 = vld [vmem:[%s1331_s2] ss:$0 sm:$0xff] }
  0x21   : > { %v360_v17 = vrot.slane %v358_v9, 5  ;;  %v366_v18 = vrot.slane %v364_v10, 5  ;;  %v378_v19 = vshll.u32 %v288_v4, 16  ;;  %v383_v20 = vshrl.u32 %v1237_v6, 16 }
  0x22   : > { %1026 = vmatmul.mubr.msk.bf16.vlgmr.msra.gmra.mrb[0].mxu1 %vm431_vm0, %v947_v12  ;;  %1046 = vmatmul.mubr.msk.bf16.vlgmr.msra.gmra.mrb[0].mxu0 %vm431_vm0, %v975_v8  ;;  %v371_v21 = vrot.slane %v369_v14, 4  ;;  %v374_v22 = vrot.slane %v372_v15, 5  ;;  %v386_v24 = vshll.u32 %v1237_v6, 16  ;;  %v392_v25 = vshll.u32 %v290_v11, 16 }
  0x23   : > { %1054 = vmatpush3.bf16.msra.mxu1 %v1172_v0  ;;  %v361_v26 = vor.u32 %v360_v17, %v357_v13  ;;  %v380_v27 = vrot.slane %v378_v19, 5  ;;  %v385_v28 = vrot.slane %v383_v20, 4  ;;  %v397_v29 = vshrl.u32 %v291_v16, 16 }
  0x24   : > { %v375_v30 = vor.u32 %v374_v22, %v371_v21  ;;  %v388_v31 = vrot.slane %v386_v24, 5  ;;  %v394_v32 = vrot.slane %v392_v25, 5  ;;  %v400_v33 = vshll.u32 %v291_v16, 16 }
  0x25   : > { %v362_v34 = vrot.slane %v361_v26, 4  ;;  %v399_v36 = vrot.slane %v397_v29, 4  ;;  %v406_v37 = vshll.u32 %v292_v23, 16  ;;  %v968_v38 = vrot.slane %v1216_v53, 9 }
  0x26   : > { %v376_v39 = vrot.slane %v375_v30, 4  ;;  %v389_v40 = vor.u32 %v388_v31, %v385_v28  ;;  %v402_v41 = vrot.slane %v400_v33, 5  ;;  %v641_v42 = vrot.slane %v286_v58, 5 }
  0x27   : > { %v367_v0 = vsel %vm1203_vm5, %v362_v34, %v366_v18  ;;  %v408_v43 = vrot.slane %v406_v37, 5  ;;  %v969_v45 = vrot.slane %v1228_v63, 9  ;;  %v645_v46 = vrot.slane %v288_v4, 5 }
  0x28   : > { %v381_v47 = vsel %vm1203_vm5, %v376_v39, %v380_v27  ;;  %v390_v48 = vrot.slane %v389_v40, 4  ;;  %v403_v49 = vor.u32 %v402_v41, %v399_v36  ;;  %v642_v50 = vsel %vm1209_vm6, %v968_v38, %v641_v42  ;;  %v1007_v42 = vld [vmem:[%s1288_s6 + $0x18] sm:$0xff]  }
  0x29   : > { %v948_v51 = vcombine.low %v367_v0, %v381_v47  ;;  %v646_v52 = vsel %vm1209_vm6, %v969_v45, %v645_v46  ;;  %v970_v54 = vrot.slane %v1237_v6, 9  ;;  %v649_v55 = vrot.slane %v290_v11, 5  ;;  %v1006_v0 = vld [vmem:[%s1288_s6 + $0x10] sm:$0xff]  }
  0x2a   : > { %v395_v56 = vsel %vm1203_vm5, %v390_v48, %v394_v32  ;;  %v404_v57 = vrot.slane %v403_v49, 4  ;;  %v976_v58 = vcombine.low %v642_v50, %v646_v52  ;;  %v971_v59 = vrot.slane %v291_v16, 9 }
  0x2b   : > { %1029 = vmatprep.mubr.msk.bf16.mxu1 %vm431_vm0, %v948_v51  ;;  %v650_v60 = vsel %vm1209_vm6, %v970_v54, %v649_v55  ;;  %v653_v61 = vrot.slane %v292_v23, 5  ;;  %v957_v1 = vcombine.low %v1216_v53, %v1228_v63  ;;  %v958_v5 = vcombine.low %v1237_v6, %v291_v16 }
  0x2c   : > { %v409_v62 = vsel %vm1203_vm5, %v404_v57, %v408_v43  ;;  %1049 = vmatprep.mubr.msk.bf16.mxu0 %vm431_vm0, %v976_v58  ;;  %v995_v9 = vunpack.c.l.bf16 %v1005_v35  ;;  %v991_v13 = vunpack.c.l.bf16 %v990_v44  ;;  %v996_v18 = vunpack.c.h.bf16 %v1005_v35 }
  0x2d   : > { %v949_v2 = vcombine.low %v395_v56, %v409_v62  ;;  %v654_v3 = vsel %vm1209_vm6, %v971_v59, %v653_v61  ;;  %v992_v22 = vunpack.c.h.bf16 %v990_v44  ;;  %v1003_v46 = vunpack.c.l.bf16 %v1007_v42 }
  0x2e   : > { %v977_v4 = vcombine.low %v650_v60, %v654_v3  ;;  %v999_v49 = vunpack.c.l.bf16 %v1006_v0  ;;  %v1004_v54 = vunpack.c.h.bf16 %v1007_v42  ;;  %v1000_v58 = vunpack.c.h.bf16 %v1006_v0 }
  0x2f   : > { %1030 = vmatmul.mubr.msk.bf16.gmra.mrb[4].mxu1 %vm431_vm0, %v949_v2 }
  0x30   : > { %1050 = vmatmul.mubr.msk.bf16.gmra.mrb[4].mxu0 %vm431_vm0, %v977_v4  ;;  %1039 = vmatprep.mubr.msk.bf16.mxu1 %vm431_vm0, %v957_v1 }
  0x3b   : > { %1040 = vmatmul.mubr.msk.bf16.vlgmr.msra.gmra.mrb[4].mxu1 %vm431_vm0, %v958_v5 }
  0xf5   : > { %v1027_v53 = vpop.f32.mrb[0].mxu1  ;;  %v1047_v63 = vpop.f32.mrb[0].mxu0 }
  0xf6   : > { %v478_v6 = vpop.f32.mrb[1].mxu1  ;;  %v1055_v8 = vadd.f32 %v1047_v63, %v1027_v53  ;;  %v722_v10 = vpop.f32.mrb[1].mxu0 }
  0xf7   : > { %v1028_v11 = vpop.f32.mrb[2].mxu1  ;;  %v1056_v12 = vadd.f32 %v722_v10, %v478_v6  ;;  %v1048_v14 = vpop.f32.mrb[2].mxu0 }
  0xf8   : > { %v481_v15 = vpop.f32.mrb[3].mxu1  ;;  %v770_v16 = vadd.f32 %v1055_v8, %v983_v7  ;;  %v1057_v17 = vadd.f32 %v1048_v14, %v1028_v11  ;;  %v725_v19 = vpop.f32.mrb[3].mxu0 }
  0xf9   : > { %v768_v20 = vadd.f32 %v1056_v12, %v983_v7  ;;  %v1058_v21 = vadd.f32 %v725_v19, %v481_v15 }
  0xfa   : > { %v794_v23 = vadd.f32 %v995_v9, %v770_v16  ;;  %v771_v24 = vadd.f32 %v1057_v17, %v983_v7 }
  0xfb   : > { %v792_v25 = vadd.f32 %v991_v13, %v768_v20  ;;  %v769_v26 = vadd.f32 %v1058_v21, %v983_v7 }
  0xfc   : > { %v802_v27 = vmax.f32 %v794_v23, 0.0  ;;  %v795_v28 = vadd.f32 %v996_v18, %v771_v24 }
  0xfd   : > { %v800_v29 = vmax.f32 %v792_v25, 0.0  ;;  %v793_v30 = vadd.f32 %v992_v22, %v769_v26 }
  0xfe   : > { %v810_v31 = vpack.c.bf16 %v802_v27, %v802_v27  ;;  %v803_v32 = vmax.f32 %v795_v28, 0.0 }
  0xff   : > { %v808_v33 = vpack.c.bf16 %v800_v29, %v800_v29  ;;  %v801_v34 = vmax.f32 %v793_v30, 0.0 }
 0x100   : > { %819 = vst.msk [vmem:[%s1300_s11 + $0x8] sm:$0xf] %vm816_vm7, %v810_v31  ;;  %v811_v36 = vpack.c.bf16 %v803_v32, %v803_v32 }
 0x101   : > { %817 = vst.msk [vmem:[%s1300_s11] sm:$0xf] %vm816_vm7, %v808_v33  ;;  %v809_v37 = vpack.c.bf16 %v801_v34, %v801_v34 }
 0x102   : > { %820 = vst.msk [vmem:[%s1300_s11 + $0xc] sm:$0xf] %vm816_vm7, %v811_v36 }
 0x103   : > { %818 = vst.msk [vmem:[%s1300_s11 + $0x4] sm:$0xf] %vm816_vm7, %v809_v37  ;;  %v1051_v38 = vpop.f32.mrb[4].mxu0 }
 0x104   : > { %v738_v39 = vpop.f32.mrb[5].mxu0 }
 0x105   : > { %v1052_v40 = vpop.f32.mrb[6].mxu0 }
 0x106   : > { %v741_v41 = vpop.f32.mrb[7].mxu0 }
 0x10e   : > { %v1041_v43 = vpop.f32.mrb[4].mxu1 }
 0x10f   : > { %v1059_v45 = vadd.f32 %v1051_v38, %v1041_v43  ;;  %v597_v47 = vpop.f32.mrb[5].mxu1 }
 0x110   : > { %v1060_v48 = vadd.f32 %v738_v39, %v597_v47  ;;  %v1042_v50 = vpop.f32.mrb[6].mxu1 }
 0x111   : > { %v774_v51 = vadd.f32 %v1059_v45, %v983_v7  ;;  %v1061_v52 = vadd.f32 %v1052_v40, %v1042_v50  ;;  %v600_v55 = vpop.f32.mrb[7].mxu1 }
 0x112   : > { %v772_v56 = vadd.f32 %v1060_v48, %v983_v7  ;;  %v1062_v57 = vadd.f32 %v741_v41, %v600_v55 }
 0x113   : > { %v798_v59 = vadd.f32 %v1003_v46, %v774_v51  ;;  %v775_v60 = vadd.f32 %v1061_v52, %v983_v7 }
 0x114   : > { %v796_v61 = vadd.f32 %v999_v49, %v772_v56  ;;  %v773_v62 = vadd.f32 %v1062_v57, %v983_v7 }
 0x115   : > { %v806_v1 = vmax.f32 %v798_v59, 0.0  ;;  %v799_v2 = vadd.f32 %v1004_v54, %v775_v60 }
 0x116   : > { %v804_v3 = vmax.f32 %v796_v61, 0.0  ;;  %v797_v4 = vadd.f32 %v1000_v58, %v773_v62 }
 0x117   : > { %v814_v5 = vpack.c.bf16 %v806_v1, %v806_v1  ;;  %v807_v35 = vmax.f32 %v799_v2, 0.0 }
 0x118   : > { %v812_v44 = vpack.c.bf16 %v804_v3, %v804_v3  ;;  %v805_v53 = vmax.f32 %v797_v4, 0.0 }
 0x119   : > { %823 = vst.msk [vmem:[%s1300_s11 + $0x18] sm:$0xf] %vm816_vm7, %v814_v5  ;;  %v815_v63 = vpack.c.bf16 %v807_v35, %v807_v35 }
 0x11a   : > { %821 = vst.msk [vmem:[%s1300_s11 + $0x10] sm:$0xf] %vm816_vm7, %v812_v44  ;;  %v813_v6 = vpack.c.bf16 %v805_v53, %v805_v53 }
 0x11b   : > { %824 = vst.msk [vmem:[%s1300_s11 + $0x1c] sm:$0xf] %vm816_vm7, %v815_v63 }
 0x11c   : > { %822 = vst.msk [vmem:[%s1300_s11 + $0x14] sm:$0xf] %vm816_vm7, %v813_v6 }
 0x11d PF: > { %s14_s17 = sadd.s32 1, %s1124_s17   ;;  %s1338_s15 = smov %s1120_s16 }
 0x11e   : > { %p11_p5 = scmp.ge.s32.totalorder %s14_s17, 4   ;;  %s1339_s16 = smov %s1341_s18 }
 0x120   :  { %13 = sbr.rel (!%p11_p5) target bundleno = 2 (0x2), region = 71 }

// kernel: erfnet_forward.146
= control target key start
LH: loop header
LB: loop body
LE: loop exit
PB: predicated region body
PF: predicated region fallthrough
CT: control target
= control target key end

     0   :  { %s1019_s12 = smov 0   ;;  %s1021_s13 = smov 0   ;;  %s1184_s0 = inlined_call_operand.vmem [shape: bf16[2,8,10,16], index: 0, kind: input, shape index: {}]   ;;  %s1185_s1 = inlined_call_operand.vmem [shape: bf16[3,16,16], index: 1, kind: input, shape index: {}]   ;;  %s1186_s2 = inlined_call_operand.vmem [shape: f32[1,16], index: 2, kind: input, shape index: {}]   ;;  %s1187_s3 = inlined_call_operand.vmem [shape: bf16[2,8,8,16], index: 3, kind: output, shape index: {}]  }
   0x1   :  { %s1023_s14 = smov 0  }
   0x2 LB: > { %s25_s15 = sadd.s32 1, %s993_s13  ;;  %p832_p0 = scmp.ge.s32.totalorder %s997_s14, 1  ;;  %s997_s14 = sphi %s1023_s14, %s13_s14   ;;  %s993_s13 = sphi %s1021_s13, %s1193_s13   ;;  %s989_s12 = sphi %s1019_s12, %s1192_s12  }
   0x3   : > { %p27_p1 = scmp.ge.s32.totalorder %s25_s15, 2  ;;  %p159_p2 = scmp.lt.s32.totalorder %s997_s14, 3 }
   0x5   : > { %s1195_s15 = smov (%p27_p1, %s25_s15), 0  ;;  %p160_p3 = pnand %p832_p0, %p159_p2 }
   0x6   : > { %v1040_v0 = vld [vmem:[%s1185_s1] sm:$0xff] (!%p160_p3)   ;;  %p193_p4 = scmp.lt.s32.totalorder (!%p160_p3), %s989_s12, 1  ;;  %v971_v1 = vld [vmem:[%s1185_s1 + $0x8] sm:$0xff] (!%p160_p3)   ;;  %v972_v2 = vld [vmem:[%s1185_s1 + $0x10] sm:$0xff] (!%p160_p3)   ;;  %vm368_vm0 = vcmask (!%p160_p3), 130048   ;;  %vm557_vm3 = vcmask (!%p160_p3), 1042432  }
   0x7   : > { %163 = sbr.rel (%p160_p3) target bundleno = 283 (0x11b), region = 32  ;;  %906 = vmatprep.subr.bf16.mxu0 (!%p160_p3), %v1040_v0  ;;  %896 = vmatprep.subr.bf16.mxu1 (!%p160_p3), %v971_v1  ;;  %vm232_vm1 = vsmask.f32 (!%p160_p3), 3328  ;;  %vm233_vm2 = vsmask.f32 (!%p160_p3), 7440  ;;  %vm558_vm4 = vcmask (!%p160_p3), 1046532  }
   0x8   : > { %907 = vmatpush3.bf16.msra.mxu0 (!%p160_p3), %v1040_v0  ;;  %897 = vmatpush3.bf16.msra.mxu1 (!%p160_p3), %v971_v1  ;;  %vm1071_vm5 = vmor (!%p160_p3), %vm232_vm1, %vm233_vm2  ;;  %vm729_vm7 = vcmask (!%p160_p3), 125952  }
   0x9   : > { %916 = vmatprep.subr.bf16.mxu0 (!%p160_p3), %v972_v2  ;;  %926 = vmatprep.subr.bf16.mxu1 (!%p160_p3), %v1040_v0  ;;  %vm1077_vm6 = vmor (!%p160_p3), %vm557_vm3, %vm558_vm4 }
   0xe   : > { %s1197_s12 = smov (!%p193_p4, %s989_s12), 1 }
   0xf   : > { %s879_s22 = sshll.u32 %s1197_s12, 6  ;;  %s880_s28 = sshll.u32 %s1197_s12, 5 }
  0x10   : > { %s1056_s25 = scalar_lea.vmem %s1184_s0, %s879_s22  ;;  %s1157_s4 = scalar_lea.vmem %s1187_s3, %s880_s28 }
  0x11   : > { %v214_v3 = vld [vmem:[%s1056_s25] sm:$0xf]  ;;  %v216_v4 = vld [vmem:[%s1056_s25 + $0x8] sm:$0xf]  ;;  %v218_v5 = vld [vmem:[%s1056_s25 + $0x10] sm:$0xf] }
  0x12   : > { %v236_v6 = vshrl.u32 %v214_v3, 16  ;;  %v239_v7 = vshll.u32 %v214_v3, 16  ;;  %v250_v8 = vshrl.u32 %v216_v4, 16  ;;  %v253_v9 = vshll.u32 %v216_v4, 16  ;;  %v220_v10 = vld [vmem:[%s1056_s25 + $0x18] sm:$0xf] }
  0x13   : > { %v848_v11 = vcombine.low %v214_v3, %v216_v4  ;;  %v857_v12 = vrot.slane %v214_v3, 9  ;;  %v858_v13 = vrot.slane %v216_v4, 9  ;;  %v264_v14 = vshrl.u32 %v218_v5, 16  ;;  %v215_v15 = vld [vmem:[%s1056_s25 + $0x4] sm:$0x1] }
  0x14   : > { %v267_v16 = vshll.u32 %v218_v5, 16  ;;  %v278_v17 = vshrl.u32 %v220_v10, 16  ;;  %v281_v18 = vshll.u32 %v220_v10, 16  ;;  %v849_v19 = vcombine.low %v218_v5, %v220_v10  ;;  %v217_v20 = vld [vmem:[%s1056_s25 + $0xc] sm:$0x1] }
  0x15   : > { %908 = vmatprep.mubr.msk.bf16.mxu0 %vm368_vm0, %v848_v11  ;;  %v859_v21 = vrot.slane %v218_v5, 9  ;;  %v860_v22 = vrot.slane %v220_v10, 9  ;;  %v238_v23 = vrot.slane %v236_v6, 4  ;;  %v241_v24 = vrot.slane %v239_v7, 5  ;;  %v219_v29 = vld [vmem:[%s1056_s25 + $0x14] sm:$0x1] }
  0x16   : > { %909 = vmatmul.mubr.msk.bf16.vlgmr.msra.gmra.mrb[0].mxu0 %vm368_vm0, %v849_v19  ;;  %v245_v25 = vshll.u32 %v215_v15, 16  ;;  %v252_v26 = vrot.slane %v250_v8, 4  ;;  %v255_v27 = vrot.slane %v253_v9, 5  ;;  %v259_v28 = vshll.u32 %v217_v20, 16  ;;  %v221_v33 = vld [vmem:[%s1056_s25 + $0x1c] sm:$0x1] }
  0x17   : > { %v242_v30 = vor.u32 %v241_v24, %v238_v23  ;;  %v562_v31 = vrot.slane %v215_v15, 5  ;;  %v566_v32 = vrot.slane %v217_v20, 5  ;;  %v266_v34 = vrot.slane %v264_v14, 4  ;;  %917 = vmatpush3.bf16.msra.mxu0 %v972_v2  ;;  %v1084_v53 = vld [vmem:[%s1056_s25 + $0x20] sm:$0xf] }
  0x18   : > { %v247_v36 = vrot.slane %v245_v25, 5  ;;  %v256_v37 = vor.u32 %v255_v27, %v252_v26  ;;  %v261_v38 = vrot.slane %v259_v28, 5  ;;  %v269_v39 = vrot.slane %v267_v16, 5  ;;  %v223_v58 = vld [vmem:[%s1056_s25 + $0x24] sm:$0x1] }
  0x19   : > { %v243_v40 = vrot.slane %v242_v30, 4  ;;  %v273_v41 = vshll.u32 %v219_v29, 16  ;;  %v280_v42 = vrot.slane %v278_v17, 4  ;;  %v283_v43 = vrot.slane %v281_v18, 5  ;;  %v1096_v63 = vld [vmem:[%s1056_s25 + $0x28] sm:$0xf] }
  0x1a   : > { %v257_v45 = vrot.slane %v256_v37, 4  ;;  %v270_v46 = vor.u32 %v269_v39, %v266_v34  ;;  %v287_v47 = vshll.u32 %v221_v33, 16  ;;  %v570_v48 = vrot.slane %v219_v29, 5  ;;  %v225_v4 = vld [vmem:[%s1056_s25 + $0x2c] sm:$0x1] }
  0x1b   : > { %v248_v49 = vsel %vm1071_vm5, %v243_v40, %v247_v36  ;;  %v275_v50 = vrot.slane %v273_v41, 5  ;;  %v284_v51 = vor.u32 %v283_v43, %v280_v42  ;;  %v574_v52 = vrot.slane %v221_v33, 5  ;;  %v1105_v6 = vld [vmem:[%s1056_s25 + $0x30] sm:$0xf]  ;;  %v227_v11 = vld [vmem:[%s1056_s25 + $0x34] sm:$0x1] }
  0x1c   : > { %v262_v54 = vsel %vm1071_vm5, %v257_v45, %v261_v38  ;;  %v271_v55 = vrot.slane %v270_v46, 4  ;;  %v289_v56 = vrot.slane %v287_v47, 5  ;;  %v563_v57 = vsel %vm1077_vm6, %v857_v12, %v562_v31  ;;  %v228_v16 = vld [vmem:[%s1056_s25 + $0x38] sm:$0xf]  ;;  %v229_v23 = vld [vmem:[%s1056_s25 + $0x3c] sm:$0x1] }
  0x1d   : > { %v839_v59 = vcombine.low %v248_v49, %v262_v54  ;;  %v285_v60 = vrot.slane %v284_v51, 4  ;;  %v567_v61 = vsel %vm1077_vm6, %v858_v13, %v566_v32  ;;  %v571_v62 = vsel %vm1077_vm6, %v859_v21, %v570_v48 }
  0x1e   : > { %v276_v1 = vsel %vm1071_vm5, %v271_v55, %v275_v50  ;;  %v867_v2 = vcombine.low %v563_v57, %v567_v61  ;;  %v575_v3 = vsel %vm1077_vm6, %v860_v22, %v574_v52  ;;  %v292_v5 = vshrl.u32 %v1084_v53, 16 }
  0x1f   : > { %898 = vmatprep.mubr.msk.bf16.mxu1 %vm368_vm0, %v839_v59  ;;  %v290_v7 = vsel %vm1071_vm5, %v285_v60, %v289_v56  ;;  %v868_v8 = vcombine.low %v571_v62, %v575_v3  ;;  %v295_v9 = vshll.u32 %v1084_v53, 16  ;;  %v301_v10 = vshll.u32 %v223_v58, 16 }
  0x20   : > { %v840_v12 = vcombine.low %v276_v1, %v290_v7  ;;  %918 = vmatprep.mubr.msk.bf16.mxu0 %vm368_vm0, %v867_v2  ;;  %v294_v13 = vrot.slane %v292_v5, 4  ;;  %v306_v14 = vshrl.u32 %v1096_v63, 16  ;;  %v309_v15 = vshll.u32 %v1096_v63, 16 }
  0x21   : > { %v297_v17 = vrot.slane %v295_v9, 5  ;;  %v303_v18 = vrot.slane %v301_v10, 5  ;;  %v315_v19 = vshll.u32 %v225_v4, 16  ;;  %v320_v20 = vshrl.u32 %v1105_v6, 16 }
  0x22   : > { %899 = vmatmul.mubr.msk.bf16.vlgmr.msra.gmra.mrb[0].mxu1 %vm368_vm0, %v840_v12  ;;  %919 = vmatmul.mubr.msk.bf16.vlgmr.msra.gmra.mrb[0].mxu0 %vm368_vm0, %v868_v8  ;;  %v308_v21 = vrot.slane %v306_v14, 4  ;;  %v311_v22 = vrot.slane %v309_v15, 5  ;;  %v323_v24 = vshll.u32 %v1105_v6, 16  ;;  %v329_v25 = vshll.u32 %v227_v11, 16 }
  0x23   : > { %927 = vmatpush3.bf16.msra.mxu1 %v1040_v0  ;;  %v298_v26 = vor.u32 %v297_v17, %v294_v13  ;;  %v317_v27 = vrot.slane %v315_v19, 5  ;;  %v322_v28 = vrot.slane %v320_v20, 4  ;;  %v334_v29 = vshrl.u32 %v228_v16, 16 }
  0x24   : > { %v312_v30 = vor.u32 %v311_v22, %v308_v21  ;;  %v325_v31 = vrot.slane %v323_v24, 5  ;;  %v331_v32 = vrot.slane %v329_v25, 5  ;;  %v337_v33 = vshll.u32 %v228_v16, 16 }
  0x25   : > { %v299_v34 = vrot.slane %v298_v26, 4  ;;  %v336_v36 = vrot.slane %v334_v29, 4  ;;  %v343_v37 = vshll.u32 %v229_v23, 16  ;;  %v861_v38 = vrot.slane %v1084_v53, 9 }
  0x26   : > { %v313_v39 = vrot.slane %v312_v30, 4  ;;  %v326_v40 = vor.u32 %v325_v31, %v322_v28  ;;  %v339_v41 = vrot.slane %v337_v33, 5  ;;  %v578_v42 = vrot.slane %v223_v58, 5 }
  0x27   : > { %v304_v0 = vsel %vm1071_vm5, %v299_v34, %v303_v18  ;;  %v345_v43 = vrot.slane %v343_v37, 5  ;;  %v862_v45 = vrot.slane %v1096_v63, 9  ;;  %v582_v46 = vrot.slane %v225_v4, 5 }
  0x28   : > { %v318_v47 = vsel %vm1071_vm5, %v313_v39, %v317_v27  ;;  %v327_v48 = vrot.slane %v326_v40, 4  ;;  %v340_v49 = vor.u32 %v339_v41, %v336_v36  ;;  %v579_v50 = vsel %vm1077_vm6, %v861_v38, %v578_v42 }
  0x29   : > { %v841_v51 = vcombine.low %v304_v0, %v318_v47  ;;  %v583_v52 = vsel %vm1077_vm6, %v862_v45, %v582_v46  ;;  %v863_v54 = vrot.slane %v1105_v6, 9  ;;  %v586_v55 = vrot.slane %v227_v11, 5 }
  0x2a   : > { %v332_v56 = vsel %vm1071_vm5, %v327_v48, %v331_v32  ;;  %v341_v57 = vrot.slane %v340_v49, 4  ;;  %v869_v58 = vcombine.low %v579_v50, %v583_v52  ;;  %v864_v59 = vrot.slane %v228_v16, 9 }
  0x2b   : > { %902 = vmatprep.mubr.msk.bf16.mxu1 %vm368_vm0, %v841_v51  ;;  %v587_v60 = vsel %vm1077_vm6, %v863_v54, %v586_v55  ;;  %v590_v61 = vrot.slane %v229_v23, 5  ;;  %v850_v1 = vcombine.low %v1084_v53, %v1096_v63  ;;  %v851_v35 = vcombine.low %v1105_v6, %v228_v16  ;;  %v876_v53 = vld [vmem:[%s1186_s2] ss:$0 sm:$0xff] }
  0x2c   : > { %v346_v62 = vsel %vm1071_vm5, %v341_v57, %v345_v43  ;;  %922 = vmatprep.mubr.msk.bf16.mxu0 %vm368_vm0, %v869_v58 }
  0x2d   : > { %v842_v2 = vcombine.low %v332_v56, %v346_v62  ;;  %v591_v3 = vsel %vm1077_vm6, %v864_v59, %v590_v61 }
  0x2e   : > { %v870_v4 = vcombine.low %v587_v60, %v591_v3 }
  0x2f   : > { %903 = vmatmul.mubr.msk.bf16.gmra.mrb[4].mxu1 %vm368_vm0, %v842_v2 }
  0x30   : > { %923 = vmatmul.mubr.msk.bf16.gmra.mrb[4].mxu0 %vm368_vm0, %v870_v4  ;;  %912 = vmatprep.mubr.msk.bf16.mxu1 %vm368_vm0, %v850_v1 }
  0x3b   : > { %913 = vmatmul.mubr.msk.bf16.vlgmr.msra.gmra.mrb[4].mxu1 %vm368_vm0, %v851_v35 }
  0xf5   : > { %v900_v5 = vpop.f32.mrb[0].mxu1  ;;  %v920_v7 = vpop.f32.mrb[0].mxu0 }
  0xf6   : > { %v415_v44 = vpop.f32.mrb[1].mxu1  ;;  %v928_v63 = vadd.f32 %v920_v7, %v900_v5  ;;  %v659_v8 = vpop.f32.mrb[1].mxu0 }
  0xf7   : > { %v901_v9 = vpop.f32.mrb[2].mxu1  ;;  %v929_v10 = vadd.f32 %v659_v8, %v415_v44  ;;  %v921_v11 = vpop.f32.mrb[2].mxu0 }
  0xf8   : > { %v418_v12 = vpop.f32.mrb[3].mxu1  ;;  %v707_v13 = vadd.f32 %v928_v63, %v876_v53  ;;  %v930_v14 = vadd.f32 %v921_v11, %v901_v9  ;;  %v662_v15 = vpop.f32.mrb[3].mxu0 }
  0xf9   : > { %v705_v6 = vadd.f32 %v929_v10, %v876_v53  ;;  %v931_v16 = vadd.f32 %v662_v15, %v418_v12 }
  0xfa   : > { %v715_v17 = vmax.f32 %v707_v13, 0.0  ;;  %v708_v18 = vadd.f32 %v930_v14, %v876_v53 }
  0xfb   : > { %v713_v19 = vmax.f32 %v705_v6, 0.0  ;;  %v706_v20 = vadd.f32 %v931_v16, %v876_v53 }
  0xfc   : > { %v723_v21 = vpack.c.bf16 %v715_v17, %v715_v17  ;;  %v716_v22 = vmax.f32 %v708_v18, 0.0 }
  0xfd   : > { %v721_v23 = vpack.c.bf16 %v713_v19, %v713_v19  ;;  %v714_v24 = vmax.f32 %v706_v20, 0.0 }
  0xfe   : > { %732 = vst.msk [vmem:[%s1157_s4 + $0x8] sm:$0xf] %vm729_vm7, %v723_v21  ;;  %v724_v25 = vpack.c.bf16 %v716_v22, %v716_v22 }
  0xff   : > { %730 = vst.msk [vmem:[%s1157_s4] sm:$0xf] %vm729_vm7, %v721_v23  ;;  %v722_v26 = vpack.c.bf16 %v714_v24, %v714_v24 }
 0x100   : > { %733 = vst.msk [vmem:[%s1157_s4 + $0xc] sm:$0xf] %vm729_vm7, %v724_v25 }
 0x101   : > { %731 = vst.msk [vmem:[%s1157_s4 + $0x4] sm:$0xf] %vm729_vm7, %v722_v26 }
 0x103   : > { %v924_v27 = vpop.f32.mrb[4].mxu0 }
 0x104   : > { %v675_v28 = vpop.f32.mrb[5].mxu0 }
 0x105   : > { %v925_v29 = vpop.f32.mrb[6].mxu0 }
 0x106   : > { %v678_v30 = vpop.f32.mrb[7].mxu0 }
 0x10e   : > { %v914_v31 = vpop.f32.mrb[4].mxu1 }
 0x10f   : > { %v932_v32 = vadd.f32 %v924_v27, %v914_v31  ;;  %v534_v33 = vpop.f32.mrb[5].mxu1 }
 0x110   : > { %v933_v34 = vadd.f32 %v675_v28, %v534_v33  ;;  %v915_v36 = vpop.f32.mrb[6].mxu1 }
 0x111   : > { %v711_v37 = vadd.f32 %v932_v32, %v876_v53  ;;  %v934_v38 = vadd.f32 %v925_v29, %v915_v36  ;;  %v537_v39 = vpop.f32.mrb[7].mxu1 }
 0x112   : > { %v709_v40 = vadd.f32 %v933_v34, %v876_v53  ;;  %v935_v41 = vadd.f32 %v678_v30, %v537_v39 }
 0x113   : > { %v719_v42 = vmax.f32 %v711_v37, 0.0  ;;  %v712_v0 = vadd.f32 %v934_v38, %v876_v53 }
 0x114   : > { %v717_v43 = vmax.f32 %v709_v40, 0.0  ;;  %v710_v45 = vadd.f32 %v935_v41, %v876_v53 }
 0x115   : > { %v727_v46 = vpack.c.bf16 %v719_v42, %v719_v42  ;;  %v720_v47 = vmax.f32 %v712_v0, 0.0 }
 0x116   : > { %v725_v48 = vpack.c.bf16 %v717_v43, %v717_v43  ;;  %v718_v49 = vmax.f32 %v710_v45, 0.0 }
 0x117   : > { %736 = vst.msk [vmem:[%s1157_s4 + $0x18] sm:$0xf] %vm729_vm7, %v727_v46  ;;  %v728_v50 = vpack.c.bf16 %v720_v47, %v720_v47 }
 0x118   : > { %734 = vst.msk [vmem:[%s1157_s4 + $0x10] sm:$0xf] %vm729_vm7, %v725_v48  ;;  %v726_v51 = vpack.c.bf16 %v718_v49, %v718_v49 }
 0x119   : > { %737 = vst.msk [vmem:[%s1157_s4 + $0x1c] sm:$0xf] %vm729_vm7, %v728_v50 }
 0x11a   : > { %735 = vst.msk [vmem:[%s1157_s4 + $0x14] sm:$0xf] %vm729_vm7, %v726_v51 }
 0x11b PF: > { %s13_s14 = sadd.s32 1, %s997_s14   ;;  %s1192_s12 = smov %s993_s13 }
 0x11c   : > { %p10_p5 = scmp.ge.s32.totalorder %s13_s14, 4   ;;  %s1193_s13 = smov %s1195_s15 }
 0x11e   :  { %12 = sbr.rel (!%p10_p5) target bundleno = 2 (0x2), region = 64 }

// kernel: erfnet_forward.145
= control target key start
LH: loop header
LB: loop body
LE: loop exit
PB: predicated region body
PF: predicated region fallthrough
CT: control target
= control target key end

     0   :  { %s806_s12 = smov 0   ;;  %s808_s13 = smov 0   ;;  %s897_s0 = inlined_call_operand.vmem [shape: bf16[2,10,8,16], index: 0, kind: input, shape index: {}]   ;;  %s898_s1 = inlined_call_operand.vmem [shape: bf16[3,16,16], index: 1, kind: input, shape index: {}]   ;;  %s899_s2 = inlined_call_operand.vmem [shape: f32[1,16], index: 2, kind: input, shape index: {}]   ;;  %s900_s3 = inlined_call_operand.vmem [shape: bf16[2,8,8,16], index: 3, kind: output, shape index: {}]  }
   0x1   :  { %s810_s14 = smov 0  }
   0x2 LB: > { %s25_s15 = sadd.s32 1, %s780_s13  ;;  %p626_p0 = scmp.ge.s32.totalorder %s784_s14, 1  ;;  %s784_s14 = sphi %s810_s14, %s13_s14   ;;  %s780_s13 = sphi %s808_s13, %s902_s13   ;;  %s776_s12 = sphi %s806_s12, %s901_s12  }
   0x3   : > { %p27_p1 = scmp.ge.s32.totalorder %s25_s15, 2  ;;  %p156_p2 = scmp.lt.s32.totalorder %s784_s14, 3 }
   0x5   : > { %s904_s15 = smov (%p27_p1, %s25_s15), 0  ;;  %p157_p3 = pnand %p626_p0, %p156_p2 }
   0x6   : > { %v750_v0 = vld [vmem:[%s898_s1 + $0x8] sm:$0xff] (!%p157_p3)   ;;  %p186_p4 = scmp.lt.s32.totalorder (!%p157_p3), %s776_s12, 1  ;;  %v751_v1 = vld [vmem:[%s898_s1] sm:$0xff] (!%p157_p3)   ;;  %v757_v2 = vld [vmem:[%s898_s1 + $0x10] sm:$0xff] (!%p157_p3)   ;;  %vm244_vm0 = vcmask (!%p157_p3), 130048   ;;  %vm530_vm1 = vcmask (!%p157_p3), 125952  }
   0x7   : > { %160 = sbr.rel (%p157_p3) target bundleno = 267 (0x10b), region = 32  ;;  %677 = vmatprep.subr.bf16.mxu1 (!%p157_p3), %v750_v0  ;;  %687 = vmatprep.subr.bf16.mxu0 (!%p157_p3), %v751_v1  ;;  %v658_v27 = vld [vmem:[%s899_s2] ss:$0 sm:$0xff] (!%p157_p3) }
   0x8   : > { %678 = vmatpush3.bf16.msra.mxu1 (!%p157_p3), %v750_v0  ;;  %688 = vmatpush3.bf16.msra.mxu0 (!%p157_p3), %v751_v1 }
   0x9   : > { %707 = vmatprep.subr.bf16.mxu1 (!%p157_p3), %v751_v1  ;;  %697 = vmatprep.subr.bf16.mxu0 (!%p157_p3), %v757_v2 }
   0xe   : > { %s906_s12 = smov (!%p186_p4, %s776_s12), 1 }
   0xf   : > { %s725_s22 = smul.u32 40, %s906_s12  ;;  %s661_s28 = sshll.u32 %s906_s12, 5 }
  0x10   : > { %s870_s4 = scalar_lea.vmem %s900_s3, %s661_s28 }
  0x11   : > { %s839_s25 = scalar_lea.vmem %s897_s0, %s725_s22 }
  0x12   : > { %v204_v3 = vld [vmem:[%s839_s25 + $0x4] sm:$0xf]  ;;  %v205_v4 = vld [vmem:[%s839_s25 + $0x8] sm:$0xf]  ;;  %v206_v5 = vld [vmem:[%s839_s25 + $0xc] sm:$0xf] }
  0x13   : > { %v207_v6 = vld [vmem:[%s839_s25 + $0x10] sm:$0xf]  ;;  %v208_v7 = vld [vmem:[%s839_s25 + $0x14] sm:$0xf]  ;;  %v632_v8 = vcombine.low %v204_v3, %v205_v4  ;;  %v642_v9 = vcombine.low %v205_v4, %v206_v5  ;;  %v203_v10 = vld [vmem:[%s839_s25] sm:$0xf] }
  0x14   : > { %v633_v11 = vcombine.low %v206_v5, %v207_v6  ;;  %v641_v12 = vcombine.low %v203_v10, %v204_v3  ;;  %v209_v13 = vld [vmem:[%s839_s25 + $0x18] sm:$0xf]  ;;  %v210_v15 = vld [vmem:[%s839_s25 + $0x1c] sm:$0xf]  ;;  %v211_v16 = vld [vmem:[%s839_s25 + $0x20] sm:$0xf]  ;;  %v643_v18 = vcombine.low %v207_v6, %v208_v7 }
  0x15   : > { %679 = vmatprep.mubr.msk.bf16.mxu1 %vm244_vm0, %v632_v8  ;;  %v634_v14 = vcombine.low %v208_v7, %v209_v13  ;;  %v635_v17 = vcombine.low %v210_v15, %v211_v16  ;;  %v644_v19 = vcombine.low %v209_v13, %v210_v15  ;;  %v212_v20 = vld [vmem:[%s839_s25 + $0x24] sm:$0xf] }
  0x16   : > { %689 = vmatprep.mubr.msk.bf16.mxu0 %vm244_vm0, %v641_v12  ;;  %680 = vmatmul.mubr.msk.bf16.vlgmr.msra.gmra.mrb[0].mxu1 %vm244_vm0, %v633_v11  ;;  %v652_v21 = vcombine.low %v211_v16, %v212_v20 }
  0x17   : > { %708 = vmatpush3.bf16.msra.mxu1 %v751_v1  ;;  %690 = vmatmul.mubr.msk.bf16.vlgmr.msra.gmra.mrb[0].mxu0 %vm244_vm0, %v642_v9 }
  0x18   : > { %698 = vmatpush3.bf16.msra.mxu0 %v757_v2  ;;  %683 = vmatprep.mubr.msk.bf16.mxu1 %vm244_vm0, %v634_v14 }
  0x19   : > { %699 = vmatprep.mubr.msk.bf16.mxu0 %vm244_vm0, %v642_v9 }
  0x1e   : > { %684 = vmatmul.mubr.msk.bf16.gmra.mrb[4].mxu1 %vm244_vm0, %v635_v17 }
  0x1f   : > { %693 = vmatprep.mubr.msk.bf16.mxu1 %vm244_vm0, %v643_v18 }
  0x23   : > { %700 = vmatmul.mubr.msk.bf16.vlgmr.msra.gmra.mrb[0].mxu0 %vm244_vm0, %v643_v18 }
  0x24   : > { %703 = vmatprep.mubr.msk.bf16.mxu0 %vm244_vm0, %v644_v19 }
  0x2a   : > { %694 = vmatmul.mubr.msk.bf16.vlgmr.msra.gmra.mrb[4].mxu1 %vm244_vm0, %v644_v19 }
  0x2b   : > { %704 = vmatmul.mubr.msk.bf16.gmra.mrb[4].mxu0 %vm244_vm0, %v652_v21 }
  0xe9   : > { %v681_v22 = vpop.f32.mrb[0].mxu1 }
  0xea   : > { %v291_v23 = vpop.f32.mrb[1].mxu1 }
  0xeb   : > { %v682_v24 = vpop.f32.mrb[2].mxu1 }
  0xec   : > { %v294_v25 = vpop.f32.mrb[3].mxu1 }
  0xf6   : > { %v701_v26 = vpop.f32.mrb[0].mxu0 }
  0xf7   : > { %v709_v28 = vadd.f32 %v701_v26, %v681_v22  ;;  %v460_v29 = vpop.f32.mrb[1].mxu0 }
  0xf8   : > { %v710_v30 = vadd.f32 %v460_v29, %v291_v23  ;;  %v702_v31 = vpop.f32.mrb[2].mxu0 }
  0xf9   : > { %v508_v32 = vadd.f32 %v709_v28, %v658_v27  ;;  %v711_v33 = vadd.f32 %v702_v31, %v682_v24  ;;  %v463_v34 = vpop.f32.mrb[3].mxu0 }
  0xfa   : > { %v506_v35 = vadd.f32 %v710_v30, %v658_v27  ;;  %v712_v36 = vadd.f32 %v463_v34, %v294_v25 }
  0xfb   : > { %v516_v37 = vmax.f32 %v508_v32, 0.0  ;;  %v509_v38 = vadd.f32 %v711_v33, %v658_v27 }
  0xfc   : > { %v514_v39 = vmax.f32 %v506_v35, 0.0  ;;  %v507_v40 = vadd.f32 %v712_v36, %v658_v27 }
  0xfd   : > { %v524_v41 = vpack.c.bf16 %v516_v37, %v516_v37  ;;  %v517_v42 = vmax.f32 %v509_v38, 0.0  ;;  %v695_v43 = vpop.f32.mrb[4].mxu1 }
  0xfe   : > { %v522_v44 = vpack.c.bf16 %v514_v39, %v514_v39  ;;  %v515_v45 = vmax.f32 %v507_v40, 0.0  ;;  %v705_v46 = vpop.f32.mrb[4].mxu0  ;;  %v396_v47 = vpop.f32.mrb[5].mxu1 }
  0xff   : > { %533 = vst.msk [vmem:[%s870_s4 + $0x8] sm:$0xf] %vm530_vm1, %v524_v41  ;;  %v525_v48 = vpack.c.bf16 %v517_v42, %v517_v42  ;;  %v713_v49 = vadd.f32 %v705_v46, %v695_v43  ;;  %v476_v50 = vpop.f32.mrb[5].mxu0  ;;  %v696_v51 = vpop.f32.mrb[6].mxu1 }
 0x100   : > { %531 = vst.msk [vmem:[%s870_s4] sm:$0xf] %vm530_vm1, %v522_v44  ;;  %v523_v52 = vpack.c.bf16 %v515_v45, %v515_v45  ;;  %v714_v53 = vadd.f32 %v476_v50, %v396_v47  ;;  %v706_v54 = vpop.f32.mrb[6].mxu0  ;;  %v399_v55 = vpop.f32.mrb[7].mxu1 }
 0x101   : > { %534 = vst.msk [vmem:[%s870_s4 + $0xc] sm:$0xf] %vm530_vm1, %v525_v48  ;;  %v512_v56 = vadd.f32 %v713_v49, %v658_v27  ;;  %v715_v57 = vadd.f32 %v706_v54, %v696_v51  ;;  %v479_v58 = vpop.f32.mrb[7].mxu0 }
 0x102   : > { %532 = vst.msk [vmem:[%s870_s4 + $0x4] sm:$0xf] %vm530_vm1, %v523_v52  ;;  %v510_v59 = vadd.f32 %v714_v53, %v658_v27  ;;  %v716_v60 = vadd.f32 %v479_v58, %v399_v55 }
 0x103   : > { %v520_v61 = vmax.f32 %v512_v56, 0.0  ;;  %v513_v62 = vadd.f32 %v715_v57, %v658_v27 }
 0x104   : > { %v518_v63 = vmax.f32 %v510_v59, 0.0  ;;  %v511_v0 = vadd.f32 %v716_v60, %v658_v27 }
 0x105   : > { %v528_v1 = vpack.c.bf16 %v520_v61, %v520_v61  ;;  %v521_v2 = vmax.f32 %v513_v62, 0.0 }
 0x106   : > { %v526_v3 = vpack.c.bf16 %v518_v63, %v518_v63  ;;  %v519_v4 = vmax.f32 %v511_v0, 0.0 }
 0x107   : > { %537 = vst.msk [vmem:[%s870_s4 + $0x18] sm:$0xf] %vm530_vm1, %v528_v1  ;;  %v529_v5 = vpack.c.bf16 %v521_v2, %v521_v2 }
 0x108   : > { %535 = vst.msk [vmem:[%s870_s4 + $0x10] sm:$0xf] %vm530_vm1, %v526_v3  ;;  %v527_v6 = vpack.c.bf16 %v519_v4, %v519_v4 }
 0x109   : > { %538 = vst.msk [vmem:[%s870_s4 + $0x1c] sm:$0xf] %vm530_vm1, %v529_v5 }
 0x10a   : > { %536 = vst.msk [vmem:[%s870_s4 + $0x14] sm:$0xf] %vm530_vm1, %v527_v6 }
 0x10b PF: > { %s13_s14 = sadd.s32 1, %s784_s14   ;;  %s901_s12 = smov %s780_s13 }
 0x10c   : > { %p10_p5 = scmp.ge.s32.totalorder %s13_s14, 4   ;;  %s902_s13 = smov %s904_s15 }
 0x10e   :  { %12 = sbr.rel (!%p10_p5) target bundleno = 2 (0x2), region = 64 }

</bundles_post_ra>
